<compile_context>
chip_gen: v7x
topology: tpu7x:2x2x1
jax: 0.10.0
libtpu: 0.0.40
codegen_flags: <defaults>
</compile_context>

<pallas_src>
import functools

import jax
import jax.numpy as jnp
from jax import lax
from jax.experimental import pallas as pl
from jax.experimental.pallas import tpu as pltpu


_DILATIONS = (1, 2, 4, 8, 16, 32)   # conv1 .. conv6
_C = 64                             # hidden channel width


def _kept_taps(d, extent):
    """Kernel taps (0,1,2) whose offset (k-1)*d can ever hit a real pixel."""
    return tuple(k for k in range(3) if abs(k - 1) * d < extent)


# ----------------------------------------------------------------------------
# Fused Pallas kernel: conv1..conv6 (+ReLU) + 1x1 conv_out, all in VMEM.
# ----------------------------------------------------------------------------
def _fused_kernel(x_ref, w_hbm, b_ref, wout_ref, bout_ref, o_ref,
                  buf0, buf1, wbuf, sem, *, H, W, PH, PW, dilations, kept):
    # x_ref   : (H, W, Cb)           input, batch folded into channels (VMEM)
    # w_hbm   : (L, 9, Cb, Cb)       block-diag per-tap weights, left in HBM
    # b_ref   : (L, 1, Cb)           per-layer bias (batch-duplicated)
    # wout_ref: (B, Cb)              packed 1x1 output conv weight
    # bout_ref: (1, 1)               1x1 output conv bias
    # o_ref   : (B, H*W)             final single-channel output (lane dense)
    # buf0/1  : (Hp, Wp, Cb)         ping-pong activation buffers (zero halo)
    # wbuf    : (2, 9, Cb, Cb)       double-buffered per-layer weight slab
    # sem     : DMA semaphores (2,)
    Cb = x_ref.shape[-1]
    M = H * W
    L = len(dilations)
    Hp = H + 2 * PH
    Wp = W + 2 * PW
    bufs = (buf0, buf1)

    multi = tuple(len(kh) * len(kw) > 1 for kh, kw in kept)
    need_store = tuple(multi[li + 1] if li + 1 < L else False
                       for li in range(L))

    def tap_range(li):
        kh_k, kw_k = kept[li]
        idx = [kh * 3 + kw for kh in kh_k for kw in kw_k]
        return min(idx), max(idx) + 1

    def w_copy(li, slot):
        lo, hi = tap_range(li)
        return pltpu.make_async_copy(
            w_hbm.at[li, lo:hi], wbuf.at[slot, 0:hi - lo], sem.at[slot])

    # Kick off layer-0 weight prefetch before any vector work so the DMA
    # overlaps the halo zeroing + input placement below.
    w_copy(0, 0).start()

    # Zero ONLY the halo strips (interiors are always fully overwritten; the
    # halo is never written by any later code path).
    if any(multi):
        for buf in bufs:
            if PH:
                buf[0:PH, :, :] = jnp.zeros((PH, Wp, Cb), jnp.float32)
                buf[PH + H:Hp, :, :] = jnp.zeros((PH, Wp, Cb), jnp.float32)
            if PW:
                buf[PH:PH + H, 0:PW, :] = jnp.zeros((H, PW, Cb), jnp.float32)
                buf[PH:PH + H, PW + W:Wp, :] = jnp.zeros((H, PW, Cb),
                                                         jnp.float32)

    # Place the input: in the halo buffer if layer 0 is multi-tap, otherwise
    # keep it as a register value (M, Cb).
    cur_buf = None
    cur_val = None
    if multi[0]:
        buf0[PH:PH + H, PW:PW + W, :] = x_ref[...]
        cur_buf = 0
    else:
        cur_val = x_ref[...].reshape(M, Cb)

    for li, d in enumerate(dilations):
        slot = li % 2
        w_copy(li, slot).wait()
        if li + 1 < L:                       # prefetch next layer's weights
            w_copy(li + 1, 1 - slot).start()

        kh_k, kw_k = kept[li]
        lo, _ = tap_range(li)
        acc = None
        for kh in kh_k:
            for kw in kw_k:
                if multi[li]:
                    oh = PH + (kh - 1) * d
                    ow = PW + (kw - 1) * d
                    p = bufs[cur_buf][oh:oh + H, ow:ow + W, :].reshape(M, Cb)
                else:
                    p = (cur_val if cur_val is not None else
                         bufs[cur_buf][PH:PH + H, PW:PW + W, :].reshape(M, Cb))
                term = jnp.dot(p, wbuf[slot, kh * 3 + kw - lo],
                               preferred_element_type=jnp.float32)
                acc = term if acc is None else acc + term
        acc = jnp.maximum(acc + b_ref[li], 0.0)              # bias + ReLU

        if need_store[li]:
            # Next layer needs spatial neighbours -> store into the other
            # halo buffer (interior only; halo stays zero).
            dst = (1 - cur_buf) if cur_buf is not None else 0
            bufs[dst][PH:PH + H, PW:PW + W, :] = acc.reshape(H, W, Cb)
            cur_buf, cur_val = dst, None
        else:
            # Remaining consumers only use the center tap -> keep in regs.
            cur_buf, cur_val = None, acc

    # Fused 1x1 output conv straight off the last activation value; result is
    # (B, H*W) -- last dim a multiple of 128 -> unmasked lane-dense stores.
    x_fin = (cur_val if cur_val is not None else
             bufs[cur_buf][PH:PH + H, PW:PW + W, :].reshape(M, Cb))
    y = lax.dot_general(wout_ref[...], x_fin,
                        dimension_numbers=(((1,), (1,)), ((), ())),
                        preferred_element_type=jnp.float32)   # (B, M)
    o_ref[...] = (y + bout_ref[...]).astype(o_ref.dtype)


# ----------------------------------------------------------------------------
# Wrapper: NCHW in / NCHW out, one pallas_call for the whole network.
# ----------------------------------------------------------------------------
@jax.jit
def global_dilated_cnn_forward(x_nchw, params):
    """x_nchw: (B, 2, H, W) float32 -> (B, 1, H, W) float32."""
    B, cin, H, W = x_nchw.shape
    C = _C
    Cb = B * C                      # batch folded into the lane (channel) dim
    L = len(_DILATIONS)

    # ---- activations: (H, W, B*C), channel index = b*C + c ------------------
    xf = jnp.transpose(x_nchw, (2, 3, 0, 1)).astype(jnp.float32)  # (H,W,B,ci)
    xf = jnp.pad(xf, ((0, 0), (0, 0), (0, 0), (0, C - cin)))      # ci -> C
    xf = xf.reshape(H, W, Cb)

    # ---- weights: per-tap block-diagonal over batch, (L, 9, Cb, Cb) ---------
    eye_b = jnp.eye(B, dtype=jnp.float32)
    w_list, b_list = [], []
    for i in range(1, L + 1):
        w = params[f"w{i}"]                                       # (3,3,ci,C)
        ci = w.shape[2]
        if ci < C:                                                # conv1: 2->64
            w = jnp.pad(w, ((0, 0), (0, 0), (0, C - ci), (0, 0)))
        w9 = w.reshape(9, C, C)
        bd = jnp.einsum("bd,tij->tbidj", eye_b, w9).reshape(9, Cb, Cb)
        w_list.append(bd)
        b_list.append(jnp.tile(params[f"b{i}"], B).reshape(1, Cb))
    w_all = jnp.stack(w_list)                                     # (L,9,Cb,Cb)
    b_all = jnp.stack(b_list)                                     # (L,1,Cb)

    wout_v = params["wout"].reshape(C)                            # (C,)
    wout_pk = jnp.einsum("bd,c->bdc", eye_b, wout_v).reshape(B, Cb)
    bout = params["bout"].reshape(1, 1)

    # ---- static tap schedule + minimal zero halo ----------------------------
    kept = tuple((_kept_taps(d, H), _kept_taps(d, W)) for d in _DILATIONS)
    multi = tuple(len(kh) * len(kw) > 1 for kh, kw in kept)
    off_h = [abs(k - 1) * d for d, (kh, _), m in zip(_DILATIONS, kept, multi)
             if m for k in kh]
    off_w = [abs(k - 1) * d for d, (_, kw), m in zip(_DILATIONS, kept, multi)
             if m for k in kw]
    PH = max(off_h) if off_h else 0
    PW = max(off_w) if off_w else 0
    PW = -(-PW // 8) * 8 if PW else 0        # sublane-aligned interior stores
    Hp, Wp = H + 2 * PH, W + 2 * PW

    kernel = functools.partial(
        _fused_kernel, H=H, W=W, PH=PH, PW=PW,
        dilations=_DILATIONS, kept=kept)

    out = pl.pallas_call(
        kernel,
        out_shape=jax.ShapeDtypeStruct((B, H * W), jnp.float32),
        grid=(1,),
        in_specs=[
            pl.BlockSpec((H, W, Cb), lambda i: (0, 0, 0)),        # x (VMEM)
            pl.BlockSpec(memory_space=pl.ANY),                    # weights HBM
            pl.BlockSpec((L, 1, Cb), lambda i: (0, 0, 0)),        # biases
            pl.BlockSpec((B, Cb), lambda i: (0, 0)),              # wout packed
            pl.BlockSpec((1, 1), lambda i: (0, 0)),               # bout
        ],
        out_specs=pl.BlockSpec((B, H * W), lambda i: (0, 0)),
        scratch_shapes=[
            pltpu.VMEM((Hp, Wp, Cb), jnp.float32),                # ping
            pltpu.VMEM((Hp, Wp, Cb), jnp.float32),                # pong
            pltpu.VMEM((2, 9, Cb, Cb), jnp.float32),              # weight dbuf
            pltpu.SemaphoreType.DMA((2,)),
        ],
        compiler_params=pltpu.CompilerParams(
            dimension_semantics=("arbitrary",),
            vmem_limit_bytes=32 * 1024 * 1024),
    )(xf, w_all, b_all, wout_pk, bout)

    return out.reshape(B, 1, H, W)


# ----------------------------------------------------------------------------
# Pure-JAX reference (lax.conv, NCHW like PyTorch) and deterministic init.
# ----------------------------------------------------------------------------
def reference_forward(x_nchw, params):
    def conv(x, w_hwio, b, pad, dil):
        w_oihw = jnp.transpose(w_hwio, (3, 2, 0, 1))
        y = lax.conv_general_dilated(
            x, w_oihw, window_strides=(1, 1),
            padding=[(pad, pad), (pad, pad)], rhs_dilation=(dil, dil),
            dimension_numbers=("NCHW", "OIHW", "NCHW"))
        return y + b[None, :, None, None]

    x = x_nchw
    for i, d in enumerate(_DILATIONS, start=1):
        x = jnp.maximum(conv(x, params[f"w{i}"], params[f"b{i}"], d, d), 0.0)
    return conv(x, params["wout"], params["bout"], 0, 1)


def init_params(key):
    """Deterministic init, PyTorch Conv2d default-style uniform bounds."""
    specs = [("1", 3, 2, 64), ("2", 3, 64, 64), ("3", 3, 64, 64),
             ("4", 3, 64, 64), ("5", 3, 64, 64), ("6", 3, 64, 64),
             ("out", 1, 64, 1)]
    keys = jax.random.split(key, 2 * len(specs))
    params = {}
    for idx, (name, k, ci, co) in enumerate(specs):
        bound = 1.0 / float(ci * k * k) ** 0.5
        params[f"w{name}"] = jax.random.uniform(
            keys[2 * idx], (k, k, ci, co), jnp.float32, -bound, bound)
        params[f"b{name}"] = jax.random.uniform(
            keys[2 * idx + 1], (co,), jnp.float32, -bound, bound)
    return params


if __name__ == "__main__":
    root = jax.random.PRNGKey(0)
    pkey, xkey = jax.random.split(root)
    params = init_params(pkey)

    # Input implied by the module: NCHW with 2 channels.
    x = jax.random.normal(xkey, (2, 2, 16, 16), jnp.float32)

    out = jax.block_until_ready(global_dilated_cnn_forward(x, params))
    assert out.shape == (2, 1, 16, 16), out.shape

    ref = jax.block_until_ready(reference_forward(x, params))
    max_err = float(jnp.max(jnp.abs(out - ref)))
    if max_err > 5e-4:
        raise AssertionError(f"Pallas vs reference mismatch: {max_err}")

    print("KERNEL_OK")
</pallas_src>

<mosaic_0001>
module attributes {stable_mosaic.version = 11 : i64} {
  func.func @_fused_kernel(%arg0: i32, %arg1: memref<16x16x128xf32, #tpu.memory_space<vmem>>, %arg2: memref<6x9x128x128xf32, #tpu.memory_space<any>>, %arg3: memref<6x1x128xf32, #tpu.memory_space<vmem>>, %arg4: memref<2x128xf32, #tpu.memory_space<vmem>>, %arg5: memref<1x1xf32, #tpu.memory_space<vmem>>, %arg6: memref<2x256xf32, #tpu.memory_space<vmem>>, %arg7: memref<32x32x128xf32, #tpu.memory_space<vmem>>, %arg8: memref<32x32x128xf32, #tpu.memory_space<vmem>>, %arg9: memref<2x9x128x128xf32, #tpu.memory_space<vmem>>, %arg10: memref<2x!tpu.dma_semaphore, #tpu.memory_space<semaphore_mem>>) attributes {dimension_semantics = [#tpu.dimension_semantics<arbitrary>], iteration_bounds = array<i64: 1>, scalar_prefetch = 0 : i64, scratch_operands = 4 : i64, tpu.core_type = #tpu.core_type<tc>, window_params = [{pipeline_mode = #tpu.pipeline_mode<synchronous>, transform_indices = @transform_0, window_bounds = array<i64: 16, 16, 128>}, {}, {pipeline_mode = #tpu.pipeline_mode<synchronous>, transform_indices = @transform_2, window_bounds = array<i64: 6, 1, 128>}, {pipeline_mode = #tpu.pipeline_mode<synchronous>, transform_indices = @transform_3, window_bounds = array<i64: 2, 128>}, {pipeline_mode = #tpu.pipeline_mode<synchronous>, transform_indices = @transform_4, window_bounds = array<i64: 1, 1>}, {pipeline_mode = #tpu.pipeline_mode<synchronous>, transform_indices = @transform_5, window_bounds = array<i64: 2, 256>}]} {
    %c0_i32 = arith.constant 0 : i32
    %c0_i32_0 = arith.constant 0 : i32
    %c0_i32_1 = arith.constant 0 : i32
    %c0_i32_2 = arith.constant 0 : i32
    %c0_i32_3 = arith.constant 0 : i32
    %c0_i32_4 = arith.constant 0 : i32
    %0 = tpu.memref_slice %arg2[%c0_i32, %c0_i32_2, %c0_i32_3, %c0_i32_4] : memref<6x9x128x128xf32, #tpu.memory_space<any>> -> memref<1x9x128x128xf32, #tpu.memory_space<any>>
    %1 = tpu.memref_squeeze %0 : memref<1x9x128x128xf32, #tpu.memory_space<any>> -> memref<9x128x128xf32, #tpu.memory_space<any>>
    %c0_i32_5 = arith.constant 0 : i32
    %c0_i32_6 = arith.constant 0 : i32
    %c0_i32_7 = arith.constant 0 : i32
    %2 = tpu.memref_slice %arg9[%c0_i32_0, %c0_i32_5, %c0_i32_6, %c0_i32_7] : memref<2x9x128x128xf32, #tpu.memory_space<vmem>> -> memref<1x9x128x128xf32, #tpu.memory_space<vmem>>
    %3 = tpu.memref_squeeze %2 : memref<1x9x128x128xf32, #tpu.memory_space<vmem>> -> memref<9x128x128xf32, #tpu.memory_space<vmem>>
    %4 = tpu.memref_slice %arg10[%c0_i32_1] : memref<2x!tpu.dma_semaphore, #tpu.memory_space<semaphore_mem>> -> memref<1x!tpu.dma_semaphore, #tpu.memory_space<semaphore_mem>>
    %5 = tpu.memref_squeeze %4 : memref<1x!tpu.dma_semaphore, #tpu.memory_space<semaphore_mem>> -> memref<!tpu.dma_semaphore, #tpu.memory_space<semaphore_mem>>
    tpu.enqueue_dma source(%1 : memref<9x128x128xf32, #tpu.memory_space<any>>) target(%3 : memref<9x128x128xf32, #tpu.memory_space<vmem>>) target_semaphore(%5 : memref<!tpu.dma_semaphore, #tpu.memory_space<semaphore_mem>>)
    %cst = arith.constant 0.000000e+00 : f32
    %6 = vector.broadcast %cst : f32 to vector<8x32x128xf32>
    %c0 = arith.constant 0 : index
    %c0_8 = arith.constant 0 : index
    %c0_9 = arith.constant 0 : index
    %7 = vector.load %arg7[%c0, %c0_8, %c0_9] : memref<32x32x128xf32, #tpu.memory_space<vmem>>, vector<8x32x128xf32>
    tpu.vector_store %arg7[%c0, %c0_8, %c0_9], %6 {strides = array<i32>} : memref<32x32x128xf32, #tpu.memory_space<vmem>>, vector<8x32x128xf32>,
    %cst_10 = arith.constant 0.000000e+00 : f32
    %8 = vector.broadcast %cst_10 : f32 to vector<8x32x128xf32>
    %c24 = arith.constant 24 : index
    %c0_11 = arith.constant 0 : index
    %c0_12 = arith.constant 0 : index
    %9 = vector.load %arg7[%c24, %c0_11, %c0_12] : memref<32x32x128xf32, #tpu.memory_space<vmem>>, vector<8x32x128xf32>
    tpu.vector_store %arg7[%c24, %c0_11, %c0_12], %8 {strides = array<i32>} : memref<32x32x128xf32, #tpu.memory_space<vmem>>, vector<8x32x128xf32>,
    %cst_13 = arith.constant 0.000000e+00 : f32
    %10 = vector.broadcast %cst_13 : f32 to vector<16x8x128xf32>
    %c8 = arith.constant 8 : index
    %c0_14 = arith.constant 0 : index
    %c0_15 = arith.constant 0 : index
    %11 = vector.load %arg7[%c8, %c0_14, %c0_15] : memref<32x32x128xf32, #tpu.memory_space<vmem>>, vector<16x8x128xf32>
    tpu.vector_store %arg7[%c8, %c0_14, %c0_15], %10 {strides = array<i32>} : memref<32x32x128xf32, #tpu.memory_space<vmem>>, vector<16x8x128xf32>,
    %cst_16 = arith.constant 0.000000e+00 : f32
    %12 = vector.broadcast %cst_16 : f32 to vector<16x8x128xf32>
    %c8_17 = arith.constant 8 : index
    %c24_18 = arith.constant 24 : index
    %c0_19 = arith.constant 0 : index
    %13 = vector.load %arg7[%c8_17, %c24_18, %c0_19] : memref<32x32x128xf32, #tpu.memory_space<vmem>>, vector<16x8x128xf32>
    tpu.vector_store %arg7[%c8_17, %c24_18, %c0_19], %12 {strides = array<i32>} : memref<32x32x128xf32, #tpu.memory_space<vmem>>, vector<16x8x128xf32>,
    %cst_20 = arith.constant 0.000000e+00 : f32
    %14 = vector.broadcast %cst_20 : f32 to vector<8x32x128xf32>
    %c0_21 = arith.constant 0 : index
    %c0_22 = arith.constant 0 : index
    %c0_23 = arith.constant 0 : index
    %15 = vector.load %arg8[%c0_21, %c0_22, %c0_23] : memref<32x32x128xf32, #tpu.memory_space<vmem>>, vector<8x32x128xf32>
    tpu.vector_store %arg8[%c0_21, %c0_22, %c0_23], %14 {strides = array<i32>} : memref<32x32x128xf32, #tpu.memory_space<vmem>>, vector<8x32x128xf32>,
    %cst_24 = arith.constant 0.000000e+00 : f32
    %16 = vector.broadcast %cst_24 : f32 to vector<8x32x128xf32>
    %c24_25 = arith.constant 24 : index
    %c0_26 = arith.constant 0 : index
    %c0_27 = arith.constant 0 : index
    %17 = vector.load %arg8[%c24_25, %c0_26, %c0_27] : memref<32x32x128xf32, #tpu.memory_space<vmem>>, vector<8x32x128xf32>
    tpu.vector_store %arg8[%c24_25, %c0_26, %c0_27], %16 {strides = array<i32>} : memref<32x32x128xf32, #tpu.memory_space<vmem>>, vector<8x32x128xf32>,
    %cst_28 = arith.constant 0.000000e+00 : f32
    %18 = vector.broadcast %cst_28 : f32 to vector<16x8x128xf32>
    %c8_29 = arith.constant 8 : index
    %c0_30 = arith.constant 0 : index
    %c0_31 = arith.constant 0 : index
    %19 = vector.load %arg8[%c8_29, %c0_30, %c0_31] : memref<32x32x128xf32, #tpu.memory_space<vmem>>, vector<16x8x128xf32>
    tpu.vector_store %arg8[%c8_29, %c0_30, %c0_31], %18 {strides = array<i32>} : memref<32x32x128xf32, #tpu.memory_space<vmem>>, vector<16x8x128xf32>,
    %cst_32 = arith.constant 0.000000e+00 : f32
    %20 = vector.broadcast %cst_32 : f32 to vector<16x8x128xf32>
    %c8_33 = arith.constant 8 : index
    %c24_34 = arith.constant 24 : index
    %c0_35 = arith.constant 0 : index
    %21 = vector.load %arg8[%c8_33, %c24_34, %c0_35] : memref<32x32x128xf32, #tpu.memory_space<vmem>>, vector<16x8x128xf32>
    tpu.vector_store %arg8[%c8_33, %c24_34, %c0_35], %20 {strides = array<i32>} : memref<32x32x128xf32, #tpu.memory_space<vmem>>, vector<16x8x128xf32>,
    %c0_36 = arith.constant 0 : index
    %c0_37 = arith.constant 0 : index
    %c0_38 = arith.constant 0 : index
    %22 = vector.load %arg1[%c0_36, %c0_37, %c0_38] : memref<16x16x128xf32, #tpu.memory_space<vmem>>, vector<16x16x128xf32>
    %c8_39 = arith.constant 8 : index
    %c8_40 = arith.constant 8 : index
    %c0_41 = arith.constant 0 : index
    %23 = vector.load %arg7[%c8_39, %c8_40, %c0_41] : memref<32x32x128xf32, #tpu.memory_space<vmem>>, vector<16x16x128xf32>
    tpu.vector_store %arg7[%c8_39, %c8_40, %c0_41], %22 {strides = array<i32>} : memref<32x32x128xf32, #tpu.memory_space<vmem>>, vector<16x16x128xf32>,
    %c0_i32_42 = arith.constant 0 : i32
    %c0_i32_43 = arith.constant 0 : i32
    %c0_i32_44 = arith.constant 0 : i32
    %c0_i32_45 = arith.constant 0 : i32
    %c0_i32_46 = arith.constant 0 : i32
    %c0_i32_47 = arith.constant 0 : i32
    %24 = tpu.memref_slice %arg2[%c0_i32_42, %c0_i32_45, %c0_i32_46, %c0_i32_47] : memref<6x9x128x128xf32, #tpu.memory_space<any>> -> memref<1x9x128x128xf32, #tpu.memory_space<any>>
    %25 = tpu.memref_squeeze %24 : memref<1x9x128x128xf32, #tpu.memory_space<any>> -> memref<9x128x128xf32, #tpu.memory_space<any>>
    %c0_i32_48 = arith.constant 0 : i32
    %c0_i32_49 = arith.constant 0 : i32
    %c0_i32_50 = arith.constant 0 : i32
    %26 = tpu.memref_slice %arg9[%c0_i32_43, %c0_i32_48, %c0_i32_49, %c0_i32_50] : memref<2x9x128x128xf32, #tpu.memory_space<vmem>> -> memref<1x9x128x128xf32, #tpu.memory_space<vmem>>
    %27 = tpu.memref_squeeze %26 : memref<1x9x128x128xf32, #tpu.memory_space<vmem>> -> memref<9x128x128xf32, #tpu.memory_space<vmem>>
    %28 = tpu.memref_slice %arg10[%c0_i32_44] : memref<2x!tpu.dma_semaphore, #tpu.memory_space<semaphore_mem>> -> memref<1x!tpu.dma_semaphore, #tpu.memory_space<semaphore_mem>>
    %29 = tpu.memref_squeeze %28 : memref<1x!tpu.dma_semaphore, #tpu.memory_space<semaphore_mem>> -> memref<!tpu.dma_semaphore, #tpu.memory_space<semaphore_mem>>
    tpu.wait_dma2 semaphore(%29 : memref<!tpu.dma_semaphore, #tpu.memory_space<semaphore_mem>>) src(%25 : memref<9x128x128xf32, #tpu.memory_space<any>>) dst(%27 : memref<9x128x128xf32, #tpu.memory_space<vmem>>)
    %c1_i32 = arith.constant 1 : i32
    %c1_i32_51 = arith.constant 1 : i32
    %c1_i32_52 = arith.constant 1 : i32
    %c0_i32_53 = arith.constant 0 : i32
    %c0_i32_54 = arith.constant 0 : i32
    %c0_i32_55 = arith.constant 0 : i32
    %30 = tpu.memref_slice %arg2[%c1_i32, %c0_i32_53, %c0_i32_54, %c0_i32_55] : memref<6x9x128x128xf32, #tpu.memory_space<any>> -> memref<1x9x128x128xf32, #tpu.memory_space<any>>
    %31 = tpu.memref_squeeze %30 : memref<1x9x128x128xf32, #tpu.memory_space<any>> -> memref<9x128x128xf32, #tpu.memory_space<any>>
    %c0_i32_56 = arith.constant 0 : i32
    %c0_i32_57 = arith.constant 0 : i32
    %c0_i32_58 = arith.constant 0 : i32
    %32 = tpu.memref_slice %arg9[%c1_i32_51, %c0_i32_56, %c0_i32_57, %c0_i32_58] : memref<2x9x128x128xf32, #tpu.memory_space<vmem>> -> memref<1x9x128x128xf32, #tpu.memory_space<vmem>>
    %33 = tpu.memref_squeeze %32 : memref<1x9x128x128xf32, #tpu.memory_space<vmem>> -> memref<9x128x128xf32, #tpu.memory_space<vmem>>
    %34 = tpu.memref_slice %arg10[%c1_i32_52] : memref<2x!tpu.dma_semaphore, #tpu.memory_space<semaphore_mem>> -> memref<1x!tpu.dma_semaphore, #tpu.memory_space<semaphore_mem>>
    %35 = tpu.memref_squeeze %34 : memref<1x!tpu.dma_semaphore, #tpu.memory_space<semaphore_mem>> -> memref<!tpu.dma_semaphore, #tpu.memory_space<semaphore_mem>>
    tpu.enqueue_dma source(%31 : memref<9x128x128xf32, #tpu.memory_space<any>>) target(%33 : memref<9x128x128xf32, #tpu.memory_space<vmem>>) target_semaphore(%35 : memref<!tpu.dma_semaphore, #tpu.memory_space<semaphore_mem>>)
    %c7 = arith.constant 7 : index
    %c7_59 = arith.constant 7 : index
    %c0_60 = arith.constant 0 : index
    %36 = vector.load %arg7[%c7, %c7_59, %c0_60] : memref<32x32x128xf32, #tpu.memory_space<vmem>>, vector<16x16x128xf32>
    %37 = vector.shape_cast %36 : vector<16x16x128xf32> to vector<256x128xf32>
    %c0_61 = arith.constant 0 : index
    %c0_62 = arith.constant 0 : index
    %c0_63 = arith.constant 0 : index
    %c0_64 = arith.constant 0 : index
    %38 = vector.load %arg9[%c0_61, %c0_62, %c0_63, %c0_64] : memref<2x9x128x128xf32, #tpu.memory_space<vmem>>, vector<1x1x128x128xf32>
    %39 = vector.shape_cast %38 : vector<1x1x128x128xf32> to vector<128x128xf32>
    %cst_65 = arith.constant dense<0.000000e+00> : vector<256x128xf32>
    %40 = tpu.matmul %37, %39, %cst_65 {dimension_numbers = #tpu.dot_dimension_numbers<[1], [0], [0], [1], [0, 0, 1, 1], [], []>} : vector<256x128xf32>, vector<128x128xf32>, vector<256x128xf32> -> vector<256x128xf32>
    %c7_66 = arith.constant 7 : index
    %c8_67 = arith.constant 8 : index
    %c0_68 = arith.constant 0 : index
    %41 = vector.load %arg7[%c7_66, %c8_67, %c0_68] : memref<32x32x128xf32, #tpu.memory_space<vmem>>, vector<16x16x128xf32>
    %42 = vector.shape_cast %41 : vector<16x16x128xf32> to vector<256x128xf32>
    %c0_69 = arith.constant 0 : index
    %c1 = arith.constant 1 : index
    %c0_70 = arith.constant 0 : index
    %c0_71 = arith.constant 0 : index
    %43 = vector.load %arg9[%c0_69, %c1, %c0_70, %c0_71] : memref<2x9x128x128xf32, #tpu.memory_space<vmem>>, vector<1x1x128x128xf32>
    %44 = vector.shape_cast %43 : vector<1x1x128x128xf32> to vector<128x128xf32>
    %cst_72 = arith.constant dense<0.000000e+00> : vector<256x128xf32>
    %45 = tpu.matmul %42, %44, %cst_72 {dimension_numbers = #tpu.dot_dimension_numbers<[1], [0], [0], [1], [0, 0, 1, 1], [], []>} : vector<256x128xf32>, vector<128x128xf32>, vector<256x128xf32> -> vector<256x128xf32>
    %46 = arith.addf %40, %45 : vector<256x128xf32>
    %c7_73 = arith.constant 7 : index
    %c9 = arith.constant 9 : index
    %c0_74 = arith.constant 0 : index
    %47 = vector.load %arg7[%c7_73, %c9, %c0_74] : memref<32x32x128xf32, #tpu.memory_space<vmem>>, vector<16x16x128xf32>
    %48 = vector.shape_cast %47 : vector<16x16x128xf32> to vector<256x128xf32>
    %c0_75 = arith.constant 0 : index
    %c2 = arith.constant 2 : index
    %c0_76 = arith.constant 0 : index
    %c0_77 = arith.constant 0 : index
    %49 = vector.load %arg9[%c0_75, %c2, %c0_76, %c0_77] : memref<2x9x128x128xf32, #tpu.memory_space<vmem>>, vector<1x1x128x128xf32>
    %50 = vector.shape_cast %49 : vector<1x1x128x128xf32> to vector<128x128xf32>
    %cst_78 = arith.constant dense<0.000000e+00> : vector<256x128xf32>
    %51 = tpu.matmul %48, %50, %cst_78 {dimension_numbers = #tpu.dot_dimension_numbers<[1], [0], [0], [1], [0, 0, 1, 1], [], []>} : vector<256x128xf32>, vector<128x128xf32>, vector<256x128xf32> -> vector<256x128xf32>
    %52 = arith.addf %46, %51 : vector<256x128xf32>
    %c8_79 = arith.constant 8 : index
    %c7_80 = arith.constant 7 : index
    %c0_81 = arith.constant 0 : index
    %53 = vector.load %arg7[%c8_79, %c7_80, %c0_81] : memref<32x32x128xf32, #tpu.memory_space<vmem>>, vector<16x16x128xf32>
    %54 = vector.shape_cast %53 : vector<16x16x128xf32> to vector<256x128xf32>
    %c0_82 = arith.constant 0 : index
    %c3 = arith.constant 3 : index
    %c0_83 = arith.constant 0 : index
    %c0_84 = arith.constant 0 : index
    %55 = vector.load %arg9[%c0_82, %c3, %c0_83, %c0_84] : memref<2x9x128x128xf32, #tpu.memory_space<vmem>>, vector<1x1x128x128xf32>
    %56 = vector.shape_cast %55 : vector<1x1x128x128xf32> to vector<128x128xf32>
    %cst_85 = arith.constant dense<0.000000e+00> : vector<256x128xf32>
    %57 = tpu.matmul %54, %56, %cst_85 {dimension_numbers = #tpu.dot_dimension_numbers<[1], [0], [0], [1], [0, 0, 1, 1], [], []>} : vector<256x128xf32>, vector<128x128xf32>, vector<256x128xf32> -> vector<256x128xf32>
    %58 = arith.addf %52, %57 : vector<256x128xf32>
    %c8_86 = arith.constant 8 : index
    %c8_87 = arith.constant 8 : index
    %c0_88 = arith.constant 0 : index
    %59 = vector.load %arg7[%c8_86, %c8_87, %c0_88] : memref<32x32x128xf32, #tpu.memory_space<vmem>>, vector<16x16x128xf32>
    %60 = vector.shape_cast %59 : vector<16x16x128xf32> to vector<256x128xf32>
    %c0_89 = arith.constant 0 : index
    %c4 = arith.constant 4 : index
    %c0_90 = arith.constant 0 : index
    %c0_91 = arith.constant 0 : index
    %61 = vector.load %arg9[%c0_89, %c4, %c0_90, %c0_91] : memref<2x9x128x128xf32, #tpu.memory_space<vmem>>, vector<1x1x128x128xf32>
    %62 = vector.shape_cast %61 : vector<1x1x128x128xf32> to vector<128x128xf32>
    %cst_92 = arith.constant dense<0.000000e+00> : vector<256x128xf32>
    %63 = tpu.matmul %60, %62, %cst_92 {dimension_numbers = #tpu.dot_dimension_numbers<[1], [0], [0], [1], [0, 0, 1, 1], [], []>} : vector<256x128xf32>, vector<128x128xf32>, vector<256x128xf32> -> vector<256x128xf32>
    %64 = arith.addf %58, %63 : vector<256x128xf32>
    %c8_93 = arith.constant 8 : index
    %c9_94 = arith.constant 9 : index
    %c0_95 = arith.constant 0 : index
    %65 = vector.load %arg7[%c8_93, %c9_94, %c0_95] : memref<32x32x128xf32, #tpu.memory_space<vmem>>, vector<16x16x128xf32>
    %66 = vector.shape_cast %65 : vector<16x16x128xf32> to vector<256x128xf32>
    %c0_96 = arith.constant 0 : index
    %c5 = arith.constant 5 : index
    %c0_97 = arith.constant 0 : index
    %c0_98 = arith.constant 0 : index
    %67 = vector.load %arg9[%c0_96, %c5, %c0_97, %c0_98] : memref<2x9x128x128xf32, #tpu.memory_space<vmem>>, vector<1x1x128x128xf32>
    %68 = vector.shape_cast %67 : vector<1x1x128x128xf32> to vector<128x128xf32>
    %cst_99 = arith.constant dense<0.000000e+00> : vector<256x128xf32>
    %69 = tpu.matmul %66, %68, %cst_99 {dimension_numbers = #tpu.dot_dimension_numbers<[1], [0], [0], [1], [0, 0, 1, 1], [], []>} : vector<256x128xf32>, vector<128x128xf32>, vector<256x128xf32> -> vector<256x128xf32>
    %70 = arith.addf %64, %69 : vector<256x128xf32>
    %c9_100 = arith.constant 9 : index
    %c7_101 = arith.constant 7 : index
    %c0_102 = arith.constant 0 : index
    %71 = vector.load %arg7[%c9_100, %c7_101, %c0_102] : memref<32x32x128xf32, #tpu.memory_space<vmem>>, vector<16x16x128xf32>
    %72 = vector.shape_cast %71 : vector<16x16x128xf32> to vector<256x128xf32>
    %c0_103 = arith.constant 0 : index
    %c6 = arith.constant 6 : index
    %c0_104 = arith.constant 0 : index
    %c0_105 = arith.constant 0 : index
    %73 = vector.load %arg9[%c0_103, %c6, %c0_104, %c0_105] : memref<2x9x128x128xf32, #tpu.memory_space<vmem>>, vector<1x1x128x128xf32>
    %74 = vector.shape_cast %73 : vector<1x1x128x128xf32> to vector<128x128xf32>
    %cst_106 = arith.constant dense<0.000000e+00> : vector<256x128xf32>
    %75 = tpu.matmul %72, %74, %cst_106 {dimension_numbers = #tpu.dot_dimension_numbers<[1], [0], [0], [1], [0, 0, 1, 1], [], []>} : vector<256x128xf32>, vector<128x128xf32>, vector<256x128xf32> -> vector<256x128xf32>
    %76 = arith.addf %70, %75 : vector<256x128xf32>
    %c9_107 = arith.constant 9 : index
    %c8_108 = arith.constant 8 : index
    %c0_109 = arith.constant 0 : index
    %77 = vector.load %arg7[%c9_107, %c8_108, %c0_109] : memref<32x32x128xf32, #tpu.memory_space<vmem>>, vector<16x16x128xf32>
    %78 = vector.shape_cast %77 : vector<16x16x128xf32> to vector<256x128xf32>
    %c0_110 = arith.constant 0 : index
    %c7_111 = arith.constant 7 : index
    %c0_112 = arith.constant 0 : index
    %c0_113 = arith.constant 0 : index
    %79 = vector.load %arg9[%c0_110, %c7_111, %c0_112, %c0_113] : memref<2x9x128x128xf32, #tpu.memory_space<vmem>>, vector<1x1x128x128xf32>
    %80 = vector.shape_cast %79 : vector<1x1x128x128xf32> to vector<128x128xf32>
    %cst_114 = arith.constant dense<0.000000e+00> : vector<256x128xf32>
    %81 = tpu.matmul %78, %80, %cst_114 {dimension_numbers = #tpu.dot_dimension_numbers<[1], [0], [0], [1], [0, 0, 1, 1], [], []>} : vector<256x128xf32>, vector<128x128xf32>, vector<256x128xf32> -> vector<256x128xf32>
    %82 = arith.addf %76, %81 : vector<256x128xf32>
    %c9_115 = arith.constant 9 : index
    %c9_116 = arith.constant 9 : index
    %c0_117 = arith.constant 0 : index
    %83 = vector.load %arg7[%c9_115, %c9_116, %c0_117] : memref<32x32x128xf32, #tpu.memory_space<vmem>>, vector<16x16x128xf32>
    %84 = vector.shape_cast %83 : vector<16x16x128xf32> to vector<256x128xf32>
    %c0_118 = arith.constant 0 : index
    %c8_119 = arith.constant 8 : index
    %c0_120 = arith.constant 0 : index
    %c0_121 = arith.constant 0 : index
    %85 = vector.load %arg9[%c0_118, %c8_119, %c0_120, %c0_121] : memref<2x9x128x128xf32, #tpu.memory_space<vmem>>, vector<1x1x128x128xf32>
    %86 = vector.shape_cast %85 : vector<1x1x128x128xf32> to vector<128x128xf32>
    %cst_122 = arith.constant dense<0.000000e+00> : vector<256x128xf32>
    %87 = tpu.matmul %84, %86, %cst_122 {dimension_numbers = #tpu.dot_dimension_numbers<[1], [0], [0], [1], [0, 0, 1, 1], [], []>} : vector<256x128xf32>, vector<128x128xf32>, vector<256x128xf32> -> vector<256x128xf32>
    %88 = arith.addf %82, %87 : vector<256x128xf32>
    %c0_123 = arith.constant 0 : index
    %c0_124 = arith.constant 0 : index
    %c0_125 = arith.constant 0 : index
    %89 = vector.load %arg3[%c0_123, %c0_124, %c0_125] : memref<6x1x128xf32, #tpu.memory_space<vmem>>, vector<1x1x128xf32>
    %90 = vector.shape_cast %89 : vector<1x1x128xf32> to vector<1x128xf32>
    %91 = vector.broadcast %90 : vector<1x128xf32> to vector<256x128xf32>
    %92 = arith.addf %88, %91 : vector<256x128xf32>
    %cst_126 = arith.constant 0.000000e+00 : f32
    %93 = vector.broadcast %cst_126 : f32 to vector<256x128xf32>
    %94 = arith.maximumf %92, %93 : vector<256x128xf32>
    %95 = vector.shape_cast %94 : vector<256x128xf32> to vector<16x16x128xf32>
    %c8_127 = arith.constant 8 : index
    %c8_128 = arith.constant 8 : index
    %c0_129 = arith.constant 0 : index
    %96 = vector.load %arg8[%c8_127, %c8_128, %c0_129] : memref<32x32x128xf32, #tpu.memory_space<vmem>>, vector<16x16x128xf32>
    tpu.vector_store %arg8[%c8_127, %c8_128, %c0_129], %95 {strides = array<i32>} : memref<32x32x128xf32, #tpu.memory_space<vmem>>, vector<16x16x128xf32>,
    %c1_i32_130 = arith.constant 1 : i32
    %c1_i32_131 = arith.constant 1 : i32
    %c1_i32_132 = arith.constant 1 : i32
    %c0_i32_133 = arith.constant 0 : i32
    %c0_i32_134 = arith.constant 0 : i32
    %c0_i32_135 = arith.constant 0 : i32
    %97 = tpu.memref_slice %arg2[%c1_i32_130, %c0_i32_133, %c0_i32_134, %c0_i32_135] : memref<6x9x128x128xf32, #tpu.memory_space<any>> -> memref<1x9x128x128xf32, #tpu.memory_space<any>>
    %98 = tpu.memref_squeeze %97 : memref<1x9x128x128xf32, #tpu.memory_space<any>> -> memref<9x128x128xf32, #tpu.memory_space<any>>
    %c0_i32_136 = arith.constant 0 : i32
    %c0_i32_137 = arith.constant 0 : i32
    %c0_i32_138 = arith.constant 0 : i32
    %99 = tpu.memref_slice %arg9[%c1_i32_131, %c0_i32_136, %c0_i32_137, %c0_i32_138] : memref<2x9x128x128xf32, #tpu.memory_space<vmem>> -> memref<1x9x128x128xf32, #tpu.memory_space<vmem>>
    %100 = tpu.memref_squeeze %99 : memref<1x9x128x128xf32, #tpu.memory_space<vmem>> -> memref<9x128x128xf32, #tpu.memory_space<vmem>>
    %101 = tpu.memref_slice %arg10[%c1_i32_132] : memref<2x!tpu.dma_semaphore, #tpu.memory_space<semaphore_mem>> -> memref<1x!tpu.dma_semaphore, #tpu.memory_space<semaphore_mem>>
    %102 = tpu.memref_squeeze %101 : memref<1x!tpu.dma_semaphore, #tpu.memory_space<semaphore_mem>> -> memref<!tpu.dma_semaphore, #tpu.memory_space<semaphore_mem>>
    tpu.wait_dma2 semaphore(%102 : memref<!tpu.dma_semaphore, #tpu.memory_space<semaphore_mem>>) src(%98 : memref<9x128x128xf32, #tpu.memory_space<any>>) dst(%100 : memref<9x128x128xf32, #tpu.memory_space<vmem>>)
    %c2_i32 = arith.constant 2 : i32
    %c0_i32_139 = arith.constant 0 : i32
    %c0_i32_140 = arith.constant 0 : i32
    %c0_i32_141 = arith.constant 0 : i32
    %c0_i32_142 = arith.constant 0 : i32
    %c0_i32_143 = arith.constant 0 : i32
    %103 = tpu.memref_slice %arg2[%c2_i32, %c0_i32_141, %c0_i32_142, %c0_i32_143] : memref<6x9x128x128xf32, #tpu.memory_space<any>> -> memref<1x9x128x128xf32, #tpu.memory_space<any>>
    %104 = tpu.memref_squeeze %103 : memref<1x9x128x128xf32, #tpu.memory_space<any>> -> memref<9x128x128xf32, #tpu.memory_space<any>>
    %c0_i32_144 = arith.constant 0 : i32
    %c0_i32_145 = arith.constant 0 : i32
    %c0_i32_146 = arith.constant 0 : i32
    %105 = tpu.memref_slice %arg9[%c0_i32_139, %c0_i32_144, %c0_i32_145, %c0_i32_146] : memref<2x9x128x128xf32, #tpu.memory_space<vmem>> -> memref<1x9x128x128xf32, #tpu.memory_space<vmem>>
    %106 = tpu.memref_squeeze %105 : memref<1x9x128x128xf32, #tpu.memory_space<vmem>> -> memref<9x128x128xf32, #tpu.memory_space<vmem>>
    %107 = tpu.memref_slice %arg10[%c0_i32_140] : memref<2x!tpu.dma_semaphore, #tpu.memory_space<semaphore_mem>> -> memref<1x!tpu.dma_semaphore, #tpu.memory_space<semaphore_mem>>
    %108 = tpu.memref_squeeze %107 : memref<1x!tpu.dma_semaphore, #tpu.memory_space<semaphore_mem>> -> memref<!tpu.dma_semaphore, #tpu.memory_space<semaphore_mem>>
    tpu.enqueue_dma source(%104 : memref<9x128x128xf32, #tpu.memory_space<any>>) target(%106 : memref<9x128x128xf32, #tpu.memory_space<vmem>>) target_semaphore(%108 : memref<!tpu.dma_semaphore, #tpu.memory_space<semaphore_mem>>)
    %c6_147 = arith.constant 6 : index
    %c6_148 = arith.constant 6 : index
    %c0_149 = arith.constant 0 : index
    %109 = vector.load %arg8[%c6_147, %c6_148, %c0_149] : memref<32x32x128xf32, #tpu.memory_space<vmem>>, vector<16x16x128xf32>
    %110 = vector.shape_cast %109 : vector<16x16x128xf32> to vector<256x128xf32>
    %c1_150 = arith.constant 1 : index
    %c0_151 = arith.constant 0 : index
    %c0_152 = arith.constant 0 : index
    %c0_153 = arith.constant 0 : index
    %111 = vector.load %arg9[%c1_150, %c0_151, %c0_152, %c0_153] : memref<2x9x128x128xf32, #tpu.memory_space<vmem>>, vector<1x1x128x128xf32>
    %112 = vector.shape_cast %111 : vector<1x1x128x128xf32> to vector<128x128xf32>
    %cst_154 = arith.constant dense<0.000000e+00> : vector<256x128xf32>
    %113 = tpu.matmul %110, %112, %cst_154 {dimension_numbers = #tpu.dot_dimension_numbers<[1], [0], [0], [1], [0, 0, 1, 1], [], []>} : vector<256x128xf32>, vector<128x128xf32>, vector<256x128xf32> -> vector<256x128xf32>
    %c6_155 = arith.constant 6 : index
    %c8_156 = arith.constant 8 : index
    %c0_157 = arith.constant 0 : index
    %114 = vector.load %arg8[%c6_155, %c8_156, %c0_157] : memref<32x32x128xf32, #tpu.memory_space<vmem>>, vector<16x16x128xf32>
    %115 = vector.shape_cast %114 : vector<16x16x128xf32> to vector<256x128xf32>
    %c1_158 = arith.constant 1 : index
    %c1_159 = arith.constant 1 : index
    %c0_160 = arith.constant 0 : index
    %c0_161 = arith.constant 0 : index
    %116 = vector.load %arg9[%c1_158, %c1_159, %c0_160, %c0_161] : memref<2x9x128x128xf32, #tpu.memory_space<vmem>>, vector<1x1x128x128xf32>
    %117 = vector.shape_cast %116 : vector<1x1x128x128xf32> to vector<128x128xf32>
    %cst_162 = arith.constant dense<0.000000e+00> : vector<256x128xf32>
    %118 = tpu.matmul %115, %117, %cst_162 {dimension_numbers = #tpu.dot_dimension_numbers<[1], [0], [0], [1], [0, 0, 1, 1], [], []>} : vector<256x128xf32>, vector<128x128xf32>, vector<256x128xf32> -> vector<256x128xf32>
    %119 = arith.addf %113, %118 : vector<256x128xf32>
    %c6_163 = arith.constant 6 : index
    %c10 = arith.constant 10 : index
    %c0_164 = arith.constant 0 : index
    %120 = vector.load %arg8[%c6_163, %c10, %c0_164] : memref<32x32x128xf32, #tpu.memory_space<vmem>>, vector<16x16x128xf32>
    %121 = vector.shape_cast %120 : vector<16x16x128xf32> to vector<256x128xf32>
    %c1_165 = arith.constant 1 : index
    %c2_166 = arith.constant 2 : index
    %c0_167 = arith.constant 0 : index
    %c0_168 = arith.constant 0 : index
    %122 = vector.load %arg9[%c1_165, %c2_166, %c0_167, %c0_168] : memref<2x9x128x128xf32, #tpu.memory_space<vmem>>, vector<1x1x128x128xf32>
    %123 = vector.shape_cast %122 : vector<1x1x128x128xf32> to vector<128x128xf32>
    %cst_169 = arith.constant dense<0.000000e+00> : vector<256x128xf32>
    %124 = tpu.matmul %121, %123, %cst_169 {dimension_numbers = #tpu.dot_dimension_numbers<[1], [0], [0], [1], [0, 0, 1, 1], [], []>} : vector<256x128xf32>, vector<128x128xf32>, vector<256x128xf32> -> vector<256x128xf32>
    %125 = arith.addf %119, %124 : vector<256x128xf32>
    %c8_170 = arith.constant 8 : index
    %c6_171 = arith.constant 6 : index
    %c0_172 = arith.constant 0 : index
    %126 = vector.load %arg8[%c8_170, %c6_171, %c0_172] : memref<32x32x128xf32, #tpu.memory_space<vmem>>, vector<16x16x128xf32>
    %127 = vector.shape_cast %126 : vector<16x16x128xf32> to vector<256x128xf32>
    %c1_173 = arith.constant 1 : index
    %c3_174 = arith.constant 3 : index
    %c0_175 = arith.constant 0 : index
    %c0_176 = arith.constant 0 : index
    %128 = vector.load %arg9[%c1_173, %c3_174, %c0_175, %c0_176] : memref<2x9x128x128xf32, #tpu.memory_space<vmem>>, vector<1x1x128x128xf32>
    %129 = vector.shape_cast %128 : vector<1x1x128x128xf32> to vector<128x128xf32>
    %cst_177 = arith.constant dense<0.000000e+00> : vector<256x128xf32>
    %130 = tpu.matmul %127, %129, %cst_177 {dimension_numbers = #tpu.dot_dimension_numbers<[1], [0], [0], [1], [0, 0, 1, 1], [], []>} : vector<256x128xf32>, vector<128x128xf32>, vector<256x128xf32> -> vector<256x128xf32>
    %131 = arith.addf %125, %130 : vector<256x128xf32>
    %c8_178 = arith.constant 8 : index
    %c8_179 = arith.constant 8 : index
    %c0_180 = arith.constant 0 : index
    %132 = vector.load %arg8[%c8_178, %c8_179, %c0_180] : memref<32x32x128xf32, #tpu.memory_space<vmem>>, vector<16x16x128xf32>
    %133 = vector.shape_cast %132 : vector<16x16x128xf32> to vector<256x128xf32>
    %c1_181 = arith.constant 1 : index
    %c4_182 = arith.constant 4 : index
    %c0_183 = arith.constant 0 : index
    %c0_184 = arith.constant 0 : index
    %134 = vector.load %arg9[%c1_181, %c4_182, %c0_183, %c0_184] : memref<2x9x128x128xf32, #tpu.memory_space<vmem>>, vector<1x1x128x128xf32>
    %135 = vector.shape_cast %134 : vector<1x1x128x128xf32> to vector<128x128xf32>
    %cst_185 = arith.constant dense<0.000000e+00> : vector<256x128xf32>
    %136 = tpu.matmul %133, %135, %cst_185 {dimension_numbers = #tpu.dot_dimension_numbers<[1], [0], [0], [1], [0, 0, 1, 1], [], []>} : vector<256x128xf32>, vector<128x128xf32>, vector<256x128xf32> -> vector<256x128xf32>
    %137 = arith.addf %131, %136 : vector<256x128xf32>
    %c8_186 = arith.constant 8 : index
    %c10_187 = arith.constant 10 : index
    %c0_188 = arith.constant 0 : index
    %138 = vector.load %arg8[%c8_186, %c10_187, %c0_188] : memref<32x32x128xf32, #tpu.memory_space<vmem>>, vector<16x16x128xf32>
    %139 = vector.shape_cast %138 : vector<16x16x128xf32> to vector<256x128xf32>
    %c1_189 = arith.constant 1 : index
    %c5_190 = arith.constant 5 : index
    %c0_191 = arith.constant 0 : index
    %c0_192 = arith.constant 0 : index
    %140 = vector.load %arg9[%c1_189, %c5_190, %c0_191, %c0_192] : memref<2x9x128x128xf32, #tpu.memory_space<vmem>>, vector<1x1x128x128xf32>
    %141 = vector.shape_cast %140 : vector<1x1x128x128xf32> to vector<128x128xf32>
    %cst_193 = arith.constant dense<0.000000e+00> : vector<256x128xf32>
    %142 = tpu.matmul %139, %141, %cst_193 {dimension_numbers = #tpu.dot_dimension_numbers<[1], [0], [0], [1], [0, 0, 1, 1], [], []>} : vector<256x128xf32>, vector<128x128xf32>, vector<256x128xf32> -> vector<256x128xf32>
    %143 = arith.addf %137, %142 : vector<256x128xf32>
    %c10_194 = arith.constant 10 : index
    %c6_195 = arith.constant 6 : index
    %c0_196 = arith.constant 0 : index
    %144 = vector.load %arg8[%c10_194, %c6_195, %c0_196] : memref<32x32x128xf32, #tpu.memory_space<vmem>>, vector<16x16x128xf32>
    %145 = vector.shape_cast %144 : vector<16x16x128xf32> to vector<256x128xf32>
    %c1_197 = arith.constant 1 : index
    %c6_198 = arith.constant 6 : index
    %c0_199 = arith.constant 0 : index
    %c0_200 = arith.constant 0 : index
    %146 = vector.load %arg9[%c1_197, %c6_198, %c0_199, %c0_200] : memref<2x9x128x128xf32, #tpu.memory_space<vmem>>, vector<1x1x128x128xf32>
    %147 = vector.shape_cast %146 : vector<1x1x128x128xf32> to vector<128x128xf32>
    %cst_201 = arith.constant dense<0.000000e+00> : vector<256x128xf32>
    %148 = tpu.matmul %145, %147, %cst_201 {dimension_numbers = #tpu.dot_dimension_numbers<[1], [0], [0], [1], [0, 0, 1, 1], [], []>} : vector<256x128xf32>, vector<128x128xf32>, vector<256x128xf32> -> vector<256x128xf32>
    %149 = arith.addf %143, %148 : vector<256x128xf32>
    %c10_202 = arith.constant 10 : index
    %c8_203 = arith.constant 8 : index
    %c0_204 = arith.constant 0 : index
    %150 = vector.load %arg8[%c10_202, %c8_203, %c0_204] : memref<32x32x128xf32, #tpu.memory_space<vmem>>, vector<16x16x128xf32>
    %151 = vector.shape_cast %150 : vector<16x16x128xf32> to vector<256x128xf32>
    %c1_205 = arith.constant 1 : index
    %c7_206 = arith.constant 7 : index
    %c0_207 = arith.constant 0 : index
    %c0_208 = arith.constant 0 : index
    %152 = vector.load %arg9[%c1_205, %c7_206, %c0_207, %c0_208] : memref<2x9x128x128xf32, #tpu.memory_space<vmem>>, vector<1x1x128x128xf32>
    %153 = vector.shape_cast %152 : vector<1x1x128x128xf32> to vector<128x128xf32>
    %cst_209 = arith.constant dense<0.000000e+00> : vector<256x128xf32>
    %154 = tpu.matmul %151, %153, %cst_209 {dimension_numbers = #tpu.dot_dimension_numbers<[1], [0], [0], [1], [0, 0, 1, 1], [], []>} : vector<256x128xf32>, vector<128x128xf32>, vector<256x128xf32> -> vector<256x128xf32>
    %155 = arith.addf %149, %154 : vector<256x128xf32>
    %c10_210 = arith.constant 10 : index
    %c10_211 = arith.constant 10 : index
    %c0_212 = arith.constant 0 : index
    %156 = vector.load %arg8[%c10_210, %c10_211, %c0_212] : memref<32x32x128xf32, #tpu.memory_space<vmem>>, vector<16x16x128xf32>
    %157 = vector.shape_cast %156 : vector<16x16x128xf32> to vector<256x128xf32>
    %c1_213 = arith.constant 1 : index
    %c8_214 = arith.constant 8 : index
    %c0_215 = arith.constant 0 : index
    %c0_216 = arith.constant 0 : index
    %158 = vector.load %arg9[%c1_213, %c8_214, %c0_215, %c0_216] : memref<2x9x128x128xf32, #tpu.memory_space<vmem>>, vector<1x1x128x128xf32>
    %159 = vector.shape_cast %158 : vector<1x1x128x128xf32> to vector<128x128xf32>
    %cst_217 = arith.constant dense<0.000000e+00> : vector<256x128xf32>
    %160 = tpu.matmul %157, %159, %cst_217 {dimension_numbers = #tpu.dot_dimension_numbers<[1], [0], [0], [1], [0, 0, 1, 1], [], []>} : vector<256x128xf32>, vector<128x128xf32>, vector<256x128xf32> -> vector<256x128xf32>
    %161 = arith.addf %155, %160 : vector<256x128xf32>
    %c1_218 = arith.constant 1 : index
    %c0_219 = arith.constant 0 : index
    %c0_220 = arith.constant 0 : index
    %162 = vector.load %arg3[%c1_218, %c0_219, %c0_220] : memref<6x1x128xf32, #tpu.memory_space<vmem>>, vector<1x1x128xf32>
    %163 = vector.shape_cast %162 : vector<1x1x128xf32> to vector<1x128xf32>
    %164 = vector.broadcast %163 : vector<1x128xf32> to vector<256x128xf32>
    %165 = arith.addf %161, %164 : vector<256x128xf32>
    %cst_221 = arith.constant 0.000000e+00 : f32
    %166 = vector.broadcast %cst_221 : f32 to vector<256x128xf32>
    %167 = arith.maximumf %165, %166 : vector<256x128xf32>
    %168 = vector.shape_cast %167 : vector<256x128xf32> to vector<16x16x128xf32>
    %c8_222 = arith.constant 8 : index
    %c8_223 = arith.constant 8 : index
    %c0_224 = arith.constant 0 : index
    %169 = vector.load %arg7[%c8_222, %c8_223, %c0_224] : memref<32x32x128xf32, #tpu.memory_space<vmem>>, vector<16x16x128xf32>
    tpu.vector_store %arg7[%c8_222, %c8_223, %c0_224], %168 {strides = array<i32>} : memref<32x32x128xf32, #tpu.memory_space<vmem>>, vector<16x16x128xf32>,
    %c2_i32_225 = arith.constant 2 : i32
    %c0_i32_226 = arith.constant 0 : i32
    %c0_i32_227 = arith.constant 0 : i32
    %c0_i32_228 = arith.constant 0 : i32
    %c0_i32_229 = arith.constant 0 : i32
    %c0_i32_230 = arith.constant 0 : i32
    %170 = tpu.memref_slice %arg2[%c2_i32_225, %c0_i32_228, %c0_i32_229, %c0_i32_230] : memref<6x9x128x128xf32, #tpu.memory_space<any>> -> memref<1x9x128x128xf32, #tpu.memory_space<any>>
    %171 = tpu.memref_squeeze %170 : memref<1x9x128x128xf32, #tpu.memory_space<any>> -> memref<9x128x128xf32, #tpu.memory_space<any>>
    %c0_i32_231 = arith.constant 0 : i32
    %c0_i32_232 = arith.constant 0 : i32
    %c0_i32_233 = arith.constant 0 : i32
    %172 = tpu.memref_slice %arg9[%c0_i32_226, %c0_i32_231, %c0_i32_232, %c0_i32_233] : memref<2x9x128x128xf32, #tpu.memory_space<vmem>> -> memref<1x9x128x128xf32, #tpu.memory_space<vmem>>
    %173 = tpu.memref_squeeze %172 : memref<1x9x128x128xf32, #tpu.memory_space<vmem>> -> memref<9x128x128xf32, #tpu.memory_space<vmem>>
    %174 = tpu.memref_slice %arg10[%c0_i32_227] : memref<2x!tpu.dma_semaphore, #tpu.memory_space<semaphore_mem>> -> memref<1x!tpu.dma_semaphore, #tpu.memory_space<semaphore_mem>>
    %175 = tpu.memref_squeeze %174 : memref<1x!tpu.dma_semaphore, #tpu.memory_space<semaphore_mem>> -> memref<!tpu.dma_semaphore, #tpu.memory_space<semaphore_mem>>
    tpu.wait_dma2 semaphore(%175 : memref<!tpu.dma_semaphore, #tpu.memory_space<semaphore_mem>>) src(%171 : memref<9x128x128xf32, #tpu.memory_space<any>>) dst(%173 : memref<9x128x128xf32, #tpu.memory_space<vmem>>)
    %c3_i32 = arith.constant 3 : i32
    %c1_i32_234 = arith.constant 1 : i32
    %c1_i32_235 = arith.constant 1 : i32
    %c0_i32_236 = arith.constant 0 : i32
    %c0_i32_237 = arith.constant 0 : i32
    %c0_i32_238 = arith.constant 0 : i32
    %176 = tpu.memref_slice %arg2[%c3_i32, %c0_i32_236, %c0_i32_237, %c0_i32_238] : memref<6x9x128x128xf32, #tpu.memory_space<any>> -> memref<1x9x128x128xf32, #tpu.memory_space<any>>
    %177 = tpu.memref_squeeze %176 : memref<1x9x128x128xf32, #tpu.memory_space<any>> -> memref<9x128x128xf32, #tpu.memory_space<any>>
    %c0_i32_239 = arith.constant 0 : i32
    %c0_i32_240 = arith.constant 0 : i32
    %c0_i32_241 = arith.constant 0 : i32
    %178 = tpu.memref_slice %arg9[%c1_i32_234, %c0_i32_239, %c0_i32_240, %c0_i32_241] : memref<2x9x128x128xf32, #tpu.memory_space<vmem>> -> memref<1x9x128x128xf32, #tpu.memory_space<vmem>>
    %179 = tpu.memref_squeeze %178 : memref<1x9x128x128xf32, #tpu.memory_space<vmem>> -> memref<9x128x128xf32, #tpu.memory_space<vmem>>
    %180 = tpu.memref_slice %arg10[%c1_i32_235] : memref<2x!tpu.dma_semaphore, #tpu.memory_space<semaphore_mem>> -> memref<1x!tpu.dma_semaphore, #tpu.memory_space<semaphore_mem>>
    %181 = tpu.memref_squeeze %180 : memref<1x!tpu.dma_semaphore, #tpu.memory_space<semaphore_mem>> -> memref<!tpu.dma_semaphore, #tpu.memory_space<semaphore_mem>>
    tpu.enqueue_dma source(%177 : memref<9x128x128xf32, #tpu.memory_space<any>>) target(%179 : memref<9x128x128xf32, #tpu.memory_space<vmem>>) target_semaphore(%181 : memref<!tpu.dma_semaphore, #tpu.memory_space<semaphore_mem>>)
    %c4_242 = arith.constant 4 : index
    %c4_243 = arith.constant 4 : index
    %c0_244 = arith.constant 0 : index
    %182 = vector.load %arg7[%c4_242, %c4_243, %c0_244] : memref<32x32x128xf32, #tpu.memory_space<vmem>>, vector<16x16x128xf32>
    %183 = vector.shape_cast %182 : vector<16x16x128xf32> to vector<256x128xf32>
    %c0_245 = arith.constant 0 : index
    %c0_246 = arith.constant 0 : index
    %c0_247 = arith.constant 0 : index
    %c0_248 = arith.constant 0 : index
    %184 = vector.load %arg9[%c0_245, %c0_246, %c0_247, %c0_248] : memref<2x9x128x128xf32, #tpu.memory_space<vmem>>, vector<1x1x128x128xf32>
    %185 = vector.shape_cast %184 : vector<1x1x128x128xf32> to vector<128x128xf32>
    %cst_249 = arith.constant dense<0.000000e+00> : vector<256x128xf32>
    %186 = tpu.matmul %183, %185, %cst_249 {dimension_numbers = #tpu.dot_dimension_numbers<[1], [0], [0], [1], [0, 0, 1, 1], [], []>} : vector<256x128xf32>, vector<128x128xf32>, vector<256x128xf32> -> vector<256x128xf32>
    %c4_250 = arith.constant 4 : index
    %c8_251 = arith.constant 8 : index
    %c0_252 = arith.constant 0 : index
    %187 = vector.load %arg7[%c4_250, %c8_251, %c0_252] : memref<32x32x128xf32, #tpu.memory_space<vmem>>, vector<16x16x128xf32>
    %188 = vector.shape_cast %187 : vector<16x16x128xf32> to vector<256x128xf32>
    %c0_253 = arith.constant 0 : index
    %c1_254 = arith.constant 1 : index
    %c0_255 = arith.constant 0 : index
    %c0_256 = arith.constant 0 : index
    %189 = vector.load %arg9[%c0_253, %c1_254, %c0_255, %c0_256] : memref<2x9x128x128xf32, #tpu.memory_space<vmem>>, vector<1x1x128x128xf32>
    %190 = vector.shape_cast %189 : vector<1x1x128x128xf32> to vector<128x128xf32>
    %cst_257 = arith.constant dense<0.000000e+00> : vector<256x128xf32>
    %191 = tpu.matmul %188, %190, %cst_257 {dimension_numbers = #tpu.dot_dimension_numbers<[1], [0], [0], [1], [0, 0, 1, 1], [], []>} : vector<256x128xf32>, vector<128x128xf32>, vector<256x128xf32> -> vector<256x128xf32>
    %192 = arith.addf %186, %191 : vector<256x128xf32>
    %c4_258 = arith.constant 4 : index
    %c12 = arith.constant 12 : index
    %c0_259 = arith.constant 0 : index
    %193 = vector.load %arg7[%c4_258, %c12, %c0_259] : memref<32x32x128xf32, #tpu.memory_space<vmem>>, vector<16x16x128xf32>
    %194 = vector.shape_cast %193 : vector<16x16x128xf32> to vector<256x128xf32>
    %c0_260 = arith.constant 0 : index
    %c2_261 = arith.constant 2 : index
    %c0_262 = arith.constant 0 : index
    %c0_263 = arith.constant 0 : index
    %195 = vector.load %arg9[%c0_260, %c2_261, %c0_262, %c0_263] : memref<2x9x128x128xf32, #tpu.memory_space<vmem>>, vector<1x1x128x128xf32>
    %196 = vector.shape_cast %195 : vector<1x1x128x128xf32> to vector<128x128xf32>
    %cst_264 = arith.constant dense<0.000000e+00> : vector<256x128xf32>
    %197 = tpu.matmul %194, %196, %cst_264 {dimension_numbers = #tpu.dot_dimension_numbers<[1], [0], [0], [1], [0, 0, 1, 1], [], []>} : vector<256x128xf32>, vector<128x128xf32>, vector<256x128xf32> -> vector<256x128xf32>
    %198 = arith.addf %192, %197 : vector<256x128xf32>
    %c8_265 = arith.constant 8 : index
    %c4_266 = arith.constant 4 : index
    %c0_267 = arith.constant 0 : index
    %199 = vector.load %arg7[%c8_265, %c4_266, %c0_267] : memref<32x32x128xf32, #tpu.memory_space<vmem>>, vector<16x16x128xf32>
    %200 = vector.shape_cast %199 : vector<16x16x128xf32> to vector<256x128xf32>
    %c0_268 = arith.constant 0 : index
    %c3_269 = arith.constant 3 : index
    %c0_270 = arith.constant 0 : index
    %c0_271 = arith.constant 0 : index
    %201 = vector.load %arg9[%c0_268, %c3_269, %c0_270, %c0_271] : memref<2x9x128x128xf32, #tpu.memory_space<vmem>>, vector<1x1x128x128xf32>
    %202 = vector.shape_cast %201 : vector<1x1x128x128xf32> to vector<128x128xf32>
    %cst_272 = arith.constant dense<0.000000e+00> : vector<256x128xf32>
    %203 = tpu.matmul %200, %202, %cst_272 {dimension_numbers = #tpu.dot_dimension_numbers<[1], [0], [0], [1], [0, 0, 1, 1], [], []>} : vector<256x128xf32>, vector<128x128xf32>, vector<256x128xf32> -> vector<256x128xf32>
    %204 = arith.addf %198, %203 : vector<256x128xf32>
    %c8_273 = arith.constant 8 : index
    %c8_274 = arith.constant 8 : index
    %c0_275 = arith.constant 0 : index
    %205 = vector.load %arg7[%c8_273, %c8_274, %c0_275] : memref<32x32x128xf32, #tpu.memory_space<vmem>>, vector<16x16x128xf32>
    %206 = vector.shape_cast %205 : vector<16x16x128xf32> to vector<256x128xf32>
    %c0_276 = arith.constant 0 : index
    %c4_277 = arith.constant 4 : index
    %c0_278 = arith.constant 0 : index
    %c0_279 = arith.constant 0 : index
    %207 = vector.load %arg9[%c0_276, %c4_277, %c0_278, %c0_279] : memref<2x9x128x128xf32, #tpu.memory_space<vmem>>, vector<1x1x128x128xf32>
    %208 = vector.shape_cast %207 : vector<1x1x128x128xf32> to vector<128x128xf32>
    %cst_280 = arith.constant dense<0.000000e+00> : vector<256x128xf32>
    %209 = tpu.matmul %206, %208, %cst_280 {dimension_numbers = #tpu.dot_dimension_numbers<[1], [0], [0], [1], [0, 0, 1, 1], [], []>} : vector<256x128xf32>, vector<128x128xf32>, vector<256x128xf32> -> vector<256x128xf32>
    %210 = arith.addf %204, %209 : vector<256x128xf32>
    %c8_281 = arith.constant 8 : index
    %c12_282 = arith.constant 12 : index
    %c0_283 = arith.constant 0 : index
    %211 = vector.load %arg7[%c8_281, %c12_282, %c0_283] : memref<32x32x128xf32, #tpu.memory_space<vmem>>, vector<16x16x128xf32>
    %212 = vector.shape_cast %211 : vector<16x16x128xf32> to vector<256x128xf32>
    %c0_284 = arith.constant 0 : index
    %c5_285 = arith.constant 5 : index
    %c0_286 = arith.constant 0 : index
    %c0_287 = arith.constant 0 : index
    %213 = vector.load %arg9[%c0_284, %c5_285, %c0_286, %c0_287] : memref<2x9x128x128xf32, #tpu.memory_space<vmem>>, vector<1x1x128x128xf32>
    %214 = vector.shape_cast %213 : vector<1x1x128x128xf32> to vector<128x128xf32>
    %cst_288 = arith.constant dense<0.000000e+00> : vector<256x128xf32>
    %215 = tpu.matmul %212, %214, %cst_288 {dimension_numbers = #tpu.dot_dimension_numbers<[1], [0], [0], [1], [0, 0, 1, 1], [], []>} : vector<256x128xf32>, vector<128x128xf32>, vector<256x128xf32> -> vector<256x128xf32>
    %216 = arith.addf %210, %215 : vector<256x128xf32>
    %c12_289 = arith.constant 12 : index
    %c4_290 = arith.constant 4 : index
    %c0_291 = arith.constant 0 : index
    %217 = vector.load %arg7[%c12_289, %c4_290, %c0_291] : memref<32x32x128xf32, #tpu.memory_space<vmem>>, vector<16x16x128xf32>
    %218 = vector.shape_cast %217 : vector<16x16x128xf32> to vector<256x128xf32>
    %c0_292 = arith.constant 0 : index
    %c6_293 = arith.constant 6 : index
    %c0_294 = arith.constant 0 : index
    %c0_295 = arith.constant 0 : index
    %219 = vector.load %arg9[%c0_292, %c6_293, %c0_294, %c0_295] : memref<2x9x128x128xf32, #tpu.memory_space<vmem>>, vector<1x1x128x128xf32>
    %220 = vector.shape_cast %219 : vector<1x1x128x128xf32> to vector<128x128xf32>
    %cst_296 = arith.constant dense<0.000000e+00> : vector<256x128xf32>
    %221 = tpu.matmul %218, %220, %cst_296 {dimension_numbers = #tpu.dot_dimension_numbers<[1], [0], [0], [1], [0, 0, 1, 1], [], []>} : vector<256x128xf32>, vector<128x128xf32>, vector<256x128xf32> -> vector<256x128xf32>
    %222 = arith.addf %216, %221 : vector<256x128xf32>
    %c12_297 = arith.constant 12 : index
    %c8_298 = arith.constant 8 : index
    %c0_299 = arith.constant 0 : index
    %223 = vector.load %arg7[%c12_297, %c8_298, %c0_299] : memref<32x32x128xf32, #tpu.memory_space<vmem>>, vector<16x16x128xf32>
    %224 = vector.shape_cast %223 : vector<16x16x128xf32> to vector<256x128xf32>
    %c0_300 = arith.constant 0 : index
    %c7_301 = arith.constant 7 : index
    %c0_302 = arith.constant 0 : index
    %c0_303 = arith.constant 0 : index
    %225 = vector.load %arg9[%c0_300, %c7_301, %c0_302, %c0_303] : memref<2x9x128x128xf32, #tpu.memory_space<vmem>>, vector<1x1x128x128xf32>
    %226 = vector.shape_cast %225 : vector<1x1x128x128xf32> to vector<128x128xf32>
    %cst_304 = arith.constant dense<0.000000e+00> : vector<256x128xf32>
    %227 = tpu.matmul %224, %226, %cst_304 {dimension_numbers = #tpu.dot_dimension_numbers<[1], [0], [0], [1], [0, 0, 1, 1], [], []>} : vector<256x128xf32>, vector<128x128xf32>, vector<256x128xf32> -> vector<256x128xf32>
    %228 = arith.addf %222, %227 : vector<256x128xf32>
    %c12_305 = arith.constant 12 : index
    %c12_306 = arith.constant 12 : index
    %c0_307 = arith.constant 0 : index
    %229 = vector.load %arg7[%c12_305, %c12_306, %c0_307] : memref<32x32x128xf32, #tpu.memory_space<vmem>>, vector<16x16x128xf32>
    %230 = vector.shape_cast %229 : vector<16x16x128xf32> to vector<256x128xf32>
    %c0_308 = arith.constant 0 : index
    %c8_309 = arith.constant 8 : index
    %c0_310 = arith.constant 0 : index
    %c0_311 = arith.constant 0 : index
    %231 = vector.load %arg9[%c0_308, %c8_309, %c0_310, %c0_311] : memref<2x9x128x128xf32, #tpu.memory_space<vmem>>, vector<1x1x128x128xf32>
    %232 = vector.shape_cast %231 : vector<1x1x128x128xf32> to vector<128x128xf32>
    %cst_312 = arith.constant dense<0.000000e+00> : vector<256x128xf32>
    %233 = tpu.matmul %230, %232, %cst_312 {dimension_numbers = #tpu.dot_dimension_numbers<[1], [0], [0], [1], [0, 0, 1, 1], [], []>} : vector<256x128xf32>, vector<128x128xf32>, vector<256x128xf32> -> vector<256x128xf32>
    %234 = arith.addf %228, %233 : vector<256x128xf32>
    %c2_313 = arith.constant 2 : index
    %c0_314 = arith.constant 0 : index
    %c0_315 = arith.constant 0 : index
    %235 = vector.load %arg3[%c2_313, %c0_314, %c0_315] : memref<6x1x128xf32, #tpu.memory_space<vmem>>, vector<1x1x128xf32>
    %236 = vector.shape_cast %235 : vector<1x1x128xf32> to vector<1x128xf32>
    %237 = vector.broadcast %236 : vector<1x128xf32> to vector<256x128xf32>
    %238 = arith.addf %234, %237 : vector<256x128xf32>
    %cst_316 = arith.constant 0.000000e+00 : f32
    %239 = vector.broadcast %cst_316 : f32 to vector<256x128xf32>
    %240 = arith.maximumf %238, %239 : vector<256x128xf32>
    %241 = vector.shape_cast %240 : vector<256x128xf32> to vector<16x16x128xf32>
    %c8_317 = arith.constant 8 : index
    %c8_318 = arith.constant 8 : index
    %c0_319 = arith.constant 0 : index
    %242 = vector.load %arg8[%c8_317, %c8_318, %c0_319] : memref<32x32x128xf32, #tpu.memory_space<vmem>>, vector<16x16x128xf32>
    tpu.vector_store %arg8[%c8_317, %c8_318, %c0_319], %241 {strides = array<i32>} : memref<32x32x128xf32, #tpu.memory_space<vmem>>, vector<16x16x128xf32>,
    %c3_i32_320 = arith.constant 3 : i32
    %c1_i32_321 = arith.constant 1 : i32
    %c1_i32_322 = arith.constant 1 : i32
    %c0_i32_323 = arith.constant 0 : i32
    %c0_i32_324 = arith.constant 0 : i32
    %c0_i32_325 = arith.constant 0 : i32
    %243 = tpu.memref_slice %arg2[%c3_i32_320, %c0_i32_323, %c0_i32_324, %c0_i32_325] : memref<6x9x128x128xf32, #tpu.memory_space<any>> -> memref<1x9x128x128xf32, #tpu.memory_space<any>>
    %244 = tpu.memref_squeeze %243 : memref<1x9x128x128xf32, #tpu.memory_space<any>> -> memref<9x128x128xf32, #tpu.memory_space<any>>
    %c0_i32_326 = arith.constant 0 : i32
    %c0_i32_327 = arith.constant 0 : i32
    %c0_i32_328 = arith.constant 0 : i32
    %245 = tpu.memref_slice %arg9[%c1_i32_321, %c0_i32_326, %c0_i32_327, %c0_i32_328] : memref<2x9x128x128xf32, #tpu.memory_space<vmem>> -> memref<1x9x128x128xf32, #tpu.memory_space<vmem>>
    %246 = tpu.memref_squeeze %245 : memref<1x9x128x128xf32, #tpu.memory_space<vmem>> -> memref<9x128x128xf32, #tpu.memory_space<vmem>>
    %247 = tpu.memref_slice %arg10[%c1_i32_322] : memref<2x!tpu.dma_semaphore, #tpu.memory_space<semaphore_mem>> -> memref<1x!tpu.dma_semaphore, #tpu.memory_space<semaphore_mem>>
    %248 = tpu.memref_squeeze %247 : memref<1x!tpu.dma_semaphore, #tpu.memory_space<semaphore_mem>> -> memref<!tpu.dma_semaphore, #tpu.memory_space<semaphore_mem>>
    tpu.wait_dma2 semaphore(%248 : memref<!tpu.dma_semaphore, #tpu.memory_space<semaphore_mem>>) src(%244 : memref<9x128x128xf32, #tpu.memory_space<any>>) dst(%246 : memref<9x128x128xf32, #tpu.memory_space<vmem>>)
    %c4_i32 = arith.constant 4 : i32
    %c0_i32_329 = arith.constant 0 : i32
    %c0_i32_330 = arith.constant 0 : i32
    %c4_i32_331 = arith.constant 4 : i32
    %c0_i32_332 = arith.constant 0 : i32
    %c0_i32_333 = arith.constant 0 : i32
    %249 = tpu.memref_slice %arg2[%c4_i32, %c4_i32_331, %c0_i32_332, %c0_i32_333] : memref<6x9x128x128xf32, #tpu.memory_space<any>> -> memref<1x1x128x128xf32, #tpu.memory_space<any>>
    %250 = tpu.memref_squeeze %249 : memref<1x1x128x128xf32, #tpu.memory_space<any>> -> memref<1x128x128xf32, #tpu.memory_space<any>>
    %c0_i32_334 = arith.constant 0 : i32
    %c0_i32_335 = arith.constant 0 : i32
    %c0_i32_336 = arith.constant 0 : i32
    %251 = tpu.memref_slice %arg9[%c0_i32_329, %c0_i32_334, %c0_i32_335, %c0_i32_336] : memref<2x9x128x128xf32, #tpu.memory_space<vmem>> -> memref<1x1x128x128xf32, #tpu.memory_space<vmem>>
    %252 = tpu.memref_squeeze %251 : memref<1x1x128x128xf32, #tpu.memory_space<vmem>> -> memref<1x128x128xf32, #tpu.memory_space<vmem>>
    %253 = tpu.memref_slice %arg10[%c0_i32_330] : memref<2x!tpu.dma_semaphore, #tpu.memory_space<semaphore_mem>> -> memref<1x!tpu.dma_semaphore, #tpu.memory_space<semaphore_mem>>
    %254 = tpu.memref_squeeze %253 : memref<1x!tpu.dma_semaphore, #tpu.memory_space<semaphore_mem>> -> memref<!tpu.dma_semaphore, #tpu.memory_space<semaphore_mem>>
    tpu.enqueue_dma source(%250 : memref<1x128x128xf32, #tpu.memory_space<any>>) target(%252 : memref<1x128x128xf32, #tpu.memory_space<vmem>>) target_semaphore(%254 : memref<!tpu.dma_semaphore, #tpu.memory_space<semaphore_mem>>)
    %c0_337 = arith.constant 0 : index
    %c0_338 = arith.constant 0 : index
    %c0_339 = arith.constant 0 : index
    %255 = vector.load %arg8[%c0_337, %c0_338, %c0_339] : memref<32x32x128xf32, #tpu.memory_space<vmem>>, vector<16x16x128xf32>
    %256 = vector.shape_cast %255 : vector<16x16x128xf32> to vector<256x128xf32>
    %c1_340 = arith.constant 1 : index
    %c0_341 = arith.constant 0 : index
    %c0_342 = arith.constant 0 : index
    %c0_343 = arith.constant 0 : index
    %257 = vector.load %arg9[%c1_340, %c0_341, %c0_342, %c0_343] : memref<2x9x128x128xf32, #tpu.memory_space<vmem>>, vector<1x1x128x128xf32>
    %258 = vector.shape_cast %257 : vector<1x1x128x128xf32> to vector<128x128xf32>
    %cst_344 = arith.constant dense<0.000000e+00> : vector<256x128xf32>
    %259 = tpu.matmul %256, %258, %cst_344 {dimension_numbers = #tpu.dot_dimension_numbers<[1], [0], [0], [1], [0, 0, 1, 1], [], []>} : vector<256x128xf32>, vector<128x128xf32>, vector<256x128xf32> -> vector<256x128xf32>
    %c0_345 = arith.constant 0 : index
    %c8_346 = arith.constant 8 : index
    %c0_347 = arith.constant 0 : index
    %260 = vector.load %arg8[%c0_345, %c8_346, %c0_347] : memref<32x32x128xf32, #tpu.memory_space<vmem>>, vector<16x16x128xf32>
    %261 = vector.shape_cast %260 : vector<16x16x128xf32> to vector<256x128xf32>
    %c1_348 = arith.constant 1 : index
    %c1_349 = arith.constant 1 : index
    %c0_350 = arith.constant 0 : index
    %c0_351 = arith.constant 0 : index
    %262 = vector.load %arg9[%c1_348, %c1_349, %c0_350, %c0_351] : memref<2x9x128x128xf32, #tpu.memory_space<vmem>>, vector<1x1x128x128xf32>
    %263 = vector.shape_cast %262 : vector<1x1x128x128xf32> to vector<128x128xf32>
    %cst_352 = arith.constant dense<0.000000e+00> : vector<256x128xf32>
    %264 = tpu.matmul %261, %263, %cst_352 {dimension_numbers = #tpu.dot_dimension_numbers<[1], [0], [0], [1], [0, 0, 1, 1], [], []>} : vector<256x128xf32>, vector<128x128xf32>, vector<256x128xf32> -> vector<256x128xf32>
    %265 = arith.addf %259, %264 : vector<256x128xf32>
    %c0_353 = arith.constant 0 : index
    %c16 = arith.constant 16 : index
    %c0_354 = arith.constant 0 : index
    %266 = vector.load %arg8[%c0_353, %c16, %c0_354] : memref<32x32x128xf32, #tpu.memory_space<vmem>>, vector<16x16x128xf32>
    %267 = vector.shape_cast %266 : vector<16x16x128xf32> to vector<256x128xf32>
    %c1_355 = arith.constant 1 : index
    %c2_356 = arith.constant 2 : index
    %c0_357 = arith.constant 0 : index
    %c0_358 = arith.constant 0 : index
    %268 = vector.load %arg9[%c1_355, %c2_356, %c0_357, %c0_358] : memref<2x9x128x128xf32, #tpu.memory_space<vmem>>, vector<1x1x128x128xf32>
    %269 = vector.shape_cast %268 : vector<1x1x128x128xf32> to vector<128x128xf32>
    %cst_359 = arith.constant dense<0.000000e+00> : vector<256x128xf32>
    %270 = tpu.matmul %267, %269, %cst_359 {dimension_numbers = #tpu.dot_dimension_numbers<[1], [0], [0], [1], [0, 0, 1, 1], [], []>} : vector<256x128xf32>, vector<128x128xf32>, vector<256x128xf32> -> vector<256x128xf32>
    %271 = arith.addf %265, %270 : vector<256x128xf32>
    %c8_360 = arith.constant 8 : index
    %c0_361 = arith.constant 0 : index
    %c0_362 = arith.constant 0 : index
    %272 = vector.load %arg8[%c8_360, %c0_361, %c0_362] : memref<32x32x128xf32, #tpu.memory_space<vmem>>, vector<16x16x128xf32>
    %273 = vector.shape_cast %272 : vector<16x16x128xf32> to vector<256x128xf32>
    %c1_363 = arith.constant 1 : index
    %c3_364 = arith.constant 3 : index
    %c0_365 = arith.constant 0 : index
    %c0_366 = arith.constant 0 : index
    %274 = vector.load %arg9[%c1_363, %c3_364, %c0_365, %c0_366] : memref<2x9x128x128xf32, #tpu.memory_space<vmem>>, vector<1x1x128x128xf32>
    %275 = vector.shape_cast %274 : vector<1x1x128x128xf32> to vector<128x128xf32>
    %cst_367 = arith.constant dense<0.000000e+00> : vector<256x128xf32>
    %276 = tpu.matmul %273, %275, %cst_367 {dimension_numbers = #tpu.dot_dimension_numbers<[1], [0], [0], [1], [0, 0, 1, 1], [], []>} : vector<256x128xf32>, vector<128x128xf32>, vector<256x128xf32> -> vector<256x128xf32>
    %277 = arith.addf %271, %276 : vector<256x128xf32>
    %c8_368 = arith.constant 8 : index
    %c8_369 = arith.constant 8 : index
    %c0_370 = arith.constant 0 : index
    %278 = vector.load %arg8[%c8_368, %c8_369, %c0_370] : memref<32x32x128xf32, #tpu.memory_space<vmem>>, vector<16x16x128xf32>
    %279 = vector.shape_cast %278 : vector<16x16x128xf32> to vector<256x128xf32>
    %c1_371 = arith.constant 1 : index
    %c4_372 = arith.constant 4 : index
    %c0_373 = arith.constant 0 : index
    %c0_374 = arith.constant 0 : index
    %280 = vector.load %arg9[%c1_371, %c4_372, %c0_373, %c0_374] : memref<2x9x128x128xf32, #tpu.memory_space<vmem>>, vector<1x1x128x128xf32>
    %281 = vector.shape_cast %280 : vector<1x1x128x128xf32> to vector<128x128xf32>
    %cst_375 = arith.constant dense<0.000000e+00> : vector<256x128xf32>
    %282 = tpu.matmul %279, %281, %cst_375 {dimension_numbers = #tpu.dot_dimension_numbers<[1], [0], [0], [1], [0, 0, 1, 1], [], []>} : vector<256x128xf32>, vector<128x128xf32>, vector<256x128xf32> -> vector<256x128xf32>
    %283 = arith.addf %277, %282 : vector<256x128xf32>
    %c8_376 = arith.constant 8 : index
    %c16_377 = arith.constant 16 : index
    %c0_378 = arith.constant 0 : index
    %284 = vector.load %arg8[%c8_376, %c16_377, %c0_378] : memref<32x32x128xf32, #tpu.memory_space<vmem>>, vector<16x16x128xf32>
    %285 = vector.shape_cast %284 : vector<16x16x128xf32> to vector<256x128xf32>
    %c1_379 = arith.constant 1 : index
    %c5_380 = arith.constant 5 : index
    %c0_381 = arith.constant 0 : index
    %c0_382 = arith.constant 0 : index
    %286 = vector.load %arg9[%c1_379, %c5_380, %c0_381, %c0_382] : memref<2x9x128x128xf32, #tpu.memory_space<vmem>>, vector<1x1x128x128xf32>
    %287 = vector.shape_cast %286 : vector<1x1x128x128xf32> to vector<128x128xf32>
    %cst_383 = arith.constant dense<0.000000e+00> : vector<256x128xf32>
    %288 = tpu.matmul %285, %287, %cst_383 {dimension_numbers = #tpu.dot_dimension_numbers<[1], [0], [0], [1], [0, 0, 1, 1], [], []>} : vector<256x128xf32>, vector<128x128xf32>, vector<256x128xf32> -> vector<256x128xf32>
    %289 = arith.addf %283, %288 : vector<256x128xf32>
    %c16_384 = arith.constant 16 : index
    %c0_385 = arith.constant 0 : index
    %c0_386 = arith.constant 0 : index
    %290 = vector.load %arg8[%c16_384, %c0_385, %c0_386] : memref<32x32x128xf32, #tpu.memory_space<vmem>>, vector<16x16x128xf32>
    %291 = vector.shape_cast %290 : vector<16x16x128xf32> to vector<256x128xf32>
    %c1_387 = arith.constant 1 : index
    %c6_388 = arith.constant 6 : index
    %c0_389 = arith.constant 0 : index
    %c0_390 = arith.constant 0 : index
    %292 = vector.load %arg9[%c1_387, %c6_388, %c0_389, %c0_390] : memref<2x9x128x128xf32, #tpu.memory_space<vmem>>, vector<1x1x128x128xf32>
    %293 = vector.shape_cast %292 : vector<1x1x128x128xf32> to vector<128x128xf32>
    %cst_391 = arith.constant dense<0.000000e+00> : vector<256x128xf32>
    %294 = tpu.matmul %291, %293, %cst_391 {dimension_numbers = #tpu.dot_dimension_numbers<[1], [0], [0], [1], [0, 0, 1, 1], [], []>} : vector<256x128xf32>, vector<128x128xf32>, vector<256x128xf32> -> vector<256x128xf32>
    %295 = arith.addf %289, %294 : vector<256x128xf32>
    %c16_392 = arith.constant 16 : index
    %c8_393 = arith.constant 8 : index
    %c0_394 = arith.constant 0 : index
    %296 = vector.load %arg8[%c16_392, %c8_393, %c0_394] : memref<32x32x128xf32, #tpu.memory_space<vmem>>, vector<16x16x128xf32>
    %297 = vector.shape_cast %296 : vector<16x16x128xf32> to vector<256x128xf32>
    %c1_395 = arith.constant 1 : index
    %c7_396 = arith.constant 7 : index
    %c0_397 = arith.constant 0 : index
    %c0_398 = arith.constant 0 : index
    %298 = vector.load %arg9[%c1_395, %c7_396, %c0_397, %c0_398] : memref<2x9x128x128xf32, #tpu.memory_space<vmem>>, vector<1x1x128x128xf32>
    %299 = vector.shape_cast %298 : vector<1x1x128x128xf32> to vector<128x128xf32>
    %cst_399 = arith.constant dense<0.000000e+00> : vector<256x128xf32>
    %300 = tpu.matmul %297, %299, %cst_399 {dimension_numbers = #tpu.dot_dimension_numbers<[1], [0], [0], [1], [0, 0, 1, 1], [], []>} : vector<256x128xf32>, vector<128x128xf32>, vector<256x128xf32> -> vector<256x128xf32>
    %301 = arith.addf %295, %300 : vector<256x128xf32>
    %c16_400 = arith.constant 16 : index
    %c16_401 = arith.constant 16 : index
    %c0_402 = arith.constant 0 : index
    %302 = vector.load %arg8[%c16_400, %c16_401, %c0_402] : memref<32x32x128xf32, #tpu.memory_space<vmem>>, vector<16x16x128xf32>
    %303 = vector.shape_cast %302 : vector<16x16x128xf32> to vector<256x128xf32>
    %c1_403 = arith.constant 1 : index
    %c8_404 = arith.constant 8 : index
    %c0_405 = arith.constant 0 : index
    %c0_406 = arith.constant 0 : index
    %304 = vector.load %arg9[%c1_403, %c8_404, %c0_405, %c0_406] : memref<2x9x128x128xf32, #tpu.memory_space<vmem>>, vector<1x1x128x128xf32>
    %305 = vector.shape_cast %304 : vector<1x1x128x128xf32> to vector<128x128xf32>
    %cst_407 = arith.constant dense<0.000000e+00> : vector<256x128xf32>
    %306 = tpu.matmul %303, %305, %cst_407 {dimension_numbers = #tpu.dot_dimension_numbers<[1], [0], [0], [1], [0, 0, 1, 1], [], []>} : vector<256x128xf32>, vector<128x128xf32>, vector<256x128xf32> -> vector<256x128xf32>
    %307 = arith.addf %301, %306 : vector<256x128xf32>
    %c3_408 = arith.constant 3 : index
    %c0_409 = arith.constant 0 : index
    %c0_410 = arith.constant 0 : index
    %308 = vector.load %arg3[%c3_408, %c0_409, %c0_410] : memref<6x1x128xf32, #tpu.memory_space<vmem>>, vector<1x1x128xf32>
    %309 = vector.shape_cast %308 : vector<1x1x128xf32> to vector<1x128xf32>
    %310 = vector.broadcast %309 : vector<1x128xf32> to vector<256x128xf32>
    %311 = arith.addf %307, %310 : vector<256x128xf32>
    %cst_411 = arith.constant 0.000000e+00 : f32
    %312 = vector.broadcast %cst_411 : f32 to vector<256x128xf32>
    %313 = arith.maximumf %311, %312 : vector<256x128xf32>
    %c4_i32_412 = arith.constant 4 : i32
    %c0_i32_413 = arith.constant 0 : i32
    %c0_i32_414 = arith.constant 0 : i32
    %c4_i32_415 = arith.constant 4 : i32
    %c0_i32_416 = arith.constant 0 : i32
    %c0_i32_417 = arith.constant 0 : i32
    %314 = tpu.memref_slice %arg2[%c4_i32_412, %c4_i32_415, %c0_i32_416, %c0_i32_417] : memref<6x9x128x128xf32, #tpu.memory_space<any>> -> memref<1x1x128x128xf32, #tpu.memory_space<any>>
    %315 = tpu.memref_squeeze %314 : memref<1x1x128x128xf32, #tpu.memory_space<any>> -> memref<1x128x128xf32, #tpu.memory_space<any>>
    %c0_i32_418 = arith.constant 0 : i32
    %c0_i32_419 = arith.constant 0 : i32
    %c0_i32_420 = arith.constant 0 : i32
    %316 = tpu.memref_slice %arg9[%c0_i32_413, %c0_i32_418, %c0_i32_419, %c0_i32_420] : memref<2x9x128x128xf32, #tpu.memory_space<vmem>> -> memref<1x1x128x128xf32, #tpu.memory_space<vmem>>
    %317 = tpu.memref_squeeze %316 : memref<1x1x128x128xf32, #tpu.memory_space<vmem>> -> memref<1x128x128xf32, #tpu.memory_space<vmem>>
    %318 = tpu.memref_slice %arg10[%c0_i32_414] : memref<2x!tpu.dma_semaphore, #tpu.memory_space<semaphore_mem>> -> memref<1x!tpu.dma_semaphore, #tpu.memory_space<semaphore_mem>>
    %319 = tpu.memref_squeeze %318 : memref<1x!tpu.dma_semaphore, #tpu.memory_space<semaphore_mem>> -> memref<!tpu.dma_semaphore, #tpu.memory_space<semaphore_mem>>
    tpu.wait_dma2 semaphore(%319 : memref<!tpu.dma_semaphore, #tpu.memory_space<semaphore_mem>>) src(%315 : memref<1x128x128xf32, #tpu.memory_space<any>>) dst(%317 : memref<1x128x128xf32, #tpu.memory_space<vmem>>)
    %c5_i32 = arith.constant 5 : i32
    %c1_i32_421 = arith.constant 1 : i32
    %c1_i32_422 = arith.constant 1 : i32
    %c4_i32_423 = arith.constant 4 : i32
    %c0_i32_424 = arith.constant 0 : i32
    %c0_i32_425 = arith.constant 0 : i32
    %320 = tpu.memref_slice %arg2[%c5_i32, %c4_i32_423, %c0_i32_424, %c0_i32_425] : memref<6x9x128x128xf32, #tpu.memory_space<any>> -> memref<1x1x128x128xf32, #tpu.memory_space<any>>
    %321 = tpu.memref_squeeze %320 : memref<1x1x128x128xf32, #tpu.memory_space<any>> -> memref<1x128x128xf32, #tpu.memory_space<any>>
    %c0_i32_426 = arith.constant 0 : i32
    %c0_i32_427 = arith.constant 0 : i32
    %c0_i32_428 = arith.constant 0 : i32
    %322 = tpu.memref_slice %arg9[%c1_i32_421, %c0_i32_426, %c0_i32_427, %c0_i32_428] : memref<2x9x128x128xf32, #tpu.memory_space<vmem>> -> memref<1x1x128x128xf32, #tpu.memory_space<vmem>>
    %323 = tpu.memref_squeeze %322 : memref<1x1x128x128xf32, #tpu.memory_space<vmem>> -> memref<1x128x128xf32, #tpu.memory_space<vmem>>
    %324 = tpu.memref_slice %arg10[%c1_i32_422] : memref<2x!tpu.dma_semaphore, #tpu.memory_space<semaphore_mem>> -> memref<1x!tpu.dma_semaphore, #tpu.memory_space<semaphore_mem>>
    %325 = tpu.memref_squeeze %324 : memref<1x!tpu.dma_semaphore, #tpu.memory_space<semaphore_mem>> -> memref<!tpu.dma_semaphore, #tpu.memory_space<semaphore_mem>>
    tpu.enqueue_dma source(%321 : memref<1x128x128xf32, #tpu.memory_space<any>>) target(%323 : memref<1x128x128xf32, #tpu.memory_space<vmem>>) target_semaphore(%325 : memref<!tpu.dma_semaphore, #tpu.memory_space<semaphore_mem>>)
    %c0_429 = arith.constant 0 : index
    %c0_430 = arith.constant 0 : index
    %c0_431 = arith.constant 0 : index
    %c0_432 = arith.constant 0 : index
    %326 = vector.load %arg9[%c0_429, %c0_430, %c0_431, %c0_432] : memref<2x9x128x128xf32, #tpu.memory_space<vmem>>, vector<1x1x128x128xf32>
    %327 = vector.shape_cast %326 : vector<1x1x128x128xf32> to vector<128x128xf32>
    %cst_433 = arith.constant dense<0.000000e+00> : vector<256x128xf32>
    %328 = tpu.matmul %313, %327, %cst_433 {dimension_numbers = #tpu.dot_dimension_numbers<[1], [0], [0], [1], [0, 0, 1, 1], [], []>} : vector<256x128xf32>, vector<128x128xf32>, vector<256x128xf32> -> vector<256x128xf32>
    %c4_434 = arith.constant 4 : index
    %c0_435 = arith.constant 0 : index
    %c0_436 = arith.constant 0 : index
    %329 = vector.load %arg3[%c4_434, %c0_435, %c0_436] : memref<6x1x128xf32, #tpu.memory_space<vmem>>, vector<1x1x128xf32>
    %330 = vector.shape_cast %329 : vector<1x1x128xf32> to vector<1x128xf32>
    %331 = vector.broadcast %330 : vector<1x128xf32> to vector<256x128xf32>
    %332 = arith.addf %328, %331 : vector<256x128xf32>
    %cst_437 = arith.constant 0.000000e+00 : f32
    %333 = vector.broadcast %cst_437 : f32 to vector<256x128xf32>
    %334 = arith.maximumf %332, %333 : vector<256x128xf32>
    %c5_i32_438 = arith.constant 5 : i32
    %c1_i32_439 = arith.constant 1 : i32
    %c1_i32_440 = arith.constant 1 : i32
    %c4_i32_441 = arith.constant 4 : i32
    %c0_i32_442 = arith.constant 0 : i32
    %c0_i32_443 = arith.constant 0 : i32
    %335 = tpu.memref_slice %arg2[%c5_i32_438, %c4_i32_441, %c0_i32_442, %c0_i32_443] : memref<6x9x128x128xf32, #tpu.memory_space<any>> -> memref<1x1x128x128xf32, #tpu.memory_space<any>>
    %336 = tpu.memref_squeeze %335 : memref<1x1x128x128xf32, #tpu.memory_space<any>> -> memref<1x128x128xf32, #tpu.memory_space<any>>
    %c0_i32_444 = arith.constant 0 : i32
    %c0_i32_445 = arith.constant 0 : i32
    %c0_i32_446 = arith.constant 0 : i32
    %337 = tpu.memref_slice %arg9[%c1_i32_439, %c0_i32_444, %c0_i32_445, %c0_i32_446] : memref<2x9x128x128xf32, #tpu.memory_space<vmem>> -> memref<1x1x128x128xf32, #tpu.memory_space<vmem>>
    %338 = tpu.memref_squeeze %337 : memref<1x1x128x128xf32, #tpu.memory_space<vmem>> -> memref<1x128x128xf32, #tpu.memory_space<vmem>>
    %339 = tpu.memref_slice %arg10[%c1_i32_440] : memref<2x!tpu.dma_semaphore, #tpu.memory_space<semaphore_mem>> -> memref<1x!tpu.dma_semaphore, #tpu.memory_space<semaphore_mem>>
    %340 = tpu.memref_squeeze %339 : memref<1x!tpu.dma_semaphore, #tpu.memory_space<semaphore_mem>> -> memref<!tpu.dma_semaphore, #tpu.memory_space<semaphore_mem>>
    tpu.wait_dma2 semaphore(%340 : memref<!tpu.dma_semaphore, #tpu.memory_space<semaphore_mem>>) src(%336 : memref<1x128x128xf32, #tpu.memory_space<any>>) dst(%338 : memref<1x128x128xf32, #tpu.memory_space<vmem>>)
    %c1_447 = arith.constant 1 : index
    %c0_448 = arith.constant 0 : index
    %c0_449 = arith.constant 0 : index
    %c0_450 = arith.constant 0 : index
    %341 = vector.load %arg9[%c1_447, %c0_448, %c0_449, %c0_450] : memref<2x9x128x128xf32, #tpu.memory_space<vmem>>, vector<1x1x128x128xf32>
    %342 = vector.shape_cast %341 : vector<1x1x128x128xf32> to vector<128x128xf32>
    %cst_451 = arith.constant dense<0.000000e+00> : vector<256x128xf32>
    %343 = tpu.matmul %334, %342, %cst_451 {dimension_numbers = #tpu.dot_dimension_numbers<[1], [0], [0], [1], [0, 0, 1, 1], [], []>} : vector<256x128xf32>, vector<128x128xf32>, vector<256x128xf32> -> vector<256x128xf32>
    %c5_452 = arith.constant 5 : index
    %c0_453 = arith.constant 0 : index
    %c0_454 = arith.constant 0 : index
    %344 = vector.load %arg3[%c5_452, %c0_453, %c0_454] : memref<6x1x128xf32, #tpu.memory_space<vmem>>, vector<1x1x128xf32>
    %345 = vector.shape_cast %344 : vector<1x1x128xf32> to vector<1x128xf32>
    %346 = vector.broadcast %345 : vector<1x128xf32> to vector<256x128xf32>
    %347 = arith.addf %343, %346 : vector<256x128xf32>
    %cst_455 = arith.constant 0.000000e+00 : f32
    %348 = vector.broadcast %cst_455 : f32 to vector<256x128xf32>
    %349 = arith.maximumf %347, %348 : vector<256x128xf32>
    %c0_456 = arith.constant 0 : index
    %c0_457 = arith.constant 0 : index
    %350 = vector.load %arg4[%c0_456, %c0_457] : memref<2x128xf32, #tpu.memory_space<vmem>>, vector<2x128xf32>
    %cst_458 = arith.constant dense<0.000000e+00> : vector<2x256xf32>
    %351 = tpu.matmul %350, %349, %cst_458 {dimension_numbers = #tpu.dot_dimension_numbers<[1], [1], [0], [0], [0, 0, 1, 0], [], []>} : vector<2x128xf32>, vector<256x128xf32>, vector<2x256xf32> -> vector<2x256xf32>
    %c0_459 = arith.constant 0 : index
    %c0_460 = arith.constant 0 : index
    %352 = vector.load %arg5[%c0_459, %c0_460] : memref<1x1xf32, #tpu.memory_space<vmem>>, vector<1x1xf32>
    %353 = vector.broadcast %352 : vector<1x1xf32> to vector<2x256xf32>
    %354 = arith.addf %351, %353 : vector<2x256xf32>
    %c0_461 = arith.constant 0 : index
    %c0_462 = arith.constant 0 : index
    %355 = vector.load %arg6[%c0_461, %c0_462] : memref<2x256xf32, #tpu.memory_space<vmem>>, vector<2x256xf32>
    tpu.vector_store %arg6[%c0_461, %c0_462], %354 {strides = array<i32>} : memref<2x256xf32, #tpu.memory_space<vmem>>, vector<2x256xf32>,
    return
  }
  func.func @transform_0(%arg0: i32) -> (i32, i32, i32) {
    %c0_i32 = arith.constant 0 : i32
    %c0_i32_0 = arith.constant 0 : i32
    %c0_i32_1 = arith.constant 0 : i32
    %c0_i32_2 = arith.constant 0 : i32
    return %c0_i32, %c0_i32_0, %c0_i32_1 : i32, i32, i32
  }
  func.func @transform_2(%arg0: i32) -> (i32, i32, i32) {
    %c0_i32 = arith.constant 0 : i32
    %c0_i32_0 = arith.constant 0 : i32
    %c0_i32_1 = arith.constant 0 : i32
    %c0_i32_2 = arith.constant 0 : i32
    return %c0_i32, %c0_i32_0, %c0_i32_1 : i32, i32, i32
  }
  func.func @transform_3(%arg0: i32) -> (i32, i32) {
    %c0_i32 = arith.constant 0 : i32
    %c0_i32_0 = arith.constant 0 : i32
    %c0_i32_1 = arith.constant 0 : i32
    return %c0_i32, %c0_i32_0 : i32, i32
  }
  func.func @transform_4(%arg0: i32) -> (i32, i32) {
    %c0_i32 = arith.constant 0 : i32
    %c0_i32_0 = arith.constant 0 : i32
    %c0_i32_1 = arith.constant 0 : i32
    return %c0_i32, %c0_i32_0 : i32, i32
  }
  func.func @transform_5(%arg0: i32) -> (i32, i32) {
    %c0_i32 = arith.constant 0 : i32
    %c0_i32_0 = arith.constant 0 : i32
    %c0_i32_1 = arith.constant 0 : i32
    return %c0_i32, %c0_i32_0 : i32, i32
  }
}

</mosaic_0001>

<bundles_post_ra>
// kernel: tile.54
= control target key start
LH: loop header
LB: loop body
LE: loop exit
PB: predicated region body
PF: predicated region fallthrough
CT: control target
= control target key end

     0   :  { %vm7_vm0 = vcmask 523264   ;;  %vm13_vm1 = vcmask 1048064   ;;  %s39_s0 = inlined_call_operand.vmem [shape: f32[2,64], index: 0, kind: input, shape index: {}]   ;;  %s40_s1 = inlined_call_operand.vmem [shape: f32[1,1,128], index: 1, kind: output, shape index: {}]  }
   0x1   :  { %v4_v0 = vld [vmem:[%s39_s0] sm:$0x3]  ;;  %s22_s0 = smov 64  }
   0x2   :  { %5 = vst [vmem:[#allocation1] sm:$0x3] %v4_v0 }
   0x9   :  { %v10_v1 = vld [vmem:[#allocation1 + $0x1] sm:$0x1]   ;;  %v6_v2 = vld [vmem:[#allocation1] sm:$0x1]  }
   0xa   :  { %11 = vrot.lane.b32.xlu0 %v10_v1, %s22_s0  ;;  %8 = vst.msk [vmem:[#allocation0] sm:$0x1] %vm7_vm0, %v6_v2  }
  0x7c   :  { %v12_v3 = vpop.permute.xlu0 %11  }
  0x7d   :  { %14 = vst.msk [vmem:[#allocation0] sm:$0x1] %vm13_vm1, %v12_v3  }
  0x84   :  { %v18_v4 = vld [vmem:[#allocation0] sm:$0x1] }
  0x85   :  { %20 = vst [vmem:[%s40_s1] sm:$0x1] %v18_v4 }

// kernel: tile.33
= control target key start
LH: loop header
LB: loop body
LE: loop exit
PB: predicated region body
PF: predicated region fallthrough
CT: control target
= control target key end

     0   :  { %2 = vsyncpa [#allocation1], 0  ;;  %s44_s6 = smov [#allocation0]   ;;  %s70_s0 = inlined_call_operand.hbm [shape: f32[64], index: 0, kind: input, shape index: {}]   ;;  %s71_s1 = inlined_call_operand.vmem [shape: f32[2,64], index: 1, kind: output, shape index: {}]  }
   0x1   :  { %s9_s7 = sshll.u32 %s44_s6, 4  ;;  %s20_s10 = scalar_lea.hbm %s70_s0, 16  ;;  %s10_s7 = int_to_ptr.vmem [resolvable:$true] %s9_s7 }
   0x2   :  { %p21_p0 = scmp.ne.s32.totalorder %s70_s0, %s20_s10  ;;  %p24_p1 = scmp.lt.u32.totalorder %s20_s10, %s70_s0 }
   0x4   :  { %p26_p2 = pnand %p24_p1, %p21_p0 }
   0x6   :  { %29 = shalt.err (!%p26_p2)
}
   0x7   :  { %s30_s15 = scalar_lea.vmem %s10_s7, 16  ;;  %s34_s16 = scalar_lea.vmem %s10_s7, 32 }
   0x8   :  { %p31_p3 = scmp.ne.s32.totalorder %s10_s7, %s30_s15  ;;  %p35_p4 = scmp.lt.s32.totalorder %s10_s7, %s10_s7 }
   0x9   :  { %p36_p5 = scmp.lt.s32.totalorder %s34_s16, %s30_s15 }
   0xb   :  { %p37_p6 = por %p36_p5, %p35_p4 }
   0xd   :  { %p38_p7 = pnand %p37_p6, %p31_p3 }
   0xf   :  { %41 = shalt.err (!%p38_p7)
}
  0x10   :  { %12 = dma.hbm_to_vmem [thread:$0]  %s70_s0, 16, %s10_s7, [#allocation1]  }
  0x11   :  { %42 = dma.done.wait [#allocation1], 16  }
  0x12   :  { %43 = vsyncadd [#allocation1], 4294967280  ;;  %v16_v0 = vld [vmem:[#allocation0] ss:$0 sm:$0xff] }
  0x13   :  { %17 = vst [vmem:[%s71_s1] sm:$0x3] %v16_v0 }
  0x14   :  { %18 = vsyncpa [#allocation1], 1 }

// kernel: global_dilated_cnn_forward.1
= control target key start
LH: loop header
LB: loop body
LE: loop exit
PB: predicated region body
PF: predicated region fallthrough
CT: control target
= control target key end

     0   :  { %s27445_s0 = inlined_call_operand.vmem [shape: f32[16,16,128], index: 0, kind: input, shape index: {}]   ;;  %s27446_s1 = inlined_call_operand.vmem [shape: f32[6,9,128,128], index: 1, kind: input, shape index: {}]   ;;  %s27447_s2 = inlined_call_operand.vmem [shape: f32[6,1,128], index: 2, kind: input, shape index: {}]   ;;  %s27448_s3 = inlined_call_operand.vmem [shape: f32[2,128], index: 3, kind: input, shape index: {}]   ;;  %s27449_s4 = inlined_call_operand.<no memory space> [shape: f32[1,1], index: 4, kind: input, shape index: {}]   ;;  %s27450_s5 = inlined_call_operand.vmem [shape: f32[2,256], index: 5, kind: output, shape index: {}]  }
   0x1   :  { %v10_v0 = vstv %s27449_s4  ;;  %v21301_v1 = vld [vmem:[%s27446_s1] sm:$0xff]  ;;  %v21306_v2 = vld [vmem:[%s27446_s1 + $0x8] sm:$0xff]  ;;  %v21311_v3 = vld [vmem:[%s27446_s1 + $0x10] sm:$0xff] }
   0x2   :  { %11 = vst [vmem:[#allocation6] sm:$0x1] %v10_v0  ;;  %v21316_v4 = vld [vmem:[%s27446_s1 + $0x18] sm:$0xff]  ;;  %v21321_v5 = vld [vmem:[%s27446_s1 + $0x20] sm:$0xff]  ;;  %v21326_v6 = vld [vmem:[%s27446_s1 + $0x28] sm:$0xff] }
   0x3   :  { %v21331_v7 = vld [vmem:[%s27446_s1 + $0x30] sm:$0xff]  ;;  %v21336_v8 = vld [vmem:[%s27446_s1 + $0x38] sm:$0xff]  ;;  %v21341_v9 = vld [vmem:[%s27446_s1 + $0x40] sm:$0xff] }
   0x4   :  { %v21346_v10 = vld [vmem:[%s27446_s1 + $0x48] sm:$0xff]  ;;  %v21351_v11 = vld [vmem:[%s27446_s1 + $0x50] sm:$0xff]  ;;  %v21356_v12 = vld [vmem:[%s27446_s1 + $0x58] sm:$0xff] }
   0x5   :  { %v21361_v13 = vld [vmem:[%s27446_s1 + $0x60] sm:$0xff]  ;;  %v21366_v14 = vld [vmem:[%s27446_s1 + $0x68] sm:$0xff]  ;;  %v21371_v15 = vld [vmem:[%s27446_s1 + $0x70] sm:$0xff] }
   0x6   :  { %v21376_v16 = vld [vmem:[%s27446_s1 + $0x78] sm:$0xff]  ;;  %v21381_v17 = vld [vmem:[%s27446_s1 + $0x80] sm:$0xff]  ;;  %v21386_v18 = vld [vmem:[%s27446_s1 + $0x88] sm:$0xff] }
   0x7   :  { %v21391_v19 = vld [vmem:[%s27446_s1 + $0x90] sm:$0xff]  ;;  %v21396_v20 = vld [vmem:[%s27446_s1 + $0x98] sm:$0xff]  ;;  %v21401_v21 = vld [vmem:[%s27446_s1 + $0xa0] sm:$0xff] }
   0x8   :  { %v21406_v22 = vld [vmem:[%s27446_s1 + $0xa8] sm:$0xff]  ;;  %v21411_v23 = vld [vmem:[%s27446_s1 + $0xb0] sm:$0xff]  ;;  %v21416_v24 = vld [vmem:[%s27446_s1 + $0xb8] sm:$0xff] }
   0x9   :  { %v21421_v25 = vld [vmem:[%s27446_s1 + $0xc0] sm:$0xff]  ;;  %v21426_v26 = vld [vmem:[%s27446_s1 + $0xc8] sm:$0xff]  ;;  %v21431_v27 = vld [vmem:[%s27446_s1 + $0xd0] sm:$0xff] }
   0xa   :  { %v21436_v28 = vld [vmem:[%s27446_s1 + $0xd8] sm:$0xff]  ;;  %v21441_v29 = vld [vmem:[%s27446_s1 + $0xe0] sm:$0xff]  ;;  %v21446_v30 = vld [vmem:[%s27446_s1 + $0xe8] sm:$0xff] }
   0xb   :  { %v21451_v31 = vld [vmem:[%s27446_s1 + $0xf0] sm:$0xff]  ;;  %v21456_v32 = vld [vmem:[%s27446_s1 + $0xf8] sm:$0xff]  ;;  %v21461_v33 = vld [vmem:[%s27446_s1 + $0x100] sm:$0xff] }
   0xc   :  { %v21466_v34 = vld [vmem:[%s27446_s1 + $0x108] sm:$0xff]  ;;  %v21471_v35 = vld [vmem:[%s27446_s1 + $0x110] sm:$0xff]  ;;  %v21476_v36 = vld [vmem:[%s27446_s1 + $0x118] sm:$0xff] }
   0xd   :  { %v21481_v37 = vld [vmem:[%s27446_s1 + $0x120] sm:$0xff]  ;;  %v21486_v38 = vld [vmem:[%s27446_s1 + $0x128] sm:$0xff]  ;;  %v21491_v39 = vld [vmem:[%s27446_s1 + $0x130] sm:$0xff] }
   0xe   :  { %v21496_v40 = vld [vmem:[%s27446_s1 + $0x138] sm:$0xff]  ;;  %v21501_v41 = vld [vmem:[%s27446_s1 + $0x140] sm:$0xff]  ;;  %v21506_v42 = vld [vmem:[%s27446_s1 + $0x148] sm:$0xff] }
   0xf   :  { %v21511_v43 = vld [vmem:[%s27446_s1 + $0x150] sm:$0xff]  ;;  %v21516_v44 = vld [vmem:[%s27446_s1 + $0x158] sm:$0xff]  ;;  %v21521_v45 = vld [vmem:[%s27446_s1 + $0x160] sm:$0xff] }
  0x10   :  { %v21526_v46 = vld [vmem:[%s27446_s1 + $0x168] sm:$0xff]  ;;  %v21531_v47 = vld [vmem:[%s27446_s1 + $0x170] sm:$0xff]  ;;  %v21536_v48 = vld [vmem:[%s27446_s1 + $0x178] sm:$0xff] }
  0x11   :  { %v21541_v49 = vld [vmem:[%s27446_s1 + $0x180] sm:$0xff]  ;;  %v21546_v50 = vld [vmem:[%s27446_s1 + $0x188] sm:$0xff]  ;;  %v21551_v51 = vld [vmem:[%s27446_s1 + $0x190] sm:$0xff] }
  0x12   :  { %v21556_v52 = vld [vmem:[%s27446_s1 + $0x198] sm:$0xff]  ;;  %v21561_v53 = vld [vmem:[%s27446_s1 + $0x1a0] sm:$0xff]  ;;  %v21566_v54 = vld [vmem:[%s27446_s1 + $0x1a8] sm:$0xff] }
  0x13   :  { %v21571_v55 = vld [vmem:[%s27446_s1 + $0x1b0] sm:$0xff]  ;;  %v21576_v56 = vld [vmem:[%s27446_s1 + $0x1b8] sm:$0xff]  ;;  %v21581_v57 = vld [vmem:[%s27446_s1 + $0x1c0] sm:$0xff] }
  0x14   :  { %v21586_v58 = vld [vmem:[%s27446_s1 + $0x1c8] sm:$0xff]  ;;  %v21591_v59 = vld [vmem:[%s27446_s1 + $0x1d0] sm:$0xff]  ;;  %v21596_v60 = vld [vmem:[%s27446_s1 + $0x1d8] sm:$0xff] }
  0x15   :  { %27574 = vst [vmem:[#allocation19_spill] sm:$0xff] %v21591_v59  ;;  %27575 = vst [vmem:[#allocation20_spill] sm:$0xff] %v21596_v60  ;;  %v21601_v61 = vld [vmem:[%s27446_s1 + $0x1e0] sm:$0xff]  ;;  %v21606_v62 = vld [vmem:[%s27446_s1 + $0x1e8] sm:$0xff] }
  0x16   :  { %27576 = vst [vmem:[#allocation21_spill] sm:$0xff] %v21601_v61  ;;  %27577 = vst [vmem:[#allocation22_spill] sm:$0xff] %v21606_v62  ;;  %v21611_v63 = vld [vmem:[%s27446_s1 + $0x1f0] sm:$0xff]  ;;  %v21616_v0 = vld [vmem:[%s27446_s1 + $0x1f8] sm:$0xff] }
  0x17   :  { %27578 = vst [vmem:[#allocation23_spill] sm:$0xff] %v21611_v63  ;;  %27579 = vst [vmem:[#allocation24_spill] sm:$0xff] %v21616_v0  ;;  %v21621_v60 = vld [vmem:[%s27446_s1 + $0x200] sm:$0xff]  ;;  %v21626_v61 = vld [vmem:[%s27446_s1 + $0x208] sm:$0xff] }
  0x18   :  { %27580 = vst [vmem:[#allocation25_spill] sm:$0xff] %v21621_v60  ;;  %27581 = vst [vmem:[#allocation26_spill] sm:$0xff] %v21626_v61  ;;  %v21631_v62 = vld [vmem:[%s27446_s1 + $0x210] sm:$0xff]  ;;  %v21636_v63 = vld [vmem:[%s27446_s1 + $0x218] sm:$0xff] }
  0x19   :  { %27582 = vst [vmem:[#allocation27_spill] sm:$0xff] %v21631_v62  ;;  %27583 = vst [vmem:[#allocation28_spill] sm:$0xff] %v21636_v63  ;;  %v21641_v0 = vld [vmem:[%s27446_s1 + $0x220] sm:$0xff]  ;;  %v21646_v60 = vld [vmem:[%s27446_s1 + $0x228] sm:$0xff] }
  0x1a   :  { %27584 = vst [vmem:[#allocation29_spill] sm:$0xff] %v21641_v0  ;;  %27585 = vst [vmem:[#allocation30_spill] sm:$0xff] %v21646_v60  ;;  %v21651_v61 = vld [vmem:[%s27446_s1 + $0x230] sm:$0xff]  ;;  %v21656_v62 = vld [vmem:[%s27446_s1 + $0x238] sm:$0xff] }
  0x1b   :  { %27586 = vst [vmem:[#allocation31_spill] sm:$0xff] %v21651_v61  ;;  %27587 = vst [vmem:[#allocation32_spill] sm:$0xff] %v21656_v62  ;;  %v21661_v63 = vld [vmem:[%s27446_s1 + $0x240] sm:$0xff]  ;;  %v21666_v0 = vld [vmem:[%s27446_s1 + $0x248] sm:$0xff] }
  0x1c   :  { %27588 = vst [vmem:[#allocation33_spill] sm:$0xff] %v21661_v63  ;;  %27589 = vst [vmem:[#allocation34_spill] sm:$0xff] %v21666_v0  ;;  %v21671_v60 = vld [vmem:[%s27446_s1 + $0x250] sm:$0xff]  ;;  %v21676_v61 = vld [vmem:[%s27446_s1 + $0x258] sm:$0xff] }
  0x1d   :  { %27590 = vst [vmem:[#allocation35_spill] sm:$0xff] %v21671_v60  ;;  %27591 = vst [vmem:[#allocation36_spill] sm:$0xff] %v21676_v61  ;;  %v21681_v62 = vld [vmem:[%s27446_s1 + $0x260] sm:$0xff]  ;;  %v21686_v63 = vld [vmem:[%s27446_s1 + $0x268] sm:$0xff] }
  0x1e   :  { %27592 = vst [vmem:[#allocation37_spill] sm:$0xff] %v21681_v62  ;;  %27593 = vst [vmem:[#allocation38_spill] sm:$0xff] %v21686_v63  ;;  %v21691_v0 = vld [vmem:[%s27446_s1 + $0x270] sm:$0xff]  ;;  %v21696_v60 = vld [vmem:[%s27446_s1 + $0x278] sm:$0xff] }
  0x1f   :  { %27594 = vst [vmem:[#allocation39_spill] sm:$0xff] %v21691_v0  ;;  %27595 = vst [vmem:[#allocation40_spill] sm:$0xff] %v21696_v60  ;;  %v21701_v61 = vld [vmem:[%s27446_s1 + $0x280] sm:$0xff]  ;;  %v21706_v62 = vld [vmem:[%s27446_s1 + $0x288] sm:$0xff] }
  0x20   :  { %27596 = vst [vmem:[#allocation41_spill] sm:$0xff] %v21701_v61  ;;  %27597 = vst [vmem:[#allocation42_spill] sm:$0xff] %v21706_v62  ;;  %v21711_v63 = vld [vmem:[%s27446_s1 + $0x290] sm:$0xff]  ;;  %v21716_v0 = vld [vmem:[%s27446_s1 + $0x298] sm:$0xff] }
  0x21   :  { %27598 = vst [vmem:[#allocation43_spill] sm:$0xff] %v21711_v63  ;;  %27599 = vst [vmem:[#allocation44_spill] sm:$0xff] %v21716_v0  ;;  %v21721_v60 = vld [vmem:[%s27446_s1 + $0x2a0] sm:$0xff]  ;;  %v21726_v61 = vld [vmem:[%s27446_s1 + $0x2a8] sm:$0xff] }
  0x22   :  { %27600 = vst [vmem:[#allocation45_spill] sm:$0xff] %v21721_v60  ;;  %27601 = vst [vmem:[#allocation46_spill] sm:$0xff] %v21726_v61  ;;  %v21731_v62 = vld [vmem:[%s27446_s1 + $0x2b0] sm:$0xff]  ;;  %v21736_v63 = vld [vmem:[%s27446_s1 + $0x2b8] sm:$0xff] }
  0x23   :  { %27602 = vst [vmem:[#allocation47_spill] sm:$0xff] %v21731_v62  ;;  %27603 = vst [vmem:[#allocation48_spill] sm:$0xff] %v21736_v63  ;;  %v21741_v0 = vld [vmem:[%s27446_s1 + $0x2c0] sm:$0xff]  ;;  %v21746_v60 = vld [vmem:[%s27446_s1 + $0x2c8] sm:$0xff] }
  0x24   :  { %27604 = vst [vmem:[#allocation49_spill] sm:$0xff] %v21741_v0  ;;  %27605 = vst [vmem:[#allocation50_spill] sm:$0xff] %v21746_v60  ;;  %v21751_v61 = vld [vmem:[%s27446_s1 + $0x2d0] sm:$0xff]  ;;  %v21756_v62 = vld [vmem:[%s27446_s1 + $0x2d8] sm:$0xff] }
  0x25   :  { %27606 = vst [vmem:[#allocation51_spill] sm:$0xff] %v21751_v61  ;;  %27607 = vst [vmem:[#allocation52_spill] sm:$0xff] %v21756_v62  ;;  %v21761_v63 = vld [vmem:[%s27446_s1 + $0x2e0] sm:$0xff]  ;;  %v21766_v0 = vld [vmem:[%s27446_s1 + $0x2e8] sm:$0xff] }
  0x26   :  { %27608 = vst [vmem:[#allocation53_spill] sm:$0xff] %v21761_v63  ;;  %27609 = vst [vmem:[#allocation54_spill] sm:$0xff] %v21766_v0  ;;  %v21771_v60 = vld [vmem:[%s27446_s1 + $0x2f0] sm:$0xff]  ;;  %v21776_v61 = vld [vmem:[%s27446_s1 + $0x2f8] sm:$0xff] }
  0x27   :  { %27610 = vst [vmem:[#allocation55_spill] sm:$0xff] %v21771_v60  ;;  %27611 = vst [vmem:[#allocation56_spill] sm:$0xff] %v21776_v61  ;;  %v21781_v62 = vld [vmem:[%s27446_s1 + $0x300] sm:$0xff]  ;;  %v21786_v63 = vld [vmem:[%s27446_s1 + $0x308] sm:$0xff] }
  0x28   :  { %27612 = vst [vmem:[#allocation57_spill] sm:$0xff] %v21781_v62  ;;  %27613 = vst [vmem:[#allocation58_spill] sm:$0xff] %v21786_v63  ;;  %v21791_v0 = vld [vmem:[%s27446_s1 + $0x310] sm:$0xff]  ;;  %v21796_v60 = vld [vmem:[%s27446_s1 + $0x318] sm:$0xff] }
  0x29   :  { %27614 = vst [vmem:[#allocation59_spill] sm:$0xff] %v21791_v0  ;;  %27615 = vst [vmem:[#allocation60_spill] sm:$0xff] %v21796_v60  ;;  %v21801_v61 = vld [vmem:[%s27446_s1 + $0x320] sm:$0xff]  ;;  %v21806_v62 = vld [vmem:[%s27446_s1 + $0x328] sm:$0xff] }
  0x2a   :  { %27616 = vst [vmem:[#allocation61_spill] sm:$0xff] %v21801_v61  ;;  %27617 = vst [vmem:[#allocation62_spill] sm:$0xff] %v21806_v62  ;;  %v21811_v63 = vld [vmem:[%s27446_s1 + $0x330] sm:$0xff]  ;;  %v21816_v0 = vld [vmem:[%s27446_s1 + $0x338] sm:$0xff] }
  0x2b   :  { %27618 = vst [vmem:[#allocation63_spill] sm:$0xff] %v21811_v63  ;;  %27619 = vst [vmem:[#allocation64_spill] sm:$0xff] %v21816_v0  ;;  %v21821_v60 = vld [vmem:[%s27446_s1 + $0x340] sm:$0xff]  ;;  %v21826_v61 = vld [vmem:[%s27446_s1 + $0x348] sm:$0xff] }
  0x2c   :  { %27620 = vst [vmem:[#allocation65_spill] sm:$0xff] %v21821_v60  ;;  %27621 = vst [vmem:[#allocation66_spill] sm:$0xff] %v21826_v61  ;;  %v21831_v62 = vld [vmem:[%s27446_s1 + $0x350] sm:$0xff]  ;;  %v21836_v63 = vld [vmem:[%s27446_s1 + $0x358] sm:$0xff] }
  0x2d   :  { %27622 = vst [vmem:[#allocation67_spill] sm:$0xff] %v21831_v62  ;;  %27623 = vst [vmem:[#allocation68_spill] sm:$0xff] %v21836_v63  ;;  %v21841_v0 = vld [vmem:[%s27446_s1 + $0x360] sm:$0xff]  ;;  %v21846_v60 = vld [vmem:[%s27446_s1 + $0x368] sm:$0xff] }
  0x2e   :  { %27624 = vst [vmem:[#allocation69_spill] sm:$0xff] %v21841_v0  ;;  %27625 = vst [vmem:[#allocation70_spill] sm:$0xff] %v21846_v60  ;;  %v21851_v61 = vld [vmem:[%s27446_s1 + $0x370] sm:$0xff]  ;;  %v21856_v62 = vld [vmem:[%s27446_s1 + $0x378] sm:$0xff] }
  0x2f   :  { %27626 = vst [vmem:[#allocation71_spill] sm:$0xff] %v21851_v61  ;;  %27627 = vst [vmem:[#allocation72_spill] sm:$0xff] %v21856_v62  ;;  %v21861_v63 = vld [vmem:[%s27446_s1 + $0x380] sm:$0xff]  ;;  %v21866_v0 = vld [vmem:[%s27446_s1 + $0x388] sm:$0xff] }
  0x30   :  { %27628 = vst [vmem:[#allocation73_spill] sm:$0xff] %v21861_v63  ;;  %27629 = vst [vmem:[#allocation74_spill] sm:$0xff] %v21866_v0  ;;  %v21871_v60 = vld [vmem:[%s27446_s1 + $0x390] sm:$0xff]  ;;  %v21876_v61 = vld [vmem:[%s27446_s1 + $0x398] sm:$0xff] }
  0x31   :  { %27630 = vst [vmem:[#allocation75_spill] sm:$0xff] %v21871_v60  ;;  %27631 = vst [vmem:[#allocation76_spill] sm:$0xff] %v21876_v61  ;;  %v21881_v62 = vld [vmem:[%s27446_s1 + $0x3a0] sm:$0xff]  ;;  %v21886_v63 = vld [vmem:[%s27446_s1 + $0x3a8] sm:$0xff] }
  0x32   :  { %27632 = vst [vmem:[#allocation77_spill] sm:$0xff] %v21881_v62  ;;  %27633 = vst [vmem:[#allocation78_spill] sm:$0xff] %v21886_v63  ;;  %v21891_v0 = vld [vmem:[%s27446_s1 + $0x3b0] sm:$0xff]  ;;  %v21896_v60 = vld [vmem:[%s27446_s1 + $0x3b8] sm:$0xff] }
  0x33   :  { %27634 = vst [vmem:[#allocation79_spill] sm:$0xff] %v21891_v0  ;;  %27635 = vst [vmem:[#allocation80_spill] sm:$0xff] %v21896_v60  ;;  %v21901_v61 = vld [vmem:[%s27446_s1 + $0x3c0] sm:$0xff]  ;;  %v21906_v62 = vld [vmem:[%s27446_s1 + $0x3c8] sm:$0xff] }
  0x34   :  { %27636 = vst [vmem:[#allocation81_spill] sm:$0xff] %v21901_v61  ;;  %27637 = vst [vmem:[#allocation82_spill] sm:$0xff] %v21906_v62  ;;  %v21911_v63 = vld [vmem:[%s27446_s1 + $0x3d0] sm:$0xff]  ;;  %v21916_v0 = vld [vmem:[%s27446_s1 + $0x3d8] sm:$0xff] }
  0x35   :  { %27638 = vst [vmem:[#allocation83_spill] sm:$0xff] %v21911_v63  ;;  %27639 = vst [vmem:[#allocation84_spill] sm:$0xff] %v21916_v0  ;;  %v21921_v60 = vld [vmem:[%s27446_s1 + $0x3e0] sm:$0xff]  ;;  %v21926_v61 = vld [vmem:[%s27446_s1 + $0x3e8] sm:$0xff] }
  0x36   :  { %27640 = vst [vmem:[#allocation85_spill] sm:$0xff] %v21921_v60  ;;  %27641 = vst [vmem:[#allocation86_spill] sm:$0xff] %v21926_v61  ;;  %v21931_v62 = vld [vmem:[%s27446_s1 + $0x3f0] sm:$0xff]  ;;  %v21936_v63 = vld [vmem:[%s27446_s1 + $0x3f8] sm:$0xff] }
  0x37   :  { %27642 = vst [vmem:[#allocation87_spill] sm:$0xff] %v21931_v62  ;;  %27643 = vst [vmem:[#allocation88_spill] sm:$0xff] %v21936_v63  ;;  %v21941_v0 = vld [vmem:[%s27446_s1 + $0x400] sm:$0xff]  ;;  %v21946_v60 = vld [vmem:[%s27446_s1 + $0x408] sm:$0xff] }
  0x38   :  { %27644 = vst [vmem:[#allocation89_spill] sm:$0xff] %v21941_v0  ;;  %27645 = vst [vmem:[#allocation90_spill] sm:$0xff] %v21946_v60  ;;  %v21951_v61 = vld [vmem:[%s27446_s1 + $0x410] sm:$0xff]  ;;  %v21956_v62 = vld [vmem:[%s27446_s1 + $0x418] sm:$0xff] }
  0x39   :  { %27646 = vst [vmem:[#allocation91_spill] sm:$0xff] %v21951_v61  ;;  %27647 = vst [vmem:[#allocation92_spill] sm:$0xff] %v21956_v62  ;;  %v21961_v63 = vld [vmem:[%s27446_s1 + $0x420] sm:$0xff]  ;;  %v21966_v0 = vld [vmem:[%s27446_s1 + $0x428] sm:$0xff] }
  0x3a   :  { %27648 = vst [vmem:[#allocation93_spill] sm:$0xff] %v21961_v63  ;;  %27649 = vst [vmem:[#allocation94_spill] sm:$0xff] %v21966_v0  ;;  %v21971_v60 = vld [vmem:[%s27446_s1 + $0x430] sm:$0xff]  ;;  %v21976_v61 = vld [vmem:[%s27446_s1 + $0x438] sm:$0xff] }
  0x3b   :  { %27650 = vst [vmem:[#allocation95_spill] sm:$0xff] %v21971_v60  ;;  %27651 = vst [vmem:[#allocation96_spill] sm:$0xff] %v21976_v61  ;;  %v21981_v62 = vld [vmem:[%s27446_s1 + $0x440] sm:$0xff]  ;;  %v21986_v63 = vld [vmem:[%s27446_s1 + $0x448] sm:$0xff] }
  0x3c   :  { %27652 = vst [vmem:[#allocation97_spill] sm:$0xff] %v21981_v62  ;;  %27653 = vst [vmem:[#allocation98_spill] sm:$0xff] %v21986_v63  ;;  %v21991_v0 = vld [vmem:[%s27446_s1 + $0x450] sm:$0xff]  ;;  %v21996_v60 = vld [vmem:[%s27446_s1 + $0x458] sm:$0xff] }
  0x3d   :  { %27654 = vst [vmem:[#allocation99_spill] sm:$0xff] %v21991_v0  ;;  %27655 = vst [vmem:[#allocation100_spill] sm:$0xff] %v21996_v60  ;;  %v22001_v61 = vld [vmem:[%s27446_s1 + $0x460] sm:$0xff]  ;;  %v22006_v62 = vld [vmem:[%s27446_s1 + $0x468] sm:$0xff] }
  0x3e   :  { %27656 = vst [vmem:[#allocation101_spill] sm:$0xff] %v22001_v61  ;;  %27657 = vst [vmem:[#allocation102_spill] sm:$0xff] %v22006_v62  ;;  %v22011_v63 = vld [vmem:[%s27446_s1 + $0x470] sm:$0xff]  ;;  %v22016_v0 = vld [vmem:[%s27446_s1 + $0x478] sm:$0xff] }
  0x3f   :  { %27658 = vst [vmem:[#allocation103_spill] sm:$0xff] %v22011_v63  ;;  %27659 = vst [vmem:[#allocation104_spill] sm:$0xff] %v22016_v0 }
  0x40   :  { %347 = vsyncadd [#allocation5], 18432  ;;  %v22021_v61 = vld [vmem:[%s27445_s0] sm:$0xff]  ;;  %v22026_v62 = vld [vmem:[%s27445_s0 + $0x8] sm:$0xff]  ;;  %v21263_v60 = vmov 0.0  }
  0x41   :  { %364 = vst [vmem:[#allocation2 + $0x80] sm:$0xff] %v21263_v60  ;;  %365 = vst [vmem:[#allocation2 + $0x88] sm:$0xff] %v21263_v60  ;;  %v546_v0 = vld [vmem:[%s27445_s0 + $0x10] sm:$0xff]  ;;  %v547_v63 = vld [vmem:[%s27445_s0 + $0x18] sm:$0xff] }
  0x42   :  { %366 = vst [vmem:[#allocation2 + $0x90] sm:$0xff] %v21263_v60  ;;  %367 = vst [vmem:[#allocation2 + $0x98] sm:$0xff] %v21263_v60  ;;  %v548_v59 = vld [vmem:[%s27445_s0 + $0x20] sm:$0xff] }
  0x43   :  { %368 = vst [vmem:[#allocation2 + $0xa0] sm:$0xff] %v21263_v60  ;;  %369 = vst [vmem:[#allocation2 + $0xa8] sm:$0xff] %v21263_v60 }
  0x44   :  { %370 = vst [vmem:[#allocation2 + $0xb0] sm:$0xff] %v21263_v60  ;;  %371 = vst [vmem:[#allocation2 + $0xb8] sm:$0xff] %v21263_v60 }
  0x45   :  { %372 = vst [vmem:[#allocation2 + $0xc0] sm:$0xff] %v21263_v60  ;;  %373 = vst [vmem:[#allocation2 + $0xc8] sm:$0xff] %v21263_v60 }
  0x46   :  { %374 = vst [vmem:[#allocation2 + $0xd0] sm:$0xff] %v21263_v60  ;;  %375 = vst [vmem:[#allocation2 + $0xd8] sm:$0xff] %v21263_v60 }
  0x47   :  { %376 = vst [vmem:[#allocation2 + $0xe0] sm:$0xff] %v21263_v60  ;;  %377 = vst [vmem:[#allocation2 + $0xe8] sm:$0xff] %v21263_v60 }
  0x48   :  { %378 = vst [vmem:[#allocation2 + $0xf0] sm:$0xff] %v21263_v60  ;;  %379 = vst [vmem:[#allocation2 + $0xf8] sm:$0xff] %v21263_v60 }
  0x49   :  { %381 = vst [vmem:[#allocation2 + $0x300] sm:$0xff] %v21263_v60  ;;  %382 = vst [vmem:[#allocation2 + $0x308] sm:$0xff] %v21263_v60 }
  0x4a   :  { %383 = vst [vmem:[#allocation2 + $0x310] sm:$0xff] %v21263_v60  ;;  %384 = vst [vmem:[#allocation2 + $0x318] sm:$0xff] %v21263_v60 }
  0x4b   :  { %385 = vst [vmem:[#allocation2 + $0x320] sm:$0xff] %v21263_v60  ;;  %386 = vst [vmem:[#allocation2 + $0x328] sm:$0xff] %v21263_v60 }
  0x4c   :  { %387 = vst [vmem:[#allocation2 + $0x330] sm:$0xff] %v21263_v60  ;;  %388 = vst [vmem:[#allocation2 + $0x338] sm:$0xff] %v21263_v60 }
  0x4d   :  { %389 = vst [vmem:[#allocation2 + $0x340] sm:$0xff] %v21263_v60  ;;  %390 = vst [vmem:[#allocation2 + $0x348] sm:$0xff] %v21263_v60 }
  0x4e   :  { %391 = vst [vmem:[#allocation2 + $0x350] sm:$0xff] %v21263_v60  ;;  %392 = vst [vmem:[#allocation2 + $0x358] sm:$0xff] %v21263_v60 }
  0x4f   :  { %393 = vst [vmem:[#allocation2 + $0x360] sm:$0xff] %v21263_v60  ;;  %394 = vst [vmem:[#allocation2 + $0x368] sm:$0xff] %v21263_v60 }
  0x50   :  { %395 = vst [vmem:[#allocation2 + $0x370] sm:$0xff] %v21263_v60  ;;  %396 = vst [vmem:[#allocation2 + $0x378] sm:$0xff] %v21263_v60 }
  0x51   :  { %414 = vst [vmem:[#allocation2 + $0x100] sm:$0xff] %v21263_v60  ;;  %415 = vst [vmem:[#allocation2 + $0x120] sm:$0xff] %v21263_v60 }
  0x52   :  { %416 = vst [vmem:[#allocation2 + $0x140] sm:$0xff] %v21263_v60  ;;  %417 = vst [vmem:[#allocation2 + $0x160] sm:$0xff] %v21263_v60 }
  0x53   :  { %418 = vst [vmem:[#allocation2 + $0x180] sm:$0xff] %v21263_v60  ;;  %419 = vst [vmem:[#allocation2 + $0x1a0] sm:$0xff] %v21263_v60 }
  0x54   :  { %420 = vst [vmem:[#allocation2 + $0x1c0] sm:$0xff] %v21263_v60  ;;  %421 = vst [vmem:[#allocation2 + $0x1e0] sm:$0xff] %v21263_v60 }
  0x55   :  { %422 = vst [vmem:[#allocation2 + $0x200] sm:$0xff] %v21263_v60  ;;  %423 = vst [vmem:[#allocation2 + $0x220] sm:$0xff] %v21263_v60 }
  0x56   :  { %424 = vst [vmem:[#allocation2 + $0x240] sm:$0xff] %v21263_v60  ;;  %425 = vst [vmem:[#allocation2 + $0x260] sm:$0xff] %v21263_v60 }
  0x57   :  { %426 = vst [vmem:[#allocation2 + $0x280] sm:$0xff] %v21263_v60  ;;  %427 = vst [vmem:[#allocation2 + $0x2a0] sm:$0xff] %v21263_v60 }
  0x58   :  { %428 = vst [vmem:[#allocation2 + $0x2c0] sm:$0xff] %v21263_v60  ;;  %429 = vst [vmem:[#allocation2 + $0x2e0] sm:$0xff] %v21263_v60 }
  0x59   :  { %430 = vst [vmem:[#allocation2 + $0x118] sm:$0xff] %v21263_v60  ;;  %431 = vst [vmem:[#allocation2 + $0x138] sm:$0xff] %v21263_v60 }
  0x5a   :  { %432 = vst [vmem:[#allocation2 + $0x158] sm:$0xff] %v21263_v60  ;;  %433 = vst [vmem:[#allocation2 + $0x178] sm:$0xff] %v21263_v60 }
  0x5b   :  { %434 = vst [vmem:[#allocation2 + $0x198] sm:$0xff] %v21263_v60  ;;  %435 = vst [vmem:[#allocation2 + $0x1b8] sm:$0xff] %v21263_v60 }
  0x5c   :  { %436 = vst [vmem:[#allocation2 + $0x1d8] sm:$0xff] %v21263_v60  ;;  %437 = vst [vmem:[#allocation2 + $0x1f8] sm:$0xff] %v21263_v60 }
  0x5d   :  { %438 = vst [vmem:[#allocation2 + $0x218] sm:$0xff] %v21263_v60  ;;  %439 = vst [vmem:[#allocation2 + $0x238] sm:$0xff] %v21263_v60 }
  0x5e   :  { %440 = vst [vmem:[#allocation2 + $0x258] sm:$0xff] %v21263_v60  ;;  %441 = vst [vmem:[#allocation2 + $0x278] sm:$0xff] %v21263_v60 }
  0x5f   :  { %442 = vst [vmem:[#allocation2 + $0x298] sm:$0xff] %v21263_v60  ;;  %443 = vst [vmem:[#allocation2 + $0x2b8] sm:$0xff] %v21263_v60 }
  0x60   :  { %444 = vst [vmem:[#allocation2 + $0x2d8] sm:$0xff] %v21263_v60  ;;  %445 = vst [vmem:[#allocation2 + $0x2f8] sm:$0xff] %v21263_v60 }
  0x61   :  { %446 = vst [vmem:[#allocation3] sm:$0xff] %v21263_v60  ;;  %447 = vst [vmem:[#allocation3 + $0x8] sm:$0xff] %v21263_v60 }
  0x62   :  { %448 = vst [vmem:[#allocation3 + $0x10] sm:$0xff] %v21263_v60  ;;  %449 = vst [vmem:[#allocation3 + $0x18] sm:$0xff] %v21263_v60 }
  0x63   :  { %450 = vst [vmem:[#allocation3 + $0x20] sm:$0xff] %v21263_v60  ;;  %451 = vst [vmem:[#allocation3 + $0x28] sm:$0xff] %v21263_v60 }
  0x64   :  { %452 = vst [vmem:[#allocation3 + $0x30] sm:$0xff] %v21263_v60  ;;  %453 = vst [vmem:[#allocation3 + $0x38] sm:$0xff] %v21263_v60 }
  0x65   :  { %454 = vst [vmem:[#allocation3 + $0x40] sm:$0xff] %v21263_v60  ;;  %455 = vst [vmem:[#allocation3 + $0x48] sm:$0xff] %v21263_v60 }
  0x66   :  { %456 = vst [vmem:[#allocation3 + $0x50] sm:$0xff] %v21263_v60  ;;  %457 = vst [vmem:[#allocation3 + $0x58] sm:$0xff] %v21263_v60 }
  0x67   :  { %458 = vst [vmem:[#allocation3 + $0x60] sm:$0xff] %v21263_v60  ;;  %459 = vst [vmem:[#allocation3 + $0x68] sm:$0xff] %v21263_v60 }
  0x68   :  { %460 = vst [vmem:[#allocation3 + $0x70] sm:$0xff] %v21263_v60  ;;  %461 = vst [vmem:[#allocation3 + $0x78] sm:$0xff] %v21263_v60 }
  0x69   :  { %462 = vst [vmem:[#allocation3 + $0x80] sm:$0xff] %v21263_v60  ;;  %463 = vst [vmem:[#allocation3 + $0x88] sm:$0xff] %v21263_v60 }
  0x6a   :  { %464 = vst [vmem:[#allocation3 + $0x90] sm:$0xff] %v21263_v60  ;;  %465 = vst [vmem:[#allocation3 + $0x98] sm:$0xff] %v21263_v60 }
  0x6b   :  { %466 = vst [vmem:[#allocation3 + $0xa0] sm:$0xff] %v21263_v60  ;;  %467 = vst [vmem:[#allocation3 + $0xa8] sm:$0xff] %v21263_v60 }
  0x6c   :  { %468 = vst [vmem:[#allocation3 + $0xb0] sm:$0xff] %v21263_v60  ;;  %469 = vst [vmem:[#allocation3 + $0xb8] sm:$0xff] %v21263_v60 }
  0x6d   :  { %470 = vst [vmem:[#allocation3 + $0xc0] sm:$0xff] %v21263_v60  ;;  %471 = vst [vmem:[#allocation3 + $0xc8] sm:$0xff] %v21263_v60 }
  0x6e   :  { %472 = vst [vmem:[#allocation3 + $0xd0] sm:$0xff] %v21263_v60  ;;  %473 = vst [vmem:[#allocation3 + $0xd8] sm:$0xff] %v21263_v60 }
  0x6f   :  { %474 = vst [vmem:[#allocation3 + $0xe0] sm:$0xff] %v21263_v60  ;;  %475 = vst [vmem:[#allocation3 + $0xe8] sm:$0xff] %v21263_v60 }
  0x70   :  { %476 = vst [vmem:[#allocation3 + $0xf0] sm:$0xff] %v21263_v60  ;;  %477 = vst [vmem:[#allocation3 + $0xf8] sm:$0xff] %v21263_v60 }
  0x71   :  { %479 = vst [vmem:[#allocation3 + $0x300] sm:$0xff] %v21263_v60  ;;  %480 = vst [vmem:[#allocation3 + $0x308] sm:$0xff] %v21263_v60 }
  0x72   :  { %481 = vst [vmem:[#allocation3 + $0x310] sm:$0xff] %v21263_v60  ;;  %482 = vst [vmem:[#allocation3 + $0x318] sm:$0xff] %v21263_v60 }
  0x73   :  { %483 = vst [vmem:[#allocation3 + $0x320] sm:$0xff] %v21263_v60  ;;  %484 = vst [vmem:[#allocation3 + $0x328] sm:$0xff] %v21263_v60 }
  0x74   :  { %485 = vst [vmem:[#allocation3 + $0x330] sm:$0xff] %v21263_v60  ;;  %486 = vst [vmem:[#allocation3 + $0x338] sm:$0xff] %v21263_v60 }
  0x75   :  { %487 = vst [vmem:[#allocation3 + $0x340] sm:$0xff] %v21263_v60  ;;  %488 = vst [vmem:[#allocation3 + $0x348] sm:$0xff] %v21263_v60 }
  0x76   :  { %489 = vst [vmem:[#allocation3 + $0x350] sm:$0xff] %v21263_v60  ;;  %490 = vst [vmem:[#allocation3 + $0x358] sm:$0xff] %v21263_v60 }
  0x77   :  { %491 = vst [vmem:[#allocation3 + $0x360] sm:$0xff] %v21263_v60  ;;  %492 = vst [vmem:[#allocation3 + $0x368] sm:$0xff] %v21263_v60 }
  0x78   :  { %493 = vst [vmem:[#allocation3 + $0x370] sm:$0xff] %v21263_v60  ;;  %494 = vst [vmem:[#allocation3 + $0x378] sm:$0xff] %v21263_v60 }
  0x79   :  { %495 = vst [vmem:[#allocation3 + $0x380] sm:$0xff] %v21263_v60  ;;  %496 = vst [vmem:[#allocation3 + $0x388] sm:$0xff] %v21263_v60 }
  0x7a   :  { %497 = vst [vmem:[#allocation3 + $0x390] sm:$0xff] %v21263_v60  ;;  %498 = vst [vmem:[#allocation3 + $0x398] sm:$0xff] %v21263_v60 }
  0x7b   :  { %499 = vst [vmem:[#allocation3 + $0x3a0] sm:$0xff] %v21263_v60  ;;  %500 = vst [vmem:[#allocation3 + $0x3a8] sm:$0xff] %v21263_v60 }
  0x7c   :  { %501 = vst [vmem:[#allocation3 + $0x3b0] sm:$0xff] %v21263_v60  ;;  %502 = vst [vmem:[#allocation3 + $0x3b8] sm:$0xff] %v21263_v60 }
  0x7d   :  { %503 = vst [vmem:[#allocation3 + $0x3c0] sm:$0xff] %v21263_v60  ;;  %504 = vst [vmem:[#allocation3 + $0x3c8] sm:$0xff] %v21263_v60 }
  0x7e   :  { %505 = vst [vmem:[#allocation3 + $0x3d0] sm:$0xff] %v21263_v60  ;;  %506 = vst [vmem:[#allocation3 + $0x3d8] sm:$0xff] %v21263_v60 }
  0x7f   :  { %507 = vst [vmem:[#allocation3 + $0x3e0] sm:$0xff] %v21263_v60  ;;  %508 = vst [vmem:[#allocation3 + $0x3e8] sm:$0xff] %v21263_v60 }
  0x80   :  { %509 = vst [vmem:[#allocation3 + $0x3f0] sm:$0xff] %v21263_v60  ;;  %510 = vst [vmem:[#allocation3 + $0x3f8] sm:$0xff] %v21263_v60 }
  0x81   :  { %512 = vst [vmem:[#allocation3 + $0x100] sm:$0xff] %v21263_v60  ;;  %513 = vst [vmem:[#allocation3 + $0x120] sm:$0xff] %v21263_v60 }
  0x82   :  { %514 = vst [vmem:[#allocation3 + $0x140] sm:$0xff] %v21263_v60  ;;  %515 = vst [vmem:[#allocation3 + $0x160] sm:$0xff] %v21263_v60 }
  0x83   :  { %516 = vst [vmem:[#allocation3 + $0x180] sm:$0xff] %v21263_v60  ;;  %517 = vst [vmem:[#allocation3 + $0x1a0] sm:$0xff] %v21263_v60 }
  0x84   :  { %518 = vst [vmem:[#allocation3 + $0x1c0] sm:$0xff] %v21263_v60  ;;  %519 = vst [vmem:[#allocation3 + $0x1e0] sm:$0xff] %v21263_v60 }
  0x85   :  { %520 = vst [vmem:[#allocation3 + $0x200] sm:$0xff] %v21263_v60  ;;  %521 = vst [vmem:[#allocation3 + $0x220] sm:$0xff] %v21263_v60 }
  0x86   :  { %522 = vst [vmem:[#allocation3 + $0x240] sm:$0xff] %v21263_v60  ;;  %523 = vst [vmem:[#allocation3 + $0x260] sm:$0xff] %v21263_v60 }
  0x87   :  { %524 = vst [vmem:[#allocation3 + $0x280] sm:$0xff] %v21263_v60  ;;  %525 = vst [vmem:[#allocation3 + $0x2a0] sm:$0xff] %v21263_v60 }
  0x88   :  { %526 = vst [vmem:[#allocation3 + $0x2c0] sm:$0xff] %v21263_v60  ;;  %527 = vst [vmem:[#allocation3 + $0x2e0] sm:$0xff] %v21263_v60 }
  0x89   :  { %528 = vst [vmem:[#allocation3 + $0x118] sm:$0xff] %v21263_v60  ;;  %529 = vst [vmem:[#allocation3 + $0x138] sm:$0xff] %v21263_v60 }
  0x8a   :  { %530 = vst [vmem:[#allocation3 + $0x158] sm:$0xff] %v21263_v60  ;;  %531 = vst [vmem:[#allocation3 + $0x178] sm:$0xff] %v21263_v60 }
  0x8b   :  { %532 = vst [vmem:[#allocation3 + $0x198] sm:$0xff] %v21263_v60  ;;  %533 = vst [vmem:[#allocation3 + $0x1b8] sm:$0xff] %v21263_v60 }
  0x8c   :  { %534 = vst [vmem:[#allocation3 + $0x1d8] sm:$0xff] %v21263_v60  ;;  %535 = vst [vmem:[#allocation3 + $0x1f8] sm:$0xff] %v21263_v60 }
  0x8d   :  { %536 = vst [vmem:[#allocation3 + $0x218] sm:$0xff] %v21263_v60  ;;  %537 = vst [vmem:[#allocation3 + $0x238] sm:$0xff] %v21263_v60 }
  0x8e   :  { %538 = vst [vmem:[#allocation3 + $0x258] sm:$0xff] %v21263_v60  ;;  %539 = vst [vmem:[#allocation3 + $0x278] sm:$0xff] %v21263_v60 }
  0x8f   :  { %540 = vst [vmem:[#allocation3 + $0x298] sm:$0xff] %v21263_v60  ;;  %541 = vst [vmem:[#allocation3 + $0x2b8] sm:$0xff] %v21263_v60 }
  0x90   :  { %542 = vst [vmem:[#allocation3 + $0x2d8] sm:$0xff] %v21263_v60  ;;  %543 = vst [vmem:[#allocation3 + $0x2f8] sm:$0xff] %v21263_v60  ;;  %v549_v60 = vld [vmem:[%s27445_s0 + $0x28] sm:$0xff] }
  0x91   :  { %576 = vst [vmem:[#allocation2 + $0x108] sm:$0xff] %v22021_v61  ;;  %577 = vst [vmem:[#allocation2 + $0x110] sm:$0xff] %v22026_v62  ;;  %v550_v61 = vld [vmem:[%s27445_s0 + $0x30] sm:$0xff]  ;;  %v551_v62 = vld [vmem:[%s27445_s0 + $0x38] sm:$0xff] }
  0x92   :  { %578 = vst [vmem:[#allocation2 + $0x128] sm:$0xff] %v546_v0  ;;  %579 = vst [vmem:[#allocation2 + $0x130] sm:$0xff] %v547_v63  ;;  %v552_v63 = vld [vmem:[%s27445_s0 + $0x40] sm:$0xff]  ;;  %v554_v0 = vld [vmem:[%s27445_s0 + $0x50] sm:$0xff] }
  0x93   :  { %580 = vst [vmem:[#allocation2 + $0x148] sm:$0xff] %v548_v59  ;;  %581 = vst [vmem:[#allocation2 + $0x150] sm:$0xff] %v549_v60  ;;  %v553_v59 = vld [vmem:[%s27445_s0 + $0x48] sm:$0xff]  ;;  %v555_v60 = vld [vmem:[%s27445_s0 + $0x58] sm:$0xff] }
  0x94   :  { %582 = vst [vmem:[#allocation2 + $0x168] sm:$0xff] %v550_v61  ;;  %583 = vst [vmem:[#allocation2 + $0x170] sm:$0xff] %v551_v62  ;;  %v556_v61 = vld [vmem:[%s27445_s0 + $0x60] sm:$0xff]  ;;  %v557_v62 = vld [vmem:[%s27445_s0 + $0x68] sm:$0xff] }
  0x95   :  { %584 = vst [vmem:[#allocation2 + $0x188] sm:$0xff] %v552_v63  ;;  %585 = vst [vmem:[#allocation2 + $0x190] sm:$0xff] %v553_v59  ;;  %v558_v63 = vld [vmem:[%s27445_s0 + $0x70] sm:$0xff]  ;;  %v559_v59 = vld [vmem:[%s27445_s0 + $0x78] sm:$0xff] }
  0x96   :  { %586 = vst [vmem:[#allocation2 + $0x1a8] sm:$0xff] %v554_v0  ;;  %587 = vst [vmem:[#allocation2 + $0x1b0] sm:$0xff] %v555_v60  ;;  %v560_v0 = vld [vmem:[%s27445_s0 + $0x80] sm:$0xff]  ;;  %v561_v60 = vld [vmem:[%s27445_s0 + $0x88] sm:$0xff] }
  0x97   :  { %588 = vst [vmem:[#allocation2 + $0x1c8] sm:$0xff] %v556_v61  ;;  %589 = vst [vmem:[#allocation2 + $0x1d0] sm:$0xff] %v557_v62  ;;  %v562_v61 = vld [vmem:[%s27445_s0 + $0x90] sm:$0xff]  ;;  %v563_v62 = vld [vmem:[%s27445_s0 + $0x98] sm:$0xff] }
  0x98   :  { %590 = vst [vmem:[#allocation2 + $0x1e8] sm:$0xff] %v558_v63  ;;  %591 = vst [vmem:[#allocation2 + $0x1f0] sm:$0xff] %v559_v59  ;;  %v564_v63 = vld [vmem:[%s27445_s0 + $0xa0] sm:$0xff]  ;;  %v565_v59 = vld [vmem:[%s27445_s0 + $0xa8] sm:$0xff] }
  0x99   :  { %592 = vst [vmem:[#allocation2 + $0x208] sm:$0xff] %v560_v0  ;;  %593 = vst [vmem:[#allocation2 + $0x210] sm:$0xff] %v561_v60  ;;  %v566_v0 = vld [vmem:[%s27445_s0 + $0xb0] sm:$0xff]  ;;  %v567_v60 = vld [vmem:[%s27445_s0 + $0xb8] sm:$0xff] }
  0x9a   :  { %594 = vst [vmem:[#allocation2 + $0x228] sm:$0xff] %v562_v61  ;;  %595 = vst [vmem:[#allocation2 + $0x230] sm:$0xff] %v563_v62  ;;  %v568_v61 = vld [vmem:[%s27445_s0 + $0xc0] sm:$0xff]  ;;  %v569_v62 = vld [vmem:[%s27445_s0 + $0xc8] sm:$0xff] }
  0x9b   :  { %596 = vst [vmem:[#allocation2 + $0x248] sm:$0xff] %v564_v63  ;;  %597 = vst [vmem:[#allocation2 + $0x250] sm:$0xff] %v565_v59  ;;  %v570_v63 = vld [vmem:[%s27445_s0 + $0xd0] sm:$0xff]  ;;  %v571_v59 = vld [vmem:[%s27445_s0 + $0xd8] sm:$0xff] }
  0x9c   :  { %598 = vst [vmem:[#allocation2 + $0x268] sm:$0xff] %v566_v0  ;;  %599 = vst [vmem:[#allocation2 + $0x270] sm:$0xff] %v567_v60  ;;  %v572_v0 = vld [vmem:[%s27445_s0 + $0xe0] sm:$0xff]  ;;  %v573_v60 = vld [vmem:[%s27445_s0 + $0xe8] sm:$0xff] }
  0x9d   :  { %600 = vst [vmem:[#allocation2 + $0x288] sm:$0xff] %v568_v61  ;;  %601 = vst [vmem:[#allocation2 + $0x290] sm:$0xff] %v569_v62  ;;  %v574_v61 = vld [vmem:[%s27445_s0 + $0xf0] sm:$0xff]  ;;  %v575_v62 = vld [vmem:[%s27445_s0 + $0xf8] sm:$0xff] }
  0x9e   :  { %602 = vst [vmem:[#allocation2 + $0x2a8] sm:$0xff] %v570_v63  ;;  %603 = vst [vmem:[#allocation2 + $0x2b0] sm:$0xff] %v571_v59 }
  0x9f   :  { %604 = vst [vmem:[#allocation2 + $0x2c8] sm:$0xff] %v572_v0  ;;  %605 = vst [vmem:[#allocation2 + $0x2d0] sm:$0xff] %v573_v60 }
  0xa0   :  { %606 = vst [vmem:[#allocation2 + $0x2e8] sm:$0xff] %v574_v61  ;;  %607 = vst [vmem:[#allocation2 + $0x2f0] sm:$0xff] %v575_v62 }
  0xa1   :  { %21251 = dma.done.wait [#allocation5], 18432 }
  0xa2   :  { %21252 = vsyncadd [#allocation5], 4294948864  ;;  %v22283_v63 = vld [vmem:[%s27446_s1 + $0x480] sm:$0xff]  ;;  %v22288_v59 = vld [vmem:[%s27446_s1 + $0x488] sm:$0xff] }
  0xa3   :  { %27660 = vst [vmem:[#allocation105_spill] sm:$0xff] %v22283_v63  ;;  %27661 = vst [vmem:[#allocation106_spill] sm:$0xff] %v22288_v59  ;;  %v22293_v0 = vld [vmem:[%s27446_s1 + $0x490] sm:$0xff]  ;;  %v22298_v60 = vld [vmem:[%s27446_s1 + $0x498] sm:$0xff] }
  0xa4   :  { %27662 = vst [vmem:[#allocation107_spill] sm:$0xff] %v22293_v0  ;;  %27663 = vst [vmem:[#allocation108_spill] sm:$0xff] %v22298_v60  ;;  %v22303_v61 = vld [vmem:[%s27446_s1 + $0x4a0] sm:$0xff]  ;;  %v22308_v62 = vld [vmem:[%s27446_s1 + $0x4a8] sm:$0xff] }
  0xa5   :  { %27664 = vst [vmem:[#allocation109_spill] sm:$0xff] %v22303_v61  ;;  %27665 = vst [vmem:[#allocation110_spill] sm:$0xff] %v22308_v62  ;;  %v22313_v59 = vld [vmem:[%s27446_s1 + $0x4b0] sm:$0xff]  ;;  %v22318_v0 = vld [vmem:[%s27446_s1 + $0x4b8] sm:$0xff] }
  0xa6   :  { %27666 = vst [vmem:[#allocation111_spill] sm:$0xff] %v22313_v59  ;;  %27667 = vst [vmem:[#allocation112_spill] sm:$0xff] %v22318_v0  ;;  %v22323_v60 = vld [vmem:[%s27446_s1 + $0x4c0] sm:$0xff]  ;;  %v22328_v61 = vld [vmem:[%s27446_s1 + $0x4c8] sm:$0xff] }
  0xa7   :  { %27668 = vst [vmem:[#allocation113_spill] sm:$0xff] %v22323_v60  ;;  %27669 = vst [vmem:[#allocation114_spill] sm:$0xff] %v22328_v61  ;;  %v22333_v62 = vld [vmem:[%s27446_s1 + $0x4d0] sm:$0xff]  ;;  %v22338_v59 = vld [vmem:[%s27446_s1 + $0x4d8] sm:$0xff] }
  0xa8   :  { %27670 = vst [vmem:[#allocation115_spill] sm:$0xff] %v22333_v62  ;;  %27671 = vst [vmem:[#allocation116_spill] sm:$0xff] %v22338_v59  ;;  %v22343_v0 = vld [vmem:[%s27446_s1 + $0x4e0] sm:$0xff]  ;;  %v22348_v60 = vld [vmem:[%s27446_s1 + $0x4e8] sm:$0xff] }
  0xa9   :  { %27672 = vst [vmem:[#allocation117_spill] sm:$0xff] %v22343_v0  ;;  %27673 = vst [vmem:[#allocation118_spill] sm:$0xff] %v22348_v60  ;;  %v22353_v61 = vld [vmem:[%s27446_s1 + $0x4f0] sm:$0xff]  ;;  %v22358_v62 = vld [vmem:[%s27446_s1 + $0x4f8] sm:$0xff] }
  0xaa   :  { %27674 = vst [vmem:[#allocation119_spill] sm:$0xff] %v22353_v61  ;;  %27675 = vst [vmem:[#allocation120_spill] sm:$0xff] %v22358_v62  ;;  %v22363_v59 = vld [vmem:[%s27446_s1 + $0x500] sm:$0xff]  ;;  %v22368_v0 = vld [vmem:[%s27446_s1 + $0x508] sm:$0xff] }
  0xab   :  { %27676 = vst [vmem:[#allocation121_spill] sm:$0xff] %v22363_v59  ;;  %27677 = vst [vmem:[#allocation122_spill] sm:$0xff] %v22368_v0  ;;  %v22373_v60 = vld [vmem:[%s27446_s1 + $0x510] sm:$0xff]  ;;  %v22378_v61 = vld [vmem:[%s27446_s1 + $0x518] sm:$0xff] }
  0xac   :  { %27678 = vst [vmem:[#allocation123_spill] sm:$0xff] %v22373_v60  ;;  %27679 = vst [vmem:[#allocation124_spill] sm:$0xff] %v22378_v61  ;;  %v22383_v62 = vld [vmem:[%s27446_s1 + $0x520] sm:$0xff]  ;;  %v22388_v63 = vld [vmem:[%s27446_s1 + $0x528] sm:$0xff] }
  0xad   :  { %27680 = vst [vmem:[#allocation125_spill] sm:$0xff] %v22383_v62  ;;  %27681 = vst [vmem:[#allocation126_spill] sm:$0xff] %v22388_v63  ;;  %v22393_v0 = vld [vmem:[%s27446_s1 + $0x530] sm:$0xff]  ;;  %v22398_v60 = vld [vmem:[%s27446_s1 + $0x538] sm:$0xff] }
  0xae   :  { %27682 = vst [vmem:[#allocation127_spill] sm:$0xff] %v22393_v0  ;;  %27683 = vst [vmem:[#allocation128_spill] sm:$0xff] %v22398_v60  ;;  %v22403_v61 = vld [vmem:[%s27446_s1 + $0x540] sm:$0xff]  ;;  %v22408_v62 = vld [vmem:[%s27446_s1 + $0x548] sm:$0xff] }
  0xaf   :  { %27684 = vst [vmem:[#allocation129_spill] sm:$0xff] %v22403_v61  ;;  %27685 = vst [vmem:[#allocation130_spill] sm:$0xff] %v22408_v62  ;;  %v22413_v63 = vld [vmem:[%s27446_s1 + $0x550] sm:$0xff]  ;;  %v22418_v0 = vld [vmem:[%s27446_s1 + $0x558] sm:$0xff] }
  0xb0   :  { %27686 = vst [vmem:[#allocation131_spill] sm:$0xff] %v22413_v63  ;;  %27687 = vst [vmem:[#allocation132_spill] sm:$0xff] %v22418_v0  ;;  %v22423_v60 = vld [vmem:[%s27446_s1 + $0x560] sm:$0xff]  ;;  %v22428_v61 = vld [vmem:[%s27446_s1 + $0x568] sm:$0xff] }
  0xb1   :  { %27688 = vst [vmem:[#allocation133_spill] sm:$0xff] %v22423_v60  ;;  %27689 = vst [vmem:[#allocation134_spill] sm:$0xff] %v22428_v61  ;;  %v22433_v62 = vld [vmem:[%s27446_s1 + $0x570] sm:$0xff]  ;;  %v22438_v63 = vld [vmem:[%s27446_s1 + $0x578] sm:$0xff] }
  0xb2   :  { %27690 = vst [vmem:[#allocation135_spill] sm:$0xff] %v22433_v62  ;;  %27691 = vst [vmem:[#allocation136_spill] sm:$0xff] %v22438_v63  ;;  %v22443_v0 = vld [vmem:[%s27446_s1 + $0x580] sm:$0xff]  ;;  %v22448_v60 = vld [vmem:[%s27446_s1 + $0x588] sm:$0xff] }
  0xb3   :  { %27692 = vst [vmem:[#allocation137_spill] sm:$0xff] %v22443_v0  ;;  %27693 = vst [vmem:[#allocation138_spill] sm:$0xff] %v22448_v60  ;;  %v22453_v61 = vld [vmem:[%s27446_s1 + $0x590] sm:$0xff]  ;;  %v22458_v62 = vld [vmem:[%s27446_s1 + $0x598] sm:$0xff] }
  0xb4   :  { %27694 = vst [vmem:[#allocation139_spill] sm:$0xff] %v22453_v61  ;;  %27695 = vst [vmem:[#allocation140_spill] sm:$0xff] %v22458_v62  ;;  %v22463_v63 = vld [vmem:[%s27446_s1 + $0x5a0] sm:$0xff]  ;;  %v22468_v0 = vld [vmem:[%s27446_s1 + $0x5a8] sm:$0xff] }
  0xb5   :  { %27696 = vst [vmem:[#allocation141_spill] sm:$0xff] %v22463_v63  ;;  %27697 = vst [vmem:[#allocation142_spill] sm:$0xff] %v22468_v0  ;;  %v22473_v60 = vld [vmem:[%s27446_s1 + $0x5b0] sm:$0xff]  ;;  %v22478_v61 = vld [vmem:[%s27446_s1 + $0x5b8] sm:$0xff] }
  0xb6   :  { %27698 = vst [vmem:[#allocation143_spill] sm:$0xff] %v22473_v60  ;;  %27699 = vst [vmem:[#allocation144_spill] sm:$0xff] %v22478_v61  ;;  %v22483_v62 = vld [vmem:[%s27446_s1 + $0x5c0] sm:$0xff]  ;;  %v22488_v63 = vld [vmem:[%s27446_s1 + $0x5c8] sm:$0xff] }
  0xb7   :  { %27700 = vst [vmem:[#allocation145_spill] sm:$0xff] %v22483_v62  ;;  %27701 = vst [vmem:[#allocation146_spill] sm:$0xff] %v22488_v63  ;;  %v22493_v0 = vld [vmem:[%s27446_s1 + $0x5d0] sm:$0xff]  ;;  %v22498_v60 = vld [vmem:[%s27446_s1 + $0x5d8] sm:$0xff] }
  0xb8   :  { %27702 = vst [vmem:[#allocation147_spill] sm:$0xff] %v22493_v0  ;;  %27703 = vst [vmem:[#allocation148_spill] sm:$0xff] %v22498_v60  ;;  %v22503_v61 = vld [vmem:[%s27446_s1 + $0x5e0] sm:$0xff]  ;;  %v22508_v62 = vld [vmem:[%s27446_s1 + $0x5e8] sm:$0xff] }
  0xb9   :  { %27704 = vst [vmem:[#allocation149_spill] sm:$0xff] %v22503_v61  ;;  %27705 = vst [vmem:[#allocation150_spill] sm:$0xff] %v22508_v62  ;;  %v22513_v63 = vld [vmem:[%s27446_s1 + $0x5f0] sm:$0xff]  ;;  %v22518_v0 = vld [vmem:[%s27446_s1 + $0x5f8] sm:$0xff] }
  0xba   :  { %27706 = vst [vmem:[#allocation151_spill] sm:$0xff] %v22513_v63  ;;  %27707 = vst [vmem:[#allocation152_spill] sm:$0xff] %v22518_v0  ;;  %v22523_v60 = vld [vmem:[%s27446_s1 + $0x600] sm:$0xff]  ;;  %v22528_v61 = vld [vmem:[%s27446_s1 + $0x608] sm:$0xff] }
  0xbb   :  { %27708 = vst [vmem:[#allocation153_spill] sm:$0xff] %v22523_v60  ;;  %27709 = vst [vmem:[#allocation154_spill] sm:$0xff] %v22528_v61  ;;  %v22533_v62 = vld [vmem:[%s27446_s1 + $0x610] sm:$0xff]  ;;  %v22538_v63 = vld [vmem:[%s27446_s1 + $0x618] sm:$0xff] }
  0xbc   :  { %27710 = vst [vmem:[#allocation155_spill] sm:$0xff] %v22533_v62  ;;  %27711 = vst [vmem:[#allocation156_spill] sm:$0xff] %v22538_v63  ;;  %v22543_v0 = vld [vmem:[%s27446_s1 + $0x620] sm:$0xff]  ;;  %v22548_v60 = vld [vmem:[%s27446_s1 + $0x628] sm:$0xff] }
  0xbd   :  { %27712 = vst [vmem:[#allocation157_spill] sm:$0xff] %v22543_v0  ;;  %27713 = vst [vmem:[#allocation158_spill] sm:$0xff] %v22548_v60  ;;  %v22553_v61 = vld [vmem:[%s27446_s1 + $0x630] sm:$0xff]  ;;  %v22558_v62 = vld [vmem:[%s27446_s1 + $0x638] sm:$0xff] }
  0xbe   :  { %27714 = vst [vmem:[#allocation159_spill] sm:$0xff] %v22553_v61  ;;  %27715 = vst [vmem:[#allocation160_spill] sm:$0xff] %v22558_v62  ;;  %v22563_v63 = vld [vmem:[%s27446_s1 + $0x640] sm:$0xff]  ;;  %v22568_v0 = vld [vmem:[%s27446_s1 + $0x648] sm:$0xff] }
  0xbf   :  { %27716 = vst [vmem:[#allocation161_spill] sm:$0xff] %v22563_v63  ;;  %27717 = vst [vmem:[#allocation162_spill] sm:$0xff] %v22568_v0  ;;  %v22573_v60 = vld [vmem:[%s27446_s1 + $0x650] sm:$0xff]  ;;  %v22578_v61 = vld [vmem:[%s27446_s1 + $0x658] sm:$0xff] }
  0xc0   :  { %27718 = vst [vmem:[#allocation163_spill] sm:$0xff] %v22573_v60  ;;  %27719 = vst [vmem:[#allocation164_spill] sm:$0xff] %v22578_v61  ;;  %v22583_v62 = vld [vmem:[%s27446_s1 + $0x660] sm:$0xff]  ;;  %v22588_v63 = vld [vmem:[%s27446_s1 + $0x668] sm:$0xff] }
  0xc1   :  { %27720 = vst [vmem:[#allocation165_spill] sm:$0xff] %v22583_v62  ;;  %27721 = vst [vmem:[#allocation166_spill] sm:$0xff] %v22588_v63  ;;  %v22593_v0 = vld [vmem:[%s27446_s1 + $0x670] sm:$0xff]  ;;  %v22598_v60 = vld [vmem:[%s27446_s1 + $0x678] sm:$0xff] }
  0xc2   :  { %27722 = vst [vmem:[#allocation167_spill] sm:$0xff] %v22593_v0  ;;  %27723 = vst [vmem:[#allocation168_spill] sm:$0xff] %v22598_v60  ;;  %v22603_v61 = vld [vmem:[%s27446_s1 + $0x680] sm:$0xff]  ;;  %v22608_v62 = vld [vmem:[%s27446_s1 + $0x688] sm:$0xff] }
  0xc3   :  { %27724 = vst [vmem:[#allocation169_spill] sm:$0xff] %v22603_v61  ;;  %27725 = vst [vmem:[#allocation170_spill] sm:$0xff] %v22608_v62  ;;  %v22613_v63 = vld [vmem:[%s27446_s1 + $0x690] sm:$0xff]  ;;  %v22618_v0 = vld [vmem:[%s27446_s1 + $0x698] sm:$0xff] }
  0xc4   :  { %27726 = vst [vmem:[#allocation171_spill] sm:$0xff] %v22613_v63  ;;  %27727 = vst [vmem:[#allocation172_spill] sm:$0xff] %v22618_v0  ;;  %v22623_v60 = vld [vmem:[%s27446_s1 + $0x6a0] sm:$0xff]  ;;  %v22628_v61 = vld [vmem:[%s27446_s1 + $0x6a8] sm:$0xff] }
  0xc5   :  { %27728 = vst [vmem:[#allocation173_spill] sm:$0xff] %v22623_v60  ;;  %27729 = vst [vmem:[#allocation174_spill] sm:$0xff] %v22628_v61  ;;  %v22633_v62 = vld [vmem:[%s27446_s1 + $0x6b0] sm:$0xff]  ;;  %v22638_v63 = vld [vmem:[%s27446_s1 + $0x6b8] sm:$0xff] }
  0xc6   :  { %27730 = vst [vmem:[#allocation175_spill] sm:$0xff] %v22633_v62  ;;  %27731 = vst [vmem:[#allocation176_spill] sm:$0xff] %v22638_v63  ;;  %v22643_v0 = vld [vmem:[%s27446_s1 + $0x6c0] sm:$0xff]  ;;  %v22648_v60 = vld [vmem:[%s27446_s1 + $0x6c8] sm:$0xff] }
  0xc7   :  { %27732 = vst [vmem:[#allocation177_spill] sm:$0xff] %v22643_v0  ;;  %27733 = vst [vmem:[#allocation178_spill] sm:$0xff] %v22648_v60  ;;  %v22653_v61 = vld [vmem:[%s27446_s1 + $0x6d0] sm:$0xff]  ;;  %v22658_v62 = vld [vmem:[%s27446_s1 + $0x6d8] sm:$0xff] }
  0xc8   :  { %27734 = vst [vmem:[#allocation179_spill] sm:$0xff] %v22653_v61  ;;  %27735 = vst [vmem:[#allocation180_spill] sm:$0xff] %v22658_v62  ;;  %v22663_v63 = vld [vmem:[%s27446_s1 + $0x6e0] sm:$0xff]  ;;  %v22668_v0 = vld [vmem:[%s27446_s1 + $0x6e8] sm:$0xff] }
  0xc9   :  { %27736 = vst [vmem:[#allocation181_spill] sm:$0xff] %v22663_v63  ;;  %27737 = vst [vmem:[#allocation182_spill] sm:$0xff] %v22668_v0  ;;  %v22673_v60 = vld [vmem:[%s27446_s1 + $0x6f0] sm:$0xff]  ;;  %v22678_v61 = vld [vmem:[%s27446_s1 + $0x6f8] sm:$0xff] }
  0xca   :  { %27738 = vst [vmem:[#allocation183_spill] sm:$0xff] %v22673_v60  ;;  %27739 = vst [vmem:[#allocation184_spill] sm:$0xff] %v22678_v61  ;;  %v22683_v62 = vld [vmem:[%s27446_s1 + $0x700] sm:$0xff]  ;;  %v22688_v63 = vld [vmem:[%s27446_s1 + $0x708] sm:$0xff] }
  0xcb   :  { %27740 = vst [vmem:[#allocation185_spill] sm:$0xff] %v22683_v62  ;;  %27741 = vst [vmem:[#allocation186_spill] sm:$0xff] %v22688_v63  ;;  %v22693_v0 = vld [vmem:[%s27446_s1 + $0x710] sm:$0xff]  ;;  %v22698_v60 = vld [vmem:[%s27446_s1 + $0x718] sm:$0xff] }
  0xcc   :  { %27742 = vst [vmem:[#allocation187_spill] sm:$0xff] %v22693_v0  ;;  %27743 = vst [vmem:[#allocation188_spill] sm:$0xff] %v22698_v60  ;;  %v22703_v61 = vld [vmem:[%s27446_s1 + $0x720] sm:$0xff]  ;;  %v22708_v62 = vld [vmem:[%s27446_s1 + $0x728] sm:$0xff] }
  0xcd   :  { %27744 = vst [vmem:[#allocation189_spill] sm:$0xff] %v22703_v61  ;;  %27745 = vst [vmem:[#allocation190_spill] sm:$0xff] %v22708_v62  ;;  %v22713_v63 = vld [vmem:[%s27446_s1 + $0x730] sm:$0xff]  ;;  %v22718_v0 = vld [vmem:[%s27446_s1 + $0x738] sm:$0xff] }
  0xce   :  { %27746 = vst [vmem:[#allocation191_spill] sm:$0xff] %v22713_v63  ;;  %27747 = vst [vmem:[#allocation192_spill] sm:$0xff] %v22718_v0  ;;  %v22723_v60 = vld [vmem:[%s27446_s1 + $0x740] sm:$0xff]  ;;  %v22728_v61 = vld [vmem:[%s27446_s1 + $0x748] sm:$0xff] }
  0xcf   :  { %27748 = vst [vmem:[#allocation193_spill] sm:$0xff] %v22723_v60  ;;  %27749 = vst [vmem:[#allocation194_spill] sm:$0xff] %v22728_v61  ;;  %v22733_v62 = vld [vmem:[%s27446_s1 + $0x750] sm:$0xff]  ;;  %v22738_v63 = vld [vmem:[%s27446_s1 + $0x758] sm:$0xff] }
  0xd0   :  { %27750 = vst [vmem:[#allocation195_spill] sm:$0xff] %v22733_v62  ;;  %27751 = vst [vmem:[#allocation196_spill] sm:$0xff] %v22738_v63  ;;  %v22743_v0 = vld [vmem:[%s27446_s1 + $0x760] sm:$0xff]  ;;  %v22748_v60 = vld [vmem:[%s27446_s1 + $0x768] sm:$0xff] }
  0xd1   :  { %27752 = vst [vmem:[#allocation197_spill] sm:$0xff] %v22743_v0  ;;  %27753 = vst [vmem:[#allocation198_spill] sm:$0xff] %v22748_v60  ;;  %v22753_v61 = vld [vmem:[%s27446_s1 + $0x770] sm:$0xff]  ;;  %v22758_v62 = vld [vmem:[%s27446_s1 + $0x778] sm:$0xff] }
  0xd2   :  { %27754 = vst [vmem:[#allocation199_spill] sm:$0xff] %v22753_v61  ;;  %27755 = vst [vmem:[#allocation200_spill] sm:$0xff] %v22758_v62  ;;  %v22763_v63 = vld [vmem:[%s27446_s1 + $0x780] sm:$0xff]  ;;  %v22768_v0 = vld [vmem:[%s27446_s1 + $0x788] sm:$0xff] }
  0xd3   :  { %27756 = vst [vmem:[#allocation201_spill] sm:$0xff] %v22763_v63  ;;  %27757 = vst [vmem:[#allocation202_spill] sm:$0xff] %v22768_v0  ;;  %v22773_v60 = vld [vmem:[%s27446_s1 + $0x790] sm:$0xff]  ;;  %v22778_v61 = vld [vmem:[%s27446_s1 + $0x798] sm:$0xff] }
  0xd4   :  { %27758 = vst [vmem:[#allocation203_spill] sm:$0xff] %v22773_v60  ;;  %27759 = vst [vmem:[#allocation204_spill] sm:$0xff] %v22778_v61  ;;  %v22783_v62 = vld [vmem:[%s27446_s1 + $0x7a0] sm:$0xff]  ;;  %v22788_v63 = vld [vmem:[%s27446_s1 + $0x7a8] sm:$0xff] }
  0xd5   :  { %27760 = vst [vmem:[#allocation205_spill] sm:$0xff] %v22783_v62  ;;  %27761 = vst [vmem:[#allocation206_spill] sm:$0xff] %v22788_v63  ;;  %v22793_v0 = vld [vmem:[%s27446_s1 + $0x7b0] sm:$0xff]  ;;  %v22798_v60 = vld [vmem:[%s27446_s1 + $0x7b8] sm:$0xff] }
  0xd6   :  { %27762 = vst [vmem:[#allocation207_spill] sm:$0xff] %v22793_v0  ;;  %27763 = vst [vmem:[#allocation208_spill] sm:$0xff] %v22798_v60  ;;  %v22803_v61 = vld [vmem:[%s27446_s1 + $0x7c0] sm:$0xff]  ;;  %v22808_v62 = vld [vmem:[%s27446_s1 + $0x7c8] sm:$0xff] }
  0xd7   :  { %27764 = vst [vmem:[#allocation209_spill] sm:$0xff] %v22803_v61  ;;  %27765 = vst [vmem:[#allocation210_spill] sm:$0xff] %v22808_v62  ;;  %v22813_v63 = vld [vmem:[%s27446_s1 + $0x7d0] sm:$0xff]  ;;  %v22818_v0 = vld [vmem:[%s27446_s1 + $0x7d8] sm:$0xff] }
  0xd8   :  { %27766 = vst [vmem:[#allocation211_spill] sm:$0xff] %v22813_v63  ;;  %27767 = vst [vmem:[#allocation212_spill] sm:$0xff] %v22818_v0  ;;  %v22823_v60 = vld [vmem:[%s27446_s1 + $0x7e0] sm:$0xff]  ;;  %v22828_v61 = vld [vmem:[%s27446_s1 + $0x7e8] sm:$0xff] }
  0xd9   :  { %27768 = vst [vmem:[#allocation213_spill] sm:$0xff] %v22823_v60  ;;  %27769 = vst [vmem:[#allocation214_spill] sm:$0xff] %v22828_v61  ;;  %v22833_v62 = vld [vmem:[%s27446_s1 + $0x7f0] sm:$0xff]  ;;  %v22838_v63 = vld [vmem:[%s27446_s1 + $0x7f8] sm:$0xff] }
  0xda   :  { %27770 = vst [vmem:[#allocation215_spill] sm:$0xff] %v22833_v62  ;;  %27771 = vst [vmem:[#allocation216_spill] sm:$0xff] %v22838_v63  ;;  %v22843_v0 = vld [vmem:[%s27446_s1 + $0x800] sm:$0xff]  ;;  %v22848_v60 = vld [vmem:[%s27446_s1 + $0x808] sm:$0xff] }
  0xdb   :  { %27772 = vst [vmem:[#allocation217_spill] sm:$0xff] %v22843_v0  ;;  %27773 = vst [vmem:[#allocation218_spill] sm:$0xff] %v22848_v60  ;;  %v22853_v61 = vld [vmem:[%s27446_s1 + $0x810] sm:$0xff]  ;;  %v22858_v62 = vld [vmem:[%s27446_s1 + $0x818] sm:$0xff] }
  0xdc   :  { %27774 = vst [vmem:[#allocation219_spill] sm:$0xff] %v22853_v61  ;;  %27775 = vst [vmem:[#allocation220_spill] sm:$0xff] %v22858_v62  ;;  %v22863_v63 = vld [vmem:[%s27446_s1 + $0x820] sm:$0xff]  ;;  %v22868_v0 = vld [vmem:[%s27446_s1 + $0x828] sm:$0xff] }
  0xdd   :  { %27776 = vst [vmem:[#allocation221_spill] sm:$0xff] %v22863_v63  ;;  %27777 = vst [vmem:[#allocation222_spill] sm:$0xff] %v22868_v0  ;;  %v22873_v60 = vld [vmem:[%s27446_s1 + $0x830] sm:$0xff]  ;;  %v22878_v61 = vld [vmem:[%s27446_s1 + $0x838] sm:$0xff] }
  0xde   :  { %27778 = vst [vmem:[#allocation223_spill] sm:$0xff] %v22873_v60  ;;  %27779 = vst [vmem:[#allocation224_spill] sm:$0xff] %v22878_v61  ;;  %v22883_v62 = vld [vmem:[%s27446_s1 + $0x840] sm:$0xff]  ;;  %v22888_v63 = vld [vmem:[%s27446_s1 + $0x848] sm:$0xff] }
  0xdf   :  { %27780 = vst [vmem:[#allocation225_spill] sm:$0xff] %v22883_v62  ;;  %27781 = vst [vmem:[#allocation226_spill] sm:$0xff] %v22888_v63  ;;  %v22893_v0 = vld [vmem:[%s27446_s1 + $0x850] sm:$0xff]  ;;  %v22898_v60 = vld [vmem:[%s27446_s1 + $0x858] sm:$0xff] }
  0xe0   :  { %27782 = vst [vmem:[#allocation227_spill] sm:$0xff] %v22893_v0  ;;  %27783 = vst [vmem:[#allocation228_spill] sm:$0xff] %v22898_v60  ;;  %v22903_v61 = vld [vmem:[%s27446_s1 + $0x860] sm:$0xff]  ;;  %v22908_v62 = vld [vmem:[%s27446_s1 + $0x868] sm:$0xff] }
  0xe1   :  { %27784 = vst [vmem:[#allocation229_spill] sm:$0xff] %v22903_v61  ;;  %27785 = vst [vmem:[#allocation230_spill] sm:$0xff] %v22908_v62  ;;  %v22913_v63 = vld [vmem:[%s27446_s1 + $0x870] sm:$0xff]  ;;  %v22918_v0 = vld [vmem:[%s27446_s1 + $0x878] sm:$0xff] }
  0xe2   :  { %27786 = vst [vmem:[#allocation231_spill] sm:$0xff] %v22913_v63  ;;  %27787 = vst [vmem:[#allocation232_spill] sm:$0xff] %v22918_v0  ;;  %v22923_v60 = vld [vmem:[%s27446_s1 + $0x880] sm:$0xff]  ;;  %v22928_v61 = vld [vmem:[%s27446_s1 + $0x888] sm:$0xff] }
  0xe3   :  { %27788 = vst [vmem:[#allocation233_spill] sm:$0xff] %v22923_v60  ;;  %27789 = vst [vmem:[#allocation234_spill] sm:$0xff] %v22928_v61  ;;  %v22933_v62 = vld [vmem:[%s27446_s1 + $0x890] sm:$0xff]  ;;  %v22938_v63 = vld [vmem:[%s27446_s1 + $0x898] sm:$0xff] }
  0xe4   :  { %27790 = vst [vmem:[#allocation235_spill] sm:$0xff] %v22933_v62  ;;  %27791 = vst [vmem:[#allocation236_spill] sm:$0xff] %v22938_v63  ;;  %v22943_v0 = vld [vmem:[%s27446_s1 + $0x8a0] sm:$0xff]  ;;  %v22948_v60 = vld [vmem:[%s27446_s1 + $0x8a8] sm:$0xff] }
  0xe5   :  { %27792 = vst [vmem:[#allocation237_spill] sm:$0xff] %v22943_v0  ;;  %27793 = vst [vmem:[#allocation238_spill] sm:$0xff] %v22948_v60  ;;  %v22953_v61 = vld [vmem:[%s27446_s1 + $0x8b0] sm:$0xff]  ;;  %v22958_v62 = vld [vmem:[%s27446_s1 + $0x8b8] sm:$0xff] }
  0xe6   :  { %27794 = vst [vmem:[#allocation239_spill] sm:$0xff] %v22953_v61  ;;  %27795 = vst [vmem:[#allocation240_spill] sm:$0xff] %v22958_v62  ;;  %v22963_v63 = vld [vmem:[%s27446_s1 + $0x8c0] sm:$0xff]  ;;  %v22968_v0 = vld [vmem:[%s27446_s1 + $0x8c8] sm:$0xff] }
  0xe7   :  { %27796 = vst [vmem:[#allocation241_spill] sm:$0xff] %v22963_v63  ;;  %27797 = vst [vmem:[#allocation242_spill] sm:$0xff] %v22968_v0  ;;  %v22973_v60 = vld [vmem:[%s27446_s1 + $0x8d0] sm:$0xff]  ;;  %v22978_v61 = vld [vmem:[%s27446_s1 + $0x8d8] sm:$0xff] }
  0xe8   :  { %27798 = vst [vmem:[#allocation243_spill] sm:$0xff] %v22973_v60  ;;  %27799 = vst [vmem:[#allocation244_spill] sm:$0xff] %v22978_v61  ;;  %v22983_v62 = vld [vmem:[%s27446_s1 + $0x8e0] sm:$0xff]  ;;  %v22988_v63 = vld [vmem:[%s27446_s1 + $0x8e8] sm:$0xff] }
  0xe9   :  { %27800 = vst [vmem:[#allocation245_spill] sm:$0xff] %v22983_v62  ;;  %27801 = vst [vmem:[#allocation246_spill] sm:$0xff] %v22988_v63  ;;  %v22993_v0 = vld [vmem:[%s27446_s1 + $0x8f0] sm:$0xff]  ;;  %v22998_v60 = vld [vmem:[%s27446_s1 + $0x8f8] sm:$0xff] }
  0xea   :  { %27802 = vst [vmem:[#allocation247_spill] sm:$0xff] %v22993_v0  ;;  %27803 = vst [vmem:[#allocation248_spill] sm:$0xff] %v22998_v60 }
  0xeb   :  { %942 = vsyncadd [#allocation5 + $0x1], 18432  ;;  %v18976_v61 = vpack.c.bf16 %v21386_v18, %v21381_v17  ;;  %v18980_v62 = vpack.c.bf16 %v21396_v20, %v21391_v19  ;;  %v992_v59 = vld [vmem:[#allocation2 + $0xe8] sm:$0xff]  ;;  %v18984_v0 = vpack.c.bf16 %v21406_v22, %v21401_v21  ;;  %v18988_v60 = vpack.c.bf16 %v21416_v24, %v21411_v23  ;;  %v993_v22 = vld [vmem:[#allocation2 + $0xf0] sm:$0xff] }
  0xec   :  { %15968 = vmatprep.mubr.f32.mxu0 %v992_v59  ;;  %v18992_v17 = vpack.c.bf16 %v21426_v26, %v21421_v25  ;;  %v18996_v18 = vpack.c.bf16 %v21436_v28, %v21431_v27  ;;  %v19000_v19 = vpack.c.bf16 %v21446_v30, %v21441_v29  ;;  %v19004_v20 = vpack.c.bf16 %v21456_v32, %v21451_v31  ;;  %v23018_v23 = vld [vmem:[#allocation2 + $0x108] sm:$0xff]  ;;  %v23023_v25 = vld [vmem:[#allocation2 + $0x110] sm:$0xff] }
  0xed   :  { %18977 = vmatprep.subr.bf16.mxu0 %v18976_v61  ;;  %v19008_v21 = vpack.c.bf16 %v21306_v2, %v21301_v1  ;;  %v19012_v24 = vpack.c.bf16 %v21316_v4, %v21311_v3  ;;  %v23025_v26 = vld [vmem:[#allocation2 + $0x128] sm:$0xff]  ;;  %v19016_v1 = vpack.c.bf16 %v21326_v6, %v21321_v5  ;;  %v23031_v2 = vld [vmem:[#allocation2 + $0x130] sm:$0xff]  ;;  %v19020_v4 = vpack.c.bf16 %v21336_v8, %v21331_v7 }
  0xee   :  { %18979 = vmatpush3.bf16.msra.mxu0 %v18976_v61  ;;  %v23033_v3 = vld [vmem:[#allocation2 + $0x148] sm:$0xff]  ;;  %v23039_v27 = vld [vmem:[#allocation2 + $0x150] sm:$0xff]  ;;  %v19024_v6 = vpack.c.bf16 %v21346_v10, %v21341_v9  ;;  %v19028_v8 = vpack.c.bf16 %v21356_v12, %v21351_v11  ;;  %v19032_v10 = vpack.c.bf16 %v21366_v14, %v21361_v13  ;;  %v19036_v12 = vpack.c.bf16 %v21376_v16, %v21371_v15 }
  0xef   :  { %18981 = vmatprep.subr.bf16.mxu0 %v18980_v62  ;;  %v23041_v5 = vld [vmem:[#allocation2 + $0x168] sm:$0xff]  ;;  %v23047_v28 = vld [vmem:[#allocation2 + $0x170] sm:$0xff]  ;;  %v19040_v14 = vpack.c.bf16 %v21466_v34, %v21461_v33 }
  0xf0   :  { %v23049_v7 = vld [vmem:[#allocation2 + $0x188] sm:$0xff]  ;;  %v23055_v29 = vld [vmem:[#allocation2 + $0x190] sm:$0xff] }
  0xf1   :  { %v23057_v9 = vld [vmem:[#allocation2 + $0x1a8] sm:$0xff]  ;;  %v23063_v30 = vld [vmem:[#allocation2 + $0x1b0] sm:$0xff] }
  0xf2   :  { %18983 = vmatpush3.bf16.msra.mxu0 %v18980_v62  ;;  %v23065_v11 = vld [vmem:[#allocation2 + $0x1c8] sm:$0xff]  ;;  %v23071_v31 = vld [vmem:[#allocation2 + $0x1d0] sm:$0xff] }
  0xf3   :  { %18985 = vmatprep.subr.bf16.mxu0 %v18984_v0  ;;  %v23073_v13 = vld [vmem:[#allocation2 + $0x1e8] sm:$0xff]  ;;  %v23079_v32 = vld [vmem:[#allocation2 + $0x1f0] sm:$0xff] }
  0xf4   :  { %v23081_v15 = vld [vmem:[#allocation2 + $0x208] sm:$0xff]  ;;  %v23085_v16 = vld [vmem:[#allocation2 + $0x210] sm:$0xff] }
  0xf5   :  { %v23087_v59 = vld [vmem:[#allocation2 + $0x228] sm:$0xff]  ;;  %v23091_v33 = vld [vmem:[#allocation2 + $0x230] sm:$0xff] }
  0xf6   :  { %18987 = vmatpush3.bf16.msra.mxu0 %v18984_v0  ;;  %27804 = vst [vmem:[#allocation249_spill] sm:$0xff] %v23087_v59  ;;  %27805 = vst [vmem:[#allocation250_spill] sm:$0xff] %v23091_v33  ;;  %v23093_v34 = vld [vmem:[#allocation2 + $0x248] sm:$0xff]  ;;  %v23097_v0 = vld [vmem:[#allocation2 + $0x250] sm:$0xff] }
  0xf7   :  { %18989 = vmatprep.subr.bf16.mxu0 %v18988_v60  ;;  %27806 = vst [vmem:[#allocation251_spill] sm:$0xff] %v23093_v34  ;;  %27807 = vst [vmem:[#allocation252_spill] sm:$0xff] %v23097_v0  ;;  %v23103_v61 = vld [vmem:[#allocation2 + $0x270] sm:$0xff]  ;;  %v23105_v62 = vld [vmem:[#allocation2 + $0x288] sm:$0xff] }
  0xf8   :  { %27809 = vst [vmem:[#allocation254_spill] sm:$0xff] %v23103_v61  ;;  %27810 = vst [vmem:[#allocation255_spill] sm:$0xff] %v23105_v62  ;;  %v23211_v63 = vld [vmem:[#allocation2 + $0x287] sm:$0xff] }
  0xfa   :  { %18991 = vmatpush3.bf16.msra.mxu0 %v18988_v60  ;;  %v23099_v60 = vld [vmem:[#allocation2 + $0x268] sm:$0xff] }
  0xfb   :  { %18993 = vmatprep.subr.bf16.mxu0 %v18992_v17  ;;  %27808 = vst [vmem:[#allocation253_spill] sm:$0xff] %v23099_v60 }
  0xfe   :  { %18995 = vmatpush3.bf16.msra.mxu0 %v18992_v17  ;;  %v23109_v17 = vld [vmem:[#allocation2 + $0x290] sm:$0xff] }
  0xff   :  { %18997 = vmatprep.subr.bf16.mxu0 %v18996_v18  ;;  %27811 = vst [vmem:[#allocation256_spill] sm:$0xff] %v23109_v17 }
 0x102   :  { %18999 = vmatpush3.bf16.msra.mxu0 %v18996_v18  ;;  %v23111_v18 = vld [vmem:[#allocation2 + $0x2a8] sm:$0xff] }
 0x103   :  { %19001 = vmatprep.subr.bf16.mxu0 %v19000_v19  ;;  %27812 = vst [vmem:[#allocation257_spill] sm:$0xff] %v23111_v18 }
 0x106   :  { %19003 = vmatpush3.bf16.msra.mxu0 %v19000_v19  ;;  %v23115_v19 = vld [vmem:[#allocation2 + $0x2b0] sm:$0xff] }
 0x107   :  { %19005 = vmatprep.subr.bf16.mxu0 %v19004_v20  ;;  %27813 = vst [vmem:[#allocation258_spill] sm:$0xff] %v23115_v19 }
 0x10a   :  { %19007 = vmatpush3.bf16.msra.mxu0 %v19004_v20  ;;  %v23117_v20 = vld [vmem:[#allocation2 + $0x2c8] sm:$0xff] }
 0x10b   :  { %19009 = vmatprep.subr.bf16.mxu0 %v19008_v21  ;;  %27814 = vst [vmem:[#allocation259_spill] sm:$0xff] %v23117_v20 }
 0x10d   :  { %15969 = vmatmul.mubr.f32.vlgmr.msra.gmra.mrb[0].mxu0 %v993_v22  ;;  %v944_v22 = vld [vmem:[#allocation2 + $0xe7] sm:$0xff] }
 0x10e   :  { %19011 = vmatpush3.bf16.msra.mxu0 %v19008_v21  ;;  %15971 = vmatprep.mubr.f32.mxu0 %v23018_v23  ;;  %v23121_v21 = vld [vmem:[#allocation2 + $0x2d0] sm:$0xff] }
 0x10f   :  { %19013 = vmatprep.subr.bf16.mxu0 %v19012_v24  ;;  %27815 = vst [vmem:[#allocation260_spill] sm:$0xff] %v23121_v21 }
 0x111   :  { %15972 = vmatmul.mubr.f32.gmra.mrb[2].mxu0 %v23023_v25 }
 0x112   :  { %15974 = vmatprep.mubr.f32.mxu0 %v23025_v26  ;;  %19015 = vmatpush3.bf16.msra.mxu0 %v19012_v24  ;;  %v945_v24 = vld [vmem:[#allocation2 + $0xef] sm:$0xff] }
 0x113   :  { %19017 = vmatprep.subr.bf16.mxu0 %v19016_v1 }
 0x115   :  { %15975 = vmatmul.mubr.f32.gmra.mrb[4].mxu0 %v23031_v2 }
 0x116   :  { %15977 = vmatprep.mubr.f32.mxu0 %v23033_v3  ;;  %19019 = vmatpush3.bf16.msra.mxu0 %v19016_v1  ;;  %v23124_v1 = vld [vmem:[#allocation2 + $0x107] sm:$0xff] }
 0x117   :  { %19021 = vmatprep.subr.bf16.mxu0 %v19020_v4 }
 0x119   :  { %15978 = vmatmul.mubr.f32.gmra.mrb[6].mxu0 %v23039_v27 }
 0x11a   :  { %15980 = vmatprep.mubr.f32.mxu0 %v23041_v5  ;;  %19023 = vmatpush3.bf16.msra.mxu0 %v19020_v4  ;;  %v19044_v4 = vpack.c.bf16 %v21476_v36, %v21471_v35  ;;  %v23139_v35 = vld [vmem:[#allocation2 + $0x147] sm:$0xff]  ;;  %v19052_v36 = vpack.c.bf16 %v21496_v40, %v21491_v39  ;;  %v19060_v40 = vpack.c.bf16 %v21516_v44, %v21511_v43 }
 0x11b   :  { %19025 = vmatprep.subr.bf16.mxu0 %v19024_v6  ;;  %v23155_v39 = vld [vmem:[#allocation2 + $0x187] sm:$0xff]  ;;  %v19068_v44 = vpack.c.bf16 %v21536_v48, %v21531_v47  ;;  %v23191_v48 = vld [vmem:[#allocation2 + $0x20f] sm:$0xff] }
 0x11c   :  { %v23171_v43 = vld [vmem:[#allocation2 + $0x1c7] sm:$0xff] }
 0x11d   :  { %15981 = vmatmul.mubr.f32.gmra.mrb[8].mxu0 %v23047_v28  ;;  %v23187_v47 = vld [vmem:[#allocation2 + $0x207] sm:$0xff] }
 0x11e   :  { %15983 = vmatprep.mubr.f32.mxu0 %v23049_v7  ;;  %19027 = vmatpush3.bf16.msra.mxu0 %v19024_v6  ;;  %v23129_v6 = vld [vmem:[#allocation2 + $0x10f] sm:$0xff] }
 0x11f   :  { %19029 = vmatprep.subr.bf16.mxu0 %v19028_v8 }
 0x121   :  { %15984 = vmatmul.mubr.f32.gmra.mrb[10].mxu0 %v23055_v29 }
 0x122   :  { %15986 = vmatprep.mubr.f32.mxu0 %v23057_v9  ;;  %19031 = vmatpush3.bf16.msra.mxu0 %v19028_v8  ;;  %v23131_v8 = vld [vmem:[#allocation2 + $0x127] sm:$0xff] }
 0x123   :  { %19033 = vmatprep.subr.bf16.mxu0 %v19032_v10 }
 0x125   :  { %15987 = vmatmul.mubr.f32.gmra.mrb[12].mxu0 %v23063_v30 }
 0x126   :  { %15989 = vmatprep.mubr.f32.mxu0 %v23065_v11  ;;  %19035 = vmatpush3.bf16.msra.mxu0 %v19032_v10  ;;  %v19048_v10 = vpack.c.bf16 %v21486_v38, %v21481_v37  ;;  %v23147_v37 = vld [vmem:[#allocation2 + $0x167] sm:$0xff]  ;;  %v19056_v38 = vpack.c.bf16 %v21506_v42, %v21501_v41  ;;  %v19064_v42 = vpack.c.bf16 %v21526_v46, %v21521_v45 }
 0x127   :  { %19037 = vmatprep.subr.bf16.mxu0 %v19036_v12  ;;  %v23163_v41 = vld [vmem:[#allocation2 + $0x1a7] sm:$0xff]  ;;  %v19072_v46 = vpack.c.bf16 %v21546_v50, %v21541_v49  ;;  %v23197_v49 = vld [vmem:[#allocation2 + $0x22f] sm:$0xff] }
 0x128   :  { %v23179_v45 = vld [vmem:[#allocation2 + $0x1e7] sm:$0xff] }
 0x129   :  { %15990 = vmatmul.mubr.f32.gmra.mrb[14].mxu0 %v23071_v31  ;;  %v23199_v50 = vld [vmem:[#allocation2 + $0x247] sm:$0xff] }
 0x12a   :  { %15992 = vmatprep.mubr.f32.mxu0 %v23073_v13  ;;  %19039 = vmatpush3.bf16.msra.mxu0 %v19036_v12  ;;  %v23137_v12 = vld [vmem:[#allocation2 + $0x12f] sm:$0xff] }
 0x12b   :  { %19041 = vmatprep.subr.bf16.mxu0 %v19040_v14 }
 0x12d   :  { %15993 = vmatmul.mubr.f32.gmra.mrb[16].mxu0 %v23079_v32 }
 0x12e   :  { %15995 = vmatprep.mubr.f32.mxu0 %v23081_v15 }
 0x131   :  { %15996 = vmatmul.mubr.f32.gmra.mrb[18].mxu0 %v23085_v16 }
 0x132   :  { %15998 = vmatprep.mubr.f32.mxu0 %v23087_v59  ;;  %v19080_v59 = vpack.c.bf16 %v21566_v54, %v21561_v53  ;;  %v23253_v53 = vld [vmem:[#allocation2 + $0x169] sm:$0xff]  ;;  %v19088_v54 = vpack.c.bf16 %v21586_v58, %v21581_v57  ;;  %v27825_v58 = vld [vmem:[#allocation21_spill] sm:$0xff] }
 0x133   :  { %27818 = vst [vmem:[#allocation263_spill] sm:$0xff] %v23253_v53  ;;  %v23269_v57 = vld [vmem:[#allocation2 + $0x1a9] sm:$0xff] }
 0x135   :  { %15999 = vmatmul.mubr.f32.gmra.mrb[20].mxu0 %v23091_v33  ;;  %v23237_v33 = vld [vmem:[#allocation2 + $0x129] sm:$0xff] }
 0x136   :  { %16001 = vmatprep.mubr.f32.mxu0 %v23093_v34  ;;  %v23235_v34 = vld [vmem:[#allocation2 + $0x111] sm:$0xff] }
 0x139   :  { %16002 = vmatmul.mubr.f32.gmra.mrb[22].mxu0 %v23097_v0  ;;  %v19076_v0 = vpack.c.bf16 %v21556_v52, %v21551_v51  ;;  %v23245_v51 = vld [vmem:[#allocation2 + $0x149] sm:$0xff]  ;;  %v19084_v52 = vpack.c.bf16 %v21576_v56, %v21571_v55  ;;  %v27821_v56 = vld [vmem:[#allocation19_spill] sm:$0xff] }
 0x13a   :  { %16004 = vmatprep.mubr.f32.mxu0 %v23099_v60  ;;  %v23230_v60 = vld [vmem:[#allocation2 + $0x109] sm:$0xff]  ;;  %27816 = vst [vmem:[#allocation261_spill] sm:$0xff] %v23245_v51 }
 0x13b   :  { %v23261_v55 = vld [vmem:[#allocation2 + $0x189] sm:$0xff] }
 0x13c   :  { %27820 = vst [vmem:[#allocation265_spill] sm:$0xff] %v23261_v55 }
 0x13d   :  { %16005 = vmatmul.mubr.f32.gmra.mrb[24].mxu0 %v23103_v61  ;;  %v1492_v61 = vld [vmem:[#allocation2 + $0xf1] sm:$0xff] }
 0x13e   :  { %16007 = vmatprep.mubr.f32.mxu0 %v23105_v62  ;;  %v1491_v62 = vld [vmem:[#allocation2 + $0xe9] sm:$0xff] }
 0x141   :  { %16008 = vmatmul.mubr.f32.gmra.mrb[26].mxu0 %v23109_v17  ;;  %v23227_v17 = vld [vmem:[#allocation2 + $0x2cf] sm:$0xff] }
 0x142   :  { %16010 = vmatprep.mubr.f32.mxu0 %v23111_v18  ;;  %v23223_v18 = vld [vmem:[#allocation2 + $0x2c7] sm:$0xff] }
 0x145   :  { %16011 = vmatmul.mubr.f32.gmra.mrb[28].mxu0 %v23115_v19  ;;  %v23221_v19 = vld [vmem:[#allocation2 + $0x2af] sm:$0xff] }
 0x146   :  { %16013 = vmatprep.mubr.f32.mxu0 %v23117_v20  ;;  %v23217_v20 = vld [vmem:[#allocation2 + $0x2a7] sm:$0xff] }
 0x149   :  { %16014 = vmatmul.mubr.f32.gmra.mrb[30].mxu0 %v23121_v21  ;;  %v23215_v21 = vld [vmem:[#allocation2 + $0x28f] sm:$0xff] }
 0x14a   :  { %16048 = vmatprep.mubr.f32.mxu0 %v944_v22  ;;  %v23153_v22 = vld [vmem:[#allocation2 + $0x16f] sm:$0xff] }
 0x14d   :  { %16049 = vmatmul.mubr.f32.vlgmr.msra.gmra.mrb[0].mxu0 %v945_v24  ;;  %v23161_v24 = vld [vmem:[#allocation2 + $0x18f] sm:$0xff] }
 0x14e   :  { %19043 = vmatpush3.bf16.msra.mxu0 %v19040_v14  ;;  %16051 = vmatprep.mubr.f32.mxu0 %v23124_v1  ;;  %v23145_v14 = vld [vmem:[#allocation2 + $0x14f] sm:$0xff] }
 0x14f   :  { %19045 = vmatprep.subr.bf16.mxu0 %v19044_v4 }
 0x151   :  { %16052 = vmatmul.mubr.f32.gmra.mrb[2].mxu0 %v23129_v6 }
 0x152   :  { %16054 = vmatprep.mubr.f32.mxu0 %v23131_v8  ;;  %19047 = vmatpush3.bf16.msra.mxu0 %v19044_v4  ;;  %v23169_v4 = vld [vmem:[#allocation2 + $0x1af] sm:$0xff] }
 0x153   :  { %19049 = vmatprep.subr.bf16.mxu0 %v19048_v10 }
 0x155   :  { %16055 = vmatmul.mubr.f32.gmra.mrb[4].mxu0 %v23137_v12 }
 0x156   :  { %16057 = vmatprep.mubr.f32.mxu0 %v23139_v35  ;;  %19051 = vmatpush3.bf16.msra.mxu0 %v19048_v10  ;;  %v23177_v10 = vld [vmem:[#allocation2 + $0x1cf] sm:$0xff] }
 0x157   :  { %19053 = vmatprep.subr.bf16.mxu0 %v19052_v36 }
 0x159   :  { %16058 = vmatmul.mubr.f32.gmra.mrb[6].mxu0 %v23145_v14 }
 0x15a   :  { %16060 = vmatprep.mubr.f32.mxu0 %v23147_v37  ;;  %19055 = vmatpush3.bf16.msra.mxu0 %v19052_v36  ;;  %v23185_v36 = vld [vmem:[#allocation2 + $0x1ef] sm:$0xff] }
 0x15b   :  { %19057 = vmatprep.subr.bf16.mxu0 %v19056_v38 }
 0x15d   :  { %16061 = vmatmul.mubr.f32.gmra.mrb[8].mxu0 %v23153_v22 }
 0x15e   :  { %16063 = vmatprep.mubr.f32.mxu0 %v23155_v39  ;;  %19059 = vmatpush3.bf16.msra.mxu0 %v19056_v38  ;;  %v23193_v38 = vld [vmem:[#allocation2 + $0x227] sm:$0xff] }
 0x15f   :  { %19061 = vmatprep.subr.bf16.mxu0 %v19060_v40 }
 0x161   :  { %16064 = vmatmul.mubr.f32.gmra.mrb[10].mxu0 %v23161_v24 }
 0x162   :  { %16066 = vmatprep.mubr.f32.mxu0 %v23163_v41  ;;  %19063 = vmatpush3.bf16.msra.mxu0 %v19060_v40  ;;  %v23203_v40 = vld [vmem:[#allocation2 + $0x24f] sm:$0xff] }
 0x163   :  { %19065 = vmatprep.subr.bf16.mxu0 %v19064_v42 }
 0x165   :  { %16067 = vmatmul.mubr.f32.gmra.mrb[12].mxu0 %v23169_v4 }
 0x166   :  { %16069 = vmatprep.mubr.f32.mxu0 %v23171_v43  ;;  %19067 = vmatpush3.bf16.msra.mxu0 %v19064_v42  ;;  %v23205_v42 = vld [vmem:[#allocation2 + $0x267] sm:$0xff] }
 0x167   :  { %19069 = vmatprep.subr.bf16.mxu0 %v19068_v44 }
 0x169   :  { %16070 = vmatmul.mubr.f32.gmra.mrb[14].mxu0 %v23177_v10 }
 0x16a   :  { %16072 = vmatprep.mubr.f32.mxu0 %v23179_v45  ;;  %19071 = vmatpush3.bf16.msra.mxu0 %v19068_v44  ;;  %v23209_v44 = vld [vmem:[#allocation2 + $0x26f] sm:$0xff] }
 0x16b   :  { %19073 = vmatprep.subr.bf16.mxu0 %v19072_v46 }
 0x16d   :  { %16073 = vmatmul.mubr.f32.gmra.mrb[16].mxu0 %v23185_v36 }
 0x16e   :  { %16075 = vmatprep.mubr.f32.mxu0 %v23187_v47 }
 0x171   :  { %16076 = vmatmul.mubr.f32.gmra.mrb[18].mxu0 %v23191_v48 }
 0x172   :  { %16078 = vmatprep.mubr.f32.mxu0 %v23193_v38 }
 0x175   :  { %16079 = vmatmul.mubr.f32.gmra.mrb[20].mxu0 %v23197_v49 }
 0x176   :  { %16081 = vmatprep.mubr.f32.mxu0 %v23199_v50 }
 0x179   :  { %16082 = vmatmul.mubr.f32.gmra.mrb[22].mxu0 %v23203_v40 }
 0x17a   :  { %16084 = vmatprep.mubr.f32.mxu0 %v23205_v42 }
 0x17d   :  { %16085 = vmatmul.mubr.f32.gmra.mrb[24].mxu0 %v23209_v44 }
 0x17e   :  { %16087 = vmatprep.mubr.f32.mxu0 %v23211_v63 }
 0x181   :  { %16088 = vmatmul.mubr.f32.gmra.mrb[26].mxu0 %v23215_v21 }
 0x182   :  { %16090 = vmatprep.mubr.f32.mxu0 %v23217_v20 }
 0x185   :  { %16091 = vmatmul.mubr.f32.gmra.mrb[28].mxu0 %v23221_v19 }
 0x186   :  { %16093 = vmatprep.mubr.f32.mxu0 %v23223_v18 }
 0x189   :  { %16094 = vmatmul.mubr.f32.gmra.mrb[30].mxu0 %v23227_v17 }
 0x18a   :  { %16128 = vmatprep.mubr.f32.mxu0 %v1491_v62  ;;  %v23243_v62 = vld [vmem:[#allocation2 + $0x131] sm:$0xff] }
 0x18d   :  { %16129 = vmatmul.mubr.f32.vlgmr.msra.gmra.mrb[0].mxu0 %v1492_v61  ;;  %v23251_v61 = vld [vmem:[#allocation2 + $0x151] sm:$0xff] }
 0x18e   :  { %19075 = vmatpush3.bf16.msra.mxu0 %v19072_v46  ;;  %16131 = vmatprep.mubr.f32.mxu0 %v23230_v60  ;;  %27817 = vst [vmem:[#allocation262_spill] sm:$0xff] %v23251_v61  ;;  %v27822_v46 = vld [vmem:[#allocation20_spill] sm:$0xff] }
 0x18f   :  { %19077 = vmatprep.subr.bf16.mxu0 %v19076_v0  ;;  %27824 = vst [vmem:[#allocation20_spill] sm:$0xff] %v23269_v57 }
 0x191   :  { %16132 = vmatmul.mubr.f32.gmra.mrb[2].mxu0 %v23235_v34 }
 0x192   :  { %16134 = vmatprep.mubr.f32.mxu0 %v23237_v33  ;;  %19079 = vmatpush3.bf16.msra.mxu0 %v19076_v0  ;;  %v23259_v0 = vld [vmem:[#allocation2 + $0x171] sm:$0xff] }
 0x193   :  { %19081 = vmatprep.subr.bf16.mxu0 %v19080_v59  ;;  %27819 = vst [vmem:[#allocation264_spill] sm:$0xff] %v23259_v0 }
 0x195   :  { %16135 = vmatmul.mubr.f32.gmra.mrb[4].mxu0 %v23243_v62 }
 0x196   :  { %16137 = vmatprep.mubr.f32.mxu0 %v23245_v51  ;;  %19083 = vmatpush3.bf16.msra.mxu0 %v19080_v59  ;;  %v19092_v51 = vpack.c.bf16 %v27822_v46, %v27821_v56  ;;  %v23267_v59 = vld [vmem:[#allocation2 + $0x191] sm:$0xff]  ;;  %v23277_v56 = vld [vmem:[#allocation2 + $0x1c9] sm:$0xff]  ;;  %v27827_v46 = vld [vmem:[#allocation23_spill] sm:$0xff] }
 0x197   :  { %19085 = vmatprep.subr.bf16.mxu0 %v19084_v52  ;;  %27823 = vst [vmem:[#allocation19_spill] sm:$0xff] %v23267_v59 }
 0x199   :  { %16138 = vmatmul.mubr.f32.gmra.mrb[6].mxu0 %v23251_v61 }
 0x19a   :  { %16140 = vmatprep.mubr.f32.mxu0 %v23253_v53  ;;  %19087 = vmatpush3.bf16.msra.mxu0 %v19084_v52  ;;  %v27826_v53 = vld [vmem:[#allocation22_spill] sm:$0xff]  ;;  %v23275_v52 = vld [vmem:[#allocation2 + $0x1b1] sm:$0xff] }
 0x19b   :  { %19089 = vmatprep.subr.bf16.mxu0 %v19088_v54  ;;  %v19096_v61 = vpack.c.bf16 %v27826_v53, %v27825_v58  ;;  %v23285_v53 = vld [vmem:[#allocation2 + $0x1e9] sm:$0xff]  ;;  %v27830_v58 = vld [vmem:[#allocation25_spill] sm:$0xff] }
 0x19c   :  { %27829 = vst [vmem:[#allocation21_spill] sm:$0xff] %v23285_v53 }
 0x19d   :  { %16141 = vmatmul.mubr.f32.gmra.mrb[8].mxu0 %v23259_v0 }
 0x19e   :  { %16143 = vmatprep.mubr.f32.mxu0 %v23261_v55  ;;  %19091 = vmatpush3.bf16.msra.mxu0 %v19088_v54  ;;  %v27828_v55 = vld [vmem:[#allocation24_spill] sm:$0xff]  ;;  %v23283_v54 = vld [vmem:[#allocation2 + $0x1d1] sm:$0xff] }
 0x19f   :  { %19093 = vmatprep.subr.bf16.mxu0 %v19092_v51  ;;  %v19100_v0 = vpack.c.bf16 %v27828_v55, %v27827_v46  ;;  %v23293_v55 = vld [vmem:[#allocation2 + $0x209] sm:$0xff] }
 0x1a0   :  { %27833 = vst [vmem:[#allocation23_spill] sm:$0xff] %v23293_v55  ;;  %v23299_v46 = vld [vmem:[#allocation2 + $0x229] sm:$0xff] }
 0x1a1   :  { %16144 = vmatmul.mubr.f32.gmra.mrb[10].mxu0 %v23267_v59  ;;  %27835 = vst [vmem:[#allocation25_spill] sm:$0xff] %v23299_v46 }
 0x1a2   :  { %16146 = vmatprep.mubr.f32.mxu0 %v23269_v57  ;;  %19095 = vmatpush3.bf16.msra.mxu0 %v19092_v51  ;;  %v27831_v57 = vld [vmem:[#allocation26_spill] sm:$0xff]  ;;  %v23291_v51 = vld [vmem:[#allocation2 + $0x1f1] sm:$0xff] }
 0x1a3   :  { %19097 = vmatprep.subr.bf16.mxu0 %v19096_v61  ;;  %v19104_v59 = vpack.c.bf16 %v27831_v57, %v27830_v58  ;;  %27832 = vst [vmem:[#allocation22_spill] sm:$0xff] %v23291_v51  ;;  %v23303_v57 = vld [vmem:[#allocation2 + $0x231] sm:$0xff]  ;;  %v23305_v58 = vld [vmem:[#allocation2 + $0x249] sm:$0xff] }
 0x1a4   :  { %27836 = vst [vmem:[#allocation26_spill] sm:$0xff] %v23303_v57  ;;  %27837 = vst [vmem:[#allocation266_spill] sm:$0xff] %v23305_v58 }
 0x1a5   :  { %16147 = vmatmul.mubr.f32.gmra.mrb[12].mxu0 %v23275_v52 }
 0x1a6   :  { %16149 = vmatprep.mubr.f32.mxu0 %v23277_v56  ;;  %19099 = vmatpush3.bf16.msra.mxu0 %v19096_v61  ;;  %v23297_v61 = vld [vmem:[#allocation2 + $0x211] sm:$0xff] }
 0x1a7   :  { %19101 = vmatprep.subr.bf16.mxu0 %v19100_v0  ;;  %27834 = vst [vmem:[#allocation24_spill] sm:$0xff] %v23297_v61 }
 0x1a9   :  { %16150 = vmatmul.mubr.f32.gmra.mrb[14].mxu0 %v23283_v54 }
 0x1aa   :  { %16152 = vmatprep.mubr.f32.mxu0 %v23285_v53  ;;  %19103 = vmatpush3.bf16.msra.mxu0 %v19100_v0  ;;  %v23309_v0 = vld [vmem:[#allocation2 + $0x251] sm:$0xff] }
 0x1ab   :  { %19105 = vmatprep.subr.bf16.mxu0 %v19104_v59  ;;  %27838 = vst [vmem:[#allocation267_spill] sm:$0xff] %v23309_v0 }
 0x1ad   :  { %16153 = vmatmul.mubr.f32.gmra.mrb[16].mxu0 %v23291_v51  ;;  %v23311_v51 = vld [vmem:[#allocation2 + $0x269] sm:$0xff] }
 0x1ae   :  { %16155 = vmatprep.mubr.f32.mxu0 %v23293_v55  ;;  %27839 = vst [vmem:[#allocation268_spill] sm:$0xff] %v23311_v51  ;;  %v23315_v55 = vld [vmem:[#allocation2 + $0x271] sm:$0xff] }
 0x1af   :  { %27840 = vst [vmem:[#allocation269_spill] sm:$0xff] %v23315_v55 }
 0x1b1   :  { %16156 = vmatmul.mubr.f32.gmra.mrb[18].mxu0 %v23297_v61  ;;  %v23317_v61 = vld [vmem:[#allocation2 + $0x289] sm:$0xff] }
 0x1b2   :  { %16158 = vmatprep.mubr.f32.mxu0 %v23299_v46  ;;  %27841 = vst [vmem:[#allocation270_spill] sm:$0xff] %v23317_v61  ;;  %v23321_v46 = vld [vmem:[#allocation2 + $0x291] sm:$0xff] }
 0x1b3   :  { %27842 = vst [vmem:[#allocation271_spill] sm:$0xff] %v23321_v46 }
 0x1b5   :  { %16159 = vmatmul.mubr.f32.gmra.mrb[20].mxu0 %v23303_v57  ;;  %v23323_v57 = vld [vmem:[#allocation2 + $0x2a9] sm:$0xff] }
 0x1b6   :  { %16161 = vmatprep.mubr.f32.mxu0 %v23305_v58  ;;  %27843 = vst [vmem:[#allocation272_spill] sm:$0xff] %v23323_v57  ;;  %v23327_v58 = vld [vmem:[#allocation2 + $0x2b1] sm:$0xff] }
 0x1b7   :  { %27844 = vst [vmem:[#allocation273_spill] sm:$0xff] %v23327_v58 }
 0x1b9   :  { %16162 = vmatmul.mubr.f32.gmra.mrb[22].mxu0 %v23309_v0  ;;  %v23329_v0 = vld [vmem:[#allocation2 + $0x2c9] sm:$0xff] }
 0x1ba   :  { %16164 = vmatprep.mubr.f32.mxu0 %v23311_v51  ;;  %27845 = vst [vmem:[#allocation274_spill] sm:$0xff] %v23329_v0  ;;  %v23333_v51 = vld [vmem:[#allocation2 + $0x2d1] sm:$0xff] }
 0x1bb   :  { %27846 = vst [vmem:[#allocation275_spill] sm:$0xff] %v23333_v51 }
 0x1bd   :  { %16165 = vmatmul.mubr.f32.gmra.mrb[24].mxu0 %v23315_v55  ;;  %v27848_v55 = vld [vmem:[#allocation28_spill] sm:$0xff] }
 0x1be   :  { %16167 = vmatprep.mubr.f32.mxu0 %v23317_v61  ;;  %v27847_v61 = vld [vmem:[#allocation27_spill] sm:$0xff] }
 0x1bf   :  { %v19108_v53 = vpack.c.bf16 %v27848_v55, %v27847_v61  ;;  %v27856_v61 = vld [vmem:[#allocation36_spill] sm:$0xff] }
 0x1c1   :  { %16168 = vmatmul.mubr.f32.gmra.mrb[26].mxu0 %v23321_v46  ;;  %v27850_v46 = vld [vmem:[#allocation30_spill] sm:$0xff] }
 0x1c2   :  { %16170 = vmatprep.mubr.f32.mxu0 %v23323_v57  ;;  %v27849_v57 = vld [vmem:[#allocation29_spill] sm:$0xff] }
 0x1c5   :  { %16171 = vmatmul.mubr.f32.gmra.mrb[28].mxu0 %v23327_v58  ;;  %v19112_v58 = vpack.c.bf16 %v27850_v46, %v27849_v57  ;;  %v27858_v57 = vld [vmem:[#allocation38_spill] sm:$0xff] }
 0x1c6   :  { %16173 = vmatprep.mubr.f32.mxu0 %v23329_v0 }
 0x1c9   :  { %16174 = vmatmul.mubr.f32.gmra.mrb[30].mxu0 %v23333_v51  ;;  %v27851_v51 = vld [vmem:[#allocation31_spill] sm:$0xff] }
 0x1ca   :  { %16208 = vmatprep.mubr.f32.mxu0 %v23124_v1  ;;  %v27852_v1 = vld [vmem:[#allocation32_spill] sm:$0xff] }
 0x1cb   :  { %v19116_v0 = vpack.c.bf16 %v27852_v1, %v27851_v51  ;;  %v27857_v51 = vld [vmem:[#allocation37_spill] sm:$0xff]  ;;  %v27860_v1 = vld [vmem:[#allocation40_spill] sm:$0xff] }
 0x1cd   :  { %16209 = vmatmul.mubr.f32.vlgmr.msra.gmra.mrb[0].mxu0 %v23129_v6  ;;  %v27853_v6 = vld [vmem:[#allocation33_spill] sm:$0xff] }
 0x1ce   :  { %19107 = vmatpush3.bf16.msra.mxu0 %v19104_v59  ;;  %16211 = vmatprep.mubr.f32.mxu0 %v23131_v8  ;;  %v27854_v59 = vld [vmem:[#allocation34_spill] sm:$0xff] }
 0x1cf   :  { %19109 = vmatprep.subr.bf16.mxu0 %v19108_v53  ;;  %v19120_v55 = vpack.c.bf16 %v27854_v59, %v27853_v6  ;;  %v27861_v59 = vld [vmem:[#allocation41_spill] sm:$0xff] }
 0x1d1   :  { %16212 = vmatmul.mubr.f32.gmra.mrb[2].mxu0 %v23137_v12 }
 0x1d2   :  { %16214 = vmatprep.mubr.f32.mxu0 %v23139_v35  ;;  %19111 = vmatpush3.bf16.msra.mxu0 %v19108_v53  ;;  %v27855_v53 = vld [vmem:[#allocation35_spill] sm:$0xff] }
 0x1d3   :  { %19113 = vmatprep.subr.bf16.mxu0 %v19112_v58  ;;  %v19124_v46 = vpack.c.bf16 %v27856_v61, %v27855_v53  ;;  %v23381_v61 = vld [vmem:[#allocation2 + $0x2e7] sm:$0xff] }
 0x1d5   :  { %16215 = vmatmul.mubr.f32.gmra.mrb[4].mxu0 %v23145_v14 }
 0x1d6   :  { %16217 = vmatprep.mubr.f32.mxu0 %v23147_v37  ;;  %19115 = vmatpush3.bf16.msra.mxu0 %v19112_v58  ;;  %v19128_v58 = vpack.c.bf16 %v27858_v57, %v27857_v51  ;;  %v27863_v51 = vld [vmem:[#allocation43_spill] sm:$0xff]  ;;  %v27864_v57 = vld [vmem:[#allocation44_spill] sm:$0xff] }
 0x1d7   :  { %19117 = vmatprep.subr.bf16.mxu0 %v19116_v0 }
 0x1d9   :  { %16218 = vmatmul.mubr.f32.gmra.mrb[6].mxu0 %v23153_v22 }
 0x1da   :  { %16220 = vmatprep.mubr.f32.mxu0 %v23155_v39  ;;  %19119 = vmatpush3.bf16.msra.mxu0 %v19116_v0  ;;  %v27859_v0 = vld [vmem:[#allocation39_spill] sm:$0xff] }
 0x1db   :  { %19121 = vmatprep.subr.bf16.mxu0 %v19120_v55  ;;  %v19132_v6 = vpack.c.bf16 %v27860_v1, %v27859_v0  ;;  %v27865_v0 = vld [vmem:[#allocation45_spill] sm:$0xff]  ;;  %v27866_v1 = vld [vmem:[#allocation46_spill] sm:$0xff] }
 0x1dd   :  { %16221 = vmatmul.mubr.f32.gmra.mrb[8].mxu0 %v23161_v24 }
 0x1de   :  { %16223 = vmatprep.mubr.f32.mxu0 %v23163_v41  ;;  %19123 = vmatpush3.bf16.msra.mxu0 %v19120_v55  ;;  %v27862_v55 = vld [vmem:[#allocation42_spill] sm:$0xff] }
 0x1df   :  { %19125 = vmatprep.subr.bf16.mxu0 %v19124_v46  ;;  %v19136_v53 = vpack.c.bf16 %v27862_v55, %v27861_v59  ;;  %v27867_v59 = vld [vmem:[#allocation47_spill] sm:$0xff] }
 0x1e1   :  { %16224 = vmatmul.mubr.f32.gmra.mrb[10].mxu0 %v23169_v4 }
 0x1e2   :  { %16226 = vmatprep.mubr.f32.mxu0 %v23171_v43  ;;  %19127 = vmatpush3.bf16.msra.mxu0 %v19124_v46  ;;  %v23385_v46 = vld [vmem:[#allocation2 + $0x2ef] sm:$0xff] }
 0x1e3   :  { %19129 = vmatprep.subr.bf16.mxu0 %v19128_v58 }
 0x1e5   :  { %16227 = vmatmul.mubr.f32.gmra.mrb[12].mxu0 %v23177_v10 }
 0x1e6   :  { %16229 = vmatprep.mubr.f32.mxu0 %v23179_v45  ;;  %19131 = vmatpush3.bf16.msra.mxu0 %v19128_v58  ;;  %v19140_v58 = vpack.c.bf16 %v27864_v57, %v27863_v51 }
 0x1e7   :  { %19133 = vmatprep.subr.bf16.mxu0 %v19132_v6 }
 0x1e9   :  { %16230 = vmatmul.mubr.f32.gmra.mrb[14].mxu0 %v23185_v36 }
 0x1ea   :  { %16232 = vmatprep.mubr.f32.mxu0 %v23187_v47  ;;  %19135 = vmatpush3.bf16.msra.mxu0 %v19132_v6  ;;  %v19144_v6 = vpack.c.bf16 %v27866_v1, %v27865_v0  ;;  %v27883_v1 = vld [vmem:[#allocation253_spill] sm:$0xff] }
 0x1eb   :  { %19137 = vmatprep.subr.bf16.mxu0 %v19136_v53 }
 0x1ed   :  { %16233 = vmatmul.mubr.f32.gmra.mrb[16].mxu0 %v23191_v48 }
 0x1ee   :  { %16235 = vmatprep.mubr.f32.mxu0 %v23193_v38 }
 0x1f1   :  { %16236 = vmatmul.mubr.f32.gmra.mrb[18].mxu0 %v23197_v49 }
 0x1f2   :  { %16238 = vmatprep.mubr.f32.mxu0 %v23199_v50 }
 0x1f5   :  { %16239 = vmatmul.mubr.f32.gmra.mrb[20].mxu0 %v23203_v40 }
 0x1f6   :  { %16241 = vmatprep.mubr.f32.mxu0 %v23205_v42 }
 0x1f9   :  { %16242 = vmatmul.mubr.f32.gmra.mrb[22].mxu0 %v23209_v44 }
 0x1fa   :  { %16244 = vmatprep.mubr.f32.mxu0 %v23211_v63 }
 0x1fd   :  { %16245 = vmatmul.mubr.f32.gmra.mrb[24].mxu0 %v23215_v21 }
 0x1fe   :  { %16247 = vmatprep.mubr.f32.mxu0 %v23217_v20 }
 0x201   :  { %16248 = vmatmul.mubr.f32.gmra.mrb[26].mxu0 %v23221_v19 }
 0x202   :  { %16250 = vmatprep.mubr.f32.mxu0 %v23223_v18 }
 0x205   :  { %16251 = vmatmul.mubr.f32.gmra.mrb[28].mxu0 %v23227_v17 }
 0x206   :  { %16253 = vmatprep.mubr.f32.mxu0 %v23381_v61 }
 0x209   :  { %16254 = vmatmul.mubr.f32.gmra.mrb[30].mxu0 %v23385_v46 }
 0x20a   :  { %16288 = vmatprep.mubr.f32.mxu0 %v23018_v23  ;;  %v27868_v23 = vld [vmem:[#allocation48_spill] sm:$0xff] }
 0x20b   :  { %v19148_v55 = vpack.c.bf16 %v27868_v23, %v27867_v59  ;;  %v27885_v59 = vld [vmem:[#allocation255_spill] sm:$0xff]  ;;  %v27888_v23 = vld [vmem:[#allocation258_spill] sm:$0xff] }
 0x20d   :  { %16289 = vmatmul.mubr.f32.vlgmr.msra.gmra.mrb[0].mxu0 %v23023_v25  ;;  %v27869_v25 = vld [vmem:[#allocation49_spill] sm:$0xff] }
 0x20e   :  { %19139 = vmatpush3.bf16.msra.mxu0 %v19136_v53  ;;  %16291 = vmatprep.mubr.f32.mxu0 %v23025_v26  ;;  %v27870_v26 = vld [vmem:[#allocation50_spill] sm:$0xff] }
 0x20f   :  { %19141 = vmatprep.subr.bf16.mxu0 %v19140_v58  ;;  %v19152_v53 = vpack.c.bf16 %v27870_v26, %v27869_v25  ;;  %v27890_v25 = vld [vmem:[#allocation260_spill] sm:$0xff] }
 0x210   :  { %v23437_v26 = vld [vmem:[#allocation2 + $0x2f0] sm:$0xff] }
 0x211   :  { %16292 = vmatmul.mubr.f32.gmra.mrb[2].mxu0 %v23031_v2  ;;  %v27871_v2 = vld [vmem:[#allocation51_spill] sm:$0xff] }
 0x212   :  { %16294 = vmatprep.mubr.f32.mxu0 %v23033_v3  ;;  %19143 = vmatpush3.bf16.msra.mxu0 %v19140_v58  ;;  %v27872_v3 = vld [vmem:[#allocation52_spill] sm:$0xff] }
 0x213   :  { %19145 = vmatprep.subr.bf16.mxu0 %v19144_v6  ;;  %v19156_v51 = vpack.c.bf16 %v27872_v3, %v27871_v2  ;;  %v27892_v2 = vld [vmem:[#allocation60_spill] sm:$0xff] }
 0x215   :  { %16295 = vmatmul.mubr.f32.gmra.mrb[4].mxu0 %v23039_v27  ;;  %v27873_v27 = vld [vmem:[#allocation53_spill] sm:$0xff] }
 0x216   :  { %16297 = vmatprep.mubr.f32.mxu0 %v23041_v5  ;;  %19147 = vmatpush3.bf16.msra.mxu0 %v19144_v6  ;;  %v27874_v5 = vld [vmem:[#allocation54_spill] sm:$0xff] }
 0x217   :  { %19149 = vmatprep.subr.bf16.mxu0 %v19148_v55  ;;  %v19160_v57 = vpack.c.bf16 %v27874_v5, %v27873_v27  ;;  %v27884_v6 = vld [vmem:[#allocation254_spill] sm:$0xff] }
 0x218   :  { %v27894_v27 = vld [vmem:[#allocation62_spill] sm:$0xff] }
 0x219   :  { %16298 = vmatmul.mubr.f32.gmra.mrb[6].mxu0 %v23047_v28  ;;  %v27875_v28 = vld [vmem:[#allocation55_spill] sm:$0xff] }
 0x21a   :  { %16300 = vmatprep.mubr.f32.mxu0 %v23049_v7  ;;  %19151 = vmatpush3.bf16.msra.mxu0 %v19148_v55  ;;  %v27876_v7 = vld [vmem:[#allocation56_spill] sm:$0xff] }
 0x21b   :  { %19153 = vmatprep.subr.bf16.mxu0 %v19152_v53  ;;  %v19164_v58 = vpack.c.bf16 %v27876_v7, %v27875_v28  ;;  %v23433_v55 = vld [vmem:[#allocation2 + $0x2e8] sm:$0xff] }
 0x21c   :  { %v27896_v28 = vld [vmem:[#allocation63_spill] sm:$0xff] }
 0x21d   :  { %16301 = vmatmul.mubr.f32.gmra.mrb[8].mxu0 %v23055_v29  ;;  %v27877_v29 = vld [vmem:[#allocation57_spill] sm:$0xff] }
 0x21e   :  { %16303 = vmatprep.mubr.f32.mxu0 %v23057_v9  ;;  %19155 = vmatpush3.bf16.msra.mxu0 %v19152_v53  ;;  %v27878_v9 = vld [vmem:[#allocation58_spill] sm:$0xff]  ;;  %v27891_v53 = vld [vmem:[#allocation59_spill] sm:$0xff] }
 0x21f   :  { %19157 = vmatprep.subr.bf16.mxu0 %v19156_v51  ;;  %v19168_v0 = vpack.c.bf16 %v27878_v9, %v27877_v29  ;;  %v19172_v3 = vpack.c.bf16 %v27892_v2, %v27891_v53  ;;  %v27899_v29 = vld [vmem:[#allocation263_spill] sm:$0xff]  ;;  %v27913_v53 = vld [vmem:[#allocation73_spill] sm:$0xff]  ;;  %v27914_v2 = vld [vmem:[#allocation74_spill] sm:$0xff] }
 0x221   :  { %16304 = vmatmul.mubr.f32.gmra.mrb[10].mxu0 %v23063_v30  ;;  %v27879_v30 = vld [vmem:[#allocation249_spill] sm:$0xff] }
 0x222   :  { %16306 = vmatprep.mubr.f32.mxu0 %v23065_v11  ;;  %19159 = vmatpush3.bf16.msra.mxu0 %v19156_v51  ;;  %v27880_v11 = vld [vmem:[#allocation250_spill] sm:$0xff]  ;;  %v27893_v51 = vld [vmem:[#allocation61_spill] sm:$0xff] }
 0x223   :  { %19161 = vmatprep.subr.bf16.mxu0 %v19160_v57  ;;  %v19176_v5 = vpack.c.bf16 %v27894_v27, %v27893_v51  ;;  %v27915_v51 = vld [vmem:[#allocation22_spill] sm:$0xff]  ;;  %v27916_v27 = vld [vmem:[#allocation23_spill] sm:$0xff] }
 0x225   :  { %16307 = vmatmul.mubr.f32.gmra.mrb[12].mxu0 %v23071_v31  ;;  %v27881_v31 = vld [vmem:[#allocation251_spill] sm:$0xff] }
 0x226   :  { %16309 = vmatprep.mubr.f32.mxu0 %v23073_v13  ;;  %19163 = vmatpush3.bf16.msra.mxu0 %v19160_v57  ;;  %v27882_v13 = vld [vmem:[#allocation252_spill] sm:$0xff]  ;;  %v27895_v57 = vld [vmem:[#allocation261_spill] sm:$0xff] }
 0x227   :  { %19165 = vmatprep.subr.bf16.mxu0 %v19164_v58 }
 0x229   :  { %16310 = vmatmul.mubr.f32.gmra.mrb[14].mxu0 %v23079_v32  ;;  %v27886_v32 = vld [vmem:[#allocation256_spill] sm:$0xff] }
 0x22a   :  { %16312 = vmatprep.mubr.f32.mxu0 %v23081_v15  ;;  %19167 = vmatpush3.bf16.msra.mxu0 %v19164_v58  ;;  %v27887_v15 = vld [vmem:[#allocation257_spill] sm:$0xff]  ;;  %v27898_v58 = vld [vmem:[#allocation262_spill] sm:$0xff] }
 0x22b   :  { %19169 = vmatprep.subr.bf16.mxu0 %v19168_v0 }
 0x22d   :  { %16313 = vmatmul.mubr.f32.gmra.mrb[16].mxu0 %v23085_v16  ;;  %v27889_v16 = vld [vmem:[#allocation259_spill] sm:$0xff] }
 0x22e   :  { %16315 = vmatprep.mubr.f32.mxu0 %v27879_v30  ;;  %v27903_v30 = vld [vmem:[#allocation265_spill] sm:$0xff] }
 0x231   :  { %16316 = vmatmul.mubr.f32.gmra.mrb[18].mxu0 %v27880_v11  ;;  %v27905_v11 = vld [vmem:[#allocation68_spill] sm:$0xff] }
 0x232   :  { %16318 = vmatprep.mubr.f32.mxu0 %v27881_v31 }
 0x235   :  { %16319 = vmatmul.mubr.f32.gmra.mrb[20].mxu0 %v27882_v13  ;;  %v27906_v13 = vld [vmem:[#allocation19_spill] sm:$0xff] }
 0x236   :  { %16321 = vmatprep.mubr.f32.mxu0 %v27883_v1  ;;  %v27907_v1 = vld [vmem:[#allocation20_spill] sm:$0xff] }
 0x239   :  { %16322 = vmatmul.mubr.f32.gmra.mrb[22].mxu0 %v27884_v6  ;;  %v27908_v6 = vld [vmem:[#allocation69_spill] sm:$0xff] }
 0x23a   :  { %16324 = vmatprep.mubr.f32.mxu0 %v27885_v59  ;;  %v27909_v59 = vld [vmem:[#allocation70_spill] sm:$0xff] }
 0x23d   :  { %16325 = vmatmul.mubr.f32.gmra.mrb[24].mxu0 %v27886_v32  ;;  %v19192_v32 = vpack.c.bf16 %v27909_v59, %v27908_v6  ;;  %v23489_v6 = vld [vmem:[#allocation2 + $0x2f1] sm:$0xff]  ;;  %v27931_v59 = vld [vmem:[#allocation75_spill] sm:$0xff] }
 0x23e   :  { %16327 = vmatprep.mubr.f32.mxu0 %v27887_v15  ;;  %v27910_v15 = vld [vmem:[#allocation71_spill] sm:$0xff]  ;;  %27930 = vst [vmem:[#allocation27_spill] sm:$0xff] %v23489_v6 }
 0x241   :  { %16328 = vmatmul.mubr.f32.gmra.mrb[26].mxu0 %v27888_v23  ;;  %v27911_v23 = vld [vmem:[#allocation72_spill] sm:$0xff] }
 0x242   :  { %16330 = vmatprep.mubr.f32.mxu0 %v27889_v16  ;;  %v19196_v16 = vpack.c.bf16 %v27911_v23, %v27910_v15  ;;  %v27933_v23 = vld [vmem:[#allocation77_spill] sm:$0xff] }
 0x245   :  { %16331 = vmatmul.mubr.f32.gmra.mrb[28].mxu0 %v27890_v25  ;;  %v27912_v25 = vld [vmem:[#allocation21_spill] sm:$0xff] }
 0x246   :  { %16333 = vmatprep.mubr.f32.mxu0 %v23433_v55 }
 0x249   :  { %16334 = vmatmul.mubr.f32.gmra.mrb[30].mxu0 %v23437_v26 }
 0x24a   :  { %16368 = vmatprep.mubr.f32.mxu0 %v23230_v60  ;;  %v27897_v60 = vld [vmem:[#allocation64_spill] sm:$0xff] }
 0x24b   :  { %v19180_v7 = vpack.c.bf16 %v27897_v60, %v27896_v28  ;;  %v27919_v28 = vld [vmem:[#allocation26_spill] sm:$0xff] }
 0x24c   :  { %v27920_v60 = vld [vmem:[#allocation266_spill] sm:$0xff] }
 0x24d   :  { %16369 = vmatmul.mubr.f32.vlgmr.msra.gmra.mrb[0].mxu0 %v23235_v34  ;;  %v27901_v34 = vld [vmem:[#allocation66_spill] sm:$0xff] }
 0x24e   :  { %19171 = vmatpush3.bf16.msra.mxu0 %v19168_v0  ;;  %16371 = vmatprep.mubr.f32.mxu0 %v23237_v33  ;;  %v27900_v33 = vld [vmem:[#allocation65_spill] sm:$0xff]  ;;  %v27902_v0 = vld [vmem:[#allocation264_spill] sm:$0xff] }
 0x24f   :  { %19173 = vmatprep.subr.bf16.mxu0 %v19172_v3  ;;  %v19184_v9 = vpack.c.bf16 %v27901_v34, %v27900_v33  ;;  %v27924_v33 = vld [vmem:[#allocation270_spill] sm:$0xff]  ;;  %v27925_v34 = vld [vmem:[#allocation271_spill] sm:$0xff] }
 0x251   :  { %16372 = vmatmul.mubr.f32.gmra.mrb[2].mxu0 %v23243_v62  ;;  %v27904_v62 = vld [vmem:[#allocation67_spill] sm:$0xff] }
 0x252   :  { %16374 = vmatprep.mubr.f32.mxu0 %v27895_v57  ;;  %19175 = vmatpush3.bf16.msra.mxu0 %v19172_v3  ;;  %v19188_v31 = vpack.c.bf16 %v27905_v11, %v27904_v62  ;;  %v19200_v3 = vpack.c.bf16 %v27914_v2, %v27913_v53  ;;  %v27918_v57 = vld [vmem:[#allocation25_spill] sm:$0xff]  ;;  %v27928_v62 = vld [vmem:[#allocation274_spill] sm:$0xff]  ;;  %v23485_v11 = vld [vmem:[#allocation2 + $0x2e9] sm:$0xff] }
 0x253   :  { %19177 = vmatprep.subr.bf16.mxu0 %v19176_v5  ;;  %v27935_v2 = vld [vmem:[#allocation79_spill] sm:$0xff] }
 0x255   :  { %16375 = vmatmul.mubr.f32.gmra.mrb[4].mxu0 %v27898_v58  ;;  %v27922_v58 = vld [vmem:[#allocation268_spill] sm:$0xff] }
 0x256   :  { %16377 = vmatprep.mubr.f32.mxu0 %v27899_v29  ;;  %19179 = vmatpush3.bf16.msra.mxu0 %v19176_v5  ;;  %v27917_v5 = vld [vmem:[#allocation24_spill] sm:$0xff]  ;;  %v27923_v29 = vld [vmem:[#allocation269_spill] sm:$0xff] }
 0x257   :  { %19181 = vmatprep.subr.bf16.mxu0 %v19180_v7 }
 0x259   :  { %16378 = vmatmul.mubr.f32.gmra.mrb[6].mxu0 %v27902_v0  ;;  %v27927_v0 = vld [vmem:[#allocation273_spill] sm:$0xff] }
 0x25a   :  { %16380 = vmatprep.mubr.f32.mxu0 %v27903_v30  ;;  %19183 = vmatpush3.bf16.msra.mxu0 %v19180_v7  ;;  %v27921_v7 = vld [vmem:[#allocation267_spill] sm:$0xff] }
 0x25b   :  { %19185 = vmatprep.subr.bf16.mxu0 %v19184_v9 }
 0x25d   :  { %16381 = vmatmul.mubr.f32.gmra.mrb[8].mxu0 %v27906_v13 }
 0x25e   :  { %16383 = vmatprep.mubr.f32.mxu0 %v27907_v1  ;;  %19187 = vmatpush3.bf16.msra.mxu0 %v19184_v9  ;;  %v27926_v9 = vld [vmem:[#allocation272_spill] sm:$0xff] }
 0x25f   :  { %19189 = vmatprep.subr.bf16.mxu0 %v19188_v31 }
 0x261   :  { %16384 = vmatmul.mubr.f32.gmra.mrb[10].mxu0 %v23275_v52 }
 0x262   :  { %16386 = vmatprep.mubr.f32.mxu0 %v23277_v56  ;;  %19191 = vmatpush3.bf16.msra.mxu0 %v19188_v31  ;;  %v27929_v31 = vld [vmem:[#allocation275_spill] sm:$0xff] }
 0x263   :  { %19193 = vmatprep.subr.bf16.mxu0 %v19192_v32 }
 0x265   :  { %16387 = vmatmul.mubr.f32.gmra.mrb[12].mxu0 %v23283_v54 }
 0x266   :  { %16389 = vmatprep.mubr.f32.mxu0 %v27912_v25  ;;  %19195 = vmatpush3.bf16.msra.mxu0 %v19192_v32  ;;  %v27932_v32 = vld [vmem:[#allocation76_spill] sm:$0xff] }
 0x267   :  { %19197 = vmatprep.subr.bf16.mxu0 %v19196_v16  ;;  %v19204_v15 = vpack.c.bf16 %v27932_v32, %v27931_v59 }
 0x269   :  { %16390 = vmatmul.mubr.f32.gmra.mrb[14].mxu0 %v27915_v51 }
 0x26a   :  { %16392 = vmatprep.mubr.f32.mxu0 %v27916_v27  ;;  %19199 = vmatpush3.bf16.msra.mxu0 %v19196_v16  ;;  %v27934_v16 = vld [vmem:[#allocation78_spill] sm:$0xff] }
 0x26b   :  { %19201 = vmatprep.subr.bf16.mxu0 %v19200_v3  ;;  %v19208_v53 = vpack.c.bf16 %v27934_v16, %v27933_v23  ;;  %v3030_v23 = vld [vmem:[#allocation2 + $0x1a8] sm:$0xff]  ;;  %v27953_v16 = vld [vmem:[#allocation97_spill] sm:$0xff] }
 0x26d   :  { %16393 = vmatmul.mubr.f32.gmra.mrb[16].mxu0 %v27917_v5 }
 0x26e   :  { %16395 = vmatprep.mubr.f32.mxu0 %v27918_v57 }
 0x271   :  { %16396 = vmatmul.mubr.f32.gmra.mrb[18].mxu0 %v27919_v28 }
 0x272   :  { %16398 = vmatprep.mubr.f32.mxu0 %v27920_v60 }
 0x275   :  { %16399 = vmatmul.mubr.f32.gmra.mrb[20].mxu0 %v27921_v7 }
 0x276   :  { %16401 = vmatprep.mubr.f32.mxu0 %v27922_v58 }
 0x279   :  { %16402 = vmatmul.mubr.f32.gmra.mrb[22].mxu0 %v27923_v29 }
 0x27a   :  { %16404 = vmatprep.mubr.f32.mxu0 %v27924_v33 }
 0x27d   :  { %16405 = vmatmul.mubr.f32.gmra.mrb[24].mxu0 %v27925_v34 }
 0x27e   :  { %16407 = vmatprep.mubr.f32.mxu0 %v27926_v9 }
 0x281   :  { %16408 = vmatmul.mubr.f32.gmra.mrb[26].mxu0 %v27927_v0 }
 0x282   :  { %16410 = vmatprep.mubr.f32.mxu0 %v27928_v62 }
 0x285   :  { %16411 = vmatmul.mubr.f32.gmra.mrb[28].mxu0 %v27929_v31 }
 0x286   :  { %16413 = vmatprep.mubr.f32.mxu0 %v23485_v11 }
 0x289   :  { %16414 = vmatmul.mubr.f32.gmra.mrb[30].mxu0 %v23489_v6 }
 0x28a   :  { %16448 = vmatprep.mubr.f32.mxu0 %v23131_v8  ;;  %v27936_v8 = vld [vmem:[#allocation80_spill] sm:$0xff] }
 0x28b   :  { %v19212_v6 = vpack.c.bf16 %v27936_v8, %v27935_v2  ;;  %v3031_v8 = vld [vmem:[#allocation2 + $0x1b0] sm:$0xff] }
 0x28d   :  { %16449 = vmatmul.mubr.f32.vlgmr.msra.gmra.mrb[0].mxu0 %v23137_v12  ;;  %v27937_v12 = vld [vmem:[#allocation81_spill] sm:$0xff] }
 0x28e   :  { %19203 = vmatpush3.bf16.msra.mxu0 %v19200_v3  ;;  %16451 = vmatprep.mubr.f32.mxu0 %v23139_v35  ;;  %v27938_v35 = vld [vmem:[#allocation82_spill] sm:$0xff] }
 0x28f   :  { %19205 = vmatprep.subr.bf16.mxu0 %v19204_v15  ;;  %v19216_v3 = vpack.c.bf16 %v27938_v35, %v27937_v12  ;;  %v3032_v12 = vld [vmem:[#allocation2 + $0x1c8] sm:$0xff] }
 0x290   :  { %v27955_v35 = vld [vmem:[#allocation99_spill] sm:$0xff] }
 0x291   :  { %16452 = vmatmul.mubr.f32.gmra.mrb[2].mxu0 %v23145_v14  ;;  %v27939_v14 = vld [vmem:[#allocation83_spill] sm:$0xff] }
 0x292   :  { %16454 = vmatprep.mubr.f32.mxu0 %v23147_v37  ;;  %19207 = vmatpush3.bf16.msra.mxu0 %v19204_v15  ;;  %v27940_v37 = vld [vmem:[#allocation84_spill] sm:$0xff] }
 0x293   :  { %19209 = vmatprep.subr.bf16.mxu0 %v19208_v53  ;;  %v19220_v59 = vpack.c.bf16 %v27940_v37, %v27939_v14  ;;  %v3033_v37 = vld [vmem:[#allocation2 + $0x1d0] sm:$0xff] }
 0x295   :  { %16455 = vmatmul.mubr.f32.gmra.mrb[4].mxu0 %v23153_v22  ;;  %v27941_v22 = vld [vmem:[#allocation85_spill] sm:$0xff] }
 0x296   :  { %16457 = vmatprep.mubr.f32.mxu0 %v23155_v39  ;;  %19211 = vmatpush3.bf16.msra.mxu0 %v19208_v53  ;;  %v27942_v39 = vld [vmem:[#allocation86_spill] sm:$0xff] }
 0x297   :  { %19213 = vmatprep.subr.bf16.mxu0 %v19212_v6  ;;  %v19224_v32 = vpack.c.bf16 %v27942_v39, %v27941_v22  ;;  %v27954_v53 = vld [vmem:[#allocation98_spill] sm:$0xff]  ;;  %v27957_v22 = vld [vmem:[#allocation101_spill] sm:$0xff] }
 0x298   :  { %v19248_v2 = vpack.c.bf16 %v27954_v53, %v27953_v16  ;;  %v27958_v39 = vld [vmem:[#allocation102_spill] sm:$0xff] }
 0x299   :  { %16458 = vmatmul.mubr.f32.gmra.mrb[6].mxu0 %v23161_v24  ;;  %v27943_v24 = vld [vmem:[#allocation87_spill] sm:$0xff] }
 0x29a   :  { %16460 = vmatprep.mubr.f32.mxu0 %v23163_v41  ;;  %19215 = vmatpush3.bf16.msra.mxu0 %v19212_v6  ;;  %v27944_v41 = vld [vmem:[#allocation88_spill] sm:$0xff] }
 0x29b   :  { %19217 = vmatprep.subr.bf16.mxu0 %v19216_v3  ;;  %v19228_v6 = vpack.c.bf16 %v27944_v41, %v27943_v24  ;;  %v3035_v24 = vld [vmem:[#allocation2 + $0x1f0] sm:$0xff]  ;;  %v3036_v41 = vld [vmem:[#allocation2 + $0x208] sm:$0xff] }
 0x29d   :  { %16461 = vmatmul.mubr.f32.gmra.mrb[8].mxu0 %v23169_v4  ;;  %v27945_v4 = vld [vmem:[#allocation89_spill] sm:$0xff] }
 0x29e   :  { %16463 = vmatprep.mubr.f32.mxu0 %v23171_v43  ;;  %19219 = vmatpush3.bf16.msra.mxu0 %v19216_v3  ;;  %v27946_v43 = vld [vmem:[#allocation90_spill] sm:$0xff]  ;;  %v27956_v3 = vld [vmem:[#allocation100_spill] sm:$0xff] }
 0x29f   :  { %19221 = vmatprep.subr.bf16.mxu0 %v19220_v59  ;;  %v19232_v15 = vpack.c.bf16 %v27946_v43, %v27945_v4  ;;  %v19252_v14 = vpack.c.bf16 %v27956_v3, %v27955_v35  ;;  %v27960_v4 = vld [vmem:[#allocation104_spill] sm:$0xff] }
 0x2a1   :  { %16464 = vmatmul.mubr.f32.gmra.mrb[10].mxu0 %v23177_v10  ;;  %v2746_v10 = vld [vmem:[#allocation2 + $0x307] sm:$0xff] }
 0x2a2   :  { %16466 = vmatprep.mubr.f32.mxu0 %v23179_v45  ;;  %19223 = vmatpush3.bf16.msra.mxu0 %v19220_v59  ;;  %v2747_v45 = vld [vmem:[#allocation2 + $0x30f] sm:$0xff] }
 0x2a3   :  { %19225 = vmatprep.subr.bf16.mxu0 %v19224_v32  ;;  %v3034_v59 = vld [vmem:[#allocation2 + $0x1e8] sm:$0xff] }
 0x2a5   :  { %16467 = vmatmul.mubr.f32.gmra.mrb[12].mxu0 %v23185_v36  ;;  %v3022_v36 = vld [vmem:[#allocation2 + $0x128] sm:$0xff] }
 0x2a6   :  { %16469 = vmatprep.mubr.f32.mxu0 %v23187_v47  ;;  %19227 = vmatpush3.bf16.msra.mxu0 %v19224_v32  ;;  %v27947_v47 = vld [vmem:[#allocation91_spill] sm:$0xff]  ;;  %v19256_v32 = vpack.c.bf16 %v27958_v39, %v27957_v22 }
 0x2a7   :  { %19229 = vmatprep.subr.bf16.mxu0 %v19228_v6 }
 0x2a9   :  { %16470 = vmatmul.mubr.f32.gmra.mrb[14].mxu0 %v23191_v48 }
 0x2aa   :  { %16472 = vmatprep.mubr.f32.mxu0 %v23193_v38  ;;  %19231 = vmatpush3.bf16.msra.mxu0 %v19228_v6  ;;  %v27950_v38 = vld [vmem:[#allocation94_spill] sm:$0xff]  ;;  %v27959_v6 = vld [vmem:[#allocation103_spill] sm:$0xff] }
 0x2ab   :  { %19233 = vmatprep.subr.bf16.mxu0 %v19232_v15  ;;  %v19260_v43 = vpack.c.bf16 %v27960_v4, %v27959_v6 }
 0x2ad   :  { %16473 = vmatmul.mubr.f32.gmra.mrb[16].mxu0 %v23197_v49 }
 0x2ae   :  { %16475 = vmatprep.mubr.f32.mxu0 %v23199_v50  ;;  %v3027_v50 = vld [vmem:[#allocation2 + $0x170] sm:$0xff] }
 0x2b1   :  { %16476 = vmatmul.mubr.f32.gmra.mrb[18].mxu0 %v23203_v40  ;;  %v3028_v40 = vld [vmem:[#allocation2 + $0x188] sm:$0xff] }
 0x2b2   :  { %16478 = vmatprep.mubr.f32.mxu0 %v23205_v42  ;;  %v27951_v42 = vld [vmem:[#allocation95_spill] sm:$0xff] }
 0x2b5   :  { %16479 = vmatmul.mubr.f32.gmra.mrb[20].mxu0 %v23209_v44  ;;  %v27952_v44 = vld [vmem:[#allocation96_spill] sm:$0xff] }
 0x2b6   :  { %16481 = vmatprep.mubr.f32.mxu0 %v23211_v63  ;;  %v3023_v63 = vld [vmem:[#allocation2 + $0x130] sm:$0xff] }
 0x2b9   :  { %16482 = vmatmul.mubr.f32.gmra.mrb[22].mxu0 %v23215_v21  ;;  %v3024_v21 = vld [vmem:[#allocation2 + $0x148] sm:$0xff] }
 0x2ba   :  { %16484 = vmatprep.mubr.f32.mxu0 %v23217_v20  ;;  %v27948_v20 = vld [vmem:[#allocation92_spill] sm:$0xff] }
 0x2bb   :  { %v19236_v48 = vpack.c.bf16 %v27948_v20, %v27947_v47  ;;  %v3043_v47 = vld [vmem:[#allocation2 + $0x270] sm:$0xff]  ;;  %v3044_v20 = vld [vmem:[#allocation2 + $0x288] sm:$0xff] }
 0x2bd   :  { %16485 = vmatmul.mubr.f32.gmra.mrb[24].mxu0 %v23221_v19  ;;  %v27949_v19 = vld [vmem:[#allocation93_spill] sm:$0xff] }
 0x2be   :  { %16487 = vmatprep.mubr.f32.mxu0 %v23223_v18  ;;  %v3025_v18 = vld [vmem:[#allocation2 + $0x150] sm:$0xff]  ;;  %v19240_v49 = vpack.c.bf16 %v27950_v38, %v27949_v19  ;;  %v3048_v19 = vld [vmem:[#allocation2 + $0x2c8] sm:$0xff] }
 0x2bf   :  { %v3049_v38 = vld [vmem:[#allocation2 + $0x2d0] sm:$0xff] }
 0x2c1   :  { %16488 = vmatmul.mubr.f32.gmra.mrb[26].mxu0 %v23227_v17  ;;  %v3026_v17 = vld [vmem:[#allocation2 + $0x168] sm:$0xff] }
 0x2c2   :  { %16490 = vmatprep.mubr.f32.mxu0 %v23381_v61  ;;  %v19244_v61 = vpack.c.bf16 %v27952_v44, %v27951_v42  ;;  %v3329_v42 = vld [vmem:[#allocation2 + $0x131] sm:$0xff]  ;;  %v3330_v44 = vld [vmem:[#allocation2 + $0x149] sm:$0xff] }
 0x2c5   :  { %16491 = vmatmul.mubr.f32.gmra.mrb[28].mxu0 %v23385_v46  ;;  %v3029_v46 = vld [vmem:[#allocation2 + $0x190] sm:$0xff] }
 0x2c6   :  { %16493 = vmatprep.mubr.f32.mxu0 %v2746_v10  ;;  %v3038_v10 = vld [vmem:[#allocation2 + $0x228] sm:$0xff] }
 0x2c9   :  { %16494 = vmatmul.mubr.f32.gmra.mrb[30].mxu0 %v2747_v45  ;;  %v3039_v45 = vld [vmem:[#allocation2 + $0x230] sm:$0xff] }
 0x2ca   :  { %16528 = vmatprep.mubr.f32.mxu0 %v3022_v36  ;;  %v3040_v36 = vld [vmem:[#allocation2 + $0x248] sm:$0xff] }
 0x2cd   :  { %16529 = vmatmul.mubr.f32.vlgmr.msra.gmra.mrb[0].mxu0 %v3023_v63  ;;  %v3041_v63 = vld [vmem:[#allocation2 + $0x250] sm:$0xff] }
 0x2ce   :  { %19235 = vmatpush3.bf16.msra.mxu0 %v19232_v15  ;;  %16531 = vmatprep.mubr.f32.mxu0 %v3024_v21  ;;  %v3037_v15 = vld [vmem:[#allocation2 + $0x210] sm:$0xff]  ;;  %v3042_v21 = vld [vmem:[#allocation2 + $0x268] sm:$0xff] }
 0x2cf   :  { %19237 = vmatprep.subr.bf16.mxu0 %v19236_v48 }
 0x2d1   :  { %16532 = vmatmul.mubr.f32.gmra.mrb[2].mxu0 %v3025_v18  ;;  %v3046_v18 = vld [vmem:[#allocation2 + $0x2a8] sm:$0xff] }
 0x2d2   :  { %16534 = vmatprep.mubr.f32.mxu0 %v3026_v17  ;;  %19239 = vmatpush3.bf16.msra.mxu0 %v19236_v48  ;;  %v3045_v48 = vld [vmem:[#allocation2 + $0x290] sm:$0xff] }
 0x2d3   :  { %19241 = vmatprep.subr.bf16.mxu0 %v19240_v49  ;;  %v3047_v17 = vld [vmem:[#allocation2 + $0x2b0] sm:$0xff] }
 0x2d5   :  { %16535 = vmatmul.mubr.f32.gmra.mrb[4].mxu0 %v3027_v50  ;;  %v3053_v50 = vld [vmem:[#allocation2 + $0x310] sm:$0xff] }
 0x2d6   :  { %16537 = vmatprep.mubr.f32.mxu0 %v3028_v40  ;;  %19243 = vmatpush3.bf16.msra.mxu0 %v19240_v49  ;;  %v3052_v49 = vld [vmem:[#allocation2 + $0x308] sm:$0xff] }
 0x2d7   :  { %19245 = vmatprep.subr.bf16.mxu0 %v19244_v61  ;;  %v3328_v40 = vld [vmem:[#allocation2 + $0x129] sm:$0xff] }
 0x2d9   :  { %16538 = vmatmul.mubr.f32.gmra.mrb[6].mxu0 %v3029_v46  ;;  %v3332_v46 = vld [vmem:[#allocation2 + $0x169] sm:$0xff] }
 0x2da   :  { %16540 = vmatprep.mubr.f32.mxu0 %v3030_v23  ;;  %19247 = vmatpush3.bf16.msra.mxu0 %v19244_v61  ;;  %v3331_v61 = vld [vmem:[#allocation2 + $0x151] sm:$0xff] }
 0x2db   :  { %19249 = vmatprep.subr.bf16.mxu0 %v19248_v2  ;;  %v3333_v23 = vld [vmem:[#allocation2 + $0x171] sm:$0xff] }
 0x2dd   :  { %16541 = vmatmul.mubr.f32.gmra.mrb[8].mxu0 %v3031_v8 }
 0x2de   :  { %16543 = vmatprep.mubr.f32.mxu0 %v3032_v12  ;;  %19251 = vmatpush3.bf16.msra.mxu0 %v19248_v2 }
 0x2df   :  { %19253 = vmatprep.subr.bf16.mxu0 %v19252_v14 }
 0x2e1   :  { %16544 = vmatmul.mubr.f32.gmra.mrb[10].mxu0 %v3033_v37 }
 0x2e2   :  { %16546 = vmatprep.mubr.f32.mxu0 %v3034_v59  ;;  %19255 = vmatpush3.bf16.msra.mxu0 %v19252_v14 }
 0x2e3   :  { %19257 = vmatprep.subr.bf16.mxu0 %v19256_v32 }
 0x2e5   :  { %16547 = vmatmul.mubr.f32.gmra.mrb[12].mxu0 %v3035_v24 }
 0x2e6   :  { %16549 = vmatprep.mubr.f32.mxu0 %v3036_v41  ;;  %19259 = vmatpush3.bf16.msra.mxu0 %v19256_v32 }
 0x2e7   :  { %19261 = vmatprep.subr.bf16.mxu0 %v19260_v43 }
 0x2e9   :  { %16550 = vmatmul.mubr.f32.gmra.mrb[14].mxu0 %v3037_v15 }
 0x2ea   :  { %16552 = vmatprep.mubr.f32.mxu0 %v3038_v10  ;;  %19263 = vmatpush3.bf16.msra.mxu0 %v19260_v43 }
 0x2ed   :  { %16553 = vmatmul.mubr.f32.gmra.mrb[16].mxu0 %v3039_v45 }
 0x2ee   :  { %16555 = vmatprep.mubr.f32.mxu0 %v3040_v36 }
 0x2f1   :  { %16556 = vmatmul.mubr.f32.gmra.mrb[18].mxu0 %v3041_v63 }
 0x2f2   :  { %16558 = vmatprep.mubr.f32.mxu0 %v3042_v21 }
 0x2f5   :  { %16559 = vmatmul.mubr.f32.gmra.mrb[20].mxu0 %v3043_v47 }
 0x2f6   :  { %16561 = vmatprep.mubr.f32.mxu0 %v3044_v20 }
 0x2f9   :  { %16562 = vmatmul.mubr.f32.gmra.mrb[22].mxu0 %v3045_v48 }
 0x2fa   :  { %16564 = vmatprep.mubr.f32.mxu0 %v3046_v18 }
 0x2fd   :  { %16565 = vmatmul.mubr.f32.gmra.mrb[24].mxu0 %v3047_v17 }
 0x2fe   :  { %16567 = vmatprep.mubr.f32.mxu0 %v3048_v19 }
 0x301   :  { %16568 = vmatmul.mubr.f32.gmra.mrb[26].mxu0 %v3049_v38 }
 0x302   :  { %16570 = vmatprep.mubr.f32.mxu0 %v23433_v55  ;;  %v23581_v55 = vld [vmem:[%s27447_s2] ss:$0 sm:$0xff] }
 0x305   :  { %16571 = vmatmul.mubr.f32.gmra.mrb[28].mxu0 %v23437_v26 }
 0x306   :  { %16573 = vmatprep.mubr.f32.mxu0 %v3052_v49 }
 0x309   :  { %16574 = vmatmul.mubr.f32.gmra.mrb[30].mxu0 %v3053_v50 }
 0x30a   :  { %16608 = vmatprep.mubr.f32.mxu0 %v3328_v40 }
 0x30d   :  { %16609 = vmatmul.mubr.f32.vlgmr.msra.gmra.mrb[0].mxu0 %v3329_v42 }
 0x30e   :  { %16611 = vmatprep.mubr.f32.mxu0 %v3330_v44 }
 0x311   :  { %16612 = vmatmul.mubr.f32.gmra.mrb[2].mxu0 %v3331_v61 }
 0x312   :  { %16614 = vmatprep.mubr.f32.mxu0 %v3332_v46 }
 0x315   :  { %16615 = vmatmul.mubr.f32.gmra.mrb[4].mxu0 %v3333_v23 }
 0x316   :  { %16617 = vmatprep.mubr.f32.mxu0 %v27903_v30 }
 0x319   :  { %16618 = vmatmul.mubr.f32.gmra.mrb[6].mxu0 %v27906_v13 }
 0x31a   :  { %16620 = vmatprep.mubr.f32.mxu0 %v27907_v1 }
 0x31d   :  { %16621 = vmatmul.mubr.f32.gmra.mrb[8].mxu0 %v23275_v52  ;;  %v3358_v52 = vld [vmem:[#allocation2 + $0x309] sm:$0xff] }
 0x31e   :  { %16623 = vmatprep.mubr.f32.mxu0 %v23277_v56  ;;  %v27961_v56 = vld [vmem:[#allocation27_spill] sm:$0xff] }
 0x321   :  { %16624 = vmatmul.mubr.f32.gmra.mrb[10].mxu0 %v23283_v54  ;;  %v3359_v54 = vld [vmem:[#allocation2 + $0x311] sm:$0xff] }
 0x322   :  { %16626 = vmatprep.mubr.f32.mxu0 %v27912_v25 }
 0x325   :  { %16627 = vmatmul.mubr.f32.gmra.mrb[12].mxu0 %v27915_v51 }
 0x326   :  { %16629 = vmatprep.mubr.f32.mxu0 %v27916_v27 }
 0x329   :  { %16630 = vmatmul.mubr.f32.gmra.mrb[14].mxu0 %v27917_v5 }
 0x32a   :  { %16632 = vmatprep.mubr.f32.mxu0 %v27918_v57 }
 0x32d   :  { %16633 = vmatmul.mubr.f32.gmra.mrb[16].mxu0 %v27919_v28 }
 0x32e   :  { %16635 = vmatprep.mubr.f32.mxu0 %v27920_v60 }
 0x331   :  { %16636 = vmatmul.mubr.f32.gmra.mrb[18].mxu0 %v27921_v7 }
 0x332   :  { %16638 = vmatprep.mubr.f32.mxu0 %v27922_v58 }
 0x335   :  { %16639 = vmatmul.mubr.f32.gmra.mrb[20].mxu0 %v27923_v29 }
 0x336   :  { %16641 = vmatprep.mubr.f32.mxu0 %v27924_v33 }
 0x339   :  { %16642 = vmatmul.mubr.f32.gmra.mrb[22].mxu0 %v27925_v34 }
 0x33a   :  { %16644 = vmatprep.mubr.f32.mxu0 %v27926_v9 }
 0x33d   :  { %16645 = vmatmul.mubr.f32.gmra.mrb[24].mxu0 %v27927_v0 }
 0x33e   :  { %16647 = vmatprep.mubr.f32.mxu0 %v27928_v62 }
 0x341   :  { %16648 = vmatmul.mubr.f32.gmra.mrb[26].mxu0 %v27929_v31 }
 0x342   :  { %16650 = vmatprep.mubr.f32.mxu0 %v23485_v11 }
 0x345   :  { %16651 = vmatmul.mubr.f32.gmra.mrb[28].mxu0 %v27961_v56 }
 0x346   :  { %16653 = vmatprep.mubr.f32.mxu0 %v3358_v52 }
 0x349   :  { %16654 = vmatmul.mubr.f32.gmra.mrb[30].mxu0 %v3359_v54 }
 0x3e0   :  { %v16610_v26 = vpop.f32.mrb[0].mxu0 }
 0x3e1   :  { %v3642_v30 = vadd.f32 %v16610_v26, %v23581_v55  ;;  %v3443_v13 = vpop.f32.mrb[1].mxu0 }
 0x3e2   :  { %v3641_v1 = vadd.f32 %v23581_v55, %v3443_v13 }
 0x3e3   :  { %v3674_v25 = vmax.f32 %v3642_v30, 0.0 }
 0x3e4   :  { %v3673_v51 = vmax.f32 %v3641_v1, 0.0  ;;  %v16613_v27 = vpop.f32.mrb[2].mxu0 }
 0x3e5   :  { %3706 = vst [vmem:[#allocation3 + $0x110] sm:$0xff] %v3674_v25  ;;  %v3644_v5 = vadd.f32 %v16613_v27, %v23581_v55  ;;  %v3453_v57 = vpop.f32.mrb[3].mxu0 }
 0x3e6   :  { %3705 = vst [vmem:[#allocation3 + $0x108] sm:$0xff] %v3673_v51  ;;  %v3643_v28 = vadd.f32 %v23581_v55, %v3453_v57 }
 0x3e7   :  { %v3676_v60 = vmax.f32 %v3644_v5, 0.0 }
 0x3e8   :  { %v3675_v7 = vmax.f32 %v3643_v28, 0.0  ;;  %v16616_v58 = vpop.f32.mrb[4].mxu0 }
 0x3e9   :  { %3708 = vst [vmem:[#allocation3 + $0x130] sm:$0xff] %v3676_v60  ;;  %v3646_v29 = vadd.f32 %v16616_v58, %v23581_v55  ;;  %v3463_v33 = vpop.f32.mrb[5].mxu0 }
 0x3ea   :  { %3707 = vst [vmem:[#allocation3 + $0x128] sm:$0xff] %v3675_v7  ;;  %v3645_v34 = vadd.f32 %v23581_v55, %v3463_v33 }
 0x3eb   :  { %v3678_v9 = vmax.f32 %v3646_v29, 0.0 }
 0x3ec   :  { %v3677_v0 = vmax.f32 %v3645_v34, 0.0  ;;  %v16619_v62 = vpop.f32.mrb[6].mxu0 }
 0x3ed   :  { %3710 = vst [vmem:[#allocation3 + $0x150] sm:$0xff] %v3678_v9  ;;  %v3648_v11 = vadd.f32 %v16619_v62, %v23581_v55  ;;  %v3473_v31 = vpop.f32.mrb[7].mxu0 }
 0x3ee   :  { %3709 = vst [vmem:[#allocation3 + $0x148] sm:$0xff] %v3677_v0  ;;  %v3647_v16 = vadd.f32 %v23581_v55, %v3473_v31 }
 0x3ef   :  { %v3680_v53 = vmax.f32 %v3648_v11, 0.0 }
 0x3f0   :  { %v3679_v2 = vmax.f32 %v3647_v16, 0.0  ;;  %v16622_v8 = vpop.f32.mrb[8].mxu0 }
 0x3f1   :  { %3712 = vst [vmem:[#allocation3 + $0x170] sm:$0xff] %v3680_v53  ;;  %v3650_v12 = vadd.f32 %v16622_v8, %v23581_v55  ;;  %v3483_v35 = vpop.f32.mrb[9].mxu0 }
 0x3f2   :  { %3711 = vst [vmem:[#allocation3 + $0x168] sm:$0xff] %v3679_v2  ;;  %v3649_v3 = vadd.f32 %v23581_v55, %v3483_v35 }
 0x3f3   :  { %v3682_v14 = vmax.f32 %v3650_v12, 0.0 }
 0x3f4   :  { %v3681_v37 = vmax.f32 %v3649_v3, 0.0  ;;  %v16625_v59 = vpop.f32.mrb[10].mxu0 }
 0x3f5   :  { %3714 = vst [vmem:[#allocation3 + $0x190] sm:$0xff] %v3682_v14  ;;  %v3652_v22 = vadd.f32 %v16625_v59, %v23581_v55  ;;  %v3493_v39 = vpop.f32.mrb[11].mxu0 }
 0x3f6   :  { %3713 = vst [vmem:[#allocation3 + $0x188] sm:$0xff] %v3681_v37  ;;  %v3651_v32 = vadd.f32 %v23581_v55, %v3493_v39 }
 0x3f7   :  { %v3684_v24 = vmax.f32 %v3652_v22, 0.0 }
 0x3f8   :  { %v3683_v41 = vmax.f32 %v3651_v32, 0.0  ;;  %v16628_v6 = vpop.f32.mrb[12].mxu0 }
 0x3f9   :  { %3716 = vst [vmem:[#allocation3 + $0x1b0] sm:$0xff] %v3684_v24  ;;  %v3654_v4 = vadd.f32 %v16628_v6, %v23581_v55  ;;  %v3503_v43 = vpop.f32.mrb[13].mxu0 }
 0x3fa   :  { %3715 = vst [vmem:[#allocation3 + $0x1a8] sm:$0xff] %v3683_v41  ;;  %v3653_v15 = vadd.f32 %v23581_v55, %v3503_v43 }
 0x3fb   :  { %v3686_v10 = vmax.f32 %v3654_v4, 0.0 }
 0x3fc   :  { %v3685_v45 = vmax.f32 %v3653_v15, 0.0  ;;  %v16631_v36 = vpop.f32.mrb[14].mxu0 }
 0x3fd   :  { %3718 = vst [vmem:[#allocation3 + $0x1d0] sm:$0xff] %v3686_v10  ;;  %v3656_v63 = vadd.f32 %v16631_v36, %v23581_v55  ;;  %v3513_v21 = vpop.f32.mrb[15].mxu0 }
 0x3fe   :  { %3717 = vst [vmem:[#allocation3 + $0x1c8] sm:$0xff] %v3685_v45  ;;  %v3655_v47 = vadd.f32 %v23581_v55, %v3513_v21 }
 0x3ff   :  { %v3688_v20 = vmax.f32 %v3656_v63, 0.0 }
 0x400   :  { %v3687_v48 = vmax.f32 %v3655_v47, 0.0  ;;  %v16634_v18 = vpop.f32.mrb[16].mxu0 }
 0x401   :  { %3720 = vst [vmem:[#allocation3 + $0x1f0] sm:$0xff] %v3688_v20  ;;  %v3658_v17 = vadd.f32 %v16634_v18, %v23581_v55  ;;  %v3523_v19 = vpop.f32.mrb[17].mxu0 }
 0x402   :  { %3719 = vst [vmem:[#allocation3 + $0x1e8] sm:$0xff] %v3687_v48  ;;  %v3657_v38 = vadd.f32 %v23581_v55, %v3523_v19 }
 0x403   :  { %v3690_v49 = vmax.f32 %v3658_v17, 0.0 }
 0x404   :  { %v3689_v50 = vmax.f32 %v3657_v38, 0.0  ;;  %v16637_v40 = vpop.f32.mrb[18].mxu0 }
 0x405   :  { %3722 = vst [vmem:[#allocation3 + $0x210] sm:$0xff] %v3690_v49  ;;  %v3660_v42 = vadd.f32 %v16637_v40, %v23581_v55  ;;  %v3533_v44 = vpop.f32.mrb[19].mxu0 }
 0x406   :  { %3721 = vst [vmem:[#allocation3 + $0x208] sm:$0xff] %v3689_v50  ;;  %v3659_v61 = vadd.f32 %v23581_v55, %v3533_v44 }
 0x407   :  { %v3692_v46 = vmax.f32 %v3660_v42, 0.0 }
 0x408   :  { %v3691_v23 = vmax.f32 %v3659_v61, 0.0  ;;  %v16640_v52 = vpop.f32.mrb[20].mxu0 }
 0x409   :  { %3724 = vst [vmem:[#allocation3 + $0x230] sm:$0xff] %v3692_v46  ;;  %v3662_v56 = vadd.f32 %v16640_v52, %v23581_v55  ;;  %v3543_v54 = vpop.f32.mrb[21].mxu0 }
 0x40a   :  { %3723 = vst [vmem:[#allocation3 + $0x228] sm:$0xff] %v3691_v23  ;;  %v3661_v26 = vadd.f32 %v23581_v55, %v3543_v54 }
 0x40b   :  { %v3694_v30 = vmax.f32 %v3662_v56, 0.0 }
 0x40c   :  { %v3693_v13 = vmax.f32 %v3661_v26, 0.0  ;;  %v16643_v1 = vpop.f32.mrb[22].mxu0 }
 0x40d   :  { %3726 = vst [vmem:[#allocation3 + $0x250] sm:$0xff] %v3694_v30  ;;  %v3664_v25 = vadd.f32 %v16643_v1, %v23581_v55  ;;  %v3553_v51 = vpop.f32.mrb[23].mxu0 }
 0x40e   :  { %3725 = vst [vmem:[#allocation3 + $0x248] sm:$0xff] %v3693_v13  ;;  %v3663_v27 = vadd.f32 %v23581_v55, %v3553_v51 }
 0x40f   :  { %v3696_v5 = vmax.f32 %v3664_v25, 0.0 }
 0x410   :  { %v3695_v57 = vmax.f32 %v3663_v27, 0.0  ;;  %v16646_v28 = vpop.f32.mrb[24].mxu0 }
 0x411   :  { %3728 = vst [vmem:[#allocation3 + $0x270] sm:$0xff] %v3696_v5  ;;  %v3666_v60 = vadd.f32 %v16646_v28, %v23581_v55  ;;  %v3563_v7 = vpop.f32.mrb[25].mxu0 }
 0x412   :  { %3727 = vst [vmem:[#allocation3 + $0x268] sm:$0xff] %v3695_v57  ;;  %v3665_v58 = vadd.f32 %v23581_v55, %v3563_v7 }
 0x413   :  { %v3698_v29 = vmax.f32 %v3666_v60, 0.0 }
 0x414   :  { %v3697_v33 = vmax.f32 %v3665_v58, 0.0  ;;  %v16649_v34 = vpop.f32.mrb[26].mxu0 }
 0x415   :  { %3730 = vst [vmem:[#allocation3 + $0x290] sm:$0xff] %v3698_v29  ;;  %v3668_v9 = vadd.f32 %v16649_v34, %v23581_v55  ;;  %v3573_v0 = vpop.f32.mrb[27].mxu0 }
 0x416   :  { %3729 = vst [vmem:[#allocation3 + $0x288] sm:$0xff] %v3697_v33  ;;  %v3667_v62 = vadd.f32 %v23581_v55, %v3573_v0 }
 0x417   :  { %v3700_v11 = vmax.f32 %v3668_v9, 0.0 }
 0x418   :  { %v3699_v31 = vmax.f32 %v3667_v62, 0.0  ;;  %v16652_v16 = vpop.f32.mrb[28].mxu0 }
 0x419   :  { %3732 = vst [vmem:[#allocation3 + $0x2b0] sm:$0xff] %v3700_v11  ;;  %v3670_v53 = vadd.f32 %v16652_v16, %v23581_v55  ;;  %v3583_v2 = vpop.f32.mrb[29].mxu0 }
 0x41a   :  { %3731 = vst [vmem:[#allocation3 + $0x2a8] sm:$0xff] %v3699_v31  ;;  %v3669_v8 = vadd.f32 %v23581_v55, %v3583_v2 }
 0x41b   :  { %v3702_v12 = vmax.f32 %v3670_v53, 0.0 }
 0x41c   :  { %v3701_v35 = vmax.f32 %v3669_v8, 0.0  ;;  %v16655_v3 = vpop.f32.mrb[30].mxu0 }
 0x41d   :  { %3734 = vst [vmem:[#allocation3 + $0x2d0] sm:$0xff] %v3702_v12  ;;  %v3672_v14 = vadd.f32 %v16655_v3, %v23581_v55  ;;  %v3593_v37 = vpop.f32.mrb[31].mxu0 }
 0x41e   :  { %3733 = vst [vmem:[#allocation3 + $0x2c8] sm:$0xff] %v3701_v35  ;;  %v3671_v59 = vadd.f32 %v23581_v55, %v3593_v37 }
 0x41f   :  { %v3704_v22 = vmax.f32 %v3672_v14, 0.0 }
 0x420   :  { %v3703_v39 = vmax.f32 %v3671_v59, 0.0 }
 0x421   :  { %3736 = vst [vmem:[#allocation3 + $0x2f0] sm:$0xff] %v3704_v22 }
 0x422   :  { %3735 = vst [vmem:[#allocation3 + $0x2e8] sm:$0xff] %v3703_v39 }
 0x423   :  { %21253 = dma.done.wait [#allocation5 + $0x1], 18432 }
 0x424   :  { %21254 = vsyncadd [#allocation5 + $0x1], 4294948864  ;;  %v23618_v32 = vld [vmem:[%s27446_s1 + $0x900] sm:$0xff]  ;;  %v23623_v24 = vld [vmem:[%s27446_s1 + $0x908] sm:$0xff] }
 0x425   :  { %27962 = vst [vmem:[#allocation28_spill] sm:$0xff] %v23618_v32  ;;  %27963 = vst [vmem:[#allocation29_spill] sm:$0xff] %v23623_v24  ;;  %v23628_v55 = vld [vmem:[%s27446_s1 + $0x910] sm:$0xff]  ;;  %v23633_v41 = vld [vmem:[%s27446_s1 + $0x918] sm:$0xff] }
 0x426   :  { %27964 = vst [vmem:[#allocation30_spill] sm:$0xff] %v23628_v55  ;;  %27965 = vst [vmem:[#allocation31_spill] sm:$0xff] %v23633_v41  ;;  %v23638_v6 = vld [vmem:[%s27446_s1 + $0x920] sm:$0xff]  ;;  %v23643_v4 = vld [vmem:[%s27446_s1 + $0x928] sm:$0xff] }
 0x427   :  { %27966 = vst [vmem:[#allocation32_spill] sm:$0xff] %v23638_v6  ;;  %27967 = vst [vmem:[#allocation33_spill] sm:$0xff] %v23643_v4  ;;  %v23648_v43 = vld [vmem:[%s27446_s1 + $0x930] sm:$0xff]  ;;  %v23653_v15 = vld [vmem:[%s27446_s1 + $0x938] sm:$0xff] }
 0x428   :  { %27968 = vst [vmem:[#allocation34_spill] sm:$0xff] %v23648_v43  ;;  %27969 = vst [vmem:[#allocation35_spill] sm:$0xff] %v23653_v15  ;;  %v23658_v10 = vld [vmem:[%s27446_s1 + $0x940] sm:$0xff]  ;;  %v23663_v45 = vld [vmem:[%s27446_s1 + $0x948] sm:$0xff] }
 0x429   :  { %27970 = vst [vmem:[#allocation36_spill] sm:$0xff] %v23658_v10  ;;  %27971 = vst [vmem:[#allocation37_spill] sm:$0xff] %v23663_v45  ;;  %v23668_v36 = vld [vmem:[%s27446_s1 + $0x950] sm:$0xff]  ;;  %v23673_v63 = vld [vmem:[%s27446_s1 + $0x958] sm:$0xff] }
 0x42a   :  { %27972 = vst [vmem:[#allocation38_spill] sm:$0xff] %v23668_v36  ;;  %27973 = vst [vmem:[#allocation39_spill] sm:$0xff] %v23673_v63  ;;  %v23678_v21 = vld [vmem:[%s27446_s1 + $0x960] sm:$0xff]  ;;  %v23683_v47 = vld [vmem:[%s27446_s1 + $0x968] sm:$0xff] }
 0x42b   :  { %27974 = vst [vmem:[#allocation40_spill] sm:$0xff] %v23678_v21  ;;  %27975 = vst [vmem:[#allocation41_spill] sm:$0xff] %v23683_v47  ;;  %v23688_v20 = vld [vmem:[%s27446_s1 + $0x970] sm:$0xff]  ;;  %v23693_v48 = vld [vmem:[%s27446_s1 + $0x978] sm:$0xff] }
 0x42c   :  { %27976 = vst [vmem:[#allocation42_spill] sm:$0xff] %v23688_v20  ;;  %27977 = vst [vmem:[#allocation43_spill] sm:$0xff] %v23693_v48  ;;  %v23698_v18 = vld [vmem:[%s27446_s1 + $0x980] sm:$0xff]  ;;  %v23703_v17 = vld [vmem:[%s27446_s1 + $0x988] sm:$0xff] }
 0x42d   :  { %27978 = vst [vmem:[#allocation44_spill] sm:$0xff] %v23698_v18  ;;  %27979 = vst [vmem:[#allocation45_spill] sm:$0xff] %v23703_v17  ;;  %v23708_v19 = vld [vmem:[%s27446_s1 + $0x990] sm:$0xff]  ;;  %v23713_v38 = vld [vmem:[%s27446_s1 + $0x998] sm:$0xff] }
 0x42e   :  { %27980 = vst [vmem:[#allocation46_spill] sm:$0xff] %v23708_v19  ;;  %27981 = vst [vmem:[#allocation47_spill] sm:$0xff] %v23713_v38  ;;  %v23718_v49 = vld [vmem:[%s27446_s1 + $0x9a0] sm:$0xff]  ;;  %v23723_v50 = vld [vmem:[%s27446_s1 + $0x9a8] sm:$0xff] }
 0x42f   :  { %27982 = vst [vmem:[#allocation48_spill] sm:$0xff] %v23718_v49  ;;  %27983 = vst [vmem:[#allocation49_spill] sm:$0xff] %v23723_v50  ;;  %v23728_v40 = vld [vmem:[%s27446_s1 + $0x9b0] sm:$0xff]  ;;  %v23733_v42 = vld [vmem:[%s27446_s1 + $0x9b8] sm:$0xff] }
 0x430   :  { %27984 = vst [vmem:[#allocation50_spill] sm:$0xff] %v23728_v40  ;;  %27985 = vst [vmem:[#allocation51_spill] sm:$0xff] %v23733_v42  ;;  %v23738_v44 = vld [vmem:[%s27446_s1 + $0x9c0] sm:$0xff]  ;;  %v23743_v61 = vld [vmem:[%s27446_s1 + $0x9c8] sm:$0xff] }
 0x431   :  { %27986 = vst [vmem:[#allocation52_spill] sm:$0xff] %v23738_v44  ;;  %27987 = vst [vmem:[#allocation53_spill] sm:$0xff] %v23743_v61  ;;  %v23748_v46 = vld [vmem:[%s27446_s1 + $0x9d0] sm:$0xff]  ;;  %v23753_v23 = vld [vmem:[%s27446_s1 + $0x9d8] sm:$0xff] }
 0x432   :  { %27988 = vst [vmem:[#allocation54_spill] sm:$0xff] %v23748_v46  ;;  %27989 = vst [vmem:[#allocation55_spill] sm:$0xff] %v23753_v23  ;;  %v23758_v52 = vld [vmem:[%s27446_s1 + $0x9e0] sm:$0xff]  ;;  %v23763_v56 = vld [vmem:[%s27446_s1 + $0x9e8] sm:$0xff] }
 0x433   :  { %27990 = vst [vmem:[#allocation56_spill] sm:$0xff] %v23758_v52  ;;  %27991 = vst [vmem:[#allocation57_spill] sm:$0xff] %v23763_v56  ;;  %v23768_v54 = vld [vmem:[%s27446_s1 + $0x9f0] sm:$0xff]  ;;  %v23773_v26 = vld [vmem:[%s27446_s1 + $0x9f8] sm:$0xff] }
 0x434   :  { %27992 = vst [vmem:[#allocation58_spill] sm:$0xff] %v23768_v54  ;;  %27993 = vst [vmem:[#allocation249_spill] sm:$0xff] %v23773_v26  ;;  %v23778_v30 = vld [vmem:[%s27446_s1 + $0xa00] sm:$0xff]  ;;  %v23783_v13 = vld [vmem:[%s27446_s1 + $0xa08] sm:$0xff] }
 0x435   :  { %27994 = vst [vmem:[#allocation250_spill] sm:$0xff] %v23778_v30  ;;  %27995 = vst [vmem:[#allocation251_spill] sm:$0xff] %v23783_v13  ;;  %v23788_v1 = vld [vmem:[%s27446_s1 + $0xa10] sm:$0xff]  ;;  %v23793_v25 = vld [vmem:[%s27446_s1 + $0xa18] sm:$0xff] }
 0x436   :  { %27996 = vst [vmem:[#allocation252_spill] sm:$0xff] %v23788_v1  ;;  %27997 = vst [vmem:[#allocation253_spill] sm:$0xff] %v23793_v25  ;;  %v23798_v51 = vld [vmem:[%s27446_s1 + $0xa20] sm:$0xff]  ;;  %v23803_v27 = vld [vmem:[%s27446_s1 + $0xa28] sm:$0xff] }
 0x437   :  { %27998 = vst [vmem:[#allocation254_spill] sm:$0xff] %v23798_v51  ;;  %27999 = vst [vmem:[#allocation255_spill] sm:$0xff] %v23803_v27  ;;  %v23808_v5 = vld [vmem:[%s27446_s1 + $0xa30] sm:$0xff]  ;;  %v23813_v57 = vld [vmem:[%s27446_s1 + $0xa38] sm:$0xff] }
 0x438   :  { %28000 = vst [vmem:[#allocation256_spill] sm:$0xff] %v23808_v5  ;;  %28001 = vst [vmem:[#allocation257_spill] sm:$0xff] %v23813_v57  ;;  %v23818_v28 = vld [vmem:[%s27446_s1 + $0xa40] sm:$0xff]  ;;  %v23823_v60 = vld [vmem:[%s27446_s1 + $0xa48] sm:$0xff] }
 0x439   :  { %28002 = vst [vmem:[#allocation258_spill] sm:$0xff] %v23818_v28  ;;  %28003 = vst [vmem:[#allocation259_spill] sm:$0xff] %v23823_v60  ;;  %v23828_v7 = vld [vmem:[%s27446_s1 + $0xa50] sm:$0xff]  ;;  %v23833_v58 = vld [vmem:[%s27446_s1 + $0xa58] sm:$0xff] }
 0x43a   :  { %28004 = vst [vmem:[#allocation260_spill] sm:$0xff] %v23828_v7  ;;  %28005 = vst [vmem:[#allocation59_spill] sm:$0xff] %v23833_v58  ;;  %v23838_v29 = vld [vmem:[%s27446_s1 + $0xa60] sm:$0xff]  ;;  %v23843_v33 = vld [vmem:[%s27446_s1 + $0xa68] sm:$0xff] }
 0x43b   :  { %28006 = vst [vmem:[#allocation60_spill] sm:$0xff] %v23838_v29  ;;  %28007 = vst [vmem:[#allocation61_spill] sm:$0xff] %v23843_v33  ;;  %v23848_v34 = vld [vmem:[%s27446_s1 + $0xa70] sm:$0xff]  ;;  %v23853_v9 = vld [vmem:[%s27446_s1 + $0xa78] sm:$0xff] }
 0x43c   :  { %28008 = vst [vmem:[#allocation62_spill] sm:$0xff] %v23848_v34  ;;  %28009 = vst [vmem:[#allocation261_spill] sm:$0xff] %v23853_v9  ;;  %v23858_v0 = vld [vmem:[%s27446_s1 + $0xa80] sm:$0xff]  ;;  %v23863_v62 = vld [vmem:[%s27446_s1 + $0xa88] sm:$0xff] }
 0x43d   :  { %28010 = vst [vmem:[#allocation63_spill] sm:$0xff] %v23858_v0  ;;  %28011 = vst [vmem:[#allocation64_spill] sm:$0xff] %v23863_v62  ;;  %v23868_v11 = vld [vmem:[%s27446_s1 + $0xa90] sm:$0xff]  ;;  %v23873_v31 = vld [vmem:[%s27446_s1 + $0xa98] sm:$0xff] }
 0x43e   :  { %28012 = vst [vmem:[#allocation262_spill] sm:$0xff] %v23868_v11  ;;  %28013 = vst [vmem:[#allocation263_spill] sm:$0xff] %v23873_v31  ;;  %v23878_v16 = vld [vmem:[%s27446_s1 + $0xaa0] sm:$0xff]  ;;  %v23883_v53 = vld [vmem:[%s27446_s1 + $0xaa8] sm:$0xff] }
 0x43f   :  { %28014 = vst [vmem:[#allocation65_spill] sm:$0xff] %v23878_v16  ;;  %28015 = vst [vmem:[#allocation66_spill] sm:$0xff] %v23883_v53  ;;  %v23888_v2 = vld [vmem:[%s27446_s1 + $0xab0] sm:$0xff]  ;;  %v23893_v8 = vld [vmem:[%s27446_s1 + $0xab8] sm:$0xff] }
 0x440   :  { %28016 = vst [vmem:[#allocation264_spill] sm:$0xff] %v23888_v2  ;;  %28017 = vst [vmem:[#allocation265_spill] sm:$0xff] %v23893_v8  ;;  %v23898_v12 = vld [vmem:[%s27446_s1 + $0xac0] sm:$0xff]  ;;  %v23903_v35 = vld [vmem:[%s27446_s1 + $0xac8] sm:$0xff] }
 0x441   :  { %28018 = vst [vmem:[#allocation67_spill] sm:$0xff] %v23898_v12  ;;  %28019 = vst [vmem:[#allocation68_spill] sm:$0xff] %v23903_v35  ;;  %v23908_v3 = vld [vmem:[%s27446_s1 + $0xad0] sm:$0xff]  ;;  %v23913_v14 = vld [vmem:[%s27446_s1 + $0xad8] sm:$0xff] }
 0x442   :  { %28020 = vst [vmem:[#allocation19_spill] sm:$0xff] %v23908_v3  ;;  %28021 = vst [vmem:[#allocation20_spill] sm:$0xff] %v23913_v14  ;;  %v23918_v37 = vld [vmem:[%s27446_s1 + $0xae0] sm:$0xff]  ;;  %v23923_v59 = vld [vmem:[%s27446_s1 + $0xae8] sm:$0xff] }
 0x443   :  { %28022 = vst [vmem:[#allocation69_spill] sm:$0xff] %v23918_v37  ;;  %28023 = vst [vmem:[#allocation70_spill] sm:$0xff] %v23923_v59  ;;  %v23928_v22 = vld [vmem:[%s27446_s1 + $0xaf0] sm:$0xff]  ;;  %v23933_v39 = vld [vmem:[%s27446_s1 + $0xaf8] sm:$0xff] }
 0x444   :  { %28024 = vst [vmem:[#allocation71_spill] sm:$0xff] %v23928_v22  ;;  %28025 = vst [vmem:[#allocation72_spill] sm:$0xff] %v23933_v39  ;;  %v23938_v14 = vld [vmem:[%s27446_s1 + $0xb00] sm:$0xff]  ;;  %v23943_v37 = vld [vmem:[%s27446_s1 + $0xb08] sm:$0xff] }
 0x445   :  { %28026 = vst [vmem:[#allocation21_spill] sm:$0xff] %v23938_v14  ;;  %28027 = vst [vmem:[#allocation73_spill] sm:$0xff] %v23943_v37  ;;  %v23948_v59 = vld [vmem:[%s27446_s1 + $0xb10] sm:$0xff]  ;;  %v23953_v22 = vld [vmem:[%s27446_s1 + $0xb18] sm:$0xff] }
 0x446   :  { %28028 = vst [vmem:[#allocation74_spill] sm:$0xff] %v23948_v59  ;;  %28029 = vst [vmem:[#allocation22_spill] sm:$0xff] %v23953_v22  ;;  %v23958_v39 = vld [vmem:[%s27446_s1 + $0xb20] sm:$0xff]  ;;  %v23963_v14 = vld [vmem:[%s27446_s1 + $0xb28] sm:$0xff] }
 0x447   :  { %28030 = vst [vmem:[#allocation23_spill] sm:$0xff] %v23958_v39  ;;  %28031 = vst [vmem:[#allocation24_spill] sm:$0xff] %v23963_v14  ;;  %v23968_v37 = vld [vmem:[%s27446_s1 + $0xb30] sm:$0xff]  ;;  %v23973_v59 = vld [vmem:[%s27446_s1 + $0xb38] sm:$0xff] }
 0x448   :  { %28032 = vst [vmem:[#allocation25_spill] sm:$0xff] %v23968_v37  ;;  %28033 = vst [vmem:[#allocation26_spill] sm:$0xff] %v23973_v59  ;;  %v23978_v22 = vld [vmem:[%s27446_s1 + $0xb40] sm:$0xff]  ;;  %v23983_v39 = vld [vmem:[%s27446_s1 + $0xb48] sm:$0xff] }
 0x449   :  { %28034 = vst [vmem:[#allocation266_spill] sm:$0xff] %v23978_v22  ;;  %28035 = vst [vmem:[#allocation267_spill] sm:$0xff] %v23983_v39  ;;  %v23988_v14 = vld [vmem:[%s27446_s1 + $0xb50] sm:$0xff]  ;;  %v23993_v37 = vld [vmem:[%s27446_s1 + $0xb58] sm:$0xff] }
 0x44a   :  { %28036 = vst [vmem:[#allocation268_spill] sm:$0xff] %v23988_v14  ;;  %28037 = vst [vmem:[#allocation269_spill] sm:$0xff] %v23993_v37  ;;  %v23998_v59 = vld [vmem:[%s27446_s1 + $0xb60] sm:$0xff]  ;;  %v24003_v22 = vld [vmem:[%s27446_s1 + $0xb68] sm:$0xff] }
 0x44b   :  { %28038 = vst [vmem:[#allocation270_spill] sm:$0xff] %v23998_v59  ;;  %28039 = vst [vmem:[#allocation271_spill] sm:$0xff] %v24003_v22  ;;  %v24008_v39 = vld [vmem:[%s27446_s1 + $0xb70] sm:$0xff]  ;;  %v24013_v14 = vld [vmem:[%s27446_s1 + $0xb78] sm:$0xff] }
 0x44c   :  { %28040 = vst [vmem:[#allocation272_spill] sm:$0xff] %v24008_v39  ;;  %28041 = vst [vmem:[#allocation273_spill] sm:$0xff] %v24013_v14  ;;  %v24018_v37 = vld [vmem:[%s27446_s1 + $0xb80] sm:$0xff]  ;;  %v24023_v59 = vld [vmem:[%s27446_s1 + $0xb88] sm:$0xff] }
 0x44d   :  { %28042 = vst [vmem:[#allocation274_spill] sm:$0xff] %v24018_v37  ;;  %28043 = vst [vmem:[#allocation275_spill] sm:$0xff] %v24023_v59  ;;  %v24028_v22 = vld [vmem:[%s27446_s1 + $0xb90] sm:$0xff]  ;;  %v24033_v39 = vld [vmem:[%s27446_s1 + $0xb98] sm:$0xff] }
 0x44e   :  { %28044 = vst [vmem:[#allocation75_spill] sm:$0xff] %v24028_v22  ;;  %28045 = vst [vmem:[#allocation76_spill] sm:$0xff] %v24033_v39  ;;  %v24038_v14 = vld [vmem:[%s27446_s1 + $0xba0] sm:$0xff]  ;;  %v24043_v37 = vld [vmem:[%s27446_s1 + $0xba8] sm:$0xff] }
 0x44f   :  { %28046 = vst [vmem:[#allocation77_spill] sm:$0xff] %v24038_v14  ;;  %28047 = vst [vmem:[#allocation78_spill] sm:$0xff] %v24043_v37  ;;  %v24048_v59 = vld [vmem:[%s27446_s1 + $0xbb0] sm:$0xff]  ;;  %v24053_v22 = vld [vmem:[%s27446_s1 + $0xbb8] sm:$0xff] }
 0x450   :  { %28048 = vst [vmem:[#allocation79_spill] sm:$0xff] %v24048_v59  ;;  %28049 = vst [vmem:[#allocation80_spill] sm:$0xff] %v24053_v22  ;;  %v24058_v39 = vld [vmem:[%s27446_s1 + $0xbc0] sm:$0xff]  ;;  %v24063_v14 = vld [vmem:[%s27446_s1 + $0xbc8] sm:$0xff] }
 0x451   :  { %28050 = vst [vmem:[#allocation81_spill] sm:$0xff] %v24058_v39  ;;  %28051 = vst [vmem:[#allocation82_spill] sm:$0xff] %v24063_v14  ;;  %v24068_v37 = vld [vmem:[%s27446_s1 + $0xbd0] sm:$0xff]  ;;  %v24073_v59 = vld [vmem:[%s27446_s1 + $0xbd8] sm:$0xff] }
 0x452   :  { %28052 = vst [vmem:[#allocation83_spill] sm:$0xff] %v24068_v37  ;;  %28053 = vst [vmem:[#allocation84_spill] sm:$0xff] %v24073_v59  ;;  %v24078_v22 = vld [vmem:[%s27446_s1 + $0xbe0] sm:$0xff]  ;;  %v24083_v39 = vld [vmem:[%s27446_s1 + $0xbe8] sm:$0xff] }
 0x453   :  { %28054 = vst [vmem:[#allocation85_spill] sm:$0xff] %v24078_v22  ;;  %28055 = vst [vmem:[#allocation86_spill] sm:$0xff] %v24083_v39  ;;  %v24088_v14 = vld [vmem:[%s27446_s1 + $0xbf0] sm:$0xff]  ;;  %v24093_v37 = vld [vmem:[%s27446_s1 + $0xbf8] sm:$0xff] }
 0x454   :  { %28056 = vst [vmem:[#allocation87_spill] sm:$0xff] %v24088_v14  ;;  %28057 = vst [vmem:[#allocation88_spill] sm:$0xff] %v24093_v37  ;;  %v24098_v59 = vld [vmem:[%s27446_s1 + $0xc00] sm:$0xff]  ;;  %v24103_v22 = vld [vmem:[%s27446_s1 + $0xc08] sm:$0xff] }
 0x455   :  { %28058 = vst [vmem:[#allocation89_spill] sm:$0xff] %v24098_v59  ;;  %28059 = vst [vmem:[#allocation90_spill] sm:$0xff] %v24103_v22  ;;  %v24108_v39 = vld [vmem:[%s27446_s1 + $0xc10] sm:$0xff]  ;;  %v24113_v14 = vld [vmem:[%s27446_s1 + $0xc18] sm:$0xff] }
 0x456   :  { %28060 = vst [vmem:[#allocation91_spill] sm:$0xff] %v24108_v39  ;;  %28061 = vst [vmem:[#allocation92_spill] sm:$0xff] %v24113_v14  ;;  %v24118_v37 = vld [vmem:[%s27446_s1 + $0xc20] sm:$0xff]  ;;  %v24123_v59 = vld [vmem:[%s27446_s1 + $0xc28] sm:$0xff] }
 0x457   :  { %28062 = vst [vmem:[#allocation93_spill] sm:$0xff] %v24118_v37  ;;  %28063 = vst [vmem:[#allocation94_spill] sm:$0xff] %v24123_v59  ;;  %v24128_v22 = vld [vmem:[%s27446_s1 + $0xc30] sm:$0xff]  ;;  %v24133_v39 = vld [vmem:[%s27446_s1 + $0xc38] sm:$0xff] }
 0x458   :  { %28064 = vst [vmem:[#allocation95_spill] sm:$0xff] %v24128_v22  ;;  %28065 = vst [vmem:[#allocation96_spill] sm:$0xff] %v24133_v39  ;;  %v24138_v14 = vld [vmem:[%s27446_s1 + $0xc40] sm:$0xff]  ;;  %v24143_v37 = vld [vmem:[%s27446_s1 + $0xc48] sm:$0xff] }
 0x459   :  { %28066 = vst [vmem:[#allocation97_spill] sm:$0xff] %v24138_v14  ;;  %28067 = vst [vmem:[#allocation98_spill] sm:$0xff] %v24143_v37  ;;  %v24148_v59 = vld [vmem:[%s27446_s1 + $0xc50] sm:$0xff]  ;;  %v24153_v22 = vld [vmem:[%s27446_s1 + $0xc58] sm:$0xff] }
 0x45a   :  { %28068 = vst [vmem:[#allocation99_spill] sm:$0xff] %v24148_v59  ;;  %28069 = vst [vmem:[#allocation100_spill] sm:$0xff] %v24153_v22  ;;  %v24158_v39 = vld [vmem:[%s27446_s1 + $0xc60] sm:$0xff]  ;;  %v24163_v14 = vld [vmem:[%s27446_s1 + $0xc68] sm:$0xff] }
 0x45b   :  { %28070 = vst [vmem:[#allocation101_spill] sm:$0xff] %v24158_v39  ;;  %28071 = vst [vmem:[#allocation102_spill] sm:$0xff] %v24163_v14  ;;  %v24168_v37 = vld [vmem:[%s27446_s1 + $0xc70] sm:$0xff]  ;;  %v24173_v59 = vld [vmem:[%s27446_s1 + $0xc78] sm:$0xff] }
 0x45c   :  { %28072 = vst [vmem:[#allocation103_spill] sm:$0xff] %v24168_v37  ;;  %28073 = vst [vmem:[#allocation104_spill] sm:$0xff] %v24173_v59  ;;  %v24178_v22 = vld [vmem:[%s27446_s1 + $0xc80] sm:$0xff]  ;;  %v24183_v39 = vld [vmem:[%s27446_s1 + $0xc88] sm:$0xff] }
 0x45d   :  { %28074 = vst [vmem:[#allocation27_spill] sm:$0xff] %v24178_v22  ;;  %28075 = vst [vmem:[#allocation276_spill] sm:$0xff] %v24183_v39  ;;  %v24188_v14 = vld [vmem:[%s27446_s1 + $0xc90] sm:$0xff]  ;;  %v24193_v37 = vld [vmem:[%s27446_s1 + $0xc98] sm:$0xff] }
 0x45e   :  { %28076 = vst [vmem:[#allocation277_spill] sm:$0xff] %v24188_v14  ;;  %28077 = vst [vmem:[#allocation278_spill] sm:$0xff] %v24193_v37  ;;  %v24198_v59 = vld [vmem:[%s27446_s1 + $0xca0] sm:$0xff]  ;;  %v24203_v22 = vld [vmem:[%s27446_s1 + $0xca8] sm:$0xff] }
 0x45f   :  { %28078 = vst [vmem:[#allocation279_spill] sm:$0xff] %v24198_v59  ;;  %28079 = vst [vmem:[#allocation280_spill] sm:$0xff] %v24203_v22  ;;  %v24208_v39 = vld [vmem:[%s27446_s1 + $0xcb0] sm:$0xff]  ;;  %v24213_v14 = vld [vmem:[%s27446_s1 + $0xcb8] sm:$0xff] }
 0x460   :  { %28080 = vst [vmem:[#allocation281_spill] sm:$0xff] %v24208_v39  ;;  %28081 = vst [vmem:[#allocation282_spill] sm:$0xff] %v24213_v14  ;;  %v24218_v37 = vld [vmem:[%s27446_s1 + $0xcc0] sm:$0xff]  ;;  %v24223_v59 = vld [vmem:[%s27446_s1 + $0xcc8] sm:$0xff] }
 0x461   :  { %28082 = vst [vmem:[#allocation283_spill] sm:$0xff] %v24218_v37  ;;  %28083 = vst [vmem:[#allocation284_spill] sm:$0xff] %v24223_v59  ;;  %v24228_v22 = vld [vmem:[%s27446_s1 + $0xcd0] sm:$0xff]  ;;  %v24233_v39 = vld [vmem:[%s27446_s1 + $0xcd8] sm:$0xff] }
 0x462   :  { %28084 = vst [vmem:[#allocation285_spill] sm:$0xff] %v24228_v22  ;;  %28085 = vst [vmem:[#allocation286_spill] sm:$0xff] %v24233_v39  ;;  %v24238_v14 = vld [vmem:[%s27446_s1 + $0xce0] sm:$0xff]  ;;  %v24243_v37 = vld [vmem:[%s27446_s1 + $0xce8] sm:$0xff] }
 0x463   :  { %28086 = vst [vmem:[#allocation287_spill] sm:$0xff] %v24238_v14  ;;  %28087 = vst [vmem:[#allocation288_spill] sm:$0xff] %v24243_v37  ;;  %v24248_v59 = vld [vmem:[%s27446_s1 + $0xcf0] sm:$0xff]  ;;  %v24253_v22 = vld [vmem:[%s27446_s1 + $0xcf8] sm:$0xff] }
 0x464   :  { %28088 = vst [vmem:[#allocation289_spill] sm:$0xff] %v24248_v59  ;;  %28089 = vst [vmem:[#allocation290_spill] sm:$0xff] %v24253_v22  ;;  %v24258_v39 = vld [vmem:[%s27446_s1 + $0xd00] sm:$0xff]  ;;  %v24263_v14 = vld [vmem:[%s27446_s1 + $0xd08] sm:$0xff] }
 0x465   :  { %28090 = vst [vmem:[#allocation291_spill] sm:$0xff] %v24258_v39  ;;  %28091 = vst [vmem:[#allocation292_spill] sm:$0xff] %v24263_v14  ;;  %v24268_v37 = vld [vmem:[%s27446_s1 + $0xd10] sm:$0xff]  ;;  %v24273_v59 = vld [vmem:[%s27446_s1 + $0xd18] sm:$0xff] }
 0x466   :  { %28092 = vst [vmem:[#allocation293_spill] sm:$0xff] %v24268_v37  ;;  %28093 = vst [vmem:[#allocation294_spill] sm:$0xff] %v24273_v59  ;;  %v24278_v22 = vld [vmem:[%s27446_s1 + $0xd20] sm:$0xff]  ;;  %v24283_v39 = vld [vmem:[%s27446_s1 + $0xd28] sm:$0xff] }
 0x467   :  { %28094 = vst [vmem:[#allocation295_spill] sm:$0xff] %v24278_v22  ;;  %28095 = vst [vmem:[#allocation296_spill] sm:$0xff] %v24283_v39  ;;  %v24288_v14 = vld [vmem:[%s27446_s1 + $0xd30] sm:$0xff]  ;;  %v24293_v37 = vld [vmem:[%s27446_s1 + $0xd38] sm:$0xff] }
 0x468   :  { %28096 = vst [vmem:[#allocation297_spill] sm:$0xff] %v24288_v14  ;;  %28097 = vst [vmem:[#allocation298_spill] sm:$0xff] %v24293_v37  ;;  %v24298_v59 = vld [vmem:[%s27446_s1 + $0xd40] sm:$0xff]  ;;  %v24303_v22 = vld [vmem:[%s27446_s1 + $0xd48] sm:$0xff] }
 0x469   :  { %28098 = vst [vmem:[#allocation299_spill] sm:$0xff] %v24298_v59  ;;  %28099 = vst [vmem:[#allocation300_spill] sm:$0xff] %v24303_v22  ;;  %v24308_v39 = vld [vmem:[%s27446_s1 + $0xd50] sm:$0xff]  ;;  %v24313_v14 = vld [vmem:[%s27446_s1 + $0xd58] sm:$0xff] }
 0x46a   :  { %28100 = vst [vmem:[#allocation301_spill] sm:$0xff] %v24308_v39  ;;  %28101 = vst [vmem:[#allocation302_spill] sm:$0xff] %v24313_v14  ;;  %v24318_v37 = vld [vmem:[%s27446_s1 + $0xd60] sm:$0xff]  ;;  %v24323_v59 = vld [vmem:[%s27446_s1 + $0xd68] sm:$0xff] }
 0x46b   :  { %28102 = vst [vmem:[#allocation303_spill] sm:$0xff] %v24318_v37  ;;  %28103 = vst [vmem:[#allocation304_spill] sm:$0xff] %v24323_v59  ;;  %v24328_v22 = vld [vmem:[%s27446_s1 + $0xd70] sm:$0xff]  ;;  %v24333_v39 = vld [vmem:[%s27446_s1 + $0xd78] sm:$0xff] }
 0x46c   :  { %28104 = vst [vmem:[#allocation305_spill] sm:$0xff] %v24328_v22  ;;  %28105 = vst [vmem:[#allocation306_spill] sm:$0xff] %v24333_v39 }
 0x46d   :  { %4067 = vsyncadd [#allocation5], 18432  ;;  %v28106_v14 = vld [vmem:[#allocation121_spill] sm:$0xff]  ;;  %v28107_v3 = vld [vmem:[#allocation122_spill] sm:$0xff] }
 0x46e   :  { %v19264_v35 = vpack.c.bf16 %v28107_v3, %v28106_v14  ;;  %v28108_v37 = vld [vmem:[#allocation123_spill] sm:$0xff]  ;;  %v28109_v12 = vld [vmem:[#allocation124_spill] sm:$0xff]  ;;  %v28110_v59 = vld [vmem:[#allocation125_spill] sm:$0xff] }
 0x46f   :  { %v19268_v8 = vpack.c.bf16 %v28109_v12, %v28108_v37  ;;  %v4117_v2 = vld [vmem:[#allocation3 + $0xc8] sm:$0xff]  ;;  %v28111_v53 = vld [vmem:[#allocation126_spill] sm:$0xff]  ;;  %v28114_v11 = vld [vmem:[#allocation129_spill] sm:$0xff] }
 0x470   :  { %16688 = vmatprep.mubr.f32.mxu1 %v4117_v2  ;;  %19265 = vmatprep.subr.bf16.mxu1 %v19264_v35  ;;  %v19272_v22 = vpack.c.bf16 %v28111_v53, %v28110_v59  ;;  %v28112_v16 = vld [vmem:[#allocation127_spill] sm:$0xff]  ;;  %v28113_v31 = vld [vmem:[#allocation128_spill] sm:$0xff]  ;;  %v28115_v3 = vld [vmem:[#allocation130_spill] sm:$0xff] }
 0x471   :  { %19267 = vmatpush3.bf16.msra.mxu1 %v19264_v35  ;;  %v19276_v39 = vpack.c.bf16 %v28113_v31, %v28112_v16  ;;  %v19280_v14 = vpack.c.bf16 %v28115_v3, %v28114_v11  ;;  %v28116_v12 = vld [vmem:[#allocation131_spill] sm:$0xff]  ;;  %v28117_v2 = vld [vmem:[#allocation132_spill] sm:$0xff]  ;;  %v28118_v35 = vld [vmem:[#allocation133_spill] sm:$0xff] }
 0x472   :  { %19269 = vmatprep.subr.bf16.mxu1 %v19268_v8  ;;  %v19284_v37 = vpack.c.bf16 %v28117_v2, %v28116_v12  ;;  %v28119_v62 = vld [vmem:[#allocation134_spill] sm:$0xff]  ;;  %v28121_v59 = vld [vmem:[#allocation136_spill] sm:$0xff]  ;;  %v28122_v16 = vld [vmem:[#allocation105_spill] sm:$0xff] }
 0x473   :  { %v19288_v53 = vpack.c.bf16 %v28119_v62, %v28118_v35  ;;  %v4119_v3 = vld [vmem:[#allocation3 + $0xe8] sm:$0xff]  ;;  %v4120_v62 = vld [vmem:[#allocation3 + $0xf0] sm:$0xff]  ;;  %v28135_v0 = vld [vmem:[#allocation118_spill] sm:$0xff] }
 0x474   :  { %v28124_v12 = vld [vmem:[#allocation107_spill] sm:$0xff]  ;;  %v28126_v35 = vld [vmem:[#allocation109_spill] sm:$0xff]  ;;  %v28137_v34 = vld [vmem:[#allocation120_spill] sm:$0xff] }
 0x475   :  { %19271 = vmatpush3.bf16.msra.mxu1 %v19268_v8  ;;  %v28120_v8 = vld [vmem:[#allocation135_spill] sm:$0xff]  ;;  %v28139_v29 = vld [vmem:[#allocation138_spill] sm:$0xff]  ;;  %v24432_v60 = vld [vmem:[#allocation3 + $0x250] sm:$0xff] }
 0x476   :  { %19273 = vmatprep.subr.bf16.mxu1 %v19272_v22  ;;  %v19292_v31 = vpack.c.bf16 %v28121_v59, %v28120_v8  ;;  %v24360_v59 = vld [vmem:[#allocation3 + $0x110] sm:$0xff]  ;;  %v24428_v7 = vld [vmem:[#allocation3 + $0x248] sm:$0xff]  ;;  %v28148_v45 = vld [vmem:[#allocation142_spill] sm:$0xff] }
 0x477   :  { %v24434_v28 = vld [vmem:[#allocation3 + $0x268] sm:$0xff]  ;;  %v24438_v57 = vld [vmem:[#allocation3 + $0x270] sm:$0xff]  ;;  %v28156_v6 = vld [vmem:[#allocation150_spill] sm:$0xff] }
 0x478   :  { %28140 = vst [vmem:[#allocation121_spill] sm:$0xff] %v24438_v57  ;;  %v24440_v5 = vld [vmem:[#allocation3 + $0x288] sm:$0xff]  ;;  %v24444_v27 = vld [vmem:[#allocation3 + $0x290] sm:$0xff]  ;;  %v28160_v32 = vld [vmem:[#allocation154_spill] sm:$0xff] }
 0x479   :  { %19275 = vmatpush3.bf16.msra.mxu1 %v19272_v22  ;;  %v28123_v22 = vld [vmem:[#allocation106_spill] sm:$0xff]  ;;  %28141 = vst [vmem:[#allocation122_spill] sm:$0xff] %v24440_v5  ;;  %28142 = vst [vmem:[#allocation123_spill] sm:$0xff] %v24444_v27  ;;  %v24446_v51 = vld [vmem:[#allocation3 + $0x2a8] sm:$0xff] }
 0x47a   :  { %19277 = vmatprep.subr.bf16.mxu1 %v19276_v39  ;;  %v19296_v11 = vpack.c.bf16 %v28123_v22, %v28122_v16  ;;  %v28128_v16 = vld [vmem:[#allocation111_spill] sm:$0xff]  ;;  %v28129_v22 = vld [vmem:[#allocation112_spill] sm:$0xff]  ;;  %28143 = vst [vmem:[#allocation124_spill] sm:$0xff] %v24446_v51  ;;  %v28147_v36 = vld [vmem:[#allocation141_spill] sm:$0xff] }
 0x47b   :  { %v24450_v25 = vld [vmem:[#allocation3 + $0x2b0] sm:$0xff]  ;;  %v4069_v1 = vld [vmem:[#allocation3 + $0xc6] sm:$0xff]  ;;  %v19336_v10 = vpack.c.bf16 %v28148_v45, %v28147_v36 }
 0x47c   :  { %28144 = vst [vmem:[#allocation125_spill] sm:$0xff] %v24450_v25  ;;  %v4070_v13 = vld [vmem:[#allocation3 + $0xce] sm:$0xff]  ;;  %v4071_v30 = vld [vmem:[#allocation3 + $0xe6] sm:$0xff] }
 0x47d   :  { %19279 = vmatpush3.bf16.msra.mxu1 %v19276_v39  ;;  %v4118_v39 = vld [vmem:[#allocation3 + $0xd0] sm:$0xff]  ;;  %v28145_v48 = vld [vmem:[#allocation139_spill] sm:$0xff] }
 0x47e   :  { %19281 = vmatprep.subr.bf16.mxu1 %v19280_v14  ;;  %v28146_v20 = vld [vmem:[#allocation140_spill] sm:$0xff]  ;;  %v28151_v36 = vld [vmem:[#allocation145_spill] sm:$0xff]  ;;  %v28161_v38 = vld [vmem:[#allocation155_spill] sm:$0xff] }
 0x47f   :  { %v19332_v47 = vpack.c.bf16 %v28146_v20, %v28145_v48  ;;  %v4072_v21 = vld [vmem:[#allocation3 + $0xee] sm:$0xff]  ;;  %v24455_v63 = vld [vmem:[#allocation3 + $0x106] sm:$0xff] }
 0x480   :  { %v24460_v15 = vld [vmem:[#allocation3 + $0x10e] sm:$0xff]  ;;  %v28149_v20 = vld [vmem:[#allocation143_spill] sm:$0xff] }
 0x481   :  { %19283 = vmatpush3.bf16.msra.mxu1 %v19280_v14  ;;  %v28125_v14 = vld [vmem:[#allocation108_spill] sm:$0xff]  ;;  %v4617_v50 = vld [vmem:[#allocation3 + $0xd2] sm:$0xff] }
 0x482   :  { %19285 = vmatprep.subr.bf16.mxu1 %v19284_v37  ;;  %v19300_v2 = vpack.c.bf16 %v28125_v14, %v28124_v12  ;;  %v28130_v12 = vld [vmem:[#allocation113_spill] sm:$0xff]  ;;  %v28131_v14 = vld [vmem:[#allocation114_spill] sm:$0xff]  ;;  %v28150_v48 = vld [vmem:[#allocation144_spill] sm:$0xff] }
 0x483   :  { %v24470_v45 = vld [vmem:[#allocation3 + $0x146] sm:$0xff]  ;;  %v24532_v56 = vld [vmem:[#allocation3 + $0x24e] sm:$0xff] }
 0x484   :  { %v28154_v43 = vld [vmem:[#allocation148_spill] sm:$0xff]  ;;  %v4619_v18 = vld [vmem:[#allocation3 + $0xf2] sm:$0xff] }
 0x485   :  { %19287 = vmatpush3.bf16.msra.mxu1 %v19284_v37  ;;  %v24355_v37 = vld [vmem:[#allocation3 + $0x108] sm:$0xff] }
 0x486   :  { %19289 = vmatprep.subr.bf16.mxu1 %v19288_v53  ;;  %v28158_v55 = vld [vmem:[#allocation152_spill] sm:$0xff] }
 0x487   :  { %v24528_v54 = vld [vmem:[#allocation3 + $0x246] sm:$0xff]  ;;  %v24538_v23 = vld [vmem:[#allocation3 + $0x26e] sm:$0xff] }
 0x488   :  { %v24534_v52 = vld [vmem:[#allocation3 + $0x266] sm:$0xff]  ;;  %v24544_v61 = vld [vmem:[#allocation3 + $0x28e] sm:$0xff] }
 0x489   :  { %19291 = vmatpush3.bf16.msra.mxu1 %v19288_v53  ;;  %v28127_v53 = vld [vmem:[#allocation110_spill] sm:$0xff]  ;;  %v24540_v46 = vld [vmem:[#allocation3 + $0x286] sm:$0xff]  ;;  %v24550_v42 = vld [vmem:[#allocation3 + $0x2ae] sm:$0xff] }
 0x48a   :  { %19293 = vmatprep.subr.bf16.mxu1 %v19292_v31  ;;  %v19304_v8 = vpack.c.bf16 %v28127_v53, %v28126_v35  ;;  %v24378_v35 = vld [vmem:[#allocation3 + $0x168] sm:$0xff] }
 0x48b   :  { %v28132_v53 = vld [vmem:[#allocation115_spill] sm:$0xff]  ;;  %v4616_v40 = vld [vmem:[#allocation3 + $0xca] sm:$0xff] }
 0x48c   :  { %v24546_v44 = vld [vmem:[#allocation3 + $0x2a6] sm:$0xff] }
 0x48d   :  { %19295 = vmatpush3.bf16.msra.mxu1 %v19292_v31  ;;  %v24362_v31 = vld [vmem:[#allocation3 + $0x128] sm:$0xff] }
 0x48e   :  { %19297 = vmatprep.subr.bf16.mxu1 %v19296_v11  ;;  %v4618_v49 = vld [vmem:[#allocation3 + $0xea] sm:$0xff] }
 0x48f   :  { %v28162_v19 = vld [vmem:[#allocation156_spill] sm:$0xff] }
 0x490   :  { %16689 = vmatmul.mubr.f32.vlgmr.msra.gmra.mrb[0].mxu1 %v4118_v39  ;;  %v24368_v39 = vld [vmem:[#allocation3 + $0x130] sm:$0xff]  ;;  %v19364_v17 = vpack.c.bf16 %v28162_v19, %v28161_v38  ;;  %v28167_v19 = vld [vmem:[#allocation159_spill] sm:$0xff] }
 0x491   :  { %19299 = vmatpush3.bf16.msra.mxu1 %v19296_v11  ;;  %16691 = vmatprep.mubr.f32.mxu1 %v4119_v3  ;;  %v19308_v11 = vpack.c.bf16 %v28129_v22, %v28128_v16  ;;  %v24370_v3 = vld [vmem:[#allocation3 + $0x148] sm:$0xff] }
 0x492   :  { %19301 = vmatprep.subr.bf16.mxu1 %v19300_v2  ;;  %v28133_v16 = vld [vmem:[#allocation116_spill] sm:$0xff] }
 0x493   :  { %v19316_v22 = vpack.c.bf16 %v28133_v16, %v28132_v53  ;;  %v24394_v53 = vld [vmem:[#allocation3 + $0x1a8] sm:$0xff] }
 0x494   :  { %16692 = vmatmul.mubr.f32.gmra.mrb[2].mxu1 %v4120_v62  ;;  %v19312_v62 = vpack.c.bf16 %v28131_v14, %v28130_v12  ;;  %v24386_v12 = vld [vmem:[#allocation3 + $0x188] sm:$0xff]  ;;  %v28134_v14 = vld [vmem:[#allocation117_spill] sm:$0xff] }
 0x495   :  { %16694 = vmatprep.mubr.f32.mxu1 %v24355_v37  ;;  %19303 = vmatpush3.bf16.msra.mxu1 %v19300_v2  ;;  %v24376_v2 = vld [vmem:[#allocation3 + $0x150] sm:$0xff]  ;;  %v19320_v9 = vpack.c.bf16 %v28135_v0, %v28134_v14  ;;  %v28136_v16 = vld [vmem:[#allocation119_spill] sm:$0xff] }
 0x496   :  { %19305 = vmatprep.subr.bf16.mxu1 %v19304_v8  ;;  %v19324_v33 = vpack.c.bf16 %v28137_v34, %v28136_v16  ;;  %v24402_v0 = vld [vmem:[#allocation3 + $0x1c8] sm:$0xff]  ;;  %v28138_v14 = vld [vmem:[#allocation137_spill] sm:$0xff] }
 0x497   :  { %v19328_v58 = vpack.c.bf16 %v28139_v29, %v28138_v14  ;;  %v24410_v34 = vld [vmem:[#allocation3 + $0x1e8] sm:$0xff]  ;;  %v24420_v29 = vld [vmem:[#allocation3 + $0x210] sm:$0xff] }
 0x498   :  { %16695 = vmatmul.mubr.f32.gmra.mrb[4].mxu1 %v24360_v59  ;;  %v24416_v16 = vld [vmem:[#allocation3 + $0x208] sm:$0xff] }
 0x499   :  { %16697 = vmatprep.mubr.f32.mxu1 %v24362_v31  ;;  %19307 = vmatpush3.bf16.msra.mxu1 %v19304_v8  ;;  %v24384_v8 = vld [vmem:[#allocation3 + $0x170] sm:$0xff]  ;;  %v24422_v14 = vld [vmem:[#allocation3 + $0x228] sm:$0xff] }
 0x49a   :  { %19309 = vmatprep.subr.bf16.mxu1 %v19308_v11  ;;  %v28168_v38 = vld [vmem:[#allocation160_spill] sm:$0xff] }
 0x49c   :  { %16698 = vmatmul.mubr.f32.gmra.mrb[6].mxu1 %v24368_v39 }
 0x49d   :  { %16700 = vmatprep.mubr.f32.mxu1 %v24370_v3  ;;  %19311 = vmatpush3.bf16.msra.mxu1 %v19308_v11  ;;  %v24392_v11 = vld [vmem:[#allocation3 + $0x190] sm:$0xff] }
 0x49e   :  { %19313 = vmatprep.subr.bf16.mxu1 %v19312_v62 }
 0x4a0   :  { %16701 = vmatmul.mubr.f32.gmra.mrb[8].mxu1 %v24376_v2 }
 0x4a1   :  { %16703 = vmatprep.mubr.f32.mxu1 %v24378_v35  ;;  %19315 = vmatpush3.bf16.msra.mxu1 %v19312_v62  ;;  %v24400_v62 = vld [vmem:[#allocation3 + $0x1b0] sm:$0xff] }
 0x4a2   :  { %19317 = vmatprep.subr.bf16.mxu1 %v19316_v22 }
 0x4a4   :  { %16704 = vmatmul.mubr.f32.gmra.mrb[10].mxu1 %v24384_v8 }
 0x4a5   :  { %16706 = vmatprep.mubr.f32.mxu1 %v24386_v12  ;;  %19319 = vmatpush3.bf16.msra.mxu1 %v19316_v22  ;;  %v24408_v22 = vld [vmem:[#allocation3 + $0x1d0] sm:$0xff] }
 0x4a6   :  { %19321 = vmatprep.subr.bf16.mxu1 %v19320_v9 }
 0x4a8   :  { %16707 = vmatmul.mubr.f32.gmra.mrb[12].mxu1 %v24392_v11 }
 0x4a9   :  { %16709 = vmatprep.mubr.f32.mxu1 %v24394_v53  ;;  %19323 = vmatpush3.bf16.msra.mxu1 %v19320_v9  ;;  %v24414_v9 = vld [vmem:[#allocation3 + $0x1f0] sm:$0xff] }
 0x4aa   :  { %19325 = vmatprep.subr.bf16.mxu1 %v19324_v33 }
 0x4ac   :  { %16710 = vmatmul.mubr.f32.gmra.mrb[14].mxu1 %v24400_v62 }
 0x4ad   :  { %16712 = vmatprep.mubr.f32.mxu1 %v24402_v0  ;;  %19327 = vmatpush3.bf16.msra.mxu1 %v19324_v33  ;;  %v24426_v33 = vld [vmem:[#allocation3 + $0x230] sm:$0xff] }
 0x4ae   :  { %19329 = vmatprep.subr.bf16.mxu1 %v19328_v58 }
 0x4b0   :  { %16713 = vmatmul.mubr.f32.gmra.mrb[16].mxu1 %v24408_v22 }
 0x4b1   :  { %16715 = vmatprep.mubr.f32.mxu1 %v24410_v34 }
 0x4b4   :  { %16716 = vmatmul.mubr.f32.gmra.mrb[18].mxu1 %v24414_v9 }
 0x4b5   :  { %16718 = vmatprep.mubr.f32.mxu1 %v24416_v16 }
 0x4b8   :  { %16719 = vmatmul.mubr.f32.gmra.mrb[20].mxu1 %v24420_v29 }
 0x4b9   :  { %16721 = vmatprep.mubr.f32.mxu1 %v24422_v14 }
 0x4bc   :  { %16722 = vmatmul.mubr.f32.gmra.mrb[22].mxu1 %v24426_v33 }
 0x4bd   :  { %16724 = vmatprep.mubr.f32.mxu1 %v24428_v7 }
 0x4c0   :  { %16725 = vmatmul.mubr.f32.gmra.mrb[24].mxu1 %v24432_v60 }
 0x4c1   :  { %16727 = vmatprep.mubr.f32.mxu1 %v24434_v28 }
 0x4c4   :  { %16728 = vmatmul.mubr.f32.gmra.mrb[26].mxu1 %v24438_v57  ;;  %v24560_v57 = vld [vmem:[#allocation3 + $0x112] sm:$0xff] }
 0x4c5   :  { %16730 = vmatprep.mubr.f32.mxu1 %v24440_v5  ;;  %28165 = vst [vmem:[#allocation126_spill] sm:$0xff] %v24560_v57 }
 0x4c8   :  { %16731 = vmatmul.mubr.f32.gmra.mrb[28].mxu1 %v24444_v27  ;;  %v28164_v27 = vld [vmem:[#allocation158_spill] sm:$0xff] }
 0x4c9   :  { %16733 = vmatprep.mubr.f32.mxu1 %v24446_v51  ;;  %v28163_v51 = vld [vmem:[#allocation157_spill] sm:$0xff] }
 0x4ca   :  { %v19368_v5 = vpack.c.bf16 %v28164_v27, %v28163_v51  ;;  %v28172_v51 = vld [vmem:[#allocation162_spill] sm:$0xff] }
 0x4cc   :  { %16734 = vmatmul.mubr.f32.gmra.mrb[30].mxu1 %v24450_v25  ;;  %v24555_v25 = vld [vmem:[#allocation3 + $0x10a] sm:$0xff] }
 0x4cd   :  { %16768 = vmatprep.mubr.f32.mxu1 %v4069_v1  ;;  %v24462_v1 = vld [vmem:[#allocation3 + $0x126] sm:$0xff] }
 0x4d0   :  { %16769 = vmatmul.mubr.f32.vlgmr.msra.gmra.mrb[0].mxu1 %v4070_v13  ;;  %v19340_v13 = vpack.c.bf16 %v28150_v48, %v28149_v20  ;;  %v24478_v20 = vld [vmem:[#allocation3 + $0x166] sm:$0xff] }
 0x4d1   :  { %19331 = vmatpush3.bf16.msra.mxu1 %v19328_v58  ;;  %16771 = vmatprep.mubr.f32.mxu1 %v4071_v30  ;;  %v24468_v30 = vld [vmem:[#allocation3 + $0x12e] sm:$0xff]  ;;  %v28153_v48 = vld [vmem:[#allocation147_spill] sm:$0xff] }
 0x4d2   :  { %19333 = vmatprep.subr.bf16.mxu1 %v19332_v47  ;;  %v19348_v4 = vpack.c.bf16 %v28154_v43, %v28153_v48  ;;  %v24494_v43 = vld [vmem:[#allocation3 + $0x1a6] sm:$0xff] }
 0x4d3   :  { %v28157_v48 = vld [vmem:[#allocation151_spill] sm:$0xff] }
 0x4d4   :  { %16772 = vmatmul.mubr.f32.gmra.mrb[2].mxu1 %v4072_v21  ;;  %v28152_v21 = vld [vmem:[#allocation146_spill] sm:$0xff]  ;;  %v19356_v24 = vpack.c.bf16 %v28158_v55, %v28157_v48  ;;  %v24510_v55 = vld [vmem:[#allocation3 + $0x1e6] sm:$0xff] }
 0x4d5   :  { %16774 = vmatprep.mubr.f32.mxu1 %v24455_v63  ;;  %19335 = vmatpush3.bf16.msra.mxu1 %v19332_v47  ;;  %v19344_v58 = vpack.c.bf16 %v28152_v21, %v28151_v36  ;;  %v24476_v47 = vld [vmem:[#allocation3 + $0x14e] sm:$0xff]  ;;  %v24486_v36 = vld [vmem:[#allocation3 + $0x186] sm:$0xff] }
 0x4d6   :  { %19337 = vmatprep.subr.bf16.mxu1 %v19336_v10  ;;  %v28155_v21 = vld [vmem:[#allocation149_spill] sm:$0xff]  ;;  %v24516_v48 = vld [vmem:[#allocation3 + $0x206] sm:$0xff] }
 0x4d7   :  { %v19352_v41 = vpack.c.bf16 %v28156_v6, %v28155_v21  ;;  %v24502_v6 = vld [vmem:[#allocation3 + $0x1c6] sm:$0xff]  ;;  %v28159_v21 = vld [vmem:[#allocation153_spill] sm:$0xff] }
 0x4d8   :  { %16775 = vmatmul.mubr.f32.gmra.mrb[4].mxu1 %v24460_v15  ;;  %v19360_v26 = vpack.c.bf16 %v28160_v32, %v28159_v21  ;;  %v24520_v32 = vld [vmem:[#allocation3 + $0x20e] sm:$0xff]  ;;  %v24522_v21 = vld [vmem:[#allocation3 + $0x226] sm:$0xff] }
 0x4d9   :  { %16777 = vmatprep.mubr.f32.mxu1 %v24462_v1  ;;  %19339 = vmatpush3.bf16.msra.mxu1 %v19336_v10  ;;  %v24484_v10 = vld [vmem:[#allocation3 + $0x16e] sm:$0xff] }
 0x4da   :  { %19341 = vmatprep.subr.bf16.mxu1 %v19340_v13 }
 0x4dc   :  { %16778 = vmatmul.mubr.f32.gmra.mrb[6].mxu1 %v24468_v30 }
 0x4dd   :  { %16780 = vmatprep.mubr.f32.mxu1 %v24470_v45  ;;  %19343 = vmatpush3.bf16.msra.mxu1 %v19340_v13  ;;  %v24492_v13 = vld [vmem:[#allocation3 + $0x18e] sm:$0xff] }
 0x4de   :  { %19345 = vmatprep.subr.bf16.mxu1 %v19344_v58 }
 0x4e0   :  { %16781 = vmatmul.mubr.f32.gmra.mrb[8].mxu1 %v24476_v47 }
 0x4e1   :  { %16783 = vmatprep.mubr.f32.mxu1 %v24478_v20  ;;  %19347 = vmatpush3.bf16.msra.mxu1 %v19344_v58  ;;  %v24500_v58 = vld [vmem:[#allocation3 + $0x1ae] sm:$0xff] }
 0x4e2   :  { %19349 = vmatprep.subr.bf16.mxu1 %v19348_v4 }
 0x4e4   :  { %16784 = vmatmul.mubr.f32.gmra.mrb[10].mxu1 %v24484_v10 }
 0x4e5   :  { %16786 = vmatprep.mubr.f32.mxu1 %v24486_v36  ;;  %19351 = vmatpush3.bf16.msra.mxu1 %v19348_v4  ;;  %v24508_v4 = vld [vmem:[#allocation3 + $0x1ce] sm:$0xff] }
 0x4e6   :  { %19353 = vmatprep.subr.bf16.mxu1 %v19352_v41 }
 0x4e8   :  { %16787 = vmatmul.mubr.f32.gmra.mrb[12].mxu1 %v24492_v13 }
 0x4e9   :  { %16789 = vmatprep.mubr.f32.mxu1 %v24494_v43  ;;  %19355 = vmatpush3.bf16.msra.mxu1 %v19352_v41  ;;  %v24514_v41 = vld [vmem:[#allocation3 + $0x1ee] sm:$0xff] }
 0x4ea   :  { %19357 = vmatprep.subr.bf16.mxu1 %v19356_v24 }
 0x4ec   :  { %16790 = vmatmul.mubr.f32.gmra.mrb[14].mxu1 %v24500_v58 }
 0x4ed   :  { %16792 = vmatprep.mubr.f32.mxu1 %v24502_v6  ;;  %19359 = vmatpush3.bf16.msra.mxu1 %v19356_v24  ;;  %v24526_v24 = vld [vmem:[#allocation3 + $0x22e] sm:$0xff] }
 0x4ee   :  { %19361 = vmatprep.subr.bf16.mxu1 %v19360_v26 }
 0x4f0   :  { %16793 = vmatmul.mubr.f32.gmra.mrb[16].mxu1 %v24508_v4 }
 0x4f1   :  { %16795 = vmatprep.mubr.f32.mxu1 %v24510_v55 }
 0x4f4   :  { %16796 = vmatmul.mubr.f32.gmra.mrb[18].mxu1 %v24514_v41 }
 0x4f5   :  { %16798 = vmatprep.mubr.f32.mxu1 %v24516_v48 }
 0x4f8   :  { %16799 = vmatmul.mubr.f32.gmra.mrb[20].mxu1 %v24520_v32 }
 0x4f9   :  { %16801 = vmatprep.mubr.f32.mxu1 %v24522_v21 }
 0x4fc   :  { %16802 = vmatmul.mubr.f32.gmra.mrb[22].mxu1 %v24526_v24 }
 0x4fd   :  { %16804 = vmatprep.mubr.f32.mxu1 %v24528_v54 }
 0x500   :  { %16805 = vmatmul.mubr.f32.gmra.mrb[24].mxu1 %v24532_v56 }
 0x501   :  { %16807 = vmatprep.mubr.f32.mxu1 %v24534_v52 }
 0x504   :  { %16808 = vmatmul.mubr.f32.gmra.mrb[26].mxu1 %v24538_v23 }
 0x505   :  { %16810 = vmatprep.mubr.f32.mxu1 %v24540_v46 }
 0x508   :  { %16811 = vmatmul.mubr.f32.gmra.mrb[28].mxu1 %v24544_v61 }
 0x509   :  { %16813 = vmatprep.mubr.f32.mxu1 %v24546_v44 }
 0x50c   :  { %16814 = vmatmul.mubr.f32.gmra.mrb[30].mxu1 %v24550_v42 }
 0x50d   :  { %16848 = vmatprep.mubr.f32.mxu1 %v4616_v40  ;;  %v24562_v40 = vld [vmem:[#allocation3 + $0x12a] sm:$0xff] }
 0x50e   :  { %28166 = vst [vmem:[#allocation127_spill] sm:$0xff] %v24562_v40 }
 0x510   :  { %16849 = vmatmul.mubr.f32.vlgmr.msra.gmra.mrb[0].mxu1 %v4617_v50  ;;  %v19372_v50 = vpack.c.bf16 %v28168_v38, %v28167_v19  ;;  %v24578_v19 = vld [vmem:[#allocation3 + $0x16a] sm:$0xff]  ;;  %v28175_v38 = vld [vmem:[#allocation163_spill] sm:$0xff] }
 0x511   :  { %19363 = vmatpush3.bf16.msra.mxu1 %v19360_v26  ;;  %16851 = vmatprep.mubr.f32.mxu1 %v4618_v49  ;;  %v24568_v49 = vld [vmem:[#allocation3 + $0x132] sm:$0xff]  ;;  %v24570_v26 = vld [vmem:[#allocation3 + $0x14a] sm:$0xff]  ;;  %28174 = vst [vmem:[#allocation131_spill] sm:$0xff] %v24578_v19 }
 0x512   :  { %19365 = vmatprep.subr.bf16.mxu1 %v19364_v17  ;;  %28169 = vst [vmem:[#allocation128_spill] sm:$0xff] %v24568_v49  ;;  %28170 = vst [vmem:[#allocation129_spill] sm:$0xff] %v24570_v26 }
 0x514   :  { %16852 = vmatmul.mubr.f32.gmra.mrb[2].mxu1 %v4619_v18  ;;  %v28171_v18 = vld [vmem:[#allocation161_spill] sm:$0xff] }
 0x515   :  { %16854 = vmatprep.mubr.f32.mxu1 %v24555_v25  ;;  %19367 = vmatpush3.bf16.msra.mxu1 %v19364_v17  ;;  %v19376_v27 = vpack.c.bf16 %v28172_v51, %v28171_v18  ;;  %v24576_v17 = vld [vmem:[#allocation3 + $0x152] sm:$0xff]  ;;  %v24586_v18 = vld [vmem:[#allocation3 + $0x18a] sm:$0xff] }
 0x516   :  { %19369 = vmatprep.subr.bf16.mxu1 %v19368_v5  ;;  %28173 = vst [vmem:[#allocation130_spill] sm:$0xff] %v24576_v17  ;;  %28178 = vst [vmem:[#allocation133_spill] sm:$0xff] %v24586_v18  ;;  %v28179_v51 = vld [vmem:[#allocation165_spill] sm:$0xff] }
 0x518   :  { %16855 = vmatmul.mubr.f32.gmra.mrb[4].mxu1 %v24560_v57 }
 0x519   :  { %16857 = vmatprep.mubr.f32.mxu1 %v24562_v40  ;;  %19371 = vmatpush3.bf16.msra.mxu1 %v19368_v5  ;;  %v28176_v40 = vld [vmem:[#allocation164_spill] sm:$0xff]  ;;  %v24584_v5 = vld [vmem:[#allocation3 + $0x172] sm:$0xff] }
 0x51a   :  { %19373 = vmatprep.subr.bf16.mxu1 %v19372_v50  ;;  %v19380_v57 = vpack.c.bf16 %v28176_v40, %v28175_v38  ;;  %28177 = vst [vmem:[#allocation132_spill] sm:$0xff] %v24584_v5  ;;  %v24594_v40 = vld [vmem:[#allocation3 + $0x1aa] sm:$0xff]  ;;  %v28181_v38 = vld [vmem:[#allocation167_spill] sm:$0xff] }
 0x51c   :  { %16858 = vmatmul.mubr.f32.gmra.mrb[6].mxu1 %v24568_v49 }
 0x51d   :  { %16860 = vmatprep.mubr.f32.mxu1 %v24570_v26  ;;  %19375 = vmatpush3.bf16.msra.mxu1 %v19372_v50  ;;  %v28180_v26 = vld [vmem:[#allocation166_spill] sm:$0xff] }
 0x51e   :  { %19377 = vmatprep.subr.bf16.mxu1 %v19376_v27  ;;  %v19384_v49 = vpack.c.bf16 %v28180_v26, %v28179_v51  ;;  %v24592_v50 = vld [vmem:[#allocation3 + $0x192] sm:$0xff]  ;;  %v24602_v26 = vld [vmem:[#allocation3 + $0x1ca] sm:$0xff] }
 0x51f   :  { %28183 = vst [vmem:[#allocation134_spill] sm:$0xff] %v24602_v26  ;;  %v28184_v51 = vld [vmem:[#allocation169_spill] sm:$0xff] }
 0x520   :  { %16861 = vmatmul.mubr.f32.gmra.mrb[8].mxu1 %v24576_v17 }
 0x521   :  { %16863 = vmatprep.mubr.f32.mxu1 %v24578_v19  ;;  %19379 = vmatpush3.bf16.msra.mxu1 %v19376_v27  ;;  %v28182_v19 = vld [vmem:[#allocation168_spill] sm:$0xff]  ;;  %v24600_v27 = vld [vmem:[#allocation3 + $0x1b2] sm:$0xff] }
 0x522   :  { %19381 = vmatprep.subr.bf16.mxu1 %v19380_v57  ;;  %v19388_v17 = vpack.c.bf16 %v28182_v19, %v28181_v38  ;;  %v24610_v19 = vld [vmem:[#allocation3 + $0x1ea] sm:$0xff] }
 0x523   :  { %28187 = vst [vmem:[#allocation136_spill] sm:$0xff] %v24610_v19  ;;  %v24616_v38 = vld [vmem:[#allocation3 + $0x20a] sm:$0xff] }
 0x524   :  { %16864 = vmatmul.mubr.f32.gmra.mrb[10].mxu1 %v24584_v5  ;;  %28189 = vst [vmem:[#allocation106_spill] sm:$0xff] %v24616_v38 }
 0x525   :  { %16866 = vmatprep.mubr.f32.mxu1 %v24586_v18  ;;  %19383 = vmatpush3.bf16.msra.mxu1 %v19380_v57  ;;  %v28185_v18 = vld [vmem:[#allocation170_spill] sm:$0xff] }
 0x526   :  { %19385 = vmatprep.subr.bf16.mxu1 %v19384_v49  ;;  %v19392_v5 = vpack.c.bf16 %v28185_v18, %v28184_v51  ;;  %v24608_v57 = vld [vmem:[#allocation3 + $0x1d2] sm:$0xff]  ;;  %v24622_v51 = vld [vmem:[#allocation3 + $0x22a] sm:$0xff] }
 0x527   :  { %28186 = vst [vmem:[#allocation135_spill] sm:$0xff] %v24608_v57  ;;  %v24620_v18 = vld [vmem:[#allocation3 + $0x212] sm:$0xff]  ;;  %28191 = vst [vmem:[#allocation108_spill] sm:$0xff] %v24622_v51 }
 0x528   :  { %16867 = vmatmul.mubr.f32.gmra.mrb[12].mxu1 %v24592_v50  ;;  %28190 = vst [vmem:[#allocation107_spill] sm:$0xff] %v24620_v18 }
 0x529   :  { %16869 = vmatprep.mubr.f32.mxu1 %v24594_v40  ;;  %19387 = vmatpush3.bf16.msra.mxu1 %v19384_v49  ;;  %v24614_v49 = vld [vmem:[#allocation3 + $0x1f2] sm:$0xff] }
 0x52a   :  { %19389 = vmatprep.subr.bf16.mxu1 %v19388_v17  ;;  %28188 = vst [vmem:[#allocation105_spill] sm:$0xff] %v24614_v49 }
 0x52c   :  { %16870 = vmatmul.mubr.f32.gmra.mrb[14].mxu1 %v24600_v27 }
 0x52d   :  { %16872 = vmatprep.mubr.f32.mxu1 %v24602_v26  ;;  %19391 = vmatpush3.bf16.msra.mxu1 %v19388_v17  ;;  %v24626_v17 = vld [vmem:[#allocation3 + $0x232] sm:$0xff] }
 0x52e   :  { %19393 = vmatprep.subr.bf16.mxu1 %v19392_v5  ;;  %28192 = vst [vmem:[#allocation109_spill] sm:$0xff] %v24626_v17 }
 0x530   :  { %16873 = vmatmul.mubr.f32.gmra.mrb[16].mxu1 %v24608_v57  ;;  %v24628_v57 = vld [vmem:[#allocation3 + $0x24a] sm:$0xff] }
 0x531   :  { %16875 = vmatprep.mubr.f32.mxu1 %v24610_v19  ;;  %28193 = vst [vmem:[#allocation110_spill] sm:$0xff] %v24628_v57  ;;  %v24632_v19 = vld [vmem:[#allocation3 + $0x252] sm:$0xff] }
 0x532   :  { %28194 = vst [vmem:[#allocation111_spill] sm:$0xff] %v24632_v19 }
 0x534   :  { %16876 = vmatmul.mubr.f32.gmra.mrb[18].mxu1 %v24614_v49  ;;  %v24634_v49 = vld [vmem:[#allocation3 + $0x26a] sm:$0xff] }
 0x535   :  { %16878 = vmatprep.mubr.f32.mxu1 %v24616_v38  ;;  %28195 = vst [vmem:[#allocation112_spill] sm:$0xff] %v24634_v49  ;;  %v24638_v38 = vld [vmem:[#allocation3 + $0x272] sm:$0xff] }
 0x536   :  { %28196 = vst [vmem:[#allocation113_spill] sm:$0xff] %v24638_v38 }
 0x538   :  { %16879 = vmatmul.mubr.f32.gmra.mrb[20].mxu1 %v24620_v18  ;;  %v24640_v18 = vld [vmem:[#allocation3 + $0x28a] sm:$0xff] }
 0x539   :  { %16881 = vmatprep.mubr.f32.mxu1 %v24622_v51  ;;  %28197 = vst [vmem:[#allocation114_spill] sm:$0xff] %v24640_v18  ;;  %v24644_v51 = vld [vmem:[#allocation3 + $0x292] sm:$0xff] }
 0x53a   :  { %28198 = vst [vmem:[#allocation115_spill] sm:$0xff] %v24644_v51 }
 0x53c   :  { %16882 = vmatmul.mubr.f32.gmra.mrb[22].mxu1 %v24626_v17  ;;  %v24646_v17 = vld [vmem:[#allocation3 + $0x2aa] sm:$0xff] }
 0x53d   :  { %16884 = vmatprep.mubr.f32.mxu1 %v24628_v57  ;;  %28199 = vst [vmem:[#allocation116_spill] sm:$0xff] %v24646_v17  ;;  %v24650_v57 = vld [vmem:[#allocation3 + $0x2b2] sm:$0xff] }
 0x53e   :  { %28200 = vst [vmem:[#allocation117_spill] sm:$0xff] %v24650_v57 }
 0x540   :  { %16885 = vmatmul.mubr.f32.gmra.mrb[24].mxu1 %v24632_v19  ;;  %v28202_v19 = vld [vmem:[#allocation172_spill] sm:$0xff] }
 0x541   :  { %16887 = vmatprep.mubr.f32.mxu1 %v24634_v49  ;;  %v28201_v49 = vld [vmem:[#allocation171_spill] sm:$0xff] }
 0x542   :  { %v19396_v26 = vpack.c.bf16 %v28202_v19, %v28201_v49  ;;  %v28212_v49 = vld [vmem:[#allocation182_spill] sm:$0xff] }
 0x544   :  { %16888 = vmatmul.mubr.f32.gmra.mrb[26].mxu1 %v24638_v38  ;;  %v28204_v38 = vld [vmem:[#allocation174_spill] sm:$0xff] }
 0x545   :  { %16890 = vmatprep.mubr.f32.mxu1 %v24640_v18  ;;  %v28203_v18 = vld [vmem:[#allocation173_spill] sm:$0xff] }
 0x548   :  { %16891 = vmatmul.mubr.f32.gmra.mrb[28].mxu1 %v24644_v51  ;;  %v19400_v51 = vpack.c.bf16 %v28204_v38, %v28203_v18  ;;  %v28213_v18 = vld [vmem:[#allocation183_spill] sm:$0xff] }
 0x549   :  { %16893 = vmatprep.mubr.f32.mxu1 %v24646_v17 }
 0x54c   :  { %16894 = vmatmul.mubr.f32.gmra.mrb[30].mxu1 %v24650_v57  ;;  %v28205_v57 = vld [vmem:[#allocation175_spill] sm:$0xff] }
 0x54d   :  { %16928 = vmatprep.mubr.f32.mxu1 %v24455_v63  ;;  %v28206_v63 = vld [vmem:[#allocation176_spill] sm:$0xff] }
 0x54e   :  { %v19404_v17 = vpack.c.bf16 %v28206_v63, %v28205_v57  ;;  %v28211_v57 = vld [vmem:[#allocation181_spill] sm:$0xff] }
 0x54f   :  { %v19416_v38 = vpack.c.bf16 %v28212_v49, %v28211_v57  ;;  %v28215_v63 = vld [vmem:[#allocation185_spill] sm:$0xff]  ;;  %v28217_v57 = vld [vmem:[#allocation187_spill] sm:$0xff]  ;;  %v28218_v49 = vld [vmem:[#allocation188_spill] sm:$0xff] }
 0x550   :  { %16929 = vmatmul.mubr.f32.vlgmr.msra.gmra.mrb[0].mxu1 %v24460_v15  ;;  %v28207_v15 = vld [vmem:[#allocation177_spill] sm:$0xff] }
 0x551   :  { %19395 = vmatpush3.bf16.msra.mxu1 %v19392_v5  ;;  %16931 = vmatprep.mubr.f32.mxu1 %v24462_v1  ;;  %v28208_v1 = vld [vmem:[#allocation178_spill] sm:$0xff] }
 0x552   :  { %19397 = vmatprep.subr.bf16.mxu1 %v19396_v26  ;;  %v19408_v5 = vpack.c.bf16 %v28208_v1, %v28207_v15  ;;  %v28216_v15 = vld [vmem:[#allocation186_spill] sm:$0xff] }
 0x553   :  { %v19424_v1 = vpack.c.bf16 %v28216_v15, %v28215_v63  ;;  %v28221_v63 = vld [vmem:[#allocation191_spill] sm:$0xff] }
 0x554   :  { %16932 = vmatmul.mubr.f32.gmra.mrb[2].mxu1 %v24468_v30  ;;  %v28209_v30 = vld [vmem:[#allocation179_spill] sm:$0xff] }
 0x555   :  { %16934 = vmatprep.mubr.f32.mxu1 %v24470_v45  ;;  %19399 = vmatpush3.bf16.msra.mxu1 %v19396_v26  ;;  %v28210_v26 = vld [vmem:[#allocation180_spill] sm:$0xff] }
 0x556   :  { %19401 = vmatprep.subr.bf16.mxu1 %v19400_v51  ;;  %v19412_v19 = vpack.c.bf16 %v28210_v26, %v28209_v30  ;;  %v24700_v30 = vld [vmem:[#allocation3 + $0x2ce] sm:$0xff]  ;;  %v24702_v26 = vld [vmem:[#allocation3 + $0x2e6] sm:$0xff] }
 0x558   :  { %16935 = vmatmul.mubr.f32.gmra.mrb[4].mxu1 %v24476_v47 }
 0x559   :  { %16937 = vmatprep.mubr.f32.mxu1 %v24478_v20  ;;  %19403 = vmatpush3.bf16.msra.mxu1 %v19400_v51  ;;  %v28214_v51 = vld [vmem:[#allocation184_spill] sm:$0xff] }
 0x55a   :  { %19405 = vmatprep.subr.bf16.mxu1 %v19404_v17 }
 0x55c   :  { %16938 = vmatmul.mubr.f32.gmra.mrb[6].mxu1 %v24484_v10 }
 0x55d   :  { %16940 = vmatprep.mubr.f32.mxu1 %v24486_v36  ;;  %19407 = vmatpush3.bf16.msra.mxu1 %v19404_v17  ;;  %v19420_v17 = vpack.c.bf16 %v28214_v51, %v28213_v18  ;;  %v28219_v18 = vld [vmem:[#allocation189_spill] sm:$0xff]  ;;  %v28220_v51 = vld [vmem:[#allocation190_spill] sm:$0xff] }
 0x55e   :  { %19409 = vmatprep.subr.bf16.mxu1 %v19408_v5 }
 0x560   :  { %16941 = vmatmul.mubr.f32.gmra.mrb[8].mxu1 %v24492_v13 }
 0x561   :  { %16943 = vmatprep.mubr.f32.mxu1 %v24494_v43  ;;  %19411 = vmatpush3.bf16.msra.mxu1 %v19408_v5  ;;  %v24696_v5 = vld [vmem:[#allocation3 + $0x2c6] sm:$0xff] }
 0x562   :  { %19413 = vmatprep.subr.bf16.mxu1 %v19412_v19 }
 0x564   :  { %16944 = vmatmul.mubr.f32.gmra.mrb[10].mxu1 %v24500_v58 }
 0x565   :  { %16946 = vmatprep.mubr.f32.mxu1 %v24502_v6  ;;  %19415 = vmatpush3.bf16.msra.mxu1 %v19412_v19  ;;  %v24706_v19 = vld [vmem:[#allocation3 + $0x2ee] sm:$0xff] }
 0x566   :  { %19417 = vmatprep.subr.bf16.mxu1 %v19416_v38 }
 0x568   :  { %16947 = vmatmul.mubr.f32.gmra.mrb[12].mxu1 %v24508_v4 }
 0x569   :  { %16949 = vmatprep.mubr.f32.mxu1 %v24510_v55  ;;  %19419 = vmatpush3.bf16.msra.mxu1 %v19416_v38  ;;  %v19428_v38 = vpack.c.bf16 %v28218_v49, %v28217_v57 }
 0x56a   :  { %19421 = vmatprep.subr.bf16.mxu1 %v19420_v17 }
 0x56c   :  { %16950 = vmatmul.mubr.f32.gmra.mrb[14].mxu1 %v24514_v41 }
 0x56d   :  { %16952 = vmatprep.mubr.f32.mxu1 %v24516_v48  ;;  %19423 = vmatpush3.bf16.msra.mxu1 %v19420_v17  ;;  %v19432_v17 = vpack.c.bf16 %v28220_v51, %v28219_v18  ;;  %v28240_v51 = vld [vmem:[#allocation126_spill] sm:$0xff] }
 0x56e   :  { %19425 = vmatprep.subr.bf16.mxu1 %v19424_v1 }
 0x570   :  { %16953 = vmatmul.mubr.f32.gmra.mrb[16].mxu1 %v24520_v32 }
 0x571   :  { %16955 = vmatprep.mubr.f32.mxu1 %v24522_v21 }
 0x574   :  { %16956 = vmatmul.mubr.f32.gmra.mrb[18].mxu1 %v24526_v24 }
 0x575   :  { %16958 = vmatprep.mubr.f32.mxu1 %v24528_v54 }
 0x578   :  { %16959 = vmatmul.mubr.f32.gmra.mrb[20].mxu1 %v24532_v56 }
 0x579   :  { %16961 = vmatprep.mubr.f32.mxu1 %v24534_v52 }
 0x57c   :  { %16962 = vmatmul.mubr.f32.gmra.mrb[22].mxu1 %v24538_v23 }
 0x57d   :  { %16964 = vmatprep.mubr.f32.mxu1 %v24540_v46 }
 0x580   :  { %16965 = vmatmul.mubr.f32.gmra.mrb[24].mxu1 %v24544_v61 }
 0x581   :  { %16967 = vmatprep.mubr.f32.mxu1 %v24546_v44 }
 0x584   :  { %16968 = vmatmul.mubr.f32.gmra.mrb[26].mxu1 %v24550_v42 }
 0x585   :  { %16970 = vmatprep.mubr.f32.mxu1 %v24696_v5 }
 0x588   :  { %16971 = vmatmul.mubr.f32.gmra.mrb[28].mxu1 %v24700_v30 }
 0x589   :  { %16973 = vmatprep.mubr.f32.mxu1 %v24702_v26 }
 0x58c   :  { %16974 = vmatmul.mubr.f32.gmra.mrb[30].mxu1 %v24706_v19 }
 0x58d   :  { %17008 = vmatprep.mubr.f32.mxu1 %v24355_v37  ;;  %v28222_v37 = vld [vmem:[#allocation192_spill] sm:$0xff] }
 0x58e   :  { %v19436_v15 = vpack.c.bf16 %v28222_v37, %v28221_v63  ;;  %v28242_v63 = vld [vmem:[#allocation205_spill] sm:$0xff]  ;;  %v28243_v37 = vld [vmem:[#allocation206_spill] sm:$0xff] }
 0x590   :  { %17009 = vmatmul.mubr.f32.vlgmr.msra.gmra.mrb[0].mxu1 %v24360_v59  ;;  %v28223_v59 = vld [vmem:[#allocation193_spill] sm:$0xff] }
 0x591   :  { %19427 = vmatpush3.bf16.msra.mxu1 %v19424_v1  ;;  %17011 = vmatprep.mubr.f32.mxu1 %v24362_v31  ;;  %v28224_v31 = vld [vmem:[#allocation194_spill] sm:$0xff] }
 0x592   :  { %19429 = vmatprep.subr.bf16.mxu1 %v19428_v38  ;;  %v19440_v1 = vpack.c.bf16 %v28224_v31, %v28223_v59  ;;  %v28244_v59 = vld [vmem:[#allocation128_spill] sm:$0xff]  ;;  %v28245_v31 = vld [vmem:[#allocation129_spill] sm:$0xff] }
 0x594   :  { %17012 = vmatmul.mubr.f32.gmra.mrb[2].mxu1 %v24368_v39  ;;  %v28225_v39 = vld [vmem:[#allocation195_spill] sm:$0xff] }
 0x595   :  { %17014 = vmatprep.mubr.f32.mxu1 %v24370_v3  ;;  %19431 = vmatpush3.bf16.msra.mxu1 %v19428_v38  ;;  %v28226_v3 = vld [vmem:[#allocation196_spill] sm:$0xff] }
 0x596   :  { %19433 = vmatprep.subr.bf16.mxu1 %v19432_v17  ;;  %v19444_v57 = vpack.c.bf16 %v28226_v3, %v28225_v39  ;;  %v28248_v3 = vld [vmem:[#allocation130_spill] sm:$0xff] }
 0x598   :  { %17015 = vmatmul.mubr.f32.gmra.mrb[4].mxu1 %v24376_v2  ;;  %v28227_v2 = vld [vmem:[#allocation197_spill] sm:$0xff] }
 0x599   :  { %17017 = vmatprep.mubr.f32.mxu1 %v24378_v35  ;;  %19435 = vmatpush3.bf16.msra.mxu1 %v19432_v17  ;;  %v28228_v35 = vld [vmem:[#allocation198_spill] sm:$0xff]  ;;  %v28241_v17 = vld [vmem:[#allocation127_spill] sm:$0xff] }
 0x59a   :  { %19437 = vmatprep.subr.bf16.mxu1 %v19436_v15  ;;  %v19448_v49 = vpack.c.bf16 %v28228_v35, %v28227_v2  ;;  %v28250_v2 = vld [vmem:[#allocation209_spill] sm:$0xff]  ;;  %v28251_v35 = vld [vmem:[#allocation210_spill] sm:$0xff] }
 0x59c   :  { %17018 = vmatmul.mubr.f32.gmra.mrb[6].mxu1 %v24384_v8  ;;  %v28229_v8 = vld [vmem:[#allocation199_spill] sm:$0xff] }
 0x59d   :  { %17020 = vmatprep.mubr.f32.mxu1 %v24386_v12  ;;  %19439 = vmatpush3.bf16.msra.mxu1 %v19436_v15  ;;  %v28230_v12 = vld [vmem:[#allocation200_spill] sm:$0xff]  ;;  %v19464_v15 = vpack.c.bf16 %v28243_v37, %v28242_v63  ;;  %v28265_v37 = vld [vmem:[#allocation105_spill] sm:$0xff] }
 0x59e   :  { %19441 = vmatprep.subr.bf16.mxu1 %v19440_v1  ;;  %v19452_v38 = vpack.c.bf16 %v28230_v12, %v28229_v8  ;;  %v28252_v8 = vld [vmem:[#allocation132_spill] sm:$0xff]  ;;  %v28253_v12 = vld [vmem:[#allocation133_spill] sm:$0xff] }
 0x5a0   :  { %17021 = vmatmul.mubr.f32.gmra.mrb[8].mxu1 %v24392_v11  ;;  %v28231_v11 = vld [vmem:[#allocation201_spill] sm:$0xff] }
 0x5a1   :  { %17023 = vmatprep.mubr.f32.mxu1 %v24394_v53  ;;  %19443 = vmatpush3.bf16.msra.mxu1 %v19440_v1  ;;  %v28232_v53 = vld [vmem:[#allocation202_spill] sm:$0xff]  ;;  %v28246_v1 = vld [vmem:[#allocation207_spill] sm:$0xff] }
 0x5a2   :  { %19445 = vmatprep.subr.bf16.mxu1 %v19444_v57  ;;  %v19456_v18 = vpack.c.bf16 %v28232_v53, %v28231_v11  ;;  %v28255_v11 = vld [vmem:[#allocation212_spill] sm:$0xff] }
 0x5a4   :  { %17024 = vmatmul.mubr.f32.gmra.mrb[10].mxu1 %v24400_v62  ;;  %v28233_v62 = vld [vmem:[#allocation121_spill] sm:$0xff] }
 0x5a5   :  { %17026 = vmatprep.mubr.f32.mxu1 %v24402_v0  ;;  %19447 = vmatpush3.bf16.msra.mxu1 %v19444_v57  ;;  %v28234_v0 = vld [vmem:[#allocation122_spill] sm:$0xff]  ;;  %v28249_v57 = vld [vmem:[#allocation131_spill] sm:$0xff] }
 0x5a6   :  { %19449 = vmatprep.subr.bf16.mxu1 %v19448_v49 }
 0x5a8   :  { %17027 = vmatmul.mubr.f32.gmra.mrb[12].mxu1 %v24408_v22  ;;  %v28235_v22 = vld [vmem:[#allocation123_spill] sm:$0xff] }
 0x5a9   :  { %17029 = vmatprep.mubr.f32.mxu1 %v24410_v34  ;;  %19451 = vmatpush3.bf16.msra.mxu1 %v19448_v49  ;;  %v28236_v34 = vld [vmem:[#allocation124_spill] sm:$0xff]  ;;  %v19472_v49 = vpack.c.bf16 %v28251_v35, %v28250_v2  ;;  %v28271_v2 = vld [vmem:[#allocation111_spill] sm:$0xff] }
 0x5aa   :  { %19453 = vmatprep.subr.bf16.mxu1 %v19452_v38  ;;  %v28272_v35 = vld [vmem:[#allocation112_spill] sm:$0xff] }
 0x5ac   :  { %17030 = vmatmul.mubr.f32.gmra.mrb[14].mxu1 %v24414_v9  ;;  %v24752_v9 = vld [vmem:[#allocation3 + $0x2c8] sm:$0xff] }
 0x5ad   :  { %17032 = vmatprep.mubr.f32.mxu1 %v24416_v16  ;;  %19455 = vmatpush3.bf16.msra.mxu1 %v19452_v38  ;;  %v28237_v16 = vld [vmem:[#allocation125_spill] sm:$0xff]  ;;  %v28254_v38 = vld [vmem:[#allocation211_spill] sm:$0xff] }
 0x5ae   :  { %19457 = vmatprep.subr.bf16.mxu1 %v19456_v18  ;;  %v19476_v53 = vpack.c.bf16 %v28255_v11, %v28254_v38  ;;  %v28274_v38 = vld [vmem:[#allocation114_spill] sm:$0xff]  ;;  %v28275_v11 = vld [vmem:[#allocation115_spill] sm:$0xff] }
 0x5b0   :  { %17033 = vmatmul.mubr.f32.gmra.mrb[16].mxu1 %v24420_v29  ;;  %v24756_v29 = vld [vmem:[#allocation3 + $0x2d0] sm:$0xff] }
 0x5b1   :  { %17035 = vmatprep.mubr.f32.mxu1 %v24422_v14  ;;  %v28239_v14 = vld [vmem:[#allocation204_spill] sm:$0xff] }
 0x5b4   :  { %17036 = vmatmul.mubr.f32.gmra.mrb[18].mxu1 %v24426_v33 }
 0x5b5   :  { %17038 = vmatprep.mubr.f32.mxu1 %v24428_v7  ;;  %v24758_v7 = vld [vmem:[#allocation3 + $0x2e8] sm:$0xff] }
 0x5b8   :  { %17039 = vmatmul.mubr.f32.gmra.mrb[20].mxu1 %v24432_v60  ;;  %v28238_v60 = vld [vmem:[#allocation203_spill] sm:$0xff] }
 0x5b9   :  { %17041 = vmatprep.mubr.f32.mxu1 %v24434_v28  ;;  %v24762_v28 = vld [vmem:[#allocation3 + $0x2f0] sm:$0xff]  ;;  %v19460_v33 = vpack.c.bf16 %v28239_v14, %v28238_v60  ;;  %v28261_v14 = vld [vmem:[#allocation135_spill] sm:$0xff] }
 0x5bc   :  { %17042 = vmatmul.mubr.f32.gmra.mrb[22].mxu1 %v28233_v62  ;;  %v28257_v62 = vld [vmem:[#allocation214_spill] sm:$0xff] }
 0x5bd   :  { %17044 = vmatprep.mubr.f32.mxu1 %v28234_v0 }
 0x5c0   :  { %17045 = vmatmul.mubr.f32.gmra.mrb[24].mxu1 %v28235_v22  ;;  %v28258_v22 = vld [vmem:[#allocation134_spill] sm:$0xff] }
 0x5c1   :  { %17047 = vmatprep.mubr.f32.mxu1 %v28236_v34  ;;  %v28259_v34 = vld [vmem:[#allocation215_spill] sm:$0xff] }
 0x5c4   :  { %17048 = vmatmul.mubr.f32.gmra.mrb[26].mxu1 %v28237_v16  ;;  %v28260_v16 = vld [vmem:[#allocation216_spill] sm:$0xff] }
 0x5c5   :  { %17050 = vmatprep.mubr.f32.mxu1 %v24752_v9  ;;  %v19484_v60 = vpack.c.bf16 %v28260_v16, %v28259_v34  ;;  %v24814_v34 = vld [vmem:[#allocation3 + $0x2ea] sm:$0xff]  ;;  %v24818_v16 = vld [vmem:[#allocation3 + $0x2f2] sm:$0xff] }
 0x5c6   :  { %28280 = vst [vmem:[#allocation120_spill] sm:$0xff] %v24814_v34  ;;  %28281 = vst [vmem:[#allocation137_spill] sm:$0xff] %v24818_v16 }
 0x5c8   :  { %17051 = vmatmul.mubr.f32.gmra.mrb[28].mxu1 %v24756_v29 }
 0x5c9   :  { %17053 = vmatprep.mubr.f32.mxu1 %v24758_v7 }
 0x5cc   :  { %17054 = vmatmul.mubr.f32.gmra.mrb[30].mxu1 %v24762_v28 }
 0x5cd   :  { %17088 = vmatprep.mubr.f32.mxu1 %v24555_v25  ;;  %v28247_v25 = vld [vmem:[#allocation208_spill] sm:$0xff] }
 0x5ce   :  { %v19468_v39 = vpack.c.bf16 %v28247_v25, %v28246_v1  ;;  %v28268_v1 = vld [vmem:[#allocation108_spill] sm:$0xff]  ;;  %v28269_v25 = vld [vmem:[#allocation109_spill] sm:$0xff] }
 0x5d0   :  { %17089 = vmatmul.mubr.f32.vlgmr.msra.gmra.mrb[0].mxu1 %v28240_v51  ;;  %v28263_v51 = vld [vmem:[#allocation217_spill] sm:$0xff] }
 0x5d1   :  { %19459 = vmatpush3.bf16.msra.mxu1 %v19456_v18  ;;  %17091 = vmatprep.mubr.f32.mxu1 %v28241_v17  ;;  %v28256_v18 = vld [vmem:[#allocation213_spill] sm:$0xff]  ;;  %v28264_v17 = vld [vmem:[#allocation218_spill] sm:$0xff] }
 0x5d2   :  { %19461 = vmatprep.subr.bf16.mxu1 %v19460_v33  ;;  %v19480_v0 = vpack.c.bf16 %v28257_v62, %v28256_v18  ;;  %v19488_v63 = vpack.c.bf16 %v28264_v17, %v28263_v51  ;;  %v24808_v18 = vld [vmem:[#allocation3 + $0x2ca] sm:$0xff] }
 0x5d3   :  { %28277 = vst [vmem:[#allocation118_spill] sm:$0xff] %v24808_v18  ;;  %v28278_v62 = vld [vmem:[#allocation117_spill] sm:$0xff]  ;;  %v28283_v51 = vld [vmem:[#allocation220_spill] sm:$0xff] }
 0x5d4   :  { %17092 = vmatmul.mubr.f32.gmra.mrb[2].mxu1 %v28244_v59  ;;  %v28267_v59 = vld [vmem:[#allocation107_spill] sm:$0xff] }
 0x5d5   :  { %17094 = vmatprep.mubr.f32.mxu1 %v28245_v31  ;;  %19463 = vmatpush3.bf16.msra.mxu1 %v19460_v33  ;;  %v28262_v33 = vld [vmem:[#allocation136_spill] sm:$0xff] }
 0x5d6   :  { %19465 = vmatprep.subr.bf16.mxu1 %v19464_v15 }
 0x5d8   :  { %17095 = vmatmul.mubr.f32.gmra.mrb[4].mxu1 %v28248_v3 }
 0x5d9   :  { %17097 = vmatprep.mubr.f32.mxu1 %v28249_v57  ;;  %19467 = vmatpush3.bf16.msra.mxu1 %v19464_v15  ;;  %v28266_v15 = vld [vmem:[#allocation106_spill] sm:$0xff] }
 0x5da   :  { %19469 = vmatprep.subr.bf16.mxu1 %v19468_v39 }
 0x5dc   :  { %17098 = vmatmul.mubr.f32.gmra.mrb[6].mxu1 %v28252_v8 }
 0x5dd   :  { %17100 = vmatprep.mubr.f32.mxu1 %v28253_v12  ;;  %19471 = vmatpush3.bf16.msra.mxu1 %v19468_v39  ;;  %v28270_v39 = vld [vmem:[#allocation110_spill] sm:$0xff] }
 0x5de   :  { %19473 = vmatprep.subr.bf16.mxu1 %v19472_v49 }
 0x5e0   :  { %17101 = vmatmul.mubr.f32.gmra.mrb[8].mxu1 %v24592_v50 }
 0x5e1   :  { %17103 = vmatprep.mubr.f32.mxu1 %v24594_v40  ;;  %19475 = vmatpush3.bf16.msra.mxu1 %v19472_v49  ;;  %v28273_v49 = vld [vmem:[#allocation113_spill] sm:$0xff] }
 0x5e2   :  { %19477 = vmatprep.subr.bf16.mxu1 %v19476_v53 }
 0x5e4   :  { %17104 = vmatmul.mubr.f32.gmra.mrb[10].mxu1 %v24600_v27 }
 0x5e5   :  { %17106 = vmatprep.mubr.f32.mxu1 %v28258_v22  ;;  %19479 = vmatpush3.bf16.msra.mxu1 %v19476_v53  ;;  %v28276_v53 = vld [vmem:[#allocation116_spill] sm:$0xff] }
 0x5e6   :  { %19481 = vmatprep.subr.bf16.mxu1 %v19480_v0 }
 0x5e8   :  { %17107 = vmatmul.mubr.f32.gmra.mrb[12].mxu1 %v28261_v14 }
 0x5e9   :  { %17109 = vmatprep.mubr.f32.mxu1 %v28262_v33  ;;  %19483 = vmatpush3.bf16.msra.mxu1 %v19480_v0  ;;  %v24812_v0 = vld [vmem:[#allocation3 + $0x2d2] sm:$0xff] }
 0x5ea   :  { %19485 = vmatprep.subr.bf16.mxu1 %v19484_v60  ;;  %28279 = vst [vmem:[#allocation119_spill] sm:$0xff] %v24812_v0 }
 0x5ec   :  { %17110 = vmatmul.mubr.f32.gmra.mrb[14].mxu1 %v28265_v37 }
 0x5ed   :  { %17112 = vmatprep.mubr.f32.mxu1 %v28266_v15  ;;  %19487 = vmatpush3.bf16.msra.mxu1 %v19484_v60  ;;  %v28282_v60 = vld [vmem:[#allocation219_spill] sm:$0xff] }
 0x5ee   :  { %19489 = vmatprep.subr.bf16.mxu1 %v19488_v63  ;;  %v19492_v17 = vpack.c.bf16 %v28283_v51, %v28282_v60  ;;  %v28303_v60 = vld [vmem:[#allocation240_spill] sm:$0xff] }
 0x5f0   :  { %17113 = vmatmul.mubr.f32.gmra.mrb[16].mxu1 %v28267_v59 }
 0x5f1   :  { %17115 = vmatprep.mubr.f32.mxu1 %v28268_v1 }
 0x5f4   :  { %17116 = vmatmul.mubr.f32.gmra.mrb[18].mxu1 %v28269_v25 }
 0x5f5   :  { %17118 = vmatprep.mubr.f32.mxu1 %v28270_v39 }
 0x5f8   :  { %17119 = vmatmul.mubr.f32.gmra.mrb[20].mxu1 %v28271_v2 }
 0x5f9   :  { %17121 = vmatprep.mubr.f32.mxu1 %v28272_v35 }
 0x5fc   :  { %17122 = vmatmul.mubr.f32.gmra.mrb[22].mxu1 %v28273_v49 }
 0x5fd   :  { %17124 = vmatprep.mubr.f32.mxu1 %v28274_v38 }
 0x600   :  { %17125 = vmatmul.mubr.f32.gmra.mrb[24].mxu1 %v28275_v11 }
 0x601   :  { %17127 = vmatprep.mubr.f32.mxu1 %v28276_v53 }
 0x604   :  { %17128 = vmatmul.mubr.f32.gmra.mrb[26].mxu1 %v28278_v62  ;;  %v28285_v62 = vld [vmem:[#allocation222_spill] sm:$0xff] }
 0x605   :  { %17130 = vmatprep.mubr.f32.mxu1 %v24808_v18  ;;  %v28284_v18 = vld [vmem:[#allocation221_spill] sm:$0xff] }
 0x608   :  { %17131 = vmatmul.mubr.f32.gmra.mrb[28].mxu1 %v24812_v0  ;;  %v19496_v0 = vpack.c.bf16 %v28285_v62, %v28284_v18 }
 0x609   :  { %17133 = vmatprep.mubr.f32.mxu1 %v24814_v34 }
 0x60c   :  { %17134 = vmatmul.mubr.f32.gmra.mrb[30].mxu1 %v24818_v16  ;;  %v28286_v16 = vld [vmem:[#allocation223_spill] sm:$0xff] }
 0x60d   :  { %17168 = vmatprep.mubr.f32.mxu1 %v24470_v45  ;;  %v28287_v45 = vld [vmem:[#allocation224_spill] sm:$0xff] }
 0x60e   :  { %v19500_v34 = vpack.c.bf16 %v28287_v45, %v28286_v16  ;;  %v28302_v16 = vld [vmem:[#allocation239_spill] sm:$0xff] }
 0x60f   :  { %v19532_v51 = vpack.c.bf16 %v28303_v60, %v28302_v16  ;;  %v6155_v45 = vld [vmem:[#allocation3 + $0x1c8] sm:$0xff] }
 0x610   :  { %17169 = vmatmul.mubr.f32.vlgmr.msra.gmra.mrb[0].mxu1 %v24476_v47  ;;  %v28288_v47 = vld [vmem:[#allocation225_spill] sm:$0xff] }
 0x611   :  { %19491 = vmatpush3.bf16.msra.mxu1 %v19488_v63  ;;  %17171 = vmatprep.mubr.f32.mxu1 %v24478_v20  ;;  %v28289_v20 = vld [vmem:[#allocation226_spill] sm:$0xff] }
 0x612   :  { %19493 = vmatprep.subr.bf16.mxu1 %v19492_v17  ;;  %v19504_v63 = vpack.c.bf16 %v28289_v20, %v28288_v47  ;;  %v28304_v47 = vld [vmem:[#allocation241_spill] sm:$0xff]  ;;  %v28305_v20 = vld [vmem:[#allocation242_spill] sm:$0xff] }
 0x614   :  { %17172 = vmatmul.mubr.f32.gmra.mrb[2].mxu1 %v24484_v10  ;;  %v28290_v10 = vld [vmem:[#allocation227_spill] sm:$0xff] }
 0x615   :  { %17174 = vmatprep.mubr.f32.mxu1 %v24486_v36  ;;  %19495 = vmatpush3.bf16.msra.mxu1 %v19492_v17  ;;  %v28291_v36 = vld [vmem:[#allocation228_spill] sm:$0xff] }
 0x616   :  { %19497 = vmatprep.subr.bf16.mxu1 %v19496_v0  ;;  %v19508_v18 = vpack.c.bf16 %v28291_v36, %v28290_v10  ;;  %v6154_v17 = vld [vmem:[#allocation3 + $0x1b0] sm:$0xff]  ;;  %v6157_v36 = vld [vmem:[#allocation3 + $0x1e8] sm:$0xff] }
 0x617   :  { %v6156_v10 = vld [vmem:[#allocation3 + $0x1d0] sm:$0xff] }
 0x618   :  { %17175 = vmatmul.mubr.f32.gmra.mrb[4].mxu1 %v24492_v13  ;;  %v28292_v13 = vld [vmem:[#allocation229_spill] sm:$0xff] }
 0x619   :  { %17177 = vmatprep.mubr.f32.mxu1 %v24494_v43  ;;  %19499 = vmatpush3.bf16.msra.mxu1 %v19496_v0  ;;  %v28293_v43 = vld [vmem:[#allocation230_spill] sm:$0xff] }
 0x61a   :  { %19501 = vmatprep.subr.bf16.mxu1 %v19500_v34  ;;  %v19512_v62 = vpack.c.bf16 %v28293_v43, %v28292_v13  ;;  %v28307_v13 = vld [vmem:[#allocation244_spill] sm:$0xff] }
 0x61c   :  { %17178 = vmatmul.mubr.f32.gmra.mrb[6].mxu1 %v24500_v58  ;;  %v28294_v58 = vld [vmem:[#allocation231_spill] sm:$0xff] }
 0x61d   :  { %17180 = vmatprep.mubr.f32.mxu1 %v24502_v6  ;;  %19503 = vmatpush3.bf16.msra.mxu1 %v19500_v34  ;;  %v28295_v6 = vld [vmem:[#allocation232_spill] sm:$0xff] }
 0x61e   :  { %19505 = vmatprep.subr.bf16.mxu1 %v19504_v63  ;;  %v19516_v0 = vpack.c.bf16 %v28295_v6, %v28294_v58  ;;  %v6159_v58 = vld [vmem:[#allocation3 + $0x208] sm:$0xff]  ;;  %v28308_v6 = vld [vmem:[#allocation245_spill] sm:$0xff] }
 0x620   :  { %17181 = vmatmul.mubr.f32.gmra.mrb[8].mxu1 %v24508_v4  ;;  %v28296_v4 = vld [vmem:[#allocation233_spill] sm:$0xff] }
 0x621   :  { %17183 = vmatprep.mubr.f32.mxu1 %v24510_v55  ;;  %19507 = vmatpush3.bf16.msra.mxu1 %v19504_v63  ;;  %v28297_v55 = vld [vmem:[#allocation234_spill] sm:$0xff]  ;;  %v19536_v63 = vpack.c.bf16 %v28305_v20, %v28304_v47 }
 0x622   :  { %19509 = vmatprep.subr.bf16.mxu1 %v19508_v18  ;;  %v19520_v34 = vpack.c.bf16 %v28297_v55, %v28296_v4  ;;  %v6160_v55 = vld [vmem:[#allocation3 + $0x210] sm:$0xff] }
 0x624   :  { %17184 = vmatmul.mubr.f32.gmra.mrb[10].mxu1 %v24514_v41  ;;  %v28299_v41 = vld [vmem:[#allocation236_spill] sm:$0xff] }
 0x625   :  { %17186 = vmatprep.mubr.f32.mxu1 %v24516_v48  ;;  %19511 = vmatpush3.bf16.msra.mxu1 %v19508_v18  ;;  %v28306_v18 = vld [vmem:[#allocation243_spill] sm:$0xff] }
 0x626   :  { %19513 = vmatprep.subr.bf16.mxu1 %v19512_v62  ;;  %v19540_v43 = vpack.c.bf16 %v28307_v13, %v28306_v18 }
 0x628   :  { %17187 = vmatmul.mubr.f32.gmra.mrb[12].mxu1 %v24520_v32  ;;  %v6150_v32 = vld [vmem:[#allocation3 + $0x170] sm:$0xff] }
 0x629   :  { %17189 = vmatprep.mubr.f32.mxu1 %v24522_v21  ;;  %19515 = vmatpush3.bf16.msra.mxu1 %v19512_v62  ;;  %v6151_v21 = vld [vmem:[#allocation3 + $0x188] sm:$0xff]  ;;  %v6158_v62 = vld [vmem:[#allocation3 + $0x1f0] sm:$0xff] }
 0x62a   :  { %19517 = vmatprep.subr.bf16.mxu1 %v19516_v0 }
 0x62c   :  { %17190 = vmatmul.mubr.f32.gmra.mrb[14].mxu1 %v24526_v24  ;;  %v28300_v24 = vld [vmem:[#allocation237_spill] sm:$0xff] }
 0x62d   :  { %17192 = vmatprep.mubr.f32.mxu1 %v24528_v54  ;;  %19519 = vmatpush3.bf16.msra.mxu1 %v19516_v0  ;;  %v5869_v54 = vld [vmem:[#allocation3 + $0x306] sm:$0xff]  ;;  %v28309_v0 = vld [vmem:[#allocation246_spill] sm:$0xff] }
 0x62e   :  { %19521 = vmatprep.subr.bf16.mxu1 %v19520_v34  ;;  %v19544_v4 = vpack.c.bf16 %v28309_v0, %v28308_v6 }
 0x630   :  { %17193 = vmatmul.mubr.f32.gmra.mrb[16].mxu1 %v24532_v56  ;;  %v28298_v56 = vld [vmem:[#allocation235_spill] sm:$0xff] }
 0x631   :  { %17195 = vmatprep.mubr.f32.mxu1 %v24534_v52  ;;  %v5870_v52 = vld [vmem:[#allocation3 + $0x30e] sm:$0xff]  ;;  %v19524_v48 = vpack.c.bf16 %v28299_v41, %v28298_v56 }
 0x632   :  { %v6166_v56 = vld [vmem:[#allocation3 + $0x270] sm:$0xff]  ;;  %v6167_v41 = vld [vmem:[#allocation3 + $0x288] sm:$0xff] }
 0x634   :  { %17196 = vmatmul.mubr.f32.gmra.mrb[18].mxu1 %v24538_v23  ;;  %v5871_v23 = vld [vmem:[#allocation3 + $0x326] sm:$0xff] }
 0x635   :  { %17198 = vmatprep.mubr.f32.mxu1 %v24540_v46  ;;  %v5872_v46 = vld [vmem:[#allocation3 + $0x32e] sm:$0xff] }
 0x638   :  { %17199 = vmatmul.mubr.f32.gmra.mrb[20].mxu1 %v24544_v61  ;;  %v6147_v61 = vld [vmem:[#allocation3 + $0x148] sm:$0xff] }
 0x639   :  { %17201 = vmatprep.mubr.f32.mxu1 %v24546_v44  ;;  %v6148_v44 = vld [vmem:[#allocation3 + $0x150] sm:$0xff] }
 0x63c   :  { %17202 = vmatmul.mubr.f32.gmra.mrb[22].mxu1 %v24550_v42  ;;  %v6149_v42 = vld [vmem:[#allocation3 + $0x168] sm:$0xff] }
 0x63d   :  { %17204 = vmatprep.mubr.f32.mxu1 %v24696_v5  ;;  %v28301_v5 = vld [vmem:[#allocation238_spill] sm:$0xff] }
 0x640   :  { %17205 = vmatmul.mubr.f32.gmra.mrb[24].mxu1 %v24700_v30  ;;  %v19528_v30 = vpack.c.bf16 %v28301_v5, %v28300_v24  ;;  %v6175_v24 = vld [vmem:[#allocation3 + $0x308] sm:$0xff]  ;;  %v6176_v5 = vld [vmem:[#allocation3 + $0x310] sm:$0xff] }
 0x641   :  { %17207 = vmatprep.mubr.f32.mxu1 %v24702_v26  ;;  %v6152_v26 = vld [vmem:[#allocation3 + $0x190] sm:$0xff] }
 0x644   :  { %17208 = vmatmul.mubr.f32.gmra.mrb[26].mxu1 %v24706_v19  ;;  %v6153_v19 = vld [vmem:[#allocation3 + $0x1a8] sm:$0xff] }
 0x645   :  { %17210 = vmatprep.mubr.f32.mxu1 %v5869_v54  ;;  %v28310_v54 = vld [vmem:[#allocation247_spill] sm:$0xff] }
 0x648   :  { %17211 = vmatmul.mubr.f32.gmra.mrb[28].mxu1 %v5870_v52  ;;  %v28311_v52 = vld [vmem:[#allocation248_spill] sm:$0xff] }
 0x649   :  { %17213 = vmatprep.mubr.f32.mxu1 %v5871_v23  ;;  %v19548_v23 = vpack.c.bf16 %v28311_v52, %v28310_v54 }
 0x64c   :  { %17214 = vmatmul.mubr.f32.gmra.mrb[30].mxu1 %v5872_v46  ;;  %v6162_v46 = vld [vmem:[#allocation3 + $0x230] sm:$0xff] }
 0x64d   :  { %17248 = vmatprep.mubr.f32.mxu1 %v6147_v61  ;;  %v6163_v61 = vld [vmem:[#allocation3 + $0x248] sm:$0xff] }
 0x650   :  { %17249 = vmatmul.mubr.f32.vlgmr.msra.gmra.mrb[0].mxu1 %v6148_v44  ;;  %v6164_v44 = vld [vmem:[#allocation3 + $0x250] sm:$0xff] }
 0x651   :  { %19523 = vmatpush3.bf16.msra.mxu1 %v19520_v34  ;;  %17251 = vmatprep.mubr.f32.mxu1 %v6149_v42  ;;  %v6161_v34 = vld [vmem:[#allocation3 + $0x228] sm:$0xff] }
 0x652   :  { %19525 = vmatprep.subr.bf16.mxu1 %v19524_v48  ;;  %v6165_v42 = vld [vmem:[#allocation3 + $0x268] sm:$0xff] }
 0x654   :  { %17252 = vmatmul.mubr.f32.gmra.mrb[2].mxu1 %v6150_v32  ;;  %v6169_v32 = vld [vmem:[#allocation3 + $0x2a8] sm:$0xff] }
 0x655   :  { %17254 = vmatprep.mubr.f32.mxu1 %v6151_v21  ;;  %19527 = vmatpush3.bf16.msra.mxu1 %v19524_v48  ;;  %v6168_v48 = vld [vmem:[#allocation3 + $0x290] sm:$0xff] }
 0x656   :  { %19529 = vmatprep.subr.bf16.mxu1 %v19528_v30  ;;  %v6170_v21 = vld [vmem:[#allocation3 + $0x2b0] sm:$0xff] }
 0x658   :  { %17255 = vmatmul.mubr.f32.gmra.mrb[4].mxu1 %v6152_v26  ;;  %v6178_v26 = vld [vmem:[#allocation3 + $0x330] sm:$0xff] }
 0x659   :  { %17257 = vmatprep.mubr.f32.mxu1 %v6153_v19  ;;  %19531 = vmatpush3.bf16.msra.mxu1 %v19528_v30  ;;  %v6177_v30 = vld [vmem:[#allocation3 + $0x328] sm:$0xff] }
 0x65a   :  { %19533 = vmatprep.subr.bf16.mxu1 %v19532_v51 }
 0x65c   :  { %17258 = vmatmul.mubr.f32.gmra.mrb[6].mxu1 %v6154_v17 }
 0x65d   :  { %17260 = vmatprep.mubr.f32.mxu1 %v6155_v45  ;;  %19535 = vmatpush3.bf16.msra.mxu1 %v19532_v51 }
 0x65e   :  { %19537 = vmatprep.subr.bf16.mxu1 %v19536_v63 }
 0x660   :  { %17261 = vmatmul.mubr.f32.gmra.mrb[8].mxu1 %v6156_v10 }
 0x661   :  { %17263 = vmatprep.mubr.f32.mxu1 %v6157_v36  ;;  %19539 = vmatpush3.bf16.msra.mxu1 %v19536_v63 }
 0x662   :  { %19541 = vmatprep.subr.bf16.mxu1 %v19540_v43 }
 0x664   :  { %17264 = vmatmul.mubr.f32.gmra.mrb[10].mxu1 %v6158_v62 }
 0x665   :  { %17266 = vmatprep.mubr.f32.mxu1 %v6159_v58  ;;  %19543 = vmatpush3.bf16.msra.mxu1 %v19540_v43 }
 0x666   :  { %19545 = vmatprep.subr.bf16.mxu1 %v19544_v4 }
 0x668   :  { %17267 = vmatmul.mubr.f32.gmra.mrb[12].mxu1 %v6160_v55 }
 0x669   :  { %17269 = vmatprep.mubr.f32.mxu1 %v6161_v34  ;;  %19547 = vmatpush3.bf16.msra.mxu1 %v19544_v4 }
 0x66a   :  { %19549 = vmatprep.subr.bf16.mxu1 %v19548_v23 }
 0x66c   :  { %17270 = vmatmul.mubr.f32.gmra.mrb[14].mxu1 %v6162_v46 }
 0x66d   :  { %17272 = vmatprep.mubr.f32.mxu1 %v6163_v61  ;;  %19551 = vmatpush3.bf16.msra.mxu1 %v19548_v23 }
 0x670   :  { %17273 = vmatmul.mubr.f32.gmra.mrb[16].mxu1 %v6164_v44 }
 0x671   :  { %17275 = vmatprep.mubr.f32.mxu1 %v6165_v42 }
 0x674   :  { %17276 = vmatmul.mubr.f32.gmra.mrb[18].mxu1 %v6166_v56 }
 0x675   :  { %17278 = vmatprep.mubr.f32.mxu1 %v6167_v41 }
 0x678   :  { %17279 = vmatmul.mubr.f32.gmra.mrb[20].mxu1 %v6168_v48 }
 0x679   :  { %17281 = vmatprep.mubr.f32.mxu1 %v6169_v32 }
 0x67c   :  { %17282 = vmatmul.mubr.f32.gmra.mrb[22].mxu1 %v6170_v21 }
 0x67d   :  { %17284 = vmatprep.mubr.f32.mxu1 %v24752_v9  ;;  %v28315_v9 = vld [vmem:[#allocation120_spill] sm:$0xff] }
 0x680   :  { %17285 = vmatmul.mubr.f32.gmra.mrb[24].mxu1 %v24756_v29  ;;  %v6481_v29 = vld [vmem:[#allocation3 + $0x30a] sm:$0xff] }
 0x681   :  { %17287 = vmatprep.mubr.f32.mxu1 %v24758_v7  ;;  %v28316_v7 = vld [vmem:[#allocation137_spill] sm:$0xff] }
 0x684   :  { %17288 = vmatmul.mubr.f32.gmra.mrb[26].mxu1 %v24762_v28  ;;  %v6482_v28 = vld [vmem:[#allocation3 + $0x312] sm:$0xff] }
 0x685   :  { %17290 = vmatprep.mubr.f32.mxu1 %v6175_v24 }
 0x688   :  { %17291 = vmatmul.mubr.f32.gmra.mrb[28].mxu1 %v6176_v5 }
 0x689   :  { %17293 = vmatprep.mubr.f32.mxu1 %v6177_v30 }
 0x68c   :  { %17294 = vmatmul.mubr.f32.gmra.mrb[30].mxu1 %v6178_v26 }
 0x68d   :  { %17328 = vmatprep.mubr.f32.mxu1 %v28245_v31  ;;  %v6483_v31 = vld [vmem:[#allocation3 + $0x32a] sm:$0xff] }
 0x690   :  { %17329 = vmatmul.mubr.f32.vlgmr.msra.gmra.mrb[0].mxu1 %v28248_v3  ;;  %v6484_v3 = vld [vmem:[#allocation3 + $0x332] sm:$0xff] }
 0x691   :  { %17331 = vmatprep.mubr.f32.mxu1 %v28249_v57  ;;  %v24914_v57 = vld [vmem:[%s27447_s2 + $0x1] ss:$0 sm:$0xff] }
 0x694   :  { %17332 = vmatmul.mubr.f32.gmra.mrb[2].mxu1 %v28252_v8 }
 0x695   :  { %17334 = vmatprep.mubr.f32.mxu1 %v28253_v12 }
 0x698   :  { %17335 = vmatmul.mubr.f32.gmra.mrb[4].mxu1 %v24592_v50  ;;  %v28312_v50 = vld [vmem:[#allocation117_spill] sm:$0xff] }
 0x699   :  { %17337 = vmatprep.mubr.f32.mxu1 %v24594_v40  ;;  %v28313_v40 = vld [vmem:[#allocation118_spill] sm:$0xff] }
 0x69c   :  { %17338 = vmatmul.mubr.f32.gmra.mrb[6].mxu1 %v24600_v27  ;;  %v28314_v27 = vld [vmem:[#allocation119_spill] sm:$0xff] }
 0x69d   :  { %17340 = vmatprep.mubr.f32.mxu1 %v28258_v22 }
 0x6a0   :  { %17341 = vmatmul.mubr.f32.gmra.mrb[8].mxu1 %v28261_v14 }
 0x6a1   :  { %17343 = vmatprep.mubr.f32.mxu1 %v28262_v33 }
 0x6a4   :  { %17344 = vmatmul.mubr.f32.gmra.mrb[10].mxu1 %v28265_v37 }
 0x6a5   :  { %17346 = vmatprep.mubr.f32.mxu1 %v28266_v15 }
 0x6a8   :  { %17347 = vmatmul.mubr.f32.gmra.mrb[12].mxu1 %v28267_v59 }
 0x6a9   :  { %17349 = vmatprep.mubr.f32.mxu1 %v28268_v1 }
 0x6ac   :  { %17350 = vmatmul.mubr.f32.gmra.mrb[14].mxu1 %v28269_v25 }
 0x6ad   :  { %17352 = vmatprep.mubr.f32.mxu1 %v28270_v39 }
 0x6b0   :  { %17353 = vmatmul.mubr.f32.gmra.mrb[16].mxu1 %v28271_v2 }
 0x6b1   :  { %17355 = vmatprep.mubr.f32.mxu1 %v28272_v35 }
 0x6b4   :  { %17356 = vmatmul.mubr.f32.gmra.mrb[18].mxu1 %v28273_v49 }
 0x6b5   :  { %17358 = vmatprep.mubr.f32.mxu1 %v28274_v38 }
 0x6b8   :  { %17359 = vmatmul.mubr.f32.gmra.mrb[20].mxu1 %v28275_v11 }
 0x6b9   :  { %17361 = vmatprep.mubr.f32.mxu1 %v28276_v53 }
 0x6bc   :  { %17362 = vmatmul.mubr.f32.gmra.mrb[22].mxu1 %v28312_v50 }
 0x6bd   :  { %17364 = vmatprep.mubr.f32.mxu1 %v28313_v40 }
 0x6c0   :  { %17365 = vmatmul.mubr.f32.gmra.mrb[24].mxu1 %v28314_v27 }
 0x6c1   :  { %17367 = vmatprep.mubr.f32.mxu1 %v28315_v9 }
 0x6c4   :  { %17368 = vmatmul.mubr.f32.gmra.mrb[26].mxu1 %v28316_v7 }
 0x6c5   :  { %17370 = vmatprep.mubr.f32.mxu1 %v6481_v29 }
 0x6c8   :  { %17371 = vmatmul.mubr.f32.gmra.mrb[28].mxu1 %v6482_v28 }
 0x6c9   :  { %17373 = vmatprep.mubr.f32.mxu1 %v6483_v31 }
 0x6cc   :  { %17374 = vmatmul.mubr.f32.gmra.mrb[30].mxu1 %v6484_v3 }
 0x763   :  { %v17330_v8 = vpop.f32.mrb[0].mxu1 }
 0x764   :  { %v6768_v12 = vadd.f32 %v17330_v8, %v24914_v57  ;;  %v6568_v22 = vpop.f32.mrb[1].mxu1 }
 0x765   :  { %v6767_v14 = vadd.f32 %v24914_v57, %v6568_v22 }
 0x766   :  { %v6800_v33 = vmax.f32 %v6768_v12, 0.0 }
 0x767   :  { %v6799_v37 = vmax.f32 %v6767_v14, 0.0  ;;  %v17333_v15 = vpop.f32.mrb[2].mxu1 }
 0x768   :  { %6832 = vst [vmem:[#allocation2 + $0x110] sm:$0xff] %v6800_v33  ;;  %v6770_v59 = vadd.f32 %v17333_v15, %v24914_v57  ;;  %v6578_v1 = vpop.f32.mrb[3].mxu1 }
 0x769   :  { %6831 = vst [vmem:[#allocation2 + $0x108] sm:$0xff] %v6799_v37  ;;  %v6769_v25 = vadd.f32 %v24914_v57, %v6578_v1 }
 0x76a   :  { %v6802_v39 = vmax.f32 %v6770_v59, 0.0 }
 0x76b   :  { %v6801_v2 = vmax.f32 %v6769_v25, 0.0  ;;  %v17336_v35 = vpop.f32.mrb[4].mxu1 }
 0x76c   :  { %6834 = vst [vmem:[#allocation2 + $0x130] sm:$0xff] %v6802_v39  ;;  %v6772_v49 = vadd.f32 %v17336_v35, %v24914_v57  ;;  %v6588_v38 = vpop.f32.mrb[5].mxu1 }
 0x76d   :  { %6833 = vst [vmem:[#allocation2 + $0x128] sm:$0xff] %v6801_v2  ;;  %v6771_v11 = vadd.f32 %v24914_v57, %v6588_v38 }
 0x76e   :  { %v6804_v53 = vmax.f32 %v6772_v49, 0.0 }
 0x76f   :  { %v6803_v19 = vmax.f32 %v6771_v11, 0.0  ;;  %v17339_v16 = vpop.f32.mrb[6].mxu1 }
 0x770   :  { %6836 = vst [vmem:[#allocation2 + $0x150] sm:$0xff] %v6804_v53  ;;  %v6774_v60 = vadd.f32 %v17339_v16, %v24914_v57  ;;  %v6598_v51 = vpop.f32.mrb[7].mxu1 }
 0x771   :  { %6835 = vst [vmem:[#allocation2 + $0x148] sm:$0xff] %v6803_v19  ;;  %v6773_v17 = vadd.f32 %v24914_v57, %v6598_v51 }
 0x772   :  { %v6806_v45 = vmax.f32 %v6774_v60, 0.0 }
 0x773   :  { %v6805_v47 = vmax.f32 %v6773_v17, 0.0  ;;  %v17342_v20 = vpop.f32.mrb[8].mxu1 }
 0x774   :  { %6838 = vst [vmem:[#allocation2 + $0x170] sm:$0xff] %v6806_v45  ;;  %v6776_v63 = vadd.f32 %v17342_v20, %v24914_v57  ;;  %v6608_v10 = vpop.f32.mrb[9].mxu1 }
 0x775   :  { %6837 = vst [vmem:[#allocation2 + $0x168] sm:$0xff] %v6805_v47  ;;  %v6775_v36 = vadd.f32 %v24914_v57, %v6608_v10 }
 0x776   :  { %v6808_v18 = vmax.f32 %v6776_v63, 0.0 }
 0x777   :  { %v6807_v13 = vmax.f32 %v6775_v36, 0.0  ;;  %v17345_v43 = vpop.f32.mrb[10].mxu1 }
 0x778   :  { %6840 = vst [vmem:[#allocation2 + $0x190] sm:$0xff] %v6808_v18  ;;  %v6778_v62 = vadd.f32 %v17345_v43, %v24914_v57  ;;  %v6618_v58 = vpop.f32.mrb[11].mxu1 }
 0x779   :  { %6839 = vst [vmem:[#allocation2 + $0x188] sm:$0xff] %v6807_v13  ;;  %v6777_v6 = vadd.f32 %v24914_v57, %v6618_v58 }
 0x77a   :  { %v6810_v0 = vmax.f32 %v6778_v62, 0.0 }
 0x77b   :  { %v6809_v4 = vmax.f32 %v6777_v6, 0.0  ;;  %v17348_v55 = vpop.f32.mrb[12].mxu1 }
 0x77c   :  { %6842 = vst [vmem:[#allocation2 + $0x1b0] sm:$0xff] %v6810_v0  ;;  %v6780_v34 = vadd.f32 %v17348_v55, %v24914_v57  ;;  %v6628_v54 = vpop.f32.mrb[13].mxu1 }
 0x77d   :  { %6841 = vst [vmem:[#allocation2 + $0x1a8] sm:$0xff] %v6809_v4  ;;  %v6779_v52 = vadd.f32 %v24914_v57, %v6628_v54 }
 0x77e   :  { %v6812_v23 = vmax.f32 %v6780_v34, 0.0 }
 0x77f   :  { %v6811_v46 = vmax.f32 %v6779_v52, 0.0  ;;  %v17351_v61 = vpop.f32.mrb[14].mxu1 }
 0x780   :  { %6844 = vst [vmem:[#allocation2 + $0x1d0] sm:$0xff] %v6812_v23  ;;  %v6782_v44 = vadd.f32 %v17351_v61, %v24914_v57  ;;  %v6638_v42 = vpop.f32.mrb[15].mxu1 }
 0x781   :  { %6843 = vst [vmem:[#allocation2 + $0x1c8] sm:$0xff] %v6811_v46  ;;  %v6781_v56 = vadd.f32 %v24914_v57, %v6638_v42 }
 0x782   :  { %v6814_v41 = vmax.f32 %v6782_v44, 0.0 }
 0x783   :  { %v6813_v48 = vmax.f32 %v6781_v56, 0.0  ;;  %v17354_v32 = vpop.f32.mrb[16].mxu1 }
 0x784   :  { %6846 = vst [vmem:[#allocation2 + $0x1f0] sm:$0xff] %v6814_v41  ;;  %v6784_v21 = vadd.f32 %v17354_v32, %v24914_v57  ;;  %v6648_v24 = vpop.f32.mrb[17].mxu1 }
 0x785   :  { %6845 = vst [vmem:[#allocation2 + $0x1e8] sm:$0xff] %v6813_v48  ;;  %v6783_v5 = vadd.f32 %v24914_v57, %v6648_v24 }
 0x786   :  { %v6816_v30 = vmax.f32 %v6784_v21, 0.0 }
 0x787   :  { %v6815_v26 = vmax.f32 %v6783_v5, 0.0  ;;  %v17357_v50 = vpop.f32.mrb[18].mxu1 }
 0x788   :  { %6848 = vst [vmem:[#allocation2 + $0x210] sm:$0xff] %v6816_v30  ;;  %v6786_v40 = vadd.f32 %v17357_v50, %v24914_v57  ;;  %v6658_v27 = vpop.f32.mrb[19].mxu1 }
 0x789   :  { %6847 = vst [vmem:[#allocation2 + $0x208] sm:$0xff] %v6815_v26  ;;  %v6785_v9 = vadd.f32 %v24914_v57, %v6658_v27 }
 0x78a   :  { %v6818_v29 = vmax.f32 %v6786_v40, 0.0 }
 0x78b   :  { %v6817_v7 = vmax.f32 %v6785_v9, 0.0  ;;  %v17360_v28 = vpop.f32.mrb[20].mxu1 }
 0x78c   :  { %6850 = vst [vmem:[#allocation2 + $0x230] sm:$0xff] %v6818_v29  ;;  %v6788_v31 = vadd.f32 %v17360_v28, %v24914_v57  ;;  %v6668_v3 = vpop.f32.mrb[21].mxu1 }
 0x78d   :  { %6849 = vst [vmem:[#allocation2 + $0x228] sm:$0xff] %v6817_v7  ;;  %v6787_v8 = vadd.f32 %v24914_v57, %v6668_v3 }
 0x78e   :  { %v6820_v12 = vmax.f32 %v6788_v31, 0.0 }
 0x78f   :  { %v6819_v22 = vmax.f32 %v6787_v8, 0.0  ;;  %v17363_v14 = vpop.f32.mrb[22].mxu1 }
 0x790   :  { %6852 = vst [vmem:[#allocation2 + $0x250] sm:$0xff] %v6820_v12  ;;  %v6790_v33 = vadd.f32 %v17363_v14, %v24914_v57  ;;  %v6678_v37 = vpop.f32.mrb[23].mxu1 }
 0x791   :  { %6851 = vst [vmem:[#allocation2 + $0x248] sm:$0xff] %v6819_v22  ;;  %v6789_v15 = vadd.f32 %v24914_v57, %v6678_v37 }
 0x792   :  { %v6822_v59 = vmax.f32 %v6790_v33, 0.0 }
 0x793   :  { %v6821_v1 = vmax.f32 %v6789_v15, 0.0  ;;  %v17366_v25 = vpop.f32.mrb[24].mxu1 }
 0x794   :  { %6854 = vst [vmem:[#allocation2 + $0x270] sm:$0xff] %v6822_v59  ;;  %v6792_v39 = vadd.f32 %v17366_v25, %v24914_v57  ;;  %v6688_v2 = vpop.f32.mrb[25].mxu1 }
 0x795   :  { %6853 = vst [vmem:[#allocation2 + $0x268] sm:$0xff] %v6821_v1  ;;  %v6791_v35 = vadd.f32 %v24914_v57, %v6688_v2 }
 0x796   :  { %v6824_v49 = vmax.f32 %v6792_v39, 0.0 }
 0x797   :  { %v6823_v38 = vmax.f32 %v6791_v35, 0.0  ;;  %v17369_v11 = vpop.f32.mrb[26].mxu1 }
 0x798   :  { %6856 = vst [vmem:[#allocation2 + $0x290] sm:$0xff] %v6824_v49  ;;  %v6794_v53 = vadd.f32 %v17369_v11, %v24914_v57  ;;  %v6698_v19 = vpop.f32.mrb[27].mxu1 }
 0x799   :  { %6855 = vst [vmem:[#allocation2 + $0x288] sm:$0xff] %v6823_v38  ;;  %v6793_v16 = vadd.f32 %v24914_v57, %v6698_v19 }
 0x79a   :  { %v6826_v60 = vmax.f32 %v6794_v53, 0.0 }
 0x79b   :  { %v6825_v51 = vmax.f32 %v6793_v16, 0.0  ;;  %v17372_v17 = vpop.f32.mrb[28].mxu1 }
 0x79c   :  { %6858 = vst [vmem:[#allocation2 + $0x2b0] sm:$0xff] %v6826_v60  ;;  %v6796_v45 = vadd.f32 %v17372_v17, %v24914_v57  ;;  %v6708_v47 = vpop.f32.mrb[29].mxu1 }
 0x79d   :  { %6857 = vst [vmem:[#allocation2 + $0x2a8] sm:$0xff] %v6825_v51  ;;  %v6795_v20 = vadd.f32 %v24914_v57, %v6708_v47 }
 0x79e   :  { %v6828_v63 = vmax.f32 %v6796_v45, 0.0 }
 0x79f   :  { %v6827_v10 = vmax.f32 %v6795_v20, 0.0  ;;  %v17375_v36 = vpop.f32.mrb[30].mxu1 }
 0x7a0   :  { %6860 = vst [vmem:[#allocation2 + $0x2d0] sm:$0xff] %v6828_v63  ;;  %v6798_v18 = vadd.f32 %v17375_v36, %v24914_v57  ;;  %v6718_v13 = vpop.f32.mrb[31].mxu1 }
 0x7a1   :  { %6859 = vst [vmem:[#allocation2 + $0x2c8] sm:$0xff] %v6827_v10  ;;  %v6797_v43 = vadd.f32 %v24914_v57, %v6718_v13 }
 0x7a2   :  { %v6830_v62 = vmax.f32 %v6798_v18, 0.0 }
 0x7a3   :  { %v6829_v58 = vmax.f32 %v6797_v43, 0.0 }
 0x7a4   :  { %6862 = vst [vmem:[#allocation2 + $0x2f0] sm:$0xff] %v6830_v62 }
 0x7a5   :  { %6861 = vst [vmem:[#allocation2 + $0x2e8] sm:$0xff] %v6829_v58 }
 0x7a6   :  { %21255 = dma.done.wait [#allocation5], 18432 }
 0x7a7   :  { %21256 = vsyncadd [#allocation5], 4294948864  ;;  %v24951_v6 = vld [vmem:[%s27446_s1 + $0xd80] sm:$0xff]  ;;  %v24956_v0 = vld [vmem:[%s27446_s1 + $0xd88] sm:$0xff] }
 0x7a8   :  { %28317 = vst [vmem:[#allocation138_spill] sm:$0xff] %v24951_v6  ;;  %28318 = vst [vmem:[#allocation139_spill] sm:$0xff] %v24956_v0  ;;  %v24961_v57 = vld [vmem:[%s27446_s1 + $0xd90] sm:$0xff]  ;;  %v24966_v4 = vld [vmem:[%s27446_s1 + $0xd98] sm:$0xff] }
 0x7a9   :  { %28319 = vst [vmem:[#allocation140_spill] sm:$0xff] %v24961_v57  ;;  %28320 = vst [vmem:[#allocation141_spill] sm:$0xff] %v24966_v4  ;;  %v24971_v55 = vld [vmem:[%s27446_s1 + $0xda0] sm:$0xff]  ;;  %v24976_v34 = vld [vmem:[%s27446_s1 + $0xda8] sm:$0xff] }
 0x7aa   :  { %28321 = vst [vmem:[#allocation142_spill] sm:$0xff] %v24971_v55  ;;  %28322 = vst [vmem:[#allocation143_spill] sm:$0xff] %v24976_v34  ;;  %v24981_v54 = vld [vmem:[%s27446_s1 + $0xdb0] sm:$0xff]  ;;  %v24986_v52 = vld [vmem:[%s27446_s1 + $0xdb8] sm:$0xff] }
 0x7ab   :  { %28323 = vst [vmem:[#allocation144_spill] sm:$0xff] %v24981_v54  ;;  %28324 = vst [vmem:[#allocation145_spill] sm:$0xff] %v24986_v52  ;;  %v24991_v23 = vld [vmem:[%s27446_s1 + $0xdc0] sm:$0xff]  ;;  %v24996_v46 = vld [vmem:[%s27446_s1 + $0xdc8] sm:$0xff] }
 0x7ac   :  { %28325 = vst [vmem:[#allocation146_spill] sm:$0xff] %v24991_v23  ;;  %28326 = vst [vmem:[#allocation147_spill] sm:$0xff] %v24996_v46  ;;  %v25001_v61 = vld [vmem:[%s27446_s1 + $0xdd0] sm:$0xff]  ;;  %v25006_v44 = vld [vmem:[%s27446_s1 + $0xdd8] sm:$0xff] }
 0x7ad   :  { %28327 = vst [vmem:[#allocation148_spill] sm:$0xff] %v25001_v61  ;;  %28328 = vst [vmem:[#allocation149_spill] sm:$0xff] %v25006_v44  ;;  %v25011_v42 = vld [vmem:[%s27446_s1 + $0xde0] sm:$0xff]  ;;  %v25016_v56 = vld [vmem:[%s27446_s1 + $0xde8] sm:$0xff] }
 0x7ae   :  { %28329 = vst [vmem:[#allocation150_spill] sm:$0xff] %v25011_v42  ;;  %28330 = vst [vmem:[#allocation151_spill] sm:$0xff] %v25016_v56  ;;  %v25021_v41 = vld [vmem:[%s27446_s1 + $0xdf0] sm:$0xff]  ;;  %v25026_v48 = vld [vmem:[%s27446_s1 + $0xdf8] sm:$0xff] }
 0x7af   :  { %28331 = vst [vmem:[#allocation152_spill] sm:$0xff] %v25021_v41  ;;  %28332 = vst [vmem:[#allocation153_spill] sm:$0xff] %v25026_v48  ;;  %v25031_v32 = vld [vmem:[%s27446_s1 + $0xe00] sm:$0xff]  ;;  %v25036_v21 = vld [vmem:[%s27446_s1 + $0xe08] sm:$0xff] }
 0x7b0   :  { %28333 = vst [vmem:[#allocation154_spill] sm:$0xff] %v25031_v32  ;;  %28334 = vst [vmem:[#allocation155_spill] sm:$0xff] %v25036_v21  ;;  %v25041_v24 = vld [vmem:[%s27446_s1 + $0xe10] sm:$0xff]  ;;  %v25046_v5 = vld [vmem:[%s27446_s1 + $0xe18] sm:$0xff] }
 0x7b1   :  { %28335 = vst [vmem:[#allocation156_spill] sm:$0xff] %v25041_v24  ;;  %28336 = vst [vmem:[#allocation157_spill] sm:$0xff] %v25046_v5  ;;  %v25051_v30 = vld [vmem:[%s27446_s1 + $0xe20] sm:$0xff]  ;;  %v25056_v26 = vld [vmem:[%s27446_s1 + $0xe28] sm:$0xff] }
 0x7b2   :  { %28337 = vst [vmem:[#allocation158_spill] sm:$0xff] %v25051_v30  ;;  %28338 = vst [vmem:[#allocation159_spill] sm:$0xff] %v25056_v26  ;;  %v25061_v50 = vld [vmem:[%s27446_s1 + $0xe30] sm:$0xff]  ;;  %v25066_v40 = vld [vmem:[%s27446_s1 + $0xe38] sm:$0xff] }
 0x7b3   :  { %28339 = vst [vmem:[#allocation160_spill] sm:$0xff] %v25061_v50  ;;  %28340 = vst [vmem:[#allocation161_spill] sm:$0xff] %v25066_v40  ;;  %v25071_v27 = vld [vmem:[%s27446_s1 + $0xe40] sm:$0xff]  ;;  %v25076_v9 = vld [vmem:[%s27446_s1 + $0xe48] sm:$0xff] }
 0x7b4   :  { %28341 = vst [vmem:[#allocation162_spill] sm:$0xff] %v25071_v27  ;;  %28342 = vst [vmem:[#allocation163_spill] sm:$0xff] %v25076_v9  ;;  %v25081_v29 = vld [vmem:[%s27446_s1 + $0xe50] sm:$0xff]  ;;  %v25086_v7 = vld [vmem:[%s27446_s1 + $0xe58] sm:$0xff] }
 0x7b5   :  { %28343 = vst [vmem:[#allocation164_spill] sm:$0xff] %v25081_v29  ;;  %28344 = vst [vmem:[#allocation165_spill] sm:$0xff] %v25086_v7  ;;  %v25091_v28 = vld [vmem:[%s27446_s1 + $0xe60] sm:$0xff]  ;;  %v25096_v31 = vld [vmem:[%s27446_s1 + $0xe68] sm:$0xff] }
 0x7b6   :  { %28345 = vst [vmem:[#allocation166_spill] sm:$0xff] %v25091_v28  ;;  %28346 = vst [vmem:[#allocation167_spill] sm:$0xff] %v25096_v31  ;;  %v25101_v3 = vld [vmem:[%s27446_s1 + $0xe70] sm:$0xff]  ;;  %v25106_v8 = vld [vmem:[%s27446_s1 + $0xe78] sm:$0xff] }
 0x7b7   :  { %28347 = vst [vmem:[#allocation168_spill] sm:$0xff] %v25101_v3  ;;  %28348 = vst [vmem:[#allocation169_spill] sm:$0xff] %v25106_v8  ;;  %v25111_v12 = vld [vmem:[%s27446_s1 + $0xe80] sm:$0xff]  ;;  %v25116_v22 = vld [vmem:[%s27446_s1 + $0xe88] sm:$0xff] }
 0x7b8   :  { %28349 = vst [vmem:[#allocation170_spill] sm:$0xff] %v25111_v12  ;;  %28350 = vst [vmem:[#allocation171_spill] sm:$0xff] %v25116_v22  ;;  %v25121_v14 = vld [vmem:[%s27446_s1 + $0xe90] sm:$0xff]  ;;  %v25126_v33 = vld [vmem:[%s27446_s1 + $0xe98] sm:$0xff] }
 0x7b9   :  { %28351 = vst [vmem:[#allocation172_spill] sm:$0xff] %v25121_v14  ;;  %28352 = vst [vmem:[#allocation173_spill] sm:$0xff] %v25126_v33  ;;  %v25131_v37 = vld [vmem:[%s27446_s1 + $0xea0] sm:$0xff]  ;;  %v25136_v15 = vld [vmem:[%s27446_s1 + $0xea8] sm:$0xff] }
 0x7ba   :  { %28353 = vst [vmem:[#allocation174_spill] sm:$0xff] %v25131_v37  ;;  %28354 = vst [vmem:[#allocation175_spill] sm:$0xff] %v25136_v15  ;;  %v25141_v59 = vld [vmem:[%s27446_s1 + $0xeb0] sm:$0xff]  ;;  %v25146_v1 = vld [vmem:[%s27446_s1 + $0xeb8] sm:$0xff] }
 0x7bb   :  { %28355 = vst [vmem:[#allocation176_spill] sm:$0xff] %v25141_v59  ;;  %28356 = vst [vmem:[#allocation177_spill] sm:$0xff] %v25146_v1  ;;  %v25151_v25 = vld [vmem:[%s27446_s1 + $0xec0] sm:$0xff]  ;;  %v25156_v39 = vld [vmem:[%s27446_s1 + $0xec8] sm:$0xff] }
 0x7bc   :  { %28357 = vst [vmem:[#allocation178_spill] sm:$0xff] %v25151_v25  ;;  %28358 = vst [vmem:[#allocation179_spill] sm:$0xff] %v25156_v39  ;;  %v25161_v2 = vld [vmem:[%s27446_s1 + $0xed0] sm:$0xff]  ;;  %v25166_v35 = vld [vmem:[%s27446_s1 + $0xed8] sm:$0xff] }
 0x7bd   :  { %28359 = vst [vmem:[#allocation180_spill] sm:$0xff] %v25161_v2  ;;  %28360 = vst [vmem:[#allocation181_spill] sm:$0xff] %v25166_v35  ;;  %v25171_v49 = vld [vmem:[%s27446_s1 + $0xee0] sm:$0xff]  ;;  %v25176_v38 = vld [vmem:[%s27446_s1 + $0xee8] sm:$0xff] }
 0x7be   :  { %28361 = vst [vmem:[#allocation182_spill] sm:$0xff] %v25171_v49  ;;  %28362 = vst [vmem:[#allocation183_spill] sm:$0xff] %v25176_v38  ;;  %v25181_v11 = vld [vmem:[%s27446_s1 + $0xef0] sm:$0xff]  ;;  %v25186_v53 = vld [vmem:[%s27446_s1 + $0xef8] sm:$0xff] }
 0x7bf   :  { %28363 = vst [vmem:[#allocation184_spill] sm:$0xff] %v25181_v11  ;;  %28364 = vst [vmem:[#allocation185_spill] sm:$0xff] %v25186_v53  ;;  %v25191_v19 = vld [vmem:[%s27446_s1 + $0xf00] sm:$0xff]  ;;  %v25196_v16 = vld [vmem:[%s27446_s1 + $0xf08] sm:$0xff] }
 0x7c0   :  { %28365 = vst [vmem:[#allocation186_spill] sm:$0xff] %v25191_v19  ;;  %28366 = vst [vmem:[#allocation187_spill] sm:$0xff] %v25196_v16  ;;  %v25201_v60 = vld [vmem:[%s27446_s1 + $0xf10] sm:$0xff]  ;;  %v25206_v51 = vld [vmem:[%s27446_s1 + $0xf18] sm:$0xff] }
 0x7c1   :  { %28367 = vst [vmem:[#allocation188_spill] sm:$0xff] %v25201_v60  ;;  %28368 = vst [vmem:[#allocation189_spill] sm:$0xff] %v25206_v51  ;;  %v25211_v17 = vld [vmem:[%s27446_s1 + $0xf20] sm:$0xff]  ;;  %v25216_v45 = vld [vmem:[%s27446_s1 + $0xf28] sm:$0xff] }
 0x7c2   :  { %28369 = vst [vmem:[#allocation190_spill] sm:$0xff] %v25211_v17  ;;  %28370 = vst [vmem:[#allocation191_spill] sm:$0xff] %v25216_v45  ;;  %v25221_v47 = vld [vmem:[%s27446_s1 + $0xf30] sm:$0xff]  ;;  %v25226_v20 = vld [vmem:[%s27446_s1 + $0xf38] sm:$0xff] }
 0x7c3   :  { %28371 = vst [vmem:[#allocation192_spill] sm:$0xff] %v25221_v47  ;;  %28372 = vst [vmem:[#allocation193_spill] sm:$0xff] %v25226_v20  ;;  %v25231_v63 = vld [vmem:[%s27446_s1 + $0xf40] sm:$0xff]  ;;  %v25236_v10 = vld [vmem:[%s27446_s1 + $0xf48] sm:$0xff] }
 0x7c4   :  { %28373 = vst [vmem:[#allocation194_spill] sm:$0xff] %v25231_v63  ;;  %28374 = vst [vmem:[#allocation195_spill] sm:$0xff] %v25236_v10  ;;  %v25241_v36 = vld [vmem:[%s27446_s1 + $0xf50] sm:$0xff]  ;;  %v25246_v18 = vld [vmem:[%s27446_s1 + $0xf58] sm:$0xff] }
 0x7c5   :  { %28375 = vst [vmem:[#allocation196_spill] sm:$0xff] %v25241_v36  ;;  %28376 = vst [vmem:[#allocation197_spill] sm:$0xff] %v25246_v18  ;;  %v25251_v13 = vld [vmem:[%s27446_s1 + $0xf60] sm:$0xff]  ;;  %v25256_v43 = vld [vmem:[%s27446_s1 + $0xf68] sm:$0xff] }
 0x7c6   :  { %28377 = vst [vmem:[#allocation198_spill] sm:$0xff] %v25251_v13  ;;  %28378 = vst [vmem:[#allocation199_spill] sm:$0xff] %v25256_v43  ;;  %v25261_v62 = vld [vmem:[%s27446_s1 + $0xf70] sm:$0xff]  ;;  %v25266_v58 = vld [vmem:[%s27446_s1 + $0xf78] sm:$0xff] }
 0x7c7   :  { %28379 = vst [vmem:[#allocation200_spill] sm:$0xff] %v25261_v62  ;;  %28380 = vst [vmem:[#allocation201_spill] sm:$0xff] %v25266_v58  ;;  %v25271_v18 = vld [vmem:[%s27446_s1 + $0xf80] sm:$0xff]  ;;  %v25276_v13 = vld [vmem:[%s27446_s1 + $0xf88] sm:$0xff] }
 0x7c8   :  { %28381 = vst [vmem:[#allocation202_spill] sm:$0xff] %v25271_v18  ;;  %28382 = vst [vmem:[#allocation121_spill] sm:$0xff] %v25276_v13  ;;  %v25281_v43 = vld [vmem:[%s27446_s1 + $0xf90] sm:$0xff]  ;;  %v25286_v62 = vld [vmem:[%s27446_s1 + $0xf98] sm:$0xff] }
 0x7c9   :  { %28383 = vst [vmem:[#allocation122_spill] sm:$0xff] %v25281_v43  ;;  %28384 = vst [vmem:[#allocation123_spill] sm:$0xff] %v25286_v62  ;;  %v25291_v58 = vld [vmem:[%s27446_s1 + $0xfa0] sm:$0xff]  ;;  %v25296_v18 = vld [vmem:[%s27446_s1 + $0xfa8] sm:$0xff] }
 0x7ca   :  { %28385 = vst [vmem:[#allocation124_spill] sm:$0xff] %v25291_v58  ;;  %28386 = vst [vmem:[#allocation125_spill] sm:$0xff] %v25296_v18  ;;  %v25301_v13 = vld [vmem:[%s27446_s1 + $0xfb0] sm:$0xff]  ;;  %v25306_v43 = vld [vmem:[%s27446_s1 + $0xfb8] sm:$0xff] }
 0x7cb   :  { %28387 = vst [vmem:[#allocation203_spill] sm:$0xff] %v25301_v13  ;;  %28388 = vst [vmem:[#allocation204_spill] sm:$0xff] %v25306_v43  ;;  %v25311_v62 = vld [vmem:[%s27446_s1 + $0xfc0] sm:$0xff]  ;;  %v25316_v58 = vld [vmem:[%s27446_s1 + $0xfc8] sm:$0xff] }
 0x7cc   :  { %28389 = vst [vmem:[#allocation126_spill] sm:$0xff] %v25311_v62  ;;  %28390 = vst [vmem:[#allocation127_spill] sm:$0xff] %v25316_v58  ;;  %v25321_v18 = vld [vmem:[%s27446_s1 + $0xfd0] sm:$0xff]  ;;  %v25326_v13 = vld [vmem:[%s27446_s1 + $0xfd8] sm:$0xff] }
 0x7cd   :  { %28391 = vst [vmem:[#allocation205_spill] sm:$0xff] %v25321_v18  ;;  %28392 = vst [vmem:[#allocation206_spill] sm:$0xff] %v25326_v13  ;;  %v25331_v43 = vld [vmem:[%s27446_s1 + $0xfe0] sm:$0xff]  ;;  %v25336_v62 = vld [vmem:[%s27446_s1 + $0xfe8] sm:$0xff] }
 0x7ce   :  { %28393 = vst [vmem:[#allocation128_spill] sm:$0xff] %v25331_v43  ;;  %28394 = vst [vmem:[#allocation129_spill] sm:$0xff] %v25336_v62  ;;  %v25341_v58 = vld [vmem:[%s27446_s1 + $0xff0] sm:$0xff]  ;;  %v25346_v18 = vld [vmem:[%s27446_s1 + $0xff8] sm:$0xff] }
 0x7cf   :  { %28395 = vst [vmem:[#allocation207_spill] sm:$0xff] %v25341_v58  ;;  %28396 = vst [vmem:[#allocation208_spill] sm:$0xff] %v25346_v18  ;;  %v25351_v13 = vld [vmem:[%s27446_s1 + $0x1000] sm:$0xff]  ;;  %v25356_v43 = vld [vmem:[%s27446_s1 + $0x1008] sm:$0xff] }
 0x7d0   :  { %28397 = vst [vmem:[#allocation130_spill] sm:$0xff] %v25351_v13  ;;  %28398 = vst [vmem:[#allocation131_spill] sm:$0xff] %v25356_v43  ;;  %v25361_v62 = vld [vmem:[%s27446_s1 + $0x1010] sm:$0xff]  ;;  %v25366_v58 = vld [vmem:[%s27446_s1 + $0x1018] sm:$0xff] }
 0x7d1   :  { %28399 = vst [vmem:[#allocation209_spill] sm:$0xff] %v25361_v62  ;;  %28400 = vst [vmem:[#allocation210_spill] sm:$0xff] %v25366_v58  ;;  %v25371_v18 = vld [vmem:[%s27446_s1 + $0x1020] sm:$0xff]  ;;  %v25376_v13 = vld [vmem:[%s27446_s1 + $0x1028] sm:$0xff] }
 0x7d2   :  { %28401 = vst [vmem:[#allocation132_spill] sm:$0xff] %v25371_v18  ;;  %28402 = vst [vmem:[#allocation133_spill] sm:$0xff] %v25376_v13  ;;  %v25381_v43 = vld [vmem:[%s27446_s1 + $0x1030] sm:$0xff]  ;;  %v25386_v62 = vld [vmem:[%s27446_s1 + $0x1038] sm:$0xff] }
 0x7d3   :  { %28403 = vst [vmem:[#allocation211_spill] sm:$0xff] %v25381_v43  ;;  %28404 = vst [vmem:[#allocation212_spill] sm:$0xff] %v25386_v62  ;;  %v25391_v58 = vld [vmem:[%s27446_s1 + $0x1040] sm:$0xff]  ;;  %v25396_v18 = vld [vmem:[%s27446_s1 + $0x1048] sm:$0xff] }
 0x7d4   :  { %28405 = vst [vmem:[#allocation213_spill] sm:$0xff] %v25391_v58  ;;  %28406 = vst [vmem:[#allocation214_spill] sm:$0xff] %v25396_v18  ;;  %v25401_v13 = vld [vmem:[%s27446_s1 + $0x1050] sm:$0xff]  ;;  %v25406_v43 = vld [vmem:[%s27446_s1 + $0x1058] sm:$0xff] }
 0x7d5   :  { %28407 = vst [vmem:[#allocation134_spill] sm:$0xff] %v25401_v13  ;;  %28408 = vst [vmem:[#allocation215_spill] sm:$0xff] %v25406_v43  ;;  %v25411_v62 = vld [vmem:[%s27446_s1 + $0x1060] sm:$0xff]  ;;  %v25416_v58 = vld [vmem:[%s27446_s1 + $0x1068] sm:$0xff] }
 0x7d6   :  { %28409 = vst [vmem:[#allocation216_spill] sm:$0xff] %v25411_v62  ;;  %28410 = vst [vmem:[#allocation135_spill] sm:$0xff] %v25416_v58  ;;  %v25421_v18 = vld [vmem:[%s27446_s1 + $0x1070] sm:$0xff]  ;;  %v25426_v13 = vld [vmem:[%s27446_s1 + $0x1078] sm:$0xff] }
 0x7d7   :  { %28411 = vst [vmem:[#allocation136_spill] sm:$0xff] %v25421_v18  ;;  %28412 = vst [vmem:[#allocation217_spill] sm:$0xff] %v25426_v13  ;;  %v25431_v43 = vld [vmem:[%s27446_s1 + $0x1080] sm:$0xff]  ;;  %v25436_v62 = vld [vmem:[%s27446_s1 + $0x1088] sm:$0xff] }
 0x7d8   :  { %28413 = vst [vmem:[#allocation218_spill] sm:$0xff] %v25431_v43  ;;  %28414 = vst [vmem:[#allocation105_spill] sm:$0xff] %v25436_v62  ;;  %v25441_v58 = vld [vmem:[%s27446_s1 + $0x1090] sm:$0xff]  ;;  %v25446_v18 = vld [vmem:[%s27446_s1 + $0x1098] sm:$0xff] }
 0x7d9   :  { %28415 = vst [vmem:[#allocation106_spill] sm:$0xff] %v25441_v58  ;;  %28416 = vst [vmem:[#allocation107_spill] sm:$0xff] %v25446_v18  ;;  %v25451_v13 = vld [vmem:[%s27446_s1 + $0x10a0] sm:$0xff]  ;;  %v25456_v43 = vld [vmem:[%s27446_s1 + $0x10a8] sm:$0xff] }
 0x7da   :  { %28417 = vst [vmem:[#allocation108_spill] sm:$0xff] %v25451_v13  ;;  %28418 = vst [vmem:[#allocation109_spill] sm:$0xff] %v25456_v43  ;;  %v25461_v62 = vld [vmem:[%s27446_s1 + $0x10b0] sm:$0xff]  ;;  %v25466_v58 = vld [vmem:[%s27446_s1 + $0x10b8] sm:$0xff] }
 0x7db   :  { %28419 = vst [vmem:[#allocation110_spill] sm:$0xff] %v25461_v62  ;;  %28420 = vst [vmem:[#allocation111_spill] sm:$0xff] %v25466_v58  ;;  %v25471_v18 = vld [vmem:[%s27446_s1 + $0x10c0] sm:$0xff]  ;;  %v25476_v13 = vld [vmem:[%s27446_s1 + $0x10c8] sm:$0xff] }
 0x7dc   :  { %28421 = vst [vmem:[#allocation112_spill] sm:$0xff] %v25471_v18  ;;  %28422 = vst [vmem:[#allocation113_spill] sm:$0xff] %v25476_v13  ;;  %v25481_v43 = vld [vmem:[%s27446_s1 + $0x10d0] sm:$0xff]  ;;  %v25486_v62 = vld [vmem:[%s27446_s1 + $0x10d8] sm:$0xff] }
 0x7dd   :  { %28423 = vst [vmem:[#allocation114_spill] sm:$0xff] %v25481_v43  ;;  %28424 = vst [vmem:[#allocation115_spill] sm:$0xff] %v25486_v62  ;;  %v25491_v58 = vld [vmem:[%s27446_s1 + $0x10e0] sm:$0xff]  ;;  %v25496_v18 = vld [vmem:[%s27446_s1 + $0x10e8] sm:$0xff] }
 0x7de   :  { %28425 = vst [vmem:[#allocation116_spill] sm:$0xff] %v25491_v58  ;;  %28426 = vst [vmem:[#allocation219_spill] sm:$0xff] %v25496_v18  ;;  %v25501_v13 = vld [vmem:[%s27446_s1 + $0x10f0] sm:$0xff]  ;;  %v25506_v43 = vld [vmem:[%s27446_s1 + $0x10f8] sm:$0xff] }
 0x7df   :  { %28427 = vst [vmem:[#allocation220_spill] sm:$0xff] %v25501_v13  ;;  %28428 = vst [vmem:[#allocation221_spill] sm:$0xff] %v25506_v43  ;;  %v25511_v62 = vld [vmem:[%s27446_s1 + $0x1100] sm:$0xff]  ;;  %v25516_v58 = vld [vmem:[%s27446_s1 + $0x1108] sm:$0xff] }
 0x7e0   :  { %28429 = vst [vmem:[#allocation222_spill] sm:$0xff] %v25511_v62  ;;  %28430 = vst [vmem:[#allocation223_spill] sm:$0xff] %v25516_v58  ;;  %v25521_v18 = vld [vmem:[%s27446_s1 + $0x1110] sm:$0xff]  ;;  %v25526_v13 = vld [vmem:[%s27446_s1 + $0x1118] sm:$0xff] }
 0x7e1   :  { %28431 = vst [vmem:[#allocation224_spill] sm:$0xff] %v25521_v18  ;;  %28432 = vst [vmem:[#allocation225_spill] sm:$0xff] %v25526_v13  ;;  %v25531_v43 = vld [vmem:[%s27446_s1 + $0x1120] sm:$0xff]  ;;  %v25536_v62 = vld [vmem:[%s27446_s1 + $0x1128] sm:$0xff] }
 0x7e2   :  { %28433 = vst [vmem:[#allocation226_spill] sm:$0xff] %v25531_v43  ;;  %28434 = vst [vmem:[#allocation227_spill] sm:$0xff] %v25536_v62  ;;  %v25541_v58 = vld [vmem:[%s27446_s1 + $0x1130] sm:$0xff]  ;;  %v25546_v18 = vld [vmem:[%s27446_s1 + $0x1138] sm:$0xff] }
 0x7e3   :  { %28435 = vst [vmem:[#allocation228_spill] sm:$0xff] %v25541_v58  ;;  %28436 = vst [vmem:[#allocation229_spill] sm:$0xff] %v25546_v18  ;;  %v25551_v13 = vld [vmem:[%s27446_s1 + $0x1140] sm:$0xff]  ;;  %v25556_v43 = vld [vmem:[%s27446_s1 + $0x1148] sm:$0xff] }
 0x7e4   :  { %28437 = vst [vmem:[#allocation230_spill] sm:$0xff] %v25551_v13  ;;  %28438 = vst [vmem:[#allocation231_spill] sm:$0xff] %v25556_v43  ;;  %v25561_v62 = vld [vmem:[%s27446_s1 + $0x1150] sm:$0xff]  ;;  %v25566_v58 = vld [vmem:[%s27446_s1 + $0x1158] sm:$0xff] }
 0x7e5   :  { %28439 = vst [vmem:[#allocation232_spill] sm:$0xff] %v25561_v62  ;;  %28440 = vst [vmem:[#allocation233_spill] sm:$0xff] %v25566_v58  ;;  %v25571_v18 = vld [vmem:[%s27446_s1 + $0x1160] sm:$0xff]  ;;  %v25576_v13 = vld [vmem:[%s27446_s1 + $0x1168] sm:$0xff] }
 0x7e6   :  { %28441 = vst [vmem:[#allocation234_spill] sm:$0xff] %v25571_v18  ;;  %28442 = vst [vmem:[#allocation235_spill] sm:$0xff] %v25576_v13  ;;  %v25581_v43 = vld [vmem:[%s27446_s1 + $0x1170] sm:$0xff]  ;;  %v25586_v62 = vld [vmem:[%s27446_s1 + $0x1178] sm:$0xff] }
 0x7e7   :  { %28443 = vst [vmem:[#allocation236_spill] sm:$0xff] %v25581_v43  ;;  %28444 = vst [vmem:[#allocation237_spill] sm:$0xff] %v25586_v62  ;;  %v25591_v58 = vld [vmem:[%s27446_s1 + $0x1180] sm:$0xff]  ;;  %v25596_v18 = vld [vmem:[%s27446_s1 + $0x1188] sm:$0xff] }
 0x7e8   :  { %28445 = vst [vmem:[#allocation238_spill] sm:$0xff] %v25591_v58  ;;  %28446 = vst [vmem:[#allocation239_spill] sm:$0xff] %v25596_v18  ;;  %v25601_v13 = vld [vmem:[%s27446_s1 + $0x1190] sm:$0xff]  ;;  %v25606_v43 = vld [vmem:[%s27446_s1 + $0x1198] sm:$0xff] }
 0x7e9   :  { %28447 = vst [vmem:[#allocation240_spill] sm:$0xff] %v25601_v13  ;;  %28448 = vst [vmem:[#allocation241_spill] sm:$0xff] %v25606_v43  ;;  %v25611_v62 = vld [vmem:[%s27446_s1 + $0x11a0] sm:$0xff]  ;;  %v25616_v58 = vld [vmem:[%s27446_s1 + $0x11a8] sm:$0xff] }
 0x7ea   :  { %28449 = vst [vmem:[#allocation242_spill] sm:$0xff] %v25611_v62  ;;  %28450 = vst [vmem:[#allocation243_spill] sm:$0xff] %v25616_v58  ;;  %v25621_v18 = vld [vmem:[%s27446_s1 + $0x11b0] sm:$0xff]  ;;  %v25626_v13 = vld [vmem:[%s27446_s1 + $0x11b8] sm:$0xff] }
 0x7eb   :  { %28451 = vst [vmem:[#allocation244_spill] sm:$0xff] %v25621_v18  ;;  %28452 = vst [vmem:[#allocation245_spill] sm:$0xff] %v25626_v13  ;;  %v25631_v43 = vld [vmem:[%s27446_s1 + $0x11c0] sm:$0xff]  ;;  %v25636_v62 = vld [vmem:[%s27446_s1 + $0x11c8] sm:$0xff] }
 0x7ec   :  { %28453 = vst [vmem:[#allocation246_spill] sm:$0xff] %v25631_v43  ;;  %28454 = vst [vmem:[#allocation247_spill] sm:$0xff] %v25636_v62  ;;  %v25641_v58 = vld [vmem:[%s27446_s1 + $0x11d0] sm:$0xff]  ;;  %v25646_v18 = vld [vmem:[%s27446_s1 + $0x11d8] sm:$0xff] }
 0x7ed   :  { %28455 = vst [vmem:[#allocation248_spill] sm:$0xff] %v25641_v58  ;;  %28456 = vst [vmem:[#allocation117_spill] sm:$0xff] %v25646_v18  ;;  %v25651_v13 = vld [vmem:[%s27446_s1 + $0x11e0] sm:$0xff]  ;;  %v25656_v43 = vld [vmem:[%s27446_s1 + $0x11e8] sm:$0xff] }
 0x7ee   :  { %28457 = vst [vmem:[#allocation118_spill] sm:$0xff] %v25651_v13  ;;  %28458 = vst [vmem:[#allocation119_spill] sm:$0xff] %v25656_v43  ;;  %v25661_v62 = vld [vmem:[%s27446_s1 + $0x11f0] sm:$0xff]  ;;  %v25666_v58 = vld [vmem:[%s27446_s1 + $0x11f8] sm:$0xff] }
 0x7ef   :  { %28459 = vst [vmem:[#allocation120_spill] sm:$0xff] %v25661_v62  ;;  %28460 = vst [vmem:[#allocation137_spill] sm:$0xff] %v25666_v58 }
 0x7f0   :  { %7193 = vsyncadd [#allocation5 + $0x1], 18432  ;;  %v28461_v18 = vld [vmem:[#allocation44_spill] sm:$0xff]  ;;  %v28462_v36 = vld [vmem:[#allocation45_spill] sm:$0xff] }
 0x7f1   :  { %v19552_v10 = vpack.c.bf16 %v28462_v36, %v28461_v18  ;;  %v28463_v13 = vld [vmem:[#allocation46_spill] sm:$0xff]  ;;  %v28464_v63 = vld [vmem:[#allocation47_spill] sm:$0xff]  ;;  %v28465_v43 = vld [vmem:[#allocation48_spill] sm:$0xff] }
 0x7f2   :  { %v19556_v20 = vpack.c.bf16 %v28464_v63, %v28463_v13  ;;  %v7243_v47 = vld [vmem:[#allocation2 + $0x88] sm:$0xff]  ;;  %v28466_v45 = vld [vmem:[#allocation49_spill] sm:$0xff]  ;;  %v28467_v17 = vld [vmem:[#allocation50_spill] sm:$0xff] }
 0x7f3   :  { %17408 = vmatprep.mubr.f32.mxu0 %v7243_v47  ;;  %19553 = vmatprep.subr.bf16.mxu0 %v19552_v10  ;;  %v19560_v62 = vpack.c.bf16 %v28466_v45, %v28465_v43  ;;  %v28468_v51 = vld [vmem:[#allocation51_spill] sm:$0xff]  ;;  %v28469_v60 = vld [vmem:[#allocation52_spill] sm:$0xff]  ;;  %v28470_v36 = vld [vmem:[#allocation53_spill] sm:$0xff] }
 0x7f4   :  { %19555 = vmatpush3.bf16.msra.mxu0 %v19552_v10  ;;  %v19564_v58 = vpack.c.bf16 %v28468_v51, %v28467_v17  ;;  %v19568_v18 = vpack.c.bf16 %v28470_v36, %v28469_v60  ;;  %v28471_v63 = vld [vmem:[#allocation54_spill] sm:$0xff]  ;;  %v28472_v47 = vld [vmem:[#allocation55_spill] sm:$0xff]  ;;  %v28473_v10 = vld [vmem:[#allocation56_spill] sm:$0xff] }
 0x7f5   :  { %19557 = vmatprep.subr.bf16.mxu0 %v19556_v20  ;;  %v19572_v13 = vpack.c.bf16 %v28472_v47, %v28471_v63  ;;  %v28474_v16 = vld [vmem:[#allocation57_spill] sm:$0xff]  ;;  %v28477_v17 = vld [vmem:[#allocation28_spill] sm:$0xff]  ;;  %v28479_v63 = vld [vmem:[#allocation30_spill] sm:$0xff] }
 0x7f6   :  { %v19576_v45 = vpack.c.bf16 %v28474_v16, %v28473_v10  ;;  %v28476_v43 = vld [vmem:[#allocation249_spill] sm:$0xff]  ;;  %v7245_v36 = vld [vmem:[#allocation2 + $0xa8] sm:$0xff]  ;;  %v28497_v41 = vld [vmem:[#allocation254_spill] sm:$0xff] }
 0x7f7   :  { %v7246_v16 = vld [vmem:[#allocation2 + $0xb0] sm:$0xff]  ;;  %v25749_v11 = vld [vmem:[#allocation2 + $0x208] sm:$0xff]  ;;  %v28511_v9 = vld [vmem:[#allocation262_spill] sm:$0xff] }
 0x7f8   :  { %19559 = vmatpush3.bf16.msra.mxu0 %v19556_v20  ;;  %v28475_v20 = vld [vmem:[#allocation58_spill] sm:$0xff]  ;;  %v28481_v10 = vld [vmem:[#allocation32_spill] sm:$0xff]  ;;  %v28496_v14 = vld [vmem:[#allocation253_spill] sm:$0xff] }
 0x7f9   :  { %19561 = vmatprep.subr.bf16.mxu0 %v19560_v62  ;;  %v19580_v51 = vpack.c.bf16 %v28476_v43, %v28475_v20  ;;  %v28482_v20 = vld [vmem:[#allocation33_spill] sm:$0xff]  ;;  %v25755_v49 = vld [vmem:[#allocation2 + $0x228] sm:$0xff]  ;;  %v28514_v30 = vld [vmem:[#allocation66_spill] sm:$0xff] }
 0x7fa   :  { %v7248_v43 = vld [vmem:[#allocation2 + $0xd0] sm:$0xff]  ;;  %v25761_v2 = vld [vmem:[#allocation2 + $0x248] sm:$0xff] }
 0x7fb   :  { %v25753_v38 = vld [vmem:[#allocation2 + $0x210] sm:$0xff]  ;;  %v25767_v25 = vld [vmem:[#allocation2 + $0x268] sm:$0xff] }
 0x7fc   :  { %19563 = vmatpush3.bf16.msra.mxu0 %v19560_v62  ;;  %v28478_v62 = vld [vmem:[#allocation29_spill] sm:$0xff]  ;;  %v7195_v59 = vld [vmem:[#allocation2 + $0x84] sm:$0xff] }
 0x7fd   :  { %19565 = vmatprep.subr.bf16.mxu0 %v19564_v58  ;;  %v19584_v60 = vpack.c.bf16 %v28478_v62, %v28477_v17  ;;  %v28483_v17 = vld [vmem:[#allocation34_spill] sm:$0xff]  ;;  %v28484_v62 = vld [vmem:[#allocation35_spill] sm:$0xff]  ;;  %v25759_v35 = vld [vmem:[#allocation2 + $0x230] sm:$0xff] }
 0x7fe   :  { %v19596_v19 = vpack.c.bf16 %v28484_v62, %v28483_v17  ;;  %v28490_v17 = vld [vmem:[#allocation41_spill] sm:$0xff]  ;;  %v7197_v37 = vld [vmem:[#allocation2 + $0xa4] sm:$0xff] }
 0x7ff   :  { %v25765_v39 = vld [vmem:[#allocation2 + $0x250] sm:$0xff]  ;;  %v7199_v48 = vld [vmem:[#allocation2 + $0xc4] sm:$0xff] }
 0x800   :  { %19567 = vmatpush3.bf16.msra.mxu0 %v19564_v58  ;;  %v7244_v58 = vld [vmem:[#allocation2 + $0x90] sm:$0xff]  ;;  %v28498_v56 = vld [vmem:[#allocation255_spill] sm:$0xff] }
 0x801   :  { %19569 = vmatprep.subr.bf16.mxu0 %v19568_v18  ;;  %v25771_v1 = vld [vmem:[#allocation2 + $0x270] sm:$0xff]  ;;  %v19624_v42 = vpack.c.bf16 %v28498_v56, %v28497_v41  ;;  %v7201_v44 = vld [vmem:[#allocation2 + $0xe4] sm:$0xff]  ;;  %v28501_v56 = vld [vmem:[#allocation258_spill] sm:$0xff] }
 0x802   :  { %v25774_v15 = vld [vmem:[#allocation2 + $0x8c] sm:$0xff]  ;;  %v28502_v41 = vld [vmem:[#allocation259_spill] sm:$0xff]  ;;  %v7742_v29 = vld [vmem:[#allocation2 + $0x94] sm:$0xff] }
 0x803   :  { %v28495_v33 = vld [vmem:[#allocation252_spill] sm:$0xff]  ;;  %v28506_v23 = vld [vmem:[#allocation61_spill] sm:$0xff]  ;;  %v28512_v27 = vld [vmem:[#allocation263_spill] sm:$0xff] }
 0x804   :  { %19571 = vmatpush3.bf16.msra.mxu0 %v19568_v18  ;;  %v28480_v18 = vld [vmem:[#allocation31_spill] sm:$0xff]  ;;  %v19620_v22 = vpack.c.bf16 %v28496_v14, %v28495_v33  ;;  %v25779_v12 = vld [vmem:[#allocation2 + $0xac] sm:$0xff]  ;;  %v19652_v40 = vpack.c.bf16 %v28512_v27, %v28511_v9  ;;  %v7744_v50 = vld [vmem:[#allocation2 + $0xb4] sm:$0xff] }
 0x805   :  { %19573 = vmatprep.subr.bf16.mxu0 %v19572_v13  ;;  %v19588_v47 = vpack.c.bf16 %v28480_v18, %v28479_v63  ;;  %v28486_v63 = vld [vmem:[#allocation37_spill] sm:$0xff]  ;;  %v28499_v14 = vld [vmem:[#allocation256_spill] sm:$0xff]  ;;  %v28517_v27 = vld [vmem:[#allocation67_spill] sm:$0xff] }
 0x806   :  { %v28500_v33 = vld [vmem:[#allocation257_spill] sm:$0xff]  ;;  %v28510_v55 = vld [vmem:[#allocation64_spill] sm:$0xff] }
 0x807   :  { %v19628_v61 = vpack.c.bf16 %v28500_v33, %v28499_v14  ;;  %v25799_v14 = vld [vmem:[#allocation2 + $0x124] sm:$0xff]  ;;  %v28508_v54 = vld [vmem:[#allocation261_spill] sm:$0xff] }
 0x808   :  { %19575 = vmatpush3.bf16.msra.mxu0 %v19572_v13  ;;  %v7247_v13 = vld [vmem:[#allocation2 + $0xc8] sm:$0xff]  ;;  %v28513_v26 = vld [vmem:[#allocation65_spill] sm:$0xff] }
 0x809   :  { %19577 = vmatprep.subr.bf16.mxu0 %v19576_v45  ;;  %v28504_v33 = vld [vmem:[#allocation59_spill] sm:$0xff]  ;;  %v25853_v0 = vld [vmem:[#allocation2 + $0x20c] sm:$0xff]  ;;  %v19656_v5 = vpack.c.bf16 %v28514_v30, %v28513_v26  ;;  %v7746_v24 = vld [vmem:[#allocation2 + $0xd4] sm:$0xff] }
 0x80a   :  { %v25849_v57 = vld [vmem:[#allocation2 + $0x204] sm:$0xff]  ;;  %v25859_v8 = vld [vmem:[#allocation2 + $0x22c] sm:$0xff]  ;;  %v25887_v30 = vld [vmem:[#allocation2 + $0x114] sm:$0xff] }
 0x80b   :  { %v25855_v6 = vld [vmem:[#allocation2 + $0x224] sm:$0xff]  ;;  %v25865_v31 = vld [vmem:[#allocation2 + $0x24c] sm:$0xff] }
 0x80c   :  { %19579 = vmatpush3.bf16.msra.mxu0 %v19576_v45  ;;  %v19592_v45 = vpack.c.bf16 %v28482_v20, %v28481_v10  ;;  %v28488_v10 = vld [vmem:[#allocation39_spill] sm:$0xff]  ;;  %v25871_v7 = vld [vmem:[#allocation2 + $0x26c] sm:$0xff] }
 0x80d   :  { %19581 = vmatprep.subr.bf16.mxu0 %v19580_v51  ;;  %v25861_v3 = vld [vmem:[#allocation2 + $0x244] sm:$0xff]  ;;  %v28516_v21 = vld [vmem:[#allocation265_spill] sm:$0xff] }
 0x80e   :  { %v25867_v28 = vld [vmem:[#allocation2 + $0x264] sm:$0xff] }
 0x80f   :  { %v28518_v9 = vld [vmem:[#allocation68_spill] sm:$0xff]  ;;  %v28519_v26 = vld [vmem:[#allocation19_spill] sm:$0xff] }
 0x810   :  { %19583 = vmatpush3.bf16.msra.mxu0 %v19580_v51  ;;  %v7249_v51 = vld [vmem:[#allocation2 + $0xe8] sm:$0xff] }
 0x811   :  { %19585 = vmatprep.subr.bf16.mxu0 %v19584_v60 }
 0x813   :  { %17409 = vmatmul.mubr.f32.vlgmr.msra.gmra.mrb[32].mxu0 %v7244_v58  ;;  %v7250_v58 = vld [vmem:[#allocation2 + $0xf0] sm:$0xff] }
 0x814   :  { %19587 = vmatpush3.bf16.msra.mxu0 %v19584_v60  ;;  %17411 = vmatprep.mubr.f32.mxu0 %v7245_v36  ;;  %v25692_v60 = vld [vmem:[#allocation2 + $0x108] sm:$0xff] }
 0x815   :  { %19589 = vmatprep.subr.bf16.mxu0 %v19588_v47  ;;  %v28485_v36 = vld [vmem:[#allocation36_spill] sm:$0xff] }
 0x816   :  { %v19600_v18 = vpack.c.bf16 %v28486_v63, %v28485_v36  ;;  %v28491_v36 = vld [vmem:[#allocation42_spill] sm:$0xff]  ;;  %v28492_v63 = vld [vmem:[#allocation43_spill] sm:$0xff] }
 0x817   :  { %17412 = vmatmul.mubr.f32.gmra.mrb[34].mxu0 %v7246_v16  ;;  %v25697_v16 = vld [vmem:[#allocation2 + $0x110] sm:$0xff] }
 0x818   :  { %17414 = vmatprep.mubr.f32.mxu0 %v7247_v13  ;;  %19591 = vmatpush3.bf16.msra.mxu0 %v19588_v47  ;;  %v25699_v47 = vld [vmem:[#allocation2 + $0x128] sm:$0xff]  ;;  %v28487_v13 = vld [vmem:[#allocation38_spill] sm:$0xff] }
 0x819   :  { %19593 = vmatprep.subr.bf16.mxu0 %v19592_v45  ;;  %v19604_v20 = vpack.c.bf16 %v28488_v10, %v28487_v13  ;;  %v19612_v13 = vpack.c.bf16 %v28492_v63, %v28491_v36  ;;  %v25723_v10 = vld [vmem:[#allocation2 + $0x188] sm:$0xff] }
 0x81a   :  { %v25731_v36 = vld [vmem:[#allocation2 + $0x1a8] sm:$0xff] }
 0x81b   :  { %17415 = vmatmul.mubr.f32.gmra.mrb[36].mxu0 %v7248_v43  ;;  %v25707_v43 = vld [vmem:[#allocation2 + $0x148] sm:$0xff] }
 0x81c   :  { %17417 = vmatprep.mubr.f32.mxu0 %v7249_v51  ;;  %19595 = vmatpush3.bf16.msra.mxu0 %v19592_v45  ;;  %v25705_v45 = vld [vmem:[#allocation2 + $0x130] sm:$0xff]  ;;  %v25737_v63 = vld [vmem:[#allocation2 + $0x1c8] sm:$0xff] }
 0x81d   :  { %19597 = vmatprep.subr.bf16.mxu0 %v19596_v19  ;;  %v28489_v51 = vld [vmem:[#allocation40_spill] sm:$0xff] }
 0x81e   :  { %v19608_v62 = vpack.c.bf16 %v28490_v17, %v28489_v51  ;;  %v28493_v51 = vld [vmem:[#allocation250_spill] sm:$0xff]  ;;  %v28494_v17 = vld [vmem:[#allocation251_spill] sm:$0xff] }
 0x81f   :  { %17418 = vmatmul.mubr.f32.gmra.mrb[38].mxu0 %v7250_v58  ;;  %v25715_v58 = vld [vmem:[#allocation2 + $0x168] sm:$0xff]  ;;  %v19616_v53 = vpack.c.bf16 %v28494_v17, %v28493_v51  ;;  %v25741_v51 = vld [vmem:[#allocation2 + $0x1d0] sm:$0xff] }
 0x820   :  { %17420 = vmatprep.mubr.f32.mxu0 %v25692_v60  ;;  %19599 = vmatpush3.bf16.msra.mxu0 %v19596_v19  ;;  %v25713_v19 = vld [vmem:[#allocation2 + $0x150] sm:$0xff]  ;;  %v25743_v17 = vld [vmem:[#allocation2 + $0x1e8] sm:$0xff] }
 0x821   :  { %19601 = vmatprep.subr.bf16.mxu0 %v19600_v18 }
 0x823   :  { %17421 = vmatmul.mubr.f32.gmra.mrb[40].mxu0 %v25697_v16 }
 0x824   :  { %17423 = vmatprep.mubr.f32.mxu0 %v25699_v47  ;;  %19603 = vmatpush3.bf16.msra.mxu0 %v19600_v18  ;;  %v25721_v18 = vld [vmem:[#allocation2 + $0x170] sm:$0xff] }
 0x825   :  { %19605 = vmatprep.subr.bf16.mxu0 %v19604_v20 }
 0x827   :  { %17424 = vmatmul.mubr.f32.gmra.mrb[42].mxu0 %v25705_v45 }
 0x828   :  { %17426 = vmatprep.mubr.f32.mxu0 %v25707_v43  ;;  %19607 = vmatpush3.bf16.msra.mxu0 %v19604_v20  ;;  %v25729_v20 = vld [vmem:[#allocation2 + $0x190] sm:$0xff] }
 0x829   :  { %19609 = vmatprep.subr.bf16.mxu0 %v19608_v62 }
 0x82b   :  { %17427 = vmatmul.mubr.f32.gmra.mrb[44].mxu0 %v25713_v19 }
 0x82c   :  { %17429 = vmatprep.mubr.f32.mxu0 %v25715_v58  ;;  %19611 = vmatpush3.bf16.msra.mxu0 %v19608_v62  ;;  %v25735_v62 = vld [vmem:[#allocation2 + $0x1b0] sm:$0xff] }
 0x82d   :  { %19613 = vmatprep.subr.bf16.mxu0 %v19612_v13 }
 0x82f   :  { %17430 = vmatmul.mubr.f32.gmra.mrb[46].mxu0 %v25721_v18 }
 0x830   :  { %17432 = vmatprep.mubr.f32.mxu0 %v25723_v10  ;;  %19615 = vmatpush3.bf16.msra.mxu0 %v19612_v13  ;;  %v25747_v13 = vld [vmem:[#allocation2 + $0x1f0] sm:$0xff] }
 0x831   :  { %19617 = vmatprep.subr.bf16.mxu0 %v19616_v53 }
 0x833   :  { %17433 = vmatmul.mubr.f32.gmra.mrb[48].mxu0 %v25729_v20 }
 0x834   :  { %17435 = vmatprep.mubr.f32.mxu0 %v25731_v36 }
 0x837   :  { %17436 = vmatmul.mubr.f32.gmra.mrb[50].mxu0 %v25735_v62 }
 0x838   :  { %17438 = vmatprep.mubr.f32.mxu0 %v25737_v63 }
 0x83b   :  { %17439 = vmatmul.mubr.f32.gmra.mrb[52].mxu0 %v25741_v51 }
 0x83c   :  { %17441 = vmatprep.mubr.f32.mxu0 %v25743_v17 }
 0x83f   :  { %17442 = vmatmul.mubr.f32.gmra.mrb[54].mxu0 %v25747_v13 }
 0x840   :  { %17444 = vmatprep.mubr.f32.mxu0 %v25749_v11 }
 0x843   :  { %17445 = vmatmul.mubr.f32.gmra.mrb[56].mxu0 %v25753_v38 }
 0x844   :  { %17447 = vmatprep.mubr.f32.mxu0 %v25755_v49 }
 0x847   :  { %17448 = vmatmul.mubr.f32.gmra.mrb[58].mxu0 %v25759_v35 }
 0x848   :  { %17450 = vmatprep.mubr.f32.mxu0 %v25761_v2 }
 0x84b   :  { %17451 = vmatmul.mubr.f32.gmra.mrb[60].mxu0 %v25765_v39 }
 0x84c   :  { %17453 = vmatprep.mubr.f32.mxu0 %v25767_v25 }
 0x84f   :  { %17454 = vmatmul.mubr.f32.gmra.mrb[62].mxu0 %v25771_v1 }
 0x850   :  { %17488 = vmatprep.mubr.f32.mxu0 %v7195_v59  ;;  %v25784_v59 = vld [vmem:[#allocation2 + $0xcc] sm:$0xff] }
 0x853   :  { %17489 = vmatmul.mubr.f32.vlgmr.msra.gmra.mrb[32].mxu0 %v25774_v15 }
 0x854   :  { %19619 = vmatpush3.bf16.msra.mxu0 %v19616_v53  ;;  %17491 = vmatprep.mubr.f32.mxu0 %v7197_v37  ;;  %v25789_v37 = vld [vmem:[#allocation2 + $0xec] sm:$0xff]  ;;  %v25791_v53 = vld [vmem:[#allocation2 + $0x104] sm:$0xff] }
 0x855   :  { %19621 = vmatprep.subr.bf16.mxu0 %v19620_v22 }
 0x857   :  { %17492 = vmatmul.mubr.f32.gmra.mrb[34].mxu0 %v25779_v12 }
 0x858   :  { %17494 = vmatprep.mubr.f32.mxu0 %v7199_v48  ;;  %19623 = vmatpush3.bf16.msra.mxu0 %v19620_v22  ;;  %v19632_v48 = vpack.c.bf16 %v28502_v41, %v28501_v56  ;;  %v25797_v22 = vld [vmem:[#allocation2 + $0x10c] sm:$0xff]  ;;  %v25807_v56 = vld [vmem:[#allocation2 + $0x144] sm:$0xff] }
 0x859   :  { %19625 = vmatprep.subr.bf16.mxu0 %v19624_v42  ;;  %v28505_v41 = vld [vmem:[#allocation60_spill] sm:$0xff] }
 0x85a   :  { %v19640_v52 = vpack.c.bf16 %v28506_v23, %v28505_v41  ;;  %v25823_v23 = vld [vmem:[#allocation2 + $0x184] sm:$0xff] }
 0x85b   :  { %17495 = vmatmul.mubr.f32.gmra.mrb[36].mxu0 %v25784_v59  ;;  %v28509_v41 = vld [vmem:[#allocation63_spill] sm:$0xff] }
 0x85c   :  { %17497 = vmatprep.mubr.f32.mxu0 %v7201_v44  ;;  %19627 = vmatpush3.bf16.msra.mxu0 %v19624_v42  ;;  %v28503_v44 = vld [vmem:[#allocation260_spill] sm:$0xff]  ;;  %v19648_v4 = vpack.c.bf16 %v28510_v55, %v28509_v41 }
 0x85d   :  { %19629 = vmatprep.subr.bf16.mxu0 %v19628_v61  ;;  %v19636_v46 = vpack.c.bf16 %v28504_v33, %v28503_v44  ;;  %v25805_v42 = vld [vmem:[#allocation2 + $0x12c] sm:$0xff]  ;;  %v25815_v44 = vld [vmem:[#allocation2 + $0x164] sm:$0xff]  ;;  %v28507_v33 = vld [vmem:[#allocation62_spill] sm:$0xff] }
 0x85e   :  { %v19644_v34 = vpack.c.bf16 %v28508_v54, %v28507_v33  ;;  %v25831_v54 = vld [vmem:[#allocation2 + $0x1a4] sm:$0xff]  ;;  %v25841_v55 = vld [vmem:[#allocation2 + $0x1cc] sm:$0xff] }
 0x85f   :  { %17498 = vmatmul.mubr.f32.gmra.mrb[38].mxu0 %v25789_v37  ;;  %v25837_v33 = vld [vmem:[#allocation2 + $0x1c4] sm:$0xff] }
 0x860   :  { %17500 = vmatprep.mubr.f32.mxu0 %v25791_v53  ;;  %19631 = vmatpush3.bf16.msra.mxu0 %v19628_v61  ;;  %v25813_v61 = vld [vmem:[#allocation2 + $0x14c] sm:$0xff]  ;;  %v25843_v41 = vld [vmem:[#allocation2 + $0x1e4] sm:$0xff] }
 0x861   :  { %19633 = vmatprep.subr.bf16.mxu0 %v19632_v48 }
 0x863   :  { %17501 = vmatmul.mubr.f32.gmra.mrb[40].mxu0 %v25797_v22 }
 0x864   :  { %17503 = vmatprep.mubr.f32.mxu0 %v25799_v14  ;;  %19635 = vmatpush3.bf16.msra.mxu0 %v19632_v48  ;;  %v25821_v48 = vld [vmem:[#allocation2 + $0x16c] sm:$0xff] }
 0x865   :  { %19637 = vmatprep.subr.bf16.mxu0 %v19636_v46 }
 0x867   :  { %17504 = vmatmul.mubr.f32.gmra.mrb[42].mxu0 %v25805_v42 }
 0x868   :  { %17506 = vmatprep.mubr.f32.mxu0 %v25807_v56  ;;  %19639 = vmatpush3.bf16.msra.mxu0 %v19636_v46  ;;  %v25829_v46 = vld [vmem:[#allocation2 + $0x18c] sm:$0xff] }
 0x869   :  { %19641 = vmatprep.subr.bf16.mxu0 %v19640_v52 }
 0x86b   :  { %17507 = vmatmul.mubr.f32.gmra.mrb[44].mxu0 %v25813_v61 }
 0x86c   :  { %17509 = vmatprep.mubr.f32.mxu0 %v25815_v44  ;;  %19643 = vmatpush3.bf16.msra.mxu0 %v19640_v52  ;;  %v25835_v52 = vld [vmem:[#allocation2 + $0x1ac] sm:$0xff] }
 0x86d   :  { %19645 = vmatprep.subr.bf16.mxu0 %v19644_v34 }
 0x86f   :  { %17510 = vmatmul.mubr.f32.gmra.mrb[46].mxu0 %v25821_v48 }
 0x870   :  { %17512 = vmatprep.mubr.f32.mxu0 %v25823_v23  ;;  %19647 = vmatpush3.bf16.msra.mxu0 %v19644_v34  ;;  %v25847_v34 = vld [vmem:[#allocation2 + $0x1ec] sm:$0xff] }
 0x871   :  { %19649 = vmatprep.subr.bf16.mxu0 %v19648_v4 }
 0x873   :  { %17513 = vmatmul.mubr.f32.gmra.mrb[48].mxu0 %v25829_v46 }
 0x874   :  { %17515 = vmatprep.mubr.f32.mxu0 %v25831_v54 }
 0x877   :  { %17516 = vmatmul.mubr.f32.gmra.mrb[50].mxu0 %v25835_v52 }
 0x878   :  { %17518 = vmatprep.mubr.f32.mxu0 %v25837_v33 }
 0x87b   :  { %17519 = vmatmul.mubr.f32.gmra.mrb[52].mxu0 %v25841_v55 }
 0x87c   :  { %17521 = vmatprep.mubr.f32.mxu0 %v25843_v41 }
 0x87f   :  { %17522 = vmatmul.mubr.f32.gmra.mrb[54].mxu0 %v25847_v34 }
 0x880   :  { %17524 = vmatprep.mubr.f32.mxu0 %v25849_v57 }
 0x883   :  { %17525 = vmatmul.mubr.f32.gmra.mrb[56].mxu0 %v25853_v0 }
 0x884   :  { %17527 = vmatprep.mubr.f32.mxu0 %v25855_v6 }
 0x887   :  { %17528 = vmatmul.mubr.f32.gmra.mrb[58].mxu0 %v25859_v8 }
 0x888   :  { %17530 = vmatprep.mubr.f32.mxu0 %v25861_v3 }
 0x88b   :  { %17531 = vmatmul.mubr.f32.gmra.mrb[60].mxu0 %v25865_v31 }
 0x88c   :  { %17533 = vmatprep.mubr.f32.mxu0 %v25867_v28 }
 0x88f   :  { %17534 = vmatmul.mubr.f32.gmra.mrb[62].mxu0 %v25871_v7 }
 0x890   :  { %17568 = vmatprep.mubr.f32.mxu0 %v25774_v15  ;;  %v28515_v15 = vld [vmem:[#allocation264_spill] sm:$0xff] }
 0x891   :  { %v19660_v32 = vpack.c.bf16 %v28516_v21, %v28515_v15  ;;  %v25893_v21 = vld [vmem:[#allocation2 + $0x134] sm:$0xff] }
 0x893   :  { %17569 = vmatmul.mubr.f32.vlgmr.msra.gmra.mrb[32].mxu0 %v7742_v29  ;;  %v19664_v29 = vpack.c.bf16 %v28518_v9, %v28517_v27  ;;  %v28525_v27 = vld [vmem:[#allocation21_spill] sm:$0xff] }
 0x894   :  { %19651 = vmatpush3.bf16.msra.mxu0 %v19648_v4  ;;  %17571 = vmatprep.mubr.f32.mxu0 %v25779_v12  ;;  %v7748_v4 = vld [vmem:[#allocation2 + $0xf4] sm:$0xff] }
 0x895   :  { %19653 = vmatprep.subr.bf16.mxu0 %v19652_v40  ;;  %v28526_v9 = vld [vmem:[#allocation73_spill] sm:$0xff] }
 0x897   :  { %17572 = vmatmul.mubr.f32.gmra.mrb[34].mxu0 %v7744_v50  ;;  %v28520_v50 = vld [vmem:[#allocation20_spill] sm:$0xff] }
 0x898   :  { %17574 = vmatprep.mubr.f32.mxu0 %v25784_v59  ;;  %19655 = vmatpush3.bf16.msra.mxu0 %v19652_v40  ;;  %v19668_v40 = vpack.c.bf16 %v28520_v50, %v28519_v26  ;;  %v28523_v59 = vld [vmem:[#allocation71_spill] sm:$0xff]  ;;  %v25911_v26 = vld [vmem:[#allocation2 + $0x194] sm:$0xff] }
 0x899   :  { %19657 = vmatprep.subr.bf16.mxu0 %v19656_v5  ;;  %v25915_v50 = vld [vmem:[#allocation2 + $0x1b4] sm:$0xff] }
 0x89b   :  { %17575 = vmatmul.mubr.f32.gmra.mrb[36].mxu0 %v7746_v24  ;;  %v28521_v24 = vld [vmem:[#allocation69_spill] sm:$0xff] }
 0x89c   :  { %17577 = vmatprep.mubr.f32.mxu0 %v25789_v37  ;;  %19659 = vmatpush3.bf16.msra.mxu0 %v19656_v5  ;;  %v28522_v5 = vld [vmem:[#allocation70_spill] sm:$0xff]  ;;  %v28524_v37 = vld [vmem:[#allocation72_spill] sm:$0xff] }
 0x89d   :  { %19661 = vmatprep.subr.bf16.mxu0 %v19660_v32  ;;  %v19672_v12 = vpack.c.bf16 %v28522_v5, %v28521_v24  ;;  %v19676_v15 = vpack.c.bf16 %v28524_v37, %v28523_v59  ;;  %v25923_v24 = vld [vmem:[#allocation2 + $0x1f4] sm:$0xff] }
 0x89e   :  { %28527 = vst [vmem:[#allocation44_spill] sm:$0xff] %v25923_v24  ;;  %v25927_v5 = vld [vmem:[#allocation2 + $0x214] sm:$0xff] }
 0x89f   :  { %17578 = vmatmul.mubr.f32.gmra.mrb[38].mxu0 %v7748_v4  ;;  %v25905_v4 = vld [vmem:[#allocation2 + $0x174] sm:$0xff]  ;;  %28528 = vst [vmem:[#allocation45_spill] sm:$0xff] %v25927_v5 }
 0x8a0   :  { %17580 = vmatprep.mubr.f32.mxu0 %v25797_v22  ;;  %19663 = vmatpush3.bf16.msra.mxu0 %v19660_v32  ;;  %v25899_v32 = vld [vmem:[#allocation2 + $0x154] sm:$0xff] }
 0x8a1   :  { %19665 = vmatprep.subr.bf16.mxu0 %v19664_v29  ;;  %v25935_v59 = vld [vmem:[#allocation2 + $0x254] sm:$0xff] }
 0x8a2   :  { %28530 = vst [vmem:[#allocation47_spill] sm:$0xff] %v25935_v59  ;;  %v25939_v37 = vld [vmem:[#allocation2 + $0x274] sm:$0xff] }
 0x8a3   :  { %17581 = vmatmul.mubr.f32.gmra.mrb[40].mxu0 %v25887_v30  ;;  %28531 = vst [vmem:[#allocation48_spill] sm:$0xff] %v25939_v37 }
 0x8a4   :  { %17583 = vmatprep.mubr.f32.mxu0 %v25805_v42  ;;  %19667 = vmatpush3.bf16.msra.mxu0 %v19664_v29  ;;  %v19680_v29 = vpack.c.bf16 %v28526_v9, %v28525_v27  ;;  %v28533_v27 = vld [vmem:[#allocation22_spill] sm:$0xff] }
 0x8a5   :  { %19669 = vmatprep.subr.bf16.mxu0 %v19668_v40 }
 0x8a7   :  { %17584 = vmatmul.mubr.f32.gmra.mrb[42].mxu0 %v25893_v21 }
 0x8a8   :  { %17586 = vmatprep.mubr.f32.mxu0 %v25813_v61  ;;  %19671 = vmatpush3.bf16.msra.mxu0 %v19668_v40  ;;  %v25919_v40 = vld [vmem:[#allocation2 + $0x1d4] sm:$0xff] }
 0x8a9   :  { %19673 = vmatprep.subr.bf16.mxu0 %v19672_v12 }
 0x8ab   :  { %17587 = vmatmul.mubr.f32.gmra.mrb[44].mxu0 %v25899_v32 }
 0x8ac   :  { %17589 = vmatprep.mubr.f32.mxu0 %v25821_v48  ;;  %19675 = vmatpush3.bf16.msra.mxu0 %v19672_v12  ;;  %v25931_v12 = vld [vmem:[#allocation2 + $0x234] sm:$0xff] }
 0x8ad   :  { %19677 = vmatprep.subr.bf16.mxu0 %v19676_v15  ;;  %28529 = vst [vmem:[#allocation46_spill] sm:$0xff] %v25931_v12 }
 0x8af   :  { %17590 = vmatmul.mubr.f32.gmra.mrb[46].mxu0 %v25905_v4 }
 0x8b0   :  { %17592 = vmatprep.mubr.f32.mxu0 %v25829_v46  ;;  %19679 = vmatpush3.bf16.msra.mxu0 %v19676_v15  ;;  %v28532_v15 = vld [vmem:[#allocation74_spill] sm:$0xff] }
 0x8b1   :  { %19681 = vmatprep.subr.bf16.mxu0 %v19680_v29  ;;  %v19684_v9 = vpack.c.bf16 %v28533_v27, %v28532_v15  ;;  %v28545_v27 = vld [vmem:[#allocation273_spill] sm:$0xff] }
 0x8b3   :  { %17593 = vmatmul.mubr.f32.gmra.mrb[48].mxu0 %v25911_v26 }
 0x8b4   :  { %17595 = vmatprep.mubr.f32.mxu0 %v25835_v52 }
 0x8b7   :  { %17596 = vmatmul.mubr.f32.gmra.mrb[50].mxu0 %v25915_v50 }
 0x8b8   :  { %17598 = vmatprep.mubr.f32.mxu0 %v25841_v55 }
 0x8bb   :  { %17599 = vmatmul.mubr.f32.gmra.mrb[52].mxu0 %v25919_v40 }
 0x8bc   :  { %17601 = vmatprep.mubr.f32.mxu0 %v25847_v34 }
 0x8bf   :  { %17602 = vmatmul.mubr.f32.gmra.mrb[54].mxu0 %v25923_v24 }
 0x8c0   :  { %17604 = vmatprep.mubr.f32.mxu0 %v25853_v0 }
 0x8c3   :  { %17605 = vmatmul.mubr.f32.gmra.mrb[56].mxu0 %v25927_v5  ;;  %v28535_v5 = vld [vmem:[#allocation24_spill] sm:$0xff] }
 0x8c4   :  { %17607 = vmatprep.mubr.f32.mxu0 %v25859_v8 }
 0x8c7   :  { %17608 = vmatmul.mubr.f32.gmra.mrb[58].mxu0 %v25931_v12  ;;  %v28534_v12 = vld [vmem:[#allocation23_spill] sm:$0xff] }
 0x8c8   :  { %17610 = vmatprep.mubr.f32.mxu0 %v25865_v31 }
 0x8cb   :  { %17611 = vmatmul.mubr.f32.gmra.mrb[60].mxu0 %v25935_v59  ;;  %v19688_v59 = vpack.c.bf16 %v28535_v5, %v28534_v12  ;;  %v28541_v5 = vld [vmem:[#allocation269_spill] sm:$0xff] }
 0x8cc   :  { %17613 = vmatprep.mubr.f32.mxu0 %v25871_v7 }
 0x8cf   :  { %17614 = vmatmul.mubr.f32.gmra.mrb[62].mxu0 %v25939_v37  ;;  %v28536_v37 = vld [vmem:[#allocation25_spill] sm:$0xff] }
 0x8d0   :  { %17648 = vmatprep.mubr.f32.mxu0 %v25791_v53  ;;  %v28537_v53 = vld [vmem:[#allocation26_spill] sm:$0xff] }
 0x8d1   :  { %v19692_v24 = vpack.c.bf16 %v28537_v53, %v28536_v37  ;;  %v28546_v53 = vld [vmem:[#allocation274_spill] sm:$0xff] }
 0x8d3   :  { %17649 = vmatmul.mubr.f32.vlgmr.msra.gmra.mrb[32].mxu0 %v25797_v22 }
 0x8d4   :  { %19683 = vmatpush3.bf16.msra.mxu0 %v19680_v29  ;;  %17651 = vmatprep.mubr.f32.mxu0 %v25799_v14  ;;  %v28538_v14 = vld [vmem:[#allocation266_spill] sm:$0xff]  ;;  %v28539_v29 = vld [vmem:[#allocation267_spill] sm:$0xff] }
 0x8d5   :  { %19685 = vmatprep.subr.bf16.mxu0 %v19684_v9  ;;  %v19696_v15 = vpack.c.bf16 %v28539_v29, %v28538_v14  ;;  %v28547_v14 = vld [vmem:[#allocation275_spill] sm:$0xff] }
 0x8d6   :  { %v19712_v29 = vpack.c.bf16 %v28547_v14, %v28546_v53  ;;  %v28554_v14 = vld [vmem:[#allocation77_spill] sm:$0xff] }
 0x8d7   :  { %17652 = vmatmul.mubr.f32.gmra.mrb[34].mxu0 %v25805_v42 }
 0x8d8   :  { %17654 = vmatprep.mubr.f32.mxu0 %v25807_v56  ;;  %19687 = vmatpush3.bf16.msra.mxu0 %v19684_v9  ;;  %v28540_v56 = vld [vmem:[#allocation268_spill] sm:$0xff] }
 0x8d9   :  { %19689 = vmatprep.subr.bf16.mxu0 %v19688_v59  ;;  %v19700_v12 = vpack.c.bf16 %v28541_v5, %v28540_v56  ;;  %v25985_v56 = vld [vmem:[#allocation2 + $0x28c] sm:$0xff]  ;;  %v25987_v5 = vld [vmem:[#allocation2 + $0x2a4] sm:$0xff] }
 0x8da   :  { %28549 = vst [vmem:[#allocation50_spill] sm:$0xff] %v25987_v5 }
 0x8db   :  { %17655 = vmatmul.mubr.f32.gmra.mrb[36].mxu0 %v25813_v61 }
 0x8dc   :  { %17657 = vmatprep.mubr.f32.mxu0 %v25815_v44  ;;  %19691 = vmatpush3.bf16.msra.mxu0 %v19688_v59  ;;  %v28542_v44 = vld [vmem:[#allocation270_spill] sm:$0xff]  ;;  %v28543_v59 = vld [vmem:[#allocation271_spill] sm:$0xff] }
 0x8dd   :  { %19693 = vmatprep.subr.bf16.mxu0 %v19692_v24  ;;  %v19704_v37 = vpack.c.bf16 %v28543_v59, %v28542_v44  ;;  %v25993_v44 = vld [vmem:[#allocation2 + $0x2c4] sm:$0xff]  ;;  %v25997_v59 = vld [vmem:[#allocation2 + $0x2cc] sm:$0xff] }
 0x8de   :  { %28550 = vst [vmem:[#allocation51_spill] sm:$0xff] %v25993_v44 }
 0x8df   :  { %17658 = vmatmul.mubr.f32.gmra.mrb[38].mxu0 %v25821_v48 }
 0x8e0   :  { %17660 = vmatprep.mubr.f32.mxu0 %v25823_v23  ;;  %19695 = vmatpush3.bf16.msra.mxu0 %v19692_v24  ;;  %v28544_v24 = vld [vmem:[#allocation272_spill] sm:$0xff] }
 0x8e1   :  { %19697 = vmatprep.subr.bf16.mxu0 %v19696_v15  ;;  %v19708_v9 = vpack.c.bf16 %v28545_v27, %v28544_v24  ;;  %v26003_v24 = vld [vmem:[#allocation2 + $0x2ec] sm:$0xff]  ;;  %v28552_v27 = vld [vmem:[#allocation75_spill] sm:$0xff] }
 0x8e3   :  { %17661 = vmatmul.mubr.f32.gmra.mrb[40].mxu0 %v25829_v46 }
 0x8e4   :  { %17663 = vmatprep.mubr.f32.mxu0 %v25831_v54  ;;  %19699 = vmatpush3.bf16.msra.mxu0 %v19696_v15  ;;  %v25981_v15 = vld [vmem:[#allocation2 + $0x284] sm:$0xff] }
 0x8e5   :  { %19701 = vmatprep.subr.bf16.mxu0 %v19700_v12  ;;  %28548 = vst [vmem:[#allocation49_spill] sm:$0xff] %v25981_v15 }
 0x8e7   :  { %17664 = vmatmul.mubr.f32.gmra.mrb[42].mxu0 %v25835_v52 }
 0x8e8   :  { %17666 = vmatprep.mubr.f32.mxu0 %v25837_v33  ;;  %19703 = vmatpush3.bf16.msra.mxu0 %v19700_v12  ;;  %v25991_v12 = vld [vmem:[#allocation2 + $0x2ac] sm:$0xff] }
 0x8e9   :  { %19705 = vmatprep.subr.bf16.mxu0 %v19704_v37 }
 0x8eb   :  { %17667 = vmatmul.mubr.f32.gmra.mrb[44].mxu0 %v25841_v55 }
 0x8ec   :  { %17669 = vmatprep.mubr.f32.mxu0 %v25843_v41  ;;  %19707 = vmatpush3.bf16.msra.mxu0 %v19704_v37  ;;  %v25999_v37 = vld [vmem:[#allocation2 + $0x2e4] sm:$0xff] }
 0x8ed   :  { %19709 = vmatprep.subr.bf16.mxu0 %v19708_v9  ;;  %28551 = vst [vmem:[#allocation52_spill] sm:$0xff] %v25999_v37 }
 0x8ef   :  { %17670 = vmatmul.mubr.f32.gmra.mrb[46].mxu0 %v25847_v34 }
 0x8f0   :  { %17672 = vmatprep.mubr.f32.mxu0 %v25849_v57  ;;  %19711 = vmatpush3.bf16.msra.mxu0 %v19708_v9  ;;  %v28553_v9 = vld [vmem:[#allocation76_spill] sm:$0xff] }
 0x8f1   :  { %19713 = vmatprep.subr.bf16.mxu0 %v19712_v29  ;;  %v19716_v53 = vpack.c.bf16 %v28553_v9, %v28552_v27  ;;  %v28572_v9 = vld [vmem:[#allocation95_spill] sm:$0xff] }
 0x8f3   :  { %17673 = vmatmul.mubr.f32.gmra.mrb[48].mxu0 %v25853_v0 }
 0x8f4   :  { %17675 = vmatprep.mubr.f32.mxu0 %v25855_v6 }
 0x8f7   :  { %17676 = vmatmul.mubr.f32.gmra.mrb[50].mxu0 %v25859_v8 }
 0x8f8   :  { %17678 = vmatprep.mubr.f32.mxu0 %v25861_v3 }
 0x8fb   :  { %17679 = vmatmul.mubr.f32.gmra.mrb[52].mxu0 %v25865_v31 }
 0x8fc   :  { %17681 = vmatprep.mubr.f32.mxu0 %v25867_v28 }
 0x8ff   :  { %17682 = vmatmul.mubr.f32.gmra.mrb[54].mxu0 %v25871_v7 }
 0x900   :  { %17684 = vmatprep.mubr.f32.mxu0 %v25981_v15 }
 0x903   :  { %17685 = vmatmul.mubr.f32.gmra.mrb[56].mxu0 %v25985_v56 }
 0x904   :  { %17687 = vmatprep.mubr.f32.mxu0 %v25987_v5 }
 0x907   :  { %17688 = vmatmul.mubr.f32.gmra.mrb[58].mxu0 %v25991_v12 }
 0x908   :  { %17690 = vmatprep.mubr.f32.mxu0 %v25993_v44  ;;  %v28555_v44 = vld [vmem:[#allocation78_spill] sm:$0xff] }
 0x909   :  { %v19720_v5 = vpack.c.bf16 %v28555_v44, %v28554_v14 }
 0x90b   :  { %17691 = vmatmul.mubr.f32.gmra.mrb[60].mxu0 %v25997_v59 }
 0x90c   :  { %17693 = vmatprep.mubr.f32.mxu0 %v25999_v37  ;;  %v28556_v37 = vld [vmem:[#allocation79_spill] sm:$0xff] }
 0x90f   :  { %17694 = vmatmul.mubr.f32.gmra.mrb[62].mxu0 %v26003_v24 }
 0x910   :  { %17728 = vmatprep.mubr.f32.mxu0 %v25692_v60  ;;  %v28557_v60 = vld [vmem:[#allocation80_spill] sm:$0xff] }
 0x911   :  { %v19724_v15 = vpack.c.bf16 %v28557_v60, %v28556_v37 }
 0x913   :  { %17729 = vmatmul.mubr.f32.vlgmr.msra.gmra.mrb[32].mxu0 %v25697_v16  ;;  %v28558_v16 = vld [vmem:[#allocation81_spill] sm:$0xff] }
 0x914   :  { %19715 = vmatpush3.bf16.msra.mxu0 %v19712_v29  ;;  %17731 = vmatprep.mubr.f32.mxu0 %v25699_v47  ;;  %v28559_v47 = vld [vmem:[#allocation82_spill] sm:$0xff] }
 0x915   :  { %19717 = vmatprep.subr.bf16.mxu0 %v19716_v53  ;;  %v19728_v29 = vpack.c.bf16 %v28559_v47, %v28558_v16  ;;  %v28581_v47 = vld [vmem:[#allocation104_spill] sm:$0xff] }
 0x917   :  { %17732 = vmatmul.mubr.f32.gmra.mrb[34].mxu0 %v25705_v45  ;;  %v28560_v45 = vld [vmem:[#allocation83_spill] sm:$0xff] }
 0x918   :  { %17734 = vmatprep.mubr.f32.mxu0 %v25707_v43  ;;  %19719 = vmatpush3.bf16.msra.mxu0 %v19716_v53  ;;  %v28561_v43 = vld [vmem:[#allocation84_spill] sm:$0xff] }
 0x919   :  { %19721 = vmatprep.subr.bf16.mxu0 %v19720_v5  ;;  %v19732_v44 = vpack.c.bf16 %v28561_v43, %v28560_v45  ;;  %v28582_v45 = vld [vmem:[#allocation27_spill] sm:$0xff]  ;;  %v28583_v43 = vld [vmem:[#allocation276_spill] sm:$0xff] }
 0x91b   :  { %17735 = vmatmul.mubr.f32.gmra.mrb[36].mxu0 %v25713_v19  ;;  %v28562_v19 = vld [vmem:[#allocation85_spill] sm:$0xff] }
 0x91c   :  { %17737 = vmatprep.mubr.f32.mxu0 %v25715_v58  ;;  %19723 = vmatpush3.bf16.msra.mxu0 %v19720_v5  ;;  %v28563_v58 = vld [vmem:[#allocation86_spill] sm:$0xff] }
 0x91d   :  { %19725 = vmatprep.subr.bf16.mxu0 %v19724_v15  ;;  %v19736_v5 = vpack.c.bf16 %v28563_v58, %v28562_v19  ;;  %v28584_v19 = vld [vmem:[#allocation44_spill] sm:$0xff]  ;;  %v28585_v58 = vld [vmem:[#allocation45_spill] sm:$0xff] }
 0x91f   :  { %17738 = vmatmul.mubr.f32.gmra.mrb[38].mxu0 %v25721_v18  ;;  %v28564_v18 = vld [vmem:[#allocation87_spill] sm:$0xff] }
 0x920   :  { %17740 = vmatprep.mubr.f32.mxu0 %v25723_v10  ;;  %19727 = vmatpush3.bf16.msra.mxu0 %v19724_v15  ;;  %v28565_v10 = vld [vmem:[#allocation88_spill] sm:$0xff] }
 0x921   :  { %19729 = vmatprep.subr.bf16.mxu0 %v19728_v29  ;;  %v19740_v15 = vpack.c.bf16 %v28565_v10, %v28564_v18  ;;  %v28587_v18 = vld [vmem:[#allocation47_spill] sm:$0xff]  ;;  %v28588_v10 = vld [vmem:[#allocation48_spill] sm:$0xff] }
 0x923   :  { %17741 = vmatmul.mubr.f32.gmra.mrb[40].mxu0 %v25729_v20  ;;  %v28566_v20 = vld [vmem:[#allocation89_spill] sm:$0xff] }
 0x924   :  { %17743 = vmatprep.mubr.f32.mxu0 %v25731_v36  ;;  %19731 = vmatpush3.bf16.msra.mxu0 %v19728_v29  ;;  %v28567_v36 = vld [vmem:[#allocation90_spill] sm:$0xff] }
 0x925   :  { %19733 = vmatprep.subr.bf16.mxu0 %v19732_v44  ;;  %v19744_v37 = vpack.c.bf16 %v28567_v36, %v28566_v20  ;;  %v26115_v20 = vld [vmem:[#allocation2 + $0x2b4] sm:$0xff] }
 0x926   :  { %v26119_v36 = vld [vmem:[#allocation2 + $0x2d4] sm:$0xff] }
 0x927   :  { %17744 = vmatmul.mubr.f32.gmra.mrb[42].mxu0 %v25735_v62  ;;  %v26045_v62 = vld [vmem:[#allocation2 + $0x288] sm:$0xff] }
 0x928   :  { %17746 = vmatprep.mubr.f32.mxu0 %v25737_v63  ;;  %19735 = vmatpush3.bf16.msra.mxu0 %v19732_v44  ;;  %v26051_v63 = vld [vmem:[#allocation2 + $0x2a8] sm:$0xff]  ;;  %v19776_v44 = vpack.c.bf16 %v28583_v43, %v28582_v45  ;;  %v9268_v45 = vld [vmem:[#allocation2 + $0x190] sm:$0xff] }
 0x929   :  { %19737 = vmatprep.subr.bf16.mxu0 %v19736_v5  ;;  %v9269_v43 = vld [vmem:[#allocation2 + $0x1a8] sm:$0xff] }
 0x92b   :  { %17747 = vmatmul.mubr.f32.gmra.mrb[44].mxu0 %v25741_v51 }
 0x92c   :  { %17749 = vmatprep.mubr.f32.mxu0 %v25743_v17  ;;  %19739 = vmatpush3.bf16.msra.mxu0 %v19736_v5  ;;  %v28570_v17 = vld [vmem:[#allocation93_spill] sm:$0xff]  ;;  %v28586_v5 = vld [vmem:[#allocation46_spill] sm:$0xff] }
 0x92d   :  { %19741 = vmatprep.subr.bf16.mxu0 %v19740_v15 }
 0x92f   :  { %17750 = vmatmul.mubr.f32.gmra.mrb[46].mxu0 %v25747_v13  ;;  %v28571_v13 = vld [vmem:[#allocation94_spill] sm:$0xff] }
 0x930   :  { %17752 = vmatprep.mubr.f32.mxu0 %v25749_v11  ;;  %19743 = vmatpush3.bf16.msra.mxu0 %v19740_v15  ;;  %v26049_v11 = vld [vmem:[#allocation2 + $0x290] sm:$0xff]  ;;  %v19752_v27 = vpack.c.bf16 %v28571_v13, %v28570_v17  ;;  %v28591_v17 = vld [vmem:[#allocation279_spill] sm:$0xff] }
 0x931   :  { %19745 = vmatprep.subr.bf16.mxu0 %v19744_v37  ;;  %v26111_v15 = vld [vmem:[#allocation2 + $0x294] sm:$0xff]  ;;  %v28592_v13 = vld [vmem:[#allocation280_spill] sm:$0xff] }
 0x933   :  { %17753 = vmatmul.mubr.f32.gmra.mrb[48].mxu0 %v25753_v38  ;;  %v28569_v38 = vld [vmem:[#allocation92_spill] sm:$0xff] }
 0x934   :  { %17755 = vmatprep.mubr.f32.mxu0 %v25755_v49  ;;  %v28568_v49 = vld [vmem:[#allocation91_spill] sm:$0xff] }
 0x935   :  { %v19748_v51 = vpack.c.bf16 %v28569_v38, %v28568_v49  ;;  %v28589_v49 = vld [vmem:[#allocation277_spill] sm:$0xff]  ;;  %v28590_v38 = vld [vmem:[#allocation278_spill] sm:$0xff] }
 0x937   :  { %17756 = vmatmul.mubr.f32.gmra.mrb[50].mxu0 %v25759_v35  ;;  %v26055_v35 = vld [vmem:[#allocation2 + $0x2b0] sm:$0xff] }
 0x938   :  { %17758 = vmatprep.mubr.f32.mxu0 %v25761_v2  ;;  %v26057_v2 = vld [vmem:[#allocation2 + $0x2c8] sm:$0xff] }
 0x93b   :  { %17759 = vmatmul.mubr.f32.gmra.mrb[52].mxu0 %v25765_v39  ;;  %v26067_v39 = vld [vmem:[#allocation2 + $0x2f0] sm:$0xff] }
 0x93c   :  { %17761 = vmatprep.mubr.f32.mxu0 %v25767_v25  ;;  %v26061_v25 = vld [vmem:[#allocation2 + $0x2d0] sm:$0xff] }
 0x93f   :  { %17762 = vmatmul.mubr.f32.gmra.mrb[54].mxu0 %v25771_v1  ;;  %v26063_v1 = vld [vmem:[#allocation2 + $0x2e8] sm:$0xff] }
 0x940   :  { %17764 = vmatprep.mubr.f32.mxu0 %v26045_v62 }
 0x943   :  { %17765 = vmatmul.mubr.f32.gmra.mrb[56].mxu0 %v26049_v11 }
 0x944   :  { %17767 = vmatprep.mubr.f32.mxu0 %v26051_v63 }
 0x947   :  { %17768 = vmatmul.mubr.f32.gmra.mrb[58].mxu0 %v26055_v35 }
 0x948   :  { %17770 = vmatprep.mubr.f32.mxu0 %v26057_v2 }
 0x94b   :  { %17771 = vmatmul.mubr.f32.gmra.mrb[60].mxu0 %v26061_v25 }
 0x94c   :  { %17773 = vmatprep.mubr.f32.mxu0 %v26063_v1 }
 0x94f   :  { %17774 = vmatmul.mubr.f32.gmra.mrb[62].mxu0 %v26067_v39 }
 0x950   :  { %17808 = vmatprep.mubr.f32.mxu0 %v25797_v22  ;;  %v28573_v22 = vld [vmem:[#allocation96_spill] sm:$0xff] }
 0x951   :  { %v19756_v53 = vpack.c.bf16 %v28573_v22, %v28572_v9  ;;  %v28593_v9 = vld [vmem:[#allocation281_spill] sm:$0xff] }
 0x953   :  { %17809 = vmatmul.mubr.f32.vlgmr.msra.gmra.mrb[32].mxu0 %v25887_v30  ;;  %v28575_v30 = vld [vmem:[#allocation98_spill] sm:$0xff] }
 0x954   :  { %19747 = vmatpush3.bf16.msra.mxu0 %v19744_v37  ;;  %17811 = vmatprep.mubr.f32.mxu0 %v25805_v42  ;;  %v28574_v42 = vld [vmem:[#allocation97_spill] sm:$0xff] }
 0x955   :  { %19749 = vmatprep.subr.bf16.mxu0 %v19748_v51  ;;  %v19760_v14 = vpack.c.bf16 %v28575_v30, %v28574_v42  ;;  %v26123_v37 = vld [vmem:[#allocation2 + $0x2f4] sm:$0xff] }
 0x957   :  { %17812 = vmatmul.mubr.f32.gmra.mrb[34].mxu0 %v25893_v21  ;;  %v28577_v21 = vld [vmem:[#allocation100_spill] sm:$0xff] }
 0x958   :  { %17814 = vmatprep.mubr.f32.mxu0 %v25813_v61  ;;  %19751 = vmatpush3.bf16.msra.mxu0 %v19748_v51  ;;  %v28576_v61 = vld [vmem:[#allocation99_spill] sm:$0xff]  ;;  %v19780_v51 = vpack.c.bf16 %v28590_v38, %v28589_v49  ;;  %v28610_v49 = vld [vmem:[#allocation294_spill] sm:$0xff] }
 0x959   :  { %19753 = vmatprep.subr.bf16.mxu0 %v19752_v27  ;;  %v19764_v60 = vpack.c.bf16 %v28577_v21, %v28576_v61  ;;  %v28605_v21 = vld [vmem:[#allocation49_spill] sm:$0xff] }
 0x95b   :  { %17815 = vmatmul.mubr.f32.gmra.mrb[36].mxu0 %v25899_v32  ;;  %v28579_v32 = vld [vmem:[#allocation102_spill] sm:$0xff] }
 0x95c   :  { %17817 = vmatprep.mubr.f32.mxu0 %v25821_v48  ;;  %19755 = vmatpush3.bf16.msra.mxu0 %v19752_v27  ;;  %v28578_v48 = vld [vmem:[#allocation101_spill] sm:$0xff]  ;;  %v19784_v27 = vpack.c.bf16 %v28592_v13, %v28591_v17  ;;  %v9271_v17 = vld [vmem:[#allocation2 + $0x1c8] sm:$0xff] }
 0x95d   :  { %19757 = vmatprep.subr.bf16.mxu0 %v19756_v53  ;;  %v19768_v16 = vpack.c.bf16 %v28579_v32, %v28578_v48  ;;  %v26169_v48 = vld [vmem:[#allocation2 + $0x32c] sm:$0xff]  ;;  %v8990_v32 = vld [vmem:[#allocation2 + $0x344] sm:$0xff] }
 0x95e   :  { %v28611_v13 = vld [vmem:[#allocation295_spill] sm:$0xff] }
 0x95f   :  { %17818 = vmatmul.mubr.f32.gmra.mrb[38].mxu0 %v25905_v4  ;;  %v28580_v4 = vld [vmem:[#allocation103_spill] sm:$0xff] }
 0x960   :  { %17820 = vmatprep.mubr.f32.mxu0 %v25829_v46  ;;  %19759 = vmatpush3.bf16.msra.mxu0 %v19756_v53  ;;  %v19772_v29 = vpack.c.bf16 %v28581_v47, %v28580_v4  ;;  %v8992_v4 = vld [vmem:[#allocation2 + $0x364] sm:$0xff]  ;;  %v26175_v47 = vld [vmem:[#allocation2 + $0x36c] sm:$0xff] }
 0x961   :  { %19761 = vmatprep.subr.bf16.mxu0 %v19760_v14 }
 0x963   :  { %17821 = vmatmul.mubr.f32.gmra.mrb[40].mxu0 %v25911_v26 }
 0x964   :  { %17823 = vmatprep.mubr.f32.mxu0 %v25835_v52  ;;  %19763 = vmatpush3.bf16.msra.mxu0 %v19760_v14 }
 0x965   :  { %19765 = vmatprep.subr.bf16.mxu0 %v19764_v60 }
 0x967   :  { %17824 = vmatmul.mubr.f32.gmra.mrb[42].mxu0 %v25915_v50 }
 0x968   :  { %17826 = vmatprep.mubr.f32.mxu0 %v25841_v55  ;;  %19767 = vmatpush3.bf16.msra.mxu0 %v19764_v60  ;;  %v8988_v60 = vld [vmem:[#allocation2 + $0x324] sm:$0xff] }
 0x969   :  { %19769 = vmatprep.subr.bf16.mxu0 %v19768_v16 }
 0x96b   :  { %17827 = vmatmul.mubr.f32.gmra.mrb[44].mxu0 %v25919_v40 }
 0x96c   :  { %17829 = vmatprep.mubr.f32.mxu0 %v25847_v34  ;;  %19771 = vmatpush3.bf16.msra.mxu0 %v19768_v16  ;;  %v26172_v16 = vld [vmem:[#allocation2 + $0x34c] sm:$0xff] }
 0x96d   :  { %19773 = vmatprep.subr.bf16.mxu0 %v19772_v29 }
 0x96f   :  { %17830 = vmatmul.mubr.f32.gmra.mrb[46].mxu0 %v28584_v19 }
 0x970   :  { %17832 = vmatprep.mubr.f32.mxu0 %v25853_v0  ;;  %19775 = vmatpush3.bf16.msra.mxu0 %v19772_v29  ;;  %v9267_v29 = vld [vmem:[#allocation2 + $0x188] sm:$0xff] }
 0x971   :  { %19777 = vmatprep.subr.bf16.mxu0 %v19776_v44 }
 0x973   :  { %17833 = vmatmul.mubr.f32.gmra.mrb[48].mxu0 %v28585_v58 }
 0x974   :  { %17835 = vmatprep.mubr.f32.mxu0 %v25859_v8 }
 0x977   :  { %17836 = vmatmul.mubr.f32.gmra.mrb[50].mxu0 %v28586_v5 }
 0x978   :  { %17838 = vmatprep.mubr.f32.mxu0 %v25865_v31 }
 0x97b   :  { %17839 = vmatmul.mubr.f32.gmra.mrb[52].mxu0 %v28587_v18 }
 0x97c   :  { %17841 = vmatprep.mubr.f32.mxu0 %v25871_v7 }
 0x97f   :  { %17842 = vmatmul.mubr.f32.gmra.mrb[54].mxu0 %v28588_v10 }
 0x980   :  { %17844 = vmatprep.mubr.f32.mxu0 %v25985_v56 }
 0x983   :  { %17845 = vmatmul.mubr.f32.gmra.mrb[56].mxu0 %v26111_v15 }
 0x984   :  { %17847 = vmatprep.mubr.f32.mxu0 %v25991_v12 }
 0x987   :  { %17848 = vmatmul.mubr.f32.gmra.mrb[58].mxu0 %v26115_v20 }
 0x988   :  { %17850 = vmatprep.mubr.f32.mxu0 %v25997_v59 }
 0x98b   :  { %17851 = vmatmul.mubr.f32.gmra.mrb[60].mxu0 %v26119_v36 }
 0x98c   :  { %17853 = vmatprep.mubr.f32.mxu0 %v26003_v24 }
 0x98f   :  { %17854 = vmatmul.mubr.f32.gmra.mrb[62].mxu0 %v26123_v37 }
 0x990   :  { %17888 = vmatprep.mubr.f32.mxu0 %v25823_v23  ;;  %v28594_v23 = vld [vmem:[#allocation282_spill] sm:$0xff] }
 0x991   :  { %v19788_v22 = vpack.c.bf16 %v28594_v23, %v28593_v9  ;;  %v9272_v23 = vld [vmem:[#allocation2 + $0x1d0] sm:$0xff] }
 0x993   :  { %17889 = vmatmul.mubr.f32.vlgmr.msra.gmra.mrb[32].mxu0 %v25829_v46  ;;  %v28595_v46 = vld [vmem:[#allocation283_spill] sm:$0xff] }
 0x994   :  { %19779 = vmatpush3.bf16.msra.mxu0 %v19776_v44  ;;  %17891 = vmatprep.mubr.f32.mxu0 %v25831_v54  ;;  %v28596_v54 = vld [vmem:[#allocation284_spill] sm:$0xff]  ;;  %v28609_v44 = vld [vmem:[#allocation293_spill] sm:$0xff] }
 0x995   :  { %19781 = vmatprep.subr.bf16.mxu0 %v19780_v51  ;;  %v19792_v53 = vpack.c.bf16 %v28596_v54, %v28595_v46  ;;  %v19812_v38 = vpack.c.bf16 %v28610_v49, %v28609_v44  ;;  %v28613_v46 = vld [vmem:[#allocation297_spill] sm:$0xff]  ;;  %v28614_v54 = vld [vmem:[#allocation298_spill] sm:$0xff]  ;;  %v9293_v44 = vld [vmem:[#allocation2 + $0x328] sm:$0xff] }
 0x996   :  { %v9578_v49 = vld [vmem:[#allocation2 + $0x1ec] sm:$0xff] }
 0x997   :  { %17892 = vmatmul.mubr.f32.gmra.mrb[34].mxu0 %v25835_v52  ;;  %v28597_v52 = vld [vmem:[#allocation285_spill] sm:$0xff] }
 0x998   :  { %17894 = vmatprep.mubr.f32.mxu0 %v25837_v33  ;;  %19783 = vmatpush3.bf16.msra.mxu0 %v19780_v51  ;;  %v28598_v33 = vld [vmem:[#allocation286_spill] sm:$0xff]  ;;  %v9270_v51 = vld [vmem:[#allocation2 + $0x1b0] sm:$0xff] }
 0x999   :  { %19785 = vmatprep.subr.bf16.mxu0 %v19784_v27  ;;  %v19796_v42 = vpack.c.bf16 %v28598_v33, %v28597_v52  ;;  %v9274_v52 = vld [vmem:[#allocation2 + $0x1f0] sm:$0xff]  ;;  %v9275_v33 = vld [vmem:[#allocation2 + $0x208] sm:$0xff] }
 0x99b   :  { %17895 = vmatmul.mubr.f32.gmra.mrb[36].mxu0 %v25841_v55  ;;  %v28599_v55 = vld [vmem:[#allocation287_spill] sm:$0xff] }
 0x99c   :  { %17897 = vmatprep.mubr.f32.mxu0 %v25843_v41  ;;  %19787 = vmatpush3.bf16.msra.mxu0 %v19784_v27  ;;  %v28600_v41 = vld [vmem:[#allocation288_spill] sm:$0xff] }
 0x99d   :  { %19789 = vmatprep.subr.bf16.mxu0 %v19788_v22  ;;  %v19800_v30 = vpack.c.bf16 %v28600_v41, %v28599_v55  ;;  %v28612_v27 = vld [vmem:[#allocation296_spill] sm:$0xff] }
 0x99e   :  { %v19816_v9 = vpack.c.bf16 %v28612_v27, %v28611_v13  ;;  %v28616_v55 = vld [vmem:[#allocation300_spill] sm:$0xff] }
 0x99f   :  { %17898 = vmatmul.mubr.f32.gmra.mrb[38].mxu0 %v25847_v34  ;;  %v28602_v34 = vld [vmem:[#allocation290_spill] sm:$0xff] }
 0x9a0   :  { %17900 = vmatprep.mubr.f32.mxu0 %v25849_v57  ;;  %19791 = vmatpush3.bf16.msra.mxu0 %v19788_v22  ;;  %v28601_v57 = vld [vmem:[#allocation289_spill] sm:$0xff]  ;;  %v9273_v22 = vld [vmem:[#allocation2 + $0x1e8] sm:$0xff] }
 0x9a1   :  { %19793 = vmatprep.subr.bf16.mxu0 %v19792_v53  ;;  %v19804_v14 = vpack.c.bf16 %v28602_v34, %v28601_v57  ;;  %v9277_v57 = vld [vmem:[#allocation2 + $0x228] sm:$0xff]  ;;  %v28617_v34 = vld [vmem:[#allocation301_spill] sm:$0xff] }
 0x9a3   :  { %17901 = vmatmul.mubr.f32.gmra.mrb[40].mxu0 %v25853_v0  ;;  %v28604_v0 = vld [vmem:[#allocation292_spill] sm:$0xff] }
 0x9a4   :  { %17903 = vmatprep.mubr.f32.mxu0 %v25855_v6  ;;  %19795 = vmatpush3.bf16.msra.mxu0 %v19792_v53  ;;  %v28603_v6 = vld [vmem:[#allocation291_spill] sm:$0xff]  ;;  %v19820_v53 = vpack.c.bf16 %v28614_v54, %v28613_v46 }
 0x9a5   :  { %19797 = vmatprep.subr.bf16.mxu0 %v19796_v42  ;;  %v19808_v61 = vpack.c.bf16 %v28604_v0, %v28603_v6  ;;  %v9278_v0 = vld [vmem:[#allocation2 + $0x230] sm:$0xff] }
 0x9a7   :  { %17904 = vmatmul.mubr.f32.gmra.mrb[42].mxu0 %v25859_v8  ;;  %v8986_v8 = vld [vmem:[#allocation2 + $0x304] sm:$0xff] }
 0x9a8   :  { %17906 = vmatprep.mubr.f32.mxu0 %v25861_v3  ;;  %19799 = vmatpush3.bf16.msra.mxu0 %v19796_v42  ;;  %v28606_v3 = vld [vmem:[#allocation50_spill] sm:$0xff]  ;;  %v28615_v42 = vld [vmem:[#allocation299_spill] sm:$0xff] }
 0x9a9   :  { %19801 = vmatprep.subr.bf16.mxu0 %v19800_v30  ;;  %v19824_v41 = vpack.c.bf16 %v28616_v55, %v28615_v42 }
 0x9ab   :  { %17907 = vmatmul.mubr.f32.gmra.mrb[44].mxu0 %v25865_v31  ;;  %v28607_v31 = vld [vmem:[#allocation51_spill] sm:$0xff] }
 0x9ac   :  { %17909 = vmatprep.mubr.f32.mxu0 %v25867_v28  ;;  %19803 = vmatpush3.bf16.msra.mxu0 %v19800_v30  ;;  %v28608_v28 = vld [vmem:[#allocation52_spill] sm:$0xff] }
 0x9ad   :  { %19805 = vmatprep.subr.bf16.mxu0 %v19804_v14  ;;  %v9276_v30 = vld [vmem:[#allocation2 + $0x210] sm:$0xff] }
 0x9af   :  { %17910 = vmatmul.mubr.f32.gmra.mrb[46].mxu0 %v25871_v7  ;;  %v26166_v7 = vld [vmem:[#allocation2 + $0x30c] sm:$0xff] }
 0x9b0   :  { %17912 = vmatprep.mubr.f32.mxu0 %v28605_v21  ;;  %19807 = vmatpush3.bf16.msra.mxu0 %v19804_v14  ;;  %v28618_v14 = vld [vmem:[#allocation302_spill] sm:$0xff]  ;;  %v28619_v21 = vld [vmem:[#allocation303_spill] sm:$0xff] }
 0x9b1   :  { %19809 = vmatprep.subr.bf16.mxu0 %v19808_v61  ;;  %v19828_v6 = vpack.c.bf16 %v28618_v14, %v28617_v34 }
 0x9b3   :  { %17913 = vmatmul.mubr.f32.gmra.mrb[48].mxu0 %v25985_v56 }
 0x9b4   :  { %17915 = vmatprep.mubr.f32.mxu0 %v28606_v3  ;;  %v28620_v3 = vld [vmem:[#allocation304_spill] sm:$0xff] }
 0x9b7   :  { %17916 = vmatmul.mubr.f32.gmra.mrb[50].mxu0 %v25991_v12 }
 0x9b8   :  { %17918 = vmatprep.mubr.f32.mxu0 %v28607_v31  ;;  %v19832_v31 = vpack.c.bf16 %v28620_v3, %v28619_v21 }
 0x9bb   :  { %17919 = vmatmul.mubr.f32.gmra.mrb[52].mxu0 %v25997_v59 }
 0x9bc   :  { %17921 = vmatprep.mubr.f32.mxu0 %v28608_v28  ;;  %v9280_v28 = vld [vmem:[#allocation2 + $0x250] sm:$0xff] }
 0x9bf   :  { %17922 = vmatmul.mubr.f32.gmra.mrb[54].mxu0 %v26003_v24 }
 0x9c0   :  { %17924 = vmatprep.mubr.f32.mxu0 %v8986_v8  ;;  %v9281_v8 = vld [vmem:[#allocation2 + $0x268] sm:$0xff] }
 0x9c3   :  { %17925 = vmatmul.mubr.f32.gmra.mrb[56].mxu0 %v26166_v7 }
 0x9c4   :  { %17927 = vmatprep.mubr.f32.mxu0 %v8988_v60  ;;  %v28621_v60 = vld [vmem:[#allocation305_spill] sm:$0xff] }
 0x9c7   :  { %17928 = vmatmul.mubr.f32.gmra.mrb[58].mxu0 %v26169_v48 }
 0x9c8   :  { %17930 = vmatprep.mubr.f32.mxu0 %v8990_v32  ;;  %v28622_v32 = vld [vmem:[#allocation306_spill] sm:$0xff] }
 0x9cb   :  { %17931 = vmatmul.mubr.f32.gmra.mrb[60].mxu0 %v26172_v16 }
 0x9cc   :  { %17933 = vmatprep.mubr.f32.mxu0 %v8992_v4  ;;  %v19836_v4 = vpack.c.bf16 %v28622_v32, %v28621_v60 }
 0x9cf   :  { %17934 = vmatmul.mubr.f32.gmra.mrb[62].mxu0 %v26175_v47 }
 0x9d0   :  { %17968 = vmatprep.mubr.f32.mxu0 %v9267_v29  ;;  %v9282_v29 = vld [vmem:[#allocation2 + $0x270] sm:$0xff] }
 0x9d3   :  { %17969 = vmatmul.mubr.f32.vlgmr.msra.gmra.mrb[32].mxu0 %v9268_v45  ;;  %v9291_v45 = vld [vmem:[#allocation2 + $0x308] sm:$0xff] }
 0x9d4   :  { %19811 = vmatpush3.bf16.msra.mxu0 %v19808_v61  ;;  %17971 = vmatprep.mubr.f32.mxu0 %v9269_v43  ;;  %v9279_v61 = vld [vmem:[#allocation2 + $0x248] sm:$0xff]  ;;  %v9292_v43 = vld [vmem:[#allocation2 + $0x310] sm:$0xff] }
 0x9d5   :  { %19813 = vmatprep.subr.bf16.mxu0 %v19812_v38 }
 0x9d7   :  { %17972 = vmatmul.mubr.f32.gmra.mrb[34].mxu0 %v9270_v51  ;;  %v9582_v51 = vld [vmem:[#allocation2 + $0x22c] sm:$0xff] }
 0x9d8   :  { %17974 = vmatprep.mubr.f32.mxu0 %v9271_v17  ;;  %19815 = vmatpush3.bf16.msra.mxu0 %v19812_v38  ;;  %v9580_v38 = vld [vmem:[#allocation2 + $0x20c] sm:$0xff] }
 0x9d9   :  { %19817 = vmatprep.subr.bf16.mxu0 %v19816_v9  ;;  %v9584_v17 = vld [vmem:[#allocation2 + $0x24c] sm:$0xff] }
 0x9db   :  { %17975 = vmatmul.mubr.f32.gmra.mrb[36].mxu0 %v9272_v23 }
 0x9dc   :  { %17977 = vmatprep.mubr.f32.mxu0 %v9273_v22  ;;  %19819 = vmatpush3.bf16.msra.mxu0 %v19816_v9 }
 0x9dd   :  { %19821 = vmatprep.subr.bf16.mxu0 %v19820_v53 }
 0x9df   :  { %17978 = vmatmul.mubr.f32.gmra.mrb[38].mxu0 %v9274_v52 }
 0x9e0   :  { %17980 = vmatprep.mubr.f32.mxu0 %v9275_v33  ;;  %19823 = vmatpush3.bf16.msra.mxu0 %v19820_v53 }
 0x9e1   :  { %19825 = vmatprep.subr.bf16.mxu0 %v19824_v41 }
 0x9e3   :  { %17981 = vmatmul.mubr.f32.gmra.mrb[40].mxu0 %v9276_v30 }
 0x9e4   :  { %17983 = vmatprep.mubr.f32.mxu0 %v9277_v57  ;;  %19827 = vmatpush3.bf16.msra.mxu0 %v19824_v41 }
 0x9e5   :  { %19829 = vmatprep.subr.bf16.mxu0 %v19828_v6 }
 0x9e7   :  { %17984 = vmatmul.mubr.f32.gmra.mrb[42].mxu0 %v9278_v0 }
 0x9e8   :  { %17986 = vmatprep.mubr.f32.mxu0 %v9279_v61  ;;  %19831 = vmatpush3.bf16.msra.mxu0 %v19828_v6 }
 0x9e9   :  { %19833 = vmatprep.subr.bf16.mxu0 %v19832_v31 }
 0x9eb   :  { %17987 = vmatmul.mubr.f32.gmra.mrb[44].mxu0 %v9280_v28 }
 0x9ec   :  { %17989 = vmatprep.mubr.f32.mxu0 %v9281_v8  ;;  %19835 = vmatpush3.bf16.msra.mxu0 %v19832_v31 }
 0x9ed   :  { %19837 = vmatprep.subr.bf16.mxu0 %v19836_v4 }
 0x9ef   :  { %17990 = vmatmul.mubr.f32.gmra.mrb[46].mxu0 %v9282_v29 }
 0x9f0   :  { %17992 = vmatprep.mubr.f32.mxu0 %v26045_v62  ;;  %19839 = vmatpush3.bf16.msra.mxu0 %v19836_v4  ;;  %v9294_v62 = vld [vmem:[#allocation2 + $0x330] sm:$0xff] }
 0x9f3   :  { %17993 = vmatmul.mubr.f32.gmra.mrb[48].mxu0 %v26049_v11  ;;  %v9295_v11 = vld [vmem:[#allocation2 + $0x348] sm:$0xff] }
 0x9f4   :  { %17995 = vmatprep.mubr.f32.mxu0 %v26051_v63  ;;  %v9296_v63 = vld [vmem:[#allocation2 + $0x350] sm:$0xff] }
 0x9f7   :  { %17996 = vmatmul.mubr.f32.gmra.mrb[50].mxu0 %v26055_v35  ;;  %v9297_v35 = vld [vmem:[#allocation2 + $0x368] sm:$0xff] }
 0x9f8   :  { %17998 = vmatprep.mubr.f32.mxu0 %v26057_v2  ;;  %v9298_v2 = vld [vmem:[#allocation2 + $0x370] sm:$0xff] }
 0x9fb   :  { %17999 = vmatmul.mubr.f32.gmra.mrb[52].mxu0 %v26061_v25  ;;  %v9572_v25 = vld [vmem:[#allocation2 + $0x18c] sm:$0xff] }
 0x9fc   :  { %18001 = vmatprep.mubr.f32.mxu0 %v26063_v1  ;;  %v9574_v1 = vld [vmem:[#allocation2 + $0x1ac] sm:$0xff] }
 0x9ff   :  { %18002 = vmatmul.mubr.f32.gmra.mrb[54].mxu0 %v26067_v39  ;;  %v9576_v39 = vld [vmem:[#allocation2 + $0x1cc] sm:$0xff] }
 0xa00   :  { %18004 = vmatprep.mubr.f32.mxu0 %v9291_v45 }
 0xa03   :  { %18005 = vmatmul.mubr.f32.gmra.mrb[56].mxu0 %v9292_v43 }
 0xa04   :  { %18007 = vmatprep.mubr.f32.mxu0 %v9293_v44 }
 0xa07   :  { %18008 = vmatmul.mubr.f32.gmra.mrb[58].mxu0 %v9294_v62 }
 0xa08   :  { %18010 = vmatprep.mubr.f32.mxu0 %v9295_v11 }
 0xa0b   :  { %18011 = vmatmul.mubr.f32.gmra.mrb[60].mxu0 %v9296_v63 }
 0xa0c   :  { %18013 = vmatprep.mubr.f32.mxu0 %v9297_v35 }
 0xa0f   :  { %18014 = vmatmul.mubr.f32.gmra.mrb[62].mxu0 %v9298_v2 }
 0xa10   :  { %18048 = vmatprep.mubr.f32.mxu0 %v9572_v25 }
 0xa13   :  { %18049 = vmatmul.mubr.f32.vlgmr.msra.gmra.mrb[32].mxu0 %v25911_v26  ;;  %v9586_v26 = vld [vmem:[#allocation2 + $0x26c] sm:$0xff] }
 0xa14   :  { %18051 = vmatprep.mubr.f32.mxu0 %v9574_v1 }
 0xa17   :  { %18052 = vmatmul.mubr.f32.gmra.mrb[34].mxu0 %v25915_v50  ;;  %v9597_v50 = vld [vmem:[#allocation2 + $0x314] sm:$0xff] }
 0xa18   :  { %18054 = vmatprep.mubr.f32.mxu0 %v9576_v39 }
 0xa1b   :  { %18055 = vmatmul.mubr.f32.gmra.mrb[36].mxu0 %v25919_v40  ;;  %v9599_v40 = vld [vmem:[#allocation2 + $0x334] sm:$0xff] }
 0xa1c   :  { %18057 = vmatprep.mubr.f32.mxu0 %v9578_v49 }
 0xa1f   :  { %18058 = vmatmul.mubr.f32.gmra.mrb[38].mxu0 %v28584_v19 }
 0xa20   :  { %18060 = vmatprep.mubr.f32.mxu0 %v9580_v38 }
 0xa23   :  { %18061 = vmatmul.mubr.f32.gmra.mrb[40].mxu0 %v28585_v58 }
 0xa24   :  { %18063 = vmatprep.mubr.f32.mxu0 %v9582_v51 }
 0xa27   :  { %18064 = vmatmul.mubr.f32.gmra.mrb[42].mxu0 %v28586_v5 }
 0xa28   :  { %18066 = vmatprep.mubr.f32.mxu0 %v9584_v17 }
 0xa2b   :  { %18067 = vmatmul.mubr.f32.gmra.mrb[44].mxu0 %v28587_v18 }
 0xa2c   :  { %18069 = vmatprep.mubr.f32.mxu0 %v9586_v26 }
 0xa2f   :  { %18070 = vmatmul.mubr.f32.gmra.mrb[46].mxu0 %v28588_v10 }
 0xa30   :  { %18072 = vmatprep.mubr.f32.mxu0 %v25985_v56  ;;  %v9601_v56 = vld [vmem:[#allocation2 + $0x354] sm:$0xff] }
 0xa33   :  { %18073 = vmatmul.mubr.f32.gmra.mrb[48].mxu0 %v26111_v15 }
 0xa34   :  { %18075 = vmatprep.mubr.f32.mxu0 %v25991_v12  ;;  %v9603_v12 = vld [vmem:[#allocation2 + $0x374] sm:$0xff] }
 0xa37   :  { %18076 = vmatmul.mubr.f32.gmra.mrb[50].mxu0 %v26115_v20 }
 0xa38   :  { %18078 = vmatprep.mubr.f32.mxu0 %v25997_v59  ;;  %v26223_v59 = vld [vmem:[%s27447_s2 + $0x2] ss:$0 sm:$0xff] }
 0xa3b   :  { %18079 = vmatmul.mubr.f32.gmra.mrb[52].mxu0 %v26119_v36 }
 0xa3c   :  { %18081 = vmatprep.mubr.f32.mxu0 %v26003_v24 }
 0xa3f   :  { %18082 = vmatmul.mubr.f32.gmra.mrb[54].mxu0 %v26123_v37 }
 0xa40   :  { %18084 = vmatprep.mubr.f32.mxu0 %v26166_v7 }
 0xa43   :  { %18085 = vmatmul.mubr.f32.gmra.mrb[56].mxu0 %v9597_v50 }
 0xa44   :  { %18087 = vmatprep.mubr.f32.mxu0 %v26169_v48 }
 0xa47   :  { %18088 = vmatmul.mubr.f32.gmra.mrb[58].mxu0 %v9599_v40 }
 0xa48   :  { %18090 = vmatprep.mubr.f32.mxu0 %v26172_v16 }
 0xa4b   :  { %18091 = vmatmul.mubr.f32.gmra.mrb[60].mxu0 %v9601_v56 }
 0xa4c   :  { %18093 = vmatprep.mubr.f32.mxu0 %v26175_v47 }
 0xa4f   :  { %18094 = vmatmul.mubr.f32.gmra.mrb[62].mxu0 %v9603_v12 }
 0xae6   :  { %v18050_v24 = vpop.f32.mrb[32].mxu0 }
 0xae7   :  { %v9886_v19 = vadd.f32 %v18050_v24, %v26223_v59  ;;  %v9686_v58 = vpop.f32.mrb[33].mxu0 }
 0xae8   :  { %v9885_v5 = vadd.f32 %v26223_v59, %v9686_v58 }
 0xae9   :  { %v9918_v18 = vmax.f32 %v9886_v19, 0.0 }
 0xaea   :  { %v9917_v10 = vmax.f32 %v9885_v5, 0.0  ;;  %v18053_v15 = vpop.f32.mrb[34].mxu0 }
 0xaeb   :  { %9950 = vst [vmem:[#allocation3 + $0x110] sm:$0xff] %v9918_v18  ;;  %v9888_v20 = vadd.f32 %v18053_v15, %v26223_v59  ;;  %v9696_v36 = vpop.f32.mrb[35].mxu0 }
 0xaec   :  { %9949 = vst [vmem:[#allocation3 + $0x108] sm:$0xff] %v9917_v10  ;;  %v9887_v37 = vadd.f32 %v26223_v59, %v9696_v36 }
 0xaed   :  { %v9920_v7 = vmax.f32 %v9888_v20, 0.0 }
 0xaee   :  { %v9919_v48 = vmax.f32 %v9887_v37, 0.0  ;;  %v18056_v16 = vpop.f32.mrb[36].mxu0 }
 0xaef   :  { %9952 = vst [vmem:[#allocation3 + $0x130] sm:$0xff] %v9920_v7  ;;  %v9890_v47 = vadd.f32 %v18056_v16, %v26223_v59  ;;  %v9706_v13 = vpop.f32.mrb[37].mxu0 }
 0xaf0   :  { %9951 = vst [vmem:[#allocation3 + $0x128] sm:$0xff] %v9919_v48  ;;  %v9889_v27 = vadd.f32 %v26223_v59, %v9706_v13 }
 0xaf1   :  { %v9922_v9 = vmax.f32 %v9890_v47, 0.0 }
 0xaf2   :  { %v9921_v23 = vmax.f32 %v9889_v27, 0.0  ;;  %v18059_v22 = vpop.f32.mrb[38].mxu0 }
 0xaf3   :  { %9954 = vst [vmem:[#allocation3 + $0x150] sm:$0xff] %v9922_v9  ;;  %v9892_v46 = vadd.f32 %v18059_v22, %v26223_v59  ;;  %v9716_v54 = vpop.f32.mrb[39].mxu0 }
 0xaf4   :  { %9953 = vst [vmem:[#allocation3 + $0x148] sm:$0xff] %v9921_v23  ;;  %v9891_v53 = vadd.f32 %v26223_v59, %v9716_v54 }
 0xaf5   :  { %v9924_v52 = vmax.f32 %v9892_v46, 0.0 }
 0xaf6   :  { %v9923_v33 = vmax.f32 %v9891_v53, 0.0  ;;  %v18062_v42 = vpop.f32.mrb[40].mxu0 }
 0xaf7   :  { %9956 = vst [vmem:[#allocation3 + $0x170] sm:$0xff] %v9924_v52  ;;  %v9894_v55 = vadd.f32 %v18062_v42, %v26223_v59  ;;  %v9726_v41 = vpop.f32.mrb[41].mxu0 }
 0xaf8   :  { %9955 = vst [vmem:[#allocation3 + $0x168] sm:$0xff] %v9923_v33  ;;  %v9893_v30 = vadd.f32 %v26223_v59, %v9726_v41 }
 0xaf9   :  { %v9926_v57 = vmax.f32 %v9894_v55, 0.0 }
 0xafa   :  { %v9925_v34 = vmax.f32 %v9893_v30, 0.0  ;;  %v18065_v14 = vpop.f32.mrb[42].mxu0 }
 0xafb   :  { %9958 = vst [vmem:[#allocation3 + $0x190] sm:$0xff] %v9926_v57  ;;  %v9896_v6 = vadd.f32 %v18065_v14, %v26223_v59  ;;  %v9736_v0 = vpop.f32.mrb[43].mxu0 }
 0xafc   :  { %9957 = vst [vmem:[#allocation3 + $0x188] sm:$0xff] %v9925_v34  ;;  %v9895_v61 = vadd.f32 %v26223_v59, %v9736_v0 }
 0xafd   :  { %v9928_v21 = vmax.f32 %v9896_v6, 0.0 }
 0xafe   :  { %v9927_v3 = vmax.f32 %v9895_v61, 0.0  ;;  %v18068_v31 = vpop.f32.mrb[44].mxu0 }
 0xaff   :  { %9960 = vst [vmem:[#allocation3 + $0x1b0] sm:$0xff] %v9928_v21  ;;  %v9898_v28 = vadd.f32 %v18068_v31, %v26223_v59  ;;  %v9746_v8 = vpop.f32.mrb[45].mxu0 }
 0xb00   :  { %9959 = vst [vmem:[#allocation3 + $0x1a8] sm:$0xff] %v9927_v3  ;;  %v9897_v60 = vadd.f32 %v26223_v59, %v9746_v8 }
 0xb01   :  { %v9930_v32 = vmax.f32 %v9898_v28, 0.0 }
 0xb02   :  { %v9929_v4 = vmax.f32 %v9897_v60, 0.0  ;;  %v18071_v29 = vpop.f32.mrb[46].mxu0 }
 0xb03   :  { %9962 = vst [vmem:[#allocation3 + $0x1d0] sm:$0xff] %v9930_v32  ;;  %v9900_v45 = vadd.f32 %v18071_v29, %v26223_v59  ;;  %v9756_v43 = vpop.f32.mrb[47].mxu0 }
 0xb04   :  { %9961 = vst [vmem:[#allocation3 + $0x1c8] sm:$0xff] %v9929_v4  ;;  %v9899_v44 = vadd.f32 %v26223_v59, %v9756_v43 }
 0xb05   :  { %v9932_v62 = vmax.f32 %v9900_v45, 0.0 }
 0xb06   :  { %v9931_v11 = vmax.f32 %v9899_v44, 0.0  ;;  %v18074_v63 = vpop.f32.mrb[48].mxu0 }
 0xb07   :  { %9964 = vst [vmem:[#allocation3 + $0x1f0] sm:$0xff] %v9932_v62  ;;  %v9902_v35 = vadd.f32 %v18074_v63, %v26223_v59  ;;  %v9766_v2 = vpop.f32.mrb[49].mxu0 }
 0xb08   :  { %9963 = vst [vmem:[#allocation3 + $0x1e8] sm:$0xff] %v9931_v11  ;;  %v9901_v25 = vadd.f32 %v26223_v59, %v9766_v2 }
 0xb09   :  { %v9934_v1 = vmax.f32 %v9902_v35, 0.0 }
 0xb0a   :  { %v9933_v39 = vmax.f32 %v9901_v25, 0.0  ;;  %v18077_v49 = vpop.f32.mrb[50].mxu0 }
 0xb0b   :  { %9966 = vst [vmem:[#allocation3 + $0x210] sm:$0xff] %v9934_v1  ;;  %v9904_v38 = vadd.f32 %v18077_v49, %v26223_v59  ;;  %v9776_v51 = vpop.f32.mrb[51].mxu0 }
 0xb0c   :  { %9965 = vst [vmem:[#allocation3 + $0x208] sm:$0xff] %v9933_v39  ;;  %v9903_v17 = vadd.f32 %v26223_v59, %v9776_v51 }
 0xb0d   :  { %v9936_v26 = vmax.f32 %v9904_v38, 0.0 }
 0xb0e   :  { %v9935_v50 = vmax.f32 %v9903_v17, 0.0  ;;  %v18080_v40 = vpop.f32.mrb[52].mxu0 }
 0xb0f   :  { %9968 = vst [vmem:[#allocation3 + $0x230] sm:$0xff] %v9936_v26  ;;  %v9906_v56 = vadd.f32 %v18080_v40, %v26223_v59  ;;  %v9786_v12 = vpop.f32.mrb[53].mxu0 }
 0xb10   :  { %9967 = vst [vmem:[#allocation3 + $0x228] sm:$0xff] %v9935_v50  ;;  %v9905_v24 = vadd.f32 %v26223_v59, %v9786_v12 }
 0xb11   :  { %v9938_v19 = vmax.f32 %v9906_v56, 0.0 }
 0xb12   :  { %v9937_v58 = vmax.f32 %v9905_v24, 0.0  ;;  %v18083_v5 = vpop.f32.mrb[54].mxu0 }
 0xb13   :  { %9970 = vst [vmem:[#allocation3 + $0x250] sm:$0xff] %v9938_v19  ;;  %v9908_v18 = vadd.f32 %v18083_v5, %v26223_v59  ;;  %v9796_v10 = vpop.f32.mrb[55].mxu0 }
 0xb14   :  { %9969 = vst [vmem:[#allocation3 + $0x248] sm:$0xff] %v9937_v58  ;;  %v9907_v15 = vadd.f32 %v26223_v59, %v9796_v10 }
 0xb15   :  { %v9940_v20 = vmax.f32 %v9908_v18, 0.0 }
 0xb16   :  { %v9939_v36 = vmax.f32 %v9907_v15, 0.0  ;;  %v18086_v37 = vpop.f32.mrb[56].mxu0 }
 0xb17   :  { %9972 = vst [vmem:[#allocation3 + $0x270] sm:$0xff] %v9940_v20  ;;  %v9910_v7 = vadd.f32 %v18086_v37, %v26223_v59  ;;  %v9806_v48 = vpop.f32.mrb[57].mxu0 }
 0xb18   :  { %9971 = vst [vmem:[#allocation3 + $0x268] sm:$0xff] %v9939_v36  ;;  %v9909_v16 = vadd.f32 %v26223_v59, %v9806_v48 }
 0xb19   :  { %v9942_v47 = vmax.f32 %v9910_v7, 0.0 }
 0xb1a   :  { %v9941_v13 = vmax.f32 %v9909_v16, 0.0  ;;  %v18089_v27 = vpop.f32.mrb[58].mxu0 }
 0xb1b   :  { %9974 = vst [vmem:[#allocation3 + $0x290] sm:$0xff] %v9942_v47  ;;  %v9912_v9 = vadd.f32 %v18089_v27, %v26223_v59  ;;  %v9816_v23 = vpop.f32.mrb[59].mxu0 }
 0xb1c   :  { %9973 = vst [vmem:[#allocation3 + $0x288] sm:$0xff] %v9941_v13  ;;  %v9911_v22 = vadd.f32 %v26223_v59, %v9816_v23 }
 0xb1d   :  { %v9944_v46 = vmax.f32 %v9912_v9, 0.0 }
 0xb1e   :  { %v9943_v54 = vmax.f32 %v9911_v22, 0.0  ;;  %v18092_v53 = vpop.f32.mrb[60].mxu0 }
 0xb1f   :  { %9976 = vst [vmem:[#allocation3 + $0x2b0] sm:$0xff] %v9944_v46  ;;  %v9914_v52 = vadd.f32 %v18092_v53, %v26223_v59  ;;  %v9826_v33 = vpop.f32.mrb[61].mxu0 }
 0xb20   :  { %9975 = vst [vmem:[#allocation3 + $0x2a8] sm:$0xff] %v9943_v54  ;;  %v9913_v42 = vadd.f32 %v26223_v59, %v9826_v33 }
 0xb21   :  { %v9946_v55 = vmax.f32 %v9914_v52, 0.0 }
 0xb22   :  { %v9945_v41 = vmax.f32 %v9913_v42, 0.0  ;;  %v18095_v30 = vpop.f32.mrb[62].mxu0 }
 0xb23   :  { %9978 = vst [vmem:[#allocation3 + $0x2d0] sm:$0xff] %v9946_v55  ;;  %v9916_v57 = vadd.f32 %v18095_v30, %v26223_v59  ;;  %v9836_v34 = vpop.f32.mrb[63].mxu0 }
 0xb24   :  { %9977 = vst [vmem:[#allocation3 + $0x2c8] sm:$0xff] %v9945_v41  ;;  %v9915_v14 = vadd.f32 %v26223_v59, %v9836_v34 }
 0xb25   :  { %v9948_v6 = vmax.f32 %v9916_v57, 0.0 }
 0xb26   :  { %v9947_v0 = vmax.f32 %v9915_v14, 0.0 }
 0xb27   :  { %9980 = vst [vmem:[#allocation3 + $0x2f0] sm:$0xff] %v9948_v6 }
 0xb28   :  { %9979 = vst [vmem:[#allocation3 + $0x2e8] sm:$0xff] %v9947_v0 }
 0xb29   :  { %21257 = dma.done.wait [#allocation5 + $0x1], 18432 }
 0xb2a   :  { %21258 = vsyncadd [#allocation5 + $0x1], 4294948864  ;;  %v26260_v61 = vld [vmem:[%s27446_s1 + $0x1400] sm:$0xff]  ;;  %v26265_v21 = vld [vmem:[%s27446_s1 + $0x1408] sm:$0xff] }
 0xb2b   :  { %v26270_v59 = vld [vmem:[%s27446_s1 + $0x1410] sm:$0xff]  ;;  %v26275_v3 = vld [vmem:[%s27446_s1 + $0x1418] sm:$0xff]  ;;  %v26280_v31 = vld [vmem:[%s27446_s1 + $0x1420] sm:$0xff] }
 0xb2c   :  { %v26285_v28 = vld [vmem:[%s27446_s1 + $0x1428] sm:$0xff]  ;;  %v26290_v8 = vld [vmem:[%s27446_s1 + $0x1430] sm:$0xff]  ;;  %v26295_v60 = vld [vmem:[%s27446_s1 + $0x1438] sm:$0xff] }
 0xb2d   :  { %v26300_v32 = vld [vmem:[%s27446_s1 + $0x1440] sm:$0xff]  ;;  %v26305_v4 = vld [vmem:[%s27446_s1 + $0x1448] sm:$0xff]  ;;  %v26310_v29 = vld [vmem:[%s27446_s1 + $0x1450] sm:$0xff] }
 0xb2e   :  { %v26315_v45 = vld [vmem:[%s27446_s1 + $0x1458] sm:$0xff]  ;;  %v26320_v43 = vld [vmem:[%s27446_s1 + $0x1460] sm:$0xff]  ;;  %v26325_v44 = vld [vmem:[%s27446_s1 + $0x1468] sm:$0xff] }
 0xb2f   :  { %v26330_v62 = vld [vmem:[%s27446_s1 + $0x1470] sm:$0xff]  ;;  %v26335_v11 = vld [vmem:[%s27446_s1 + $0x1478] sm:$0xff] }
 0xb30   :  { %28623 = vst [vmem:[#allocation53_spill] sm:$0xff] %v26335_v11 }
 0xb31   :  { %10055 = vsyncadd [#allocation5], 2048  ;;  %v28624_v63 = vld [vmem:[#allocation154_spill] sm:$0xff]  ;;  %v28625_v35 = vld [vmem:[#allocation155_spill] sm:$0xff] }
 0xb32   :  { %v19840_v2 = vpack.c.bf16 %v28625_v35, %v28624_v63  ;;  %v28626_v25 = vld [vmem:[#allocation156_spill] sm:$0xff]  ;;  %v28627_v1 = vld [vmem:[#allocation157_spill] sm:$0xff]  ;;  %v28628_v38 = vld [vmem:[#allocation158_spill] sm:$0xff] }
 0xb33   :  { %v19844_v39 = vpack.c.bf16 %v28627_v1, %v28626_v25  ;;  %v26341_v49 = vld [vmem:[#allocation3 + $0x8] sm:$0xff]  ;;  %v28631_v50 = vld [vmem:[#allocation161_spill] sm:$0xff]  ;;  %v28632_v56 = vld [vmem:[#allocation162_spill] sm:$0xff] }
 0xb34   :  { %18128 = vmatprep.mubr.f32.mxu1 %v26341_v49  ;;  %19841 = vmatprep.subr.bf16.mxu1 %v19840_v2  ;;  %v28629_v51 = vld [vmem:[#allocation159_spill] sm:$0xff]  ;;  %v28630_v26 = vld [vmem:[#allocation160_spill] sm:$0xff]  ;;  %v28635_v58 = vld [vmem:[#allocation165_spill] sm:$0xff] }
 0xb35   :  { %19843 = vmatpush3.bf16.msra.mxu1 %v19840_v2  ;;  %v19848_v17 = vpack.c.bf16 %v28629_v51, %v28628_v38  ;;  %v19852_v40 = vpack.c.bf16 %v28631_v50, %v28630_v26  ;;  %v28633_v12 = vld [vmem:[#allocation163_spill] sm:$0xff]  ;;  %v28634_v19 = vld [vmem:[#allocation164_spill] sm:$0xff]  ;;  %v28636_v18 = vld [vmem:[#allocation166_spill] sm:$0xff] }
 0xb36   :  { %19845 = vmatprep.subr.bf16.mxu1 %v19844_v39  ;;  %v19856_v24 = vpack.c.bf16 %v28633_v12, %v28632_v56  ;;  %v19860_v5 = vpack.c.bf16 %v28635_v58, %v28634_v19  ;;  %v28637_v10 = vld [vmem:[#allocation167_spill] sm:$0xff]  ;;  %v28638_v20 = vld [vmem:[#allocation168_spill] sm:$0xff]  ;;  %v28639_v36 = vld [vmem:[#allocation169_spill] sm:$0xff] }
 0xb37   :  { %v19864_v15 = vpack.c.bf16 %v28637_v10, %v28636_v18  ;;  %v19868_v37 = vpack.c.bf16 %v28639_v36, %v28638_v20  ;;  %v28640_v7 = vld [vmem:[#allocation138_spill] sm:$0xff]  ;;  %v28641_v48 = vld [vmem:[#allocation139_spill] sm:$0xff]  ;;  %v26358_v47 = vld [vmem:[#allocation3 + $0x10] sm:$0xff] }
 0xb38   :  { %v19872_v16 = vpack.c.bf16 %v28641_v48, %v28640_v7  ;;  %v26360_v13 = vld [vmem:[#allocation3 + $0x28] sm:$0xff]  ;;  %v28643_v9 = vld [vmem:[#allocation141_spill] sm:$0xff]  ;;  %v28644_v54 = vld [vmem:[#allocation142_spill] sm:$0xff] }
 0xb39   :  { %19847 = vmatpush3.bf16.msra.mxu1 %v19844_v39  ;;  %v28642_v27 = vld [vmem:[#allocation140_spill] sm:$0xff]  ;;  %v28645_v53 = vld [vmem:[#allocation143_spill] sm:$0xff]  ;;  %v28647_v41 = vld [vmem:[#allocation145_spill] sm:$0xff] }
 0xb3a   :  { %19849 = vmatprep.subr.bf16.mxu1 %v19848_v17  ;;  %v19876_v23 = vpack.c.bf16 %v28643_v9, %v28642_v27  ;;  %v26366_v22 = vld [vmem:[#allocation3 + $0x30] sm:$0xff]  ;;  %v26368_v46 = vld [vmem:[#allocation3 + $0x48] sm:$0xff]  ;;  %v19880_v52 = vpack.c.bf16 %v28645_v53, %v28644_v54  ;;  %v28648_v14 = vld [vmem:[#allocation146_spill] sm:$0xff] }
 0xb3b   :  { %v26374_v33 = vld [vmem:[#allocation3 + $0x50] sm:$0xff]  ;;  %v26376_v42 = vld [vmem:[#allocation3 + $0x68] sm:$0xff]  ;;  %v28652_v51 = vld [vmem:[#allocation150_spill] sm:$0xff] }
 0xb3c   :  { %v28646_v55 = vld [vmem:[#allocation144_spill] sm:$0xff]  ;;  %v28649_v6 = vld [vmem:[#allocation147_spill] sm:$0xff]  ;;  %v28651_v25 = vld [vmem:[#allocation149_spill] sm:$0xff] }
 0xb3d   :  { %19851 = vmatpush3.bf16.msra.mxu1 %v19848_v17  ;;  %v19884_v30 = vpack.c.bf16 %v28647_v41, %v28646_v55  ;;  %v26382_v57 = vld [vmem:[#allocation3 + $0x70] sm:$0xff]  ;;  %v26384_v34 = vld [vmem:[#allocation3 + $0x88] sm:$0xff]  ;;  %v19888_v0 = vpack.c.bf16 %v28649_v6, %v28648_v14  ;;  %v10058_v14 = vld [vmem:[#allocation3 + $0x20] sm:$0xff] }
 0xb3e   :  { %19853 = vmatprep.subr.bf16.mxu1 %v19852_v40  ;;  %v26390_v63 = vld [vmem:[#allocation3 + $0x90] sm:$0xff]  ;;  %v26392_v35 = vld [vmem:[#allocation3 + $0xa8] sm:$0xff] }
 0xb3f   :  { %v28650_v2 = vld [vmem:[#allocation148_spill] sm:$0xff]  ;;  %v28653_v17 = vld [vmem:[#allocation151_spill] sm:$0xff]  ;;  %v28655_v12 = vld [vmem:[#allocation153_spill] sm:$0xff] }
 0xb40   :  { %v19892_v1 = vpack.c.bf16 %v28651_v25, %v28650_v2  ;;  %v26398_v39 = vld [vmem:[#allocation3 + $0xb0] sm:$0xff]  ;;  %v26400_v38 = vld [vmem:[#allocation3 + $0xc8] sm:$0xff]  ;;  %v19896_v26 = vpack.c.bf16 %v28653_v17, %v28652_v51  ;;  %v10060_v25 = vld [vmem:[#allocation3 + $0x40] sm:$0xff] }
 0xb41   :  { %19855 = vmatpush3.bf16.msra.mxu1 %v19852_v40  ;;  %v26406_v50 = vld [vmem:[#allocation3 + $0xd0] sm:$0xff]  ;;  %v26408_v40 = vld [vmem:[#allocation3 + $0xe8] sm:$0xff] }
 0xb42   :  { %19857 = vmatprep.subr.bf16.mxu1 %v19856_v24  ;;  %v28654_v56 = vld [vmem:[#allocation152_spill] sm:$0xff]  ;;  %v28657_v18 = vld [vmem:[#allocation171_spill] sm:$0xff] }
 0xb43   :  { %v26414_v19 = vld [vmem:[#allocation3 + $0xf0] sm:$0xff]  ;;  %v26416_v58 = vld [vmem:[#allocation3 + $0x108] sm:$0xff] }
 0xb44   :  { %v26424_v20 = vld [vmem:[#allocation3 + $0x128] sm:$0xff]  ;;  %v26428_v36 = vld [vmem:[#allocation3 + $0x130] sm:$0xff] }
 0xb45   :  { %19859 = vmatpush3.bf16.msra.mxu1 %v19856_v24  ;;  %v19900_v24 = vpack.c.bf16 %v28655_v12, %v28654_v56  ;;  %v26434_v7 = vld [vmem:[#allocation3 + $0x150] sm:$0xff]  ;;  %v26436_v48 = vld [vmem:[#allocation3 + $0x168] sm:$0xff] }
 0xb46   :  { %19861 = vmatprep.subr.bf16.mxu1 %v19860_v5  ;;  %v26442_v27 = vld [vmem:[#allocation3 + $0x188] sm:$0xff]  ;;  %v26446_v9 = vld [vmem:[#allocation3 + $0x190] sm:$0xff] }
 0xb47   :  { %v26452_v54 = vld [vmem:[#allocation3 + $0x1b0] sm:$0xff]  ;;  %v26454_v53 = vld [vmem:[#allocation3 + $0x1c8] sm:$0xff] }
 0xb48   :  { %v26460_v55 = vld [vmem:[#allocation3 + $0x1e8] sm:$0xff]  ;;  %v26464_v41 = vld [vmem:[#allocation3 + $0x1f0] sm:$0xff] }
 0xb49   :  { %19863 = vmatpush3.bf16.msra.mxu1 %v19860_v5  ;;  %v28656_v5 = vld [vmem:[#allocation170_spill] sm:$0xff]  ;;  %v28658_v6 = vld [vmem:[#allocation172_spill] sm:$0xff]  ;;  %v28661_v51 = vld [vmem:[#allocation175_spill] sm:$0xff] }
 0xb4a   :  { %19865 = vmatprep.subr.bf16.mxu1 %v19864_v15  ;;  %v19904_v10 = vpack.c.bf16 %v28657_v18, %v28656_v5  ;;  %v28662_v56 = vld [vmem:[#allocation176_spill] sm:$0xff]  ;;  %v28663_v12 = vld [vmem:[#allocation177_spill] sm:$0xff]  ;;  %v28664_v5 = vld [vmem:[#allocation178_spill] sm:$0xff] }
 0xb4b   :  { %v28665_v18 = vld [vmem:[#allocation179_spill] sm:$0xff] }
 0xb4d   :  { %19867 = vmatpush3.bf16.msra.mxu1 %v19864_v15  ;;  %v26422_v15 = vld [vmem:[#allocation3 + $0x110] sm:$0xff] }
 0xb4e   :  { %19869 = vmatprep.subr.bf16.mxu1 %v19868_v37 }
 0xb51   :  { %19871 = vmatpush3.bf16.msra.mxu1 %v19868_v37  ;;  %v26430_v37 = vld [vmem:[#allocation3 + $0x148] sm:$0xff] }
 0xb52   :  { %19873 = vmatprep.subr.bf16.mxu1 %v19872_v16 }
 0xb54   :  { %18129 = vmatmul.mubr.f32.vlgmr.msra.gmra.mrb[32].mxu1 %v26358_v47 }
 0xb55   :  { %19875 = vmatpush3.bf16.msra.mxu1 %v19872_v16  ;;  %18131 = vmatprep.mubr.f32.mxu1 %v26360_v13  ;;  %v26440_v16 = vld [vmem:[#allocation3 + $0x170] sm:$0xff] }
 0xb56   :  { %19877 = vmatprep.subr.bf16.mxu1 %v19876_v23 }
 0xb58   :  { %18132 = vmatmul.mubr.f32.gmra.mrb[34].mxu1 %v26366_v22 }
 0xb59   :  { %18134 = vmatprep.mubr.f32.mxu1 %v26368_v46  ;;  %19879 = vmatpush3.bf16.msra.mxu1 %v19876_v23  ;;  %v26448_v23 = vld [vmem:[#allocation3 + $0x1a8] sm:$0xff] }
 0xb5a   :  { %19881 = vmatprep.subr.bf16.mxu1 %v19880_v52 }
 0xb5c   :  { %18135 = vmatmul.mubr.f32.gmra.mrb[36].mxu1 %v26374_v33 }
 0xb5d   :  { %18137 = vmatprep.mubr.f32.mxu1 %v26376_v42  ;;  %19883 = vmatpush3.bf16.msra.mxu1 %v19880_v52  ;;  %v26458_v52 = vld [vmem:[#allocation3 + $0x1d0] sm:$0xff] }
 0xb5e   :  { %19885 = vmatprep.subr.bf16.mxu1 %v19884_v30 }
 0xb60   :  { %18138 = vmatmul.mubr.f32.gmra.mrb[38].mxu1 %v26382_v57 }
 0xb61   :  { %18140 = vmatprep.mubr.f32.mxu1 %v26384_v34  ;;  %19887 = vmatpush3.bf16.msra.mxu1 %v19884_v30  ;;  %v10056_v30 = vld [vmem:[#allocation3] sm:$0xff] }
 0xb62   :  { %19889 = vmatprep.subr.bf16.mxu1 %v19888_v0 }
 0xb64   :  { %18141 = vmatmul.mubr.f32.gmra.mrb[40].mxu1 %v26390_v63 }
 0xb65   :  { %18143 = vmatprep.mubr.f32.mxu1 %v26392_v35  ;;  %19891 = vmatpush3.bf16.msra.mxu1 %v19888_v0  ;;  %v28659_v0 = vld [vmem:[#allocation173_spill] sm:$0xff] }
 0xb66   :  { %19893 = vmatprep.subr.bf16.mxu1 %v19892_v1  ;;  %v19908_v2 = vpack.c.bf16 %v28659_v0, %v28658_v6  ;;  %v28668_v0 = vld [vmem:[#allocation182_spill] sm:$0xff] }
 0xb68   :  { %18144 = vmatmul.mubr.f32.gmra.mrb[42].mxu1 %v26398_v39 }
 0xb69   :  { %18146 = vmatprep.mubr.f32.mxu1 %v26400_v38  ;;  %19895 = vmatpush3.bf16.msra.mxu1 %v19892_v1  ;;  %v28660_v1 = vld [vmem:[#allocation174_spill] sm:$0xff] }
 0xb6a   :  { %19897 = vmatprep.subr.bf16.mxu1 %v19896_v26  ;;  %v19912_v17 = vpack.c.bf16 %v28661_v51, %v28660_v1  ;;  %v28670_v1 = vld [vmem:[#allocation184_spill] sm:$0xff]  ;;  %v28671_v51 = vld [vmem:[#allocation185_spill] sm:$0xff] }
 0xb6c   :  { %18147 = vmatmul.mubr.f32.gmra.mrb[44].mxu1 %v26406_v50 }
 0xb6d   :  { %18149 = vmatprep.mubr.f32.mxu1 %v26408_v40  ;;  %19899 = vmatpush3.bf16.msra.mxu1 %v19896_v26  ;;  %v10062_v26 = vld [vmem:[#allocation3 + $0x60] sm:$0xff] }
 0xb6e   :  { %19901 = vmatprep.subr.bf16.mxu1 %v19900_v24 }
 0xb70   :  { %18150 = vmatmul.mubr.f32.gmra.mrb[46].mxu1 %v26414_v19 }
 0xb71   :  { %18152 = vmatprep.mubr.f32.mxu1 %v26416_v58  ;;  %19903 = vmatpush3.bf16.msra.mxu1 %v19900_v24  ;;  %v19916_v24 = vpack.c.bf16 %v28663_v12, %v28662_v56  ;;  %v28673_v56 = vld [vmem:[#allocation187_spill] sm:$0xff] }
 0xb72   :  { %19905 = vmatprep.subr.bf16.mxu1 %v19904_v10 }
 0xb74   :  { %18153 = vmatmul.mubr.f32.gmra.mrb[48].mxu1 %v26422_v15 }
 0xb75   :  { %18155 = vmatprep.mubr.f32.mxu1 %v26424_v20 }
 0xb78   :  { %18156 = vmatmul.mubr.f32.gmra.mrb[50].mxu1 %v26428_v36 }
 0xb79   :  { %18158 = vmatprep.mubr.f32.mxu1 %v26430_v37 }
 0xb7c   :  { %18159 = vmatmul.mubr.f32.gmra.mrb[52].mxu1 %v26434_v7 }
 0xb7d   :  { %18161 = vmatprep.mubr.f32.mxu1 %v26436_v48 }
 0xb80   :  { %18162 = vmatmul.mubr.f32.gmra.mrb[54].mxu1 %v26440_v16 }
 0xb81   :  { %18164 = vmatprep.mubr.f32.mxu1 %v26442_v27 }
 0xb84   :  { %18165 = vmatmul.mubr.f32.gmra.mrb[56].mxu1 %v26446_v9 }
 0xb85   :  { %18167 = vmatprep.mubr.f32.mxu1 %v26448_v23 }
 0xb88   :  { %18168 = vmatmul.mubr.f32.gmra.mrb[58].mxu1 %v26452_v54 }
 0xb89   :  { %18170 = vmatprep.mubr.f32.mxu1 %v26454_v53 }
 0xb8c   :  { %18171 = vmatmul.mubr.f32.gmra.mrb[60].mxu1 %v26458_v52 }
 0xb8d   :  { %18173 = vmatprep.mubr.f32.mxu1 %v26460_v55 }
 0xb90   :  { %18174 = vmatmul.mubr.f32.gmra.mrb[62].mxu1 %v26464_v41 }
 0xb91   :  { %18208 = vmatprep.mubr.f32.mxu1 %v10056_v30  ;;  %v28666_v30 = vld [vmem:[#allocation180_spill] sm:$0xff] }
 0xb94   :  { %18209 = vmatmul.mubr.f32.vlgmr.msra.gmra.mrb[32].mxu1 %v26341_v49  ;;  %v10064_v49 = vld [vmem:[#allocation3 + $0x80] sm:$0xff] }
 0xb95   :  { %19907 = vmatpush3.bf16.msra.mxu1 %v19904_v10  ;;  %18211 = vmatprep.mubr.f32.mxu1 %v10058_v14  ;;  %v19920_v10 = vpack.c.bf16 %v28665_v18, %v28664_v5  ;;  %v28667_v14 = vld [vmem:[#allocation181_spill] sm:$0xff]  ;;  %v26514_v5 = vld [vmem:[#allocation3 + $0x1c0] sm:$0xff] }
 0xb96   :  { %19909 = vmatprep.subr.bf16.mxu1 %v19908_v2  ;;  %v19924_v6 = vpack.c.bf16 %v28667_v14, %v28666_v30  ;;  %v26518_v18 = vld [vmem:[#allocation3 + $0x1e0] sm:$0xff]  ;;  %v28675_v30 = vld [vmem:[#allocation189_spill] sm:$0xff] }
 0xb98   :  { %18212 = vmatmul.mubr.f32.gmra.mrb[34].mxu1 %v26360_v13  ;;  %v10066_v13 = vld [vmem:[#allocation3 + $0xa0] sm:$0xff] }
 0xb99   :  { %18214 = vmatprep.mubr.f32.mxu1 %v10060_v25  ;;  %19911 = vmatpush3.bf16.msra.mxu1 %v19908_v2  ;;  %v28669_v2 = vld [vmem:[#allocation183_spill] sm:$0xff] }
 0xb9a   :  { %19913 = vmatprep.subr.bf16.mxu1 %v19912_v17  ;;  %v19928_v25 = vpack.c.bf16 %v28669_v2, %v28668_v0  ;;  %v28677_v0 = vld [vmem:[#allocation191_spill] sm:$0xff] }
 0xb9c   :  { %18215 = vmatmul.mubr.f32.gmra.mrb[36].mxu1 %v26368_v46  ;;  %v10068_v46 = vld [vmem:[#allocation3 + $0xc0] sm:$0xff] }
 0xb9d   :  { %18217 = vmatprep.mubr.f32.mxu1 %v10062_v26  ;;  %19915 = vmatpush3.bf16.msra.mxu1 %v19912_v17  ;;  %v19932_v17 = vpack.c.bf16 %v28671_v51, %v28670_v1  ;;  %v28672_v26 = vld [vmem:[#allocation186_spill] sm:$0xff] }
 0xb9e   :  { %19917 = vmatprep.subr.bf16.mxu1 %v19916_v24  ;;  %v19936_v12 = vpack.c.bf16 %v28673_v56, %v28672_v26  ;;  %v10593_v51 = vld [vmem:[#allocation3 + $0x78] sm:$0xff] }
 0xb9f   :  { %v10595_v56 = vld [vmem:[#allocation3 + $0x98] sm:$0xff] }
 0xba0   :  { %18218 = vmatmul.mubr.f32.gmra.mrb[38].mxu1 %v26376_v42  ;;  %v10070_v42 = vld [vmem:[#allocation3 + $0xe0] sm:$0xff] }
 0xba1   :  { %18220 = vmatprep.mubr.f32.mxu1 %v10064_v49  ;;  %19919 = vmatpush3.bf16.msra.mxu1 %v19916_v24  ;;  %v26502_v24 = vld [vmem:[#allocation3 + $0x160] sm:$0xff] }
 0xba2   :  { %19921 = vmatprep.subr.bf16.mxu1 %v19920_v10  ;;  %v26510_v49 = vld [vmem:[#allocation3 + $0x1a0] sm:$0xff] }
 0xba4   :  { %18221 = vmatmul.mubr.f32.gmra.mrb[40].mxu1 %v26384_v34  ;;  %v26488_v34 = vld [vmem:[#allocation3 + $0x100] sm:$0xff] }
 0xba5   :  { %18223 = vmatprep.mubr.f32.mxu1 %v10066_v13  ;;  %19923 = vmatpush3.bf16.msra.mxu1 %v19920_v10  ;;  %v10587_v10 = vld [vmem:[#allocation3 + $0x18] sm:$0xff]  ;;  %v28674_v13 = vld [vmem:[#allocation188_spill] sm:$0xff] }
 0xba6   :  { %19925 = vmatprep.subr.bf16.mxu1 %v19924_v6  ;;  %v19940_v14 = vpack.c.bf16 %v28675_v30, %v28674_v13  ;;  %v10597_v13 = vld [vmem:[#allocation3 + $0xb8] sm:$0xff]  ;;  %v28685_v30 = vld [vmem:[#allocation199_spill] sm:$0xff] }
 0xba8   :  { %18224 = vmatmul.mubr.f32.gmra.mrb[42].mxu1 %v26392_v35  ;;  %v26494_v35 = vld [vmem:[#allocation3 + $0x120] sm:$0xff] }
 0xba9   :  { %18226 = vmatprep.mubr.f32.mxu1 %v10068_v46  ;;  %19927 = vmatpush3.bf16.msra.mxu1 %v19924_v6  ;;  %v10589_v6 = vld [vmem:[#allocation3 + $0x38] sm:$0xff] }
 0xbaa   :  { %19929 = vmatprep.subr.bf16.mxu1 %v19928_v25  ;;  %v28676_v46 = vld [vmem:[#allocation190_spill] sm:$0xff] }
 0xbab   :  { %v19944_v2 = vpack.c.bf16 %v28677_v0, %v28676_v46  ;;  %v28687_v46 = vld [vmem:[#allocation201_spill] sm:$0xff] }
 0xbac   :  { %18227 = vmatmul.mubr.f32.gmra.mrb[44].mxu1 %v26400_v38  ;;  %v26498_v38 = vld [vmem:[#allocation3 + $0x140] sm:$0xff] }
 0xbad   :  { %18229 = vmatprep.mubr.f32.mxu1 %v10070_v42  ;;  %19931 = vmatpush3.bf16.msra.mxu1 %v19928_v25  ;;  %v10591_v25 = vld [vmem:[#allocation3 + $0x58] sm:$0xff] }
 0xbae   :  { %19933 = vmatprep.subr.bf16.mxu1 %v19932_v17  ;;  %v28679_v42 = vld [vmem:[#allocation193_spill] sm:$0xff] }
 0xbb0   :  { %18230 = vmatmul.mubr.f32.gmra.mrb[46].mxu1 %v26408_v40  ;;  %v26506_v40 = vld [vmem:[#allocation3 + $0x180] sm:$0xff] }
 0xbb1   :  { %18232 = vmatprep.mubr.f32.mxu1 %v26488_v34  ;;  %19935 = vmatpush3.bf16.msra.mxu1 %v19932_v17  ;;  %v28681_v17 = vld [vmem:[#allocation195_spill] sm:$0xff] }
 0xbb2   :  { %19937 = vmatprep.subr.bf16.mxu1 %v19936_v12 }
 0xbb4   :  { %18233 = vmatmul.mubr.f32.gmra.mrb[48].mxu1 %v26416_v58 }
 0xbb5   :  { %18235 = vmatprep.mubr.f32.mxu1 %v26494_v35 }
 0xbb8   :  { %18236 = vmatmul.mubr.f32.gmra.mrb[50].mxu1 %v26424_v20 }
 0xbb9   :  { %18238 = vmatprep.mubr.f32.mxu1 %v26498_v38 }
 0xbbc   :  { %18239 = vmatmul.mubr.f32.gmra.mrb[52].mxu1 %v26430_v37 }
 0xbbd   :  { %18241 = vmatprep.mubr.f32.mxu1 %v26502_v24 }
 0xbc0   :  { %18242 = vmatmul.mubr.f32.gmra.mrb[54].mxu1 %v26436_v48 }
 0xbc1   :  { %18244 = vmatprep.mubr.f32.mxu1 %v26506_v40 }
 0xbc4   :  { %18245 = vmatmul.mubr.f32.gmra.mrb[56].mxu1 %v26442_v27 }
 0xbc5   :  { %18247 = vmatprep.mubr.f32.mxu1 %v26510_v49 }
 0xbc8   :  { %18248 = vmatmul.mubr.f32.gmra.mrb[58].mxu1 %v26448_v23 }
 0xbc9   :  { %18250 = vmatprep.mubr.f32.mxu1 %v26514_v5 }
 0xbcc   :  { %18251 = vmatmul.mubr.f32.gmra.mrb[60].mxu1 %v26454_v53 }
 0xbcd   :  { %18253 = vmatprep.mubr.f32.mxu1 %v26518_v18 }
 0xbd0   :  { %18254 = vmatmul.mubr.f32.gmra.mrb[62].mxu1 %v26460_v55 }
 0xbd1   :  { %18288 = vmatprep.mubr.f32.mxu1 %v26358_v47  ;;  %v28678_v47 = vld [vmem:[#allocation192_spill] sm:$0xff] }
 0xbd2   :  { %v19948_v1 = vpack.c.bf16 %v28679_v42, %v28678_v47  ;;  %v26548_v42 = vld [vmem:[#allocation3 + $0x118] sm:$0xff] }
 0xbd4   :  { %18289 = vmatmul.mubr.f32.vlgmr.msra.gmra.mrb[32].mxu1 %v10587_v10 }
 0xbd5   :  { %19939 = vmatpush3.bf16.msra.mxu1 %v19936_v12  ;;  %18291 = vmatprep.mubr.f32.mxu1 %v26366_v22  ;;  %v28680_v22 = vld [vmem:[#allocation194_spill] sm:$0xff]  ;;  %v28683_v12 = vld [vmem:[#allocation197_spill] sm:$0xff] }
 0xbd6   :  { %19941 = vmatprep.subr.bf16.mxu1 %v19940_v14  ;;  %v19952_v26 = vpack.c.bf16 %v28681_v17, %v28680_v22  ;;  %v26568_v22 = vld [vmem:[#allocation3 + $0x1b8] sm:$0xff] }
 0xbd7   :  { %v26572_v17 = vld [vmem:[#allocation3 + $0x1d8] sm:$0xff] }
 0xbd8   :  { %18292 = vmatmul.mubr.f32.gmra.mrb[34].mxu1 %v10589_v6  ;;  %v10599_v6 = vld [vmem:[#allocation3 + $0xd8] sm:$0xff] }
 0xbd9   :  { %18294 = vmatprep.mubr.f32.mxu1 %v26374_v33  ;;  %19943 = vmatpush3.bf16.msra.mxu1 %v19940_v14  ;;  %v28682_v33 = vld [vmem:[#allocation196_spill] sm:$0xff] }
 0xbda   :  { %19945 = vmatprep.subr.bf16.mxu1 %v19944_v2  ;;  %v19956_v10 = vpack.c.bf16 %v28683_v12, %v28682_v33  ;;  %v28691_v33 = vld [vmem:[#allocation123_spill] sm:$0xff] }
 0xbdc   :  { %18295 = vmatmul.mubr.f32.gmra.mrb[36].mxu1 %v10591_v25  ;;  %v28689_v25 = vld [vmem:[#allocation121_spill] sm:$0xff] }
 0xbdd   :  { %18297 = vmatprep.mubr.f32.mxu1 %v26382_v57  ;;  %19947 = vmatpush3.bf16.msra.mxu1 %v19944_v2  ;;  %v28684_v57 = vld [vmem:[#allocation198_spill] sm:$0xff] }
 0xbde   :  { %19949 = vmatprep.subr.bf16.mxu1 %v19948_v1  ;;  %v19960_v14 = vpack.c.bf16 %v28685_v30, %v28684_v57  ;;  %v10601_v2 = vld [vmem:[#allocation3 + $0xf8] sm:$0xff]  ;;  %v28694_v30 = vld [vmem:[#allocation203_spill] sm:$0xff] }
 0xbe0   :  { %18298 = vmatmul.mubr.f32.gmra.mrb[38].mxu1 %v10593_v51  ;;  %v26564_v51 = vld [vmem:[#allocation3 + $0x198] sm:$0xff] }
 0xbe1   :  { %18300 = vmatprep.mubr.f32.mxu1 %v26390_v63  ;;  %19951 = vmatpush3.bf16.msra.mxu1 %v19948_v1  ;;  %v28686_v63 = vld [vmem:[#allocation200_spill] sm:$0xff]  ;;  %v26560_v1 = vld [vmem:[#allocation3 + $0x178] sm:$0xff] }
 0xbe2   :  { %19953 = vmatprep.subr.bf16.mxu1 %v19952_v26  ;;  %v19964_v0 = vpack.c.bf16 %v28687_v46, %v28686_v63  ;;  %v28699_v46 = vld [vmem:[#allocation206_spill] sm:$0xff] }
 0xbe4   :  { %18301 = vmatmul.mubr.f32.gmra.mrb[40].mxu1 %v10595_v56  ;;  %v28690_v56 = vld [vmem:[#allocation122_spill] sm:$0xff] }
 0xbe5   :  { %18303 = vmatprep.mubr.f32.mxu1 %v26398_v39  ;;  %19955 = vmatpush3.bf16.msra.mxu1 %v19952_v26  ;;  %v28688_v39 = vld [vmem:[#allocation202_spill] sm:$0xff]  ;;  %v19972_v12 = vpack.c.bf16 %v28691_v33, %v28690_v56  ;;  %v28705_v33 = vld [vmem:[#allocation131_spill] sm:$0xff] }
 0xbe6   :  { %19957 = vmatprep.subr.bf16.mxu1 %v19956_v10  ;;  %v19968_v47 = vpack.c.bf16 %v28689_v25, %v28688_v39  ;;  %v26576_v26 = vld [vmem:[#allocation3 + $0x1f8] sm:$0xff]  ;;  %v28703_v25 = vld [vmem:[#allocation208_spill] sm:$0xff] }
 0xbe7   :  { %v28704_v56 = vld [vmem:[#allocation130_spill] sm:$0xff] }
 0xbe8   :  { %18304 = vmatmul.mubr.f32.gmra.mrb[42].mxu1 %v10597_v13  ;;  %v28693_v13 = vld [vmem:[#allocation125_spill] sm:$0xff] }
 0xbe9   :  { %18306 = vmatprep.mubr.f32.mxu1 %v26406_v50  ;;  %19959 = vmatpush3.bf16.msra.mxu1 %v19956_v10  ;;  %v26552_v50 = vld [vmem:[#allocation3 + $0x138] sm:$0xff]  ;;  %v28692_v10 = vld [vmem:[#allocation124_spill] sm:$0xff] }
 0xbea   :  { %19961 = vmatprep.subr.bf16.mxu1 %v19960_v14  ;;  %v19976_v57 = vpack.c.bf16 %v28693_v13, %v28692_v10  ;;  %v26616_v10 = vld [vmem:[#allocation3 + $0x220] sm:$0xff] }
 0xbeb   :  { %v26622_v13 = vld [vmem:[#allocation3 + $0x240] sm:$0xff] }
 0xbec   :  { %18307 = vmatmul.mubr.f32.gmra.mrb[44].mxu1 %v10599_v6  ;;  %v28697_v6 = vld [vmem:[#allocation127_spill] sm:$0xff] }
 0xbed   :  { %18309 = vmatprep.mubr.f32.mxu1 %v26414_v19  ;;  %19963 = vmatpush3.bf16.msra.mxu1 %v19960_v14  ;;  %v26556_v19 = vld [vmem:[#allocation3 + $0x158] sm:$0xff] }
 0xbee   :  { %19965 = vmatprep.subr.bf16.mxu1 %v19964_v0 }
 0xbf0   :  { %18310 = vmatmul.mubr.f32.gmra.mrb[46].mxu1 %v10601_v2  ;;  %v28701_v2 = vld [vmem:[#allocation129_spill] sm:$0xff] }
 0xbf1   :  { %18312 = vmatprep.mubr.f32.mxu1 %v26422_v15  ;;  %19967 = vmatpush3.bf16.msra.mxu1 %v19964_v0 }
 0xbf2   :  { %19969 = vmatprep.subr.bf16.mxu1 %v19968_v47 }
 0xbf4   :  { %18313 = vmatmul.mubr.f32.gmra.mrb[48].mxu1 %v26548_v42 }
 0xbf5   :  { %18315 = vmatprep.mubr.f32.mxu1 %v26428_v36 }
 0xbf8   :  { %18316 = vmatmul.mubr.f32.gmra.mrb[50].mxu1 %v26552_v50 }
 0xbf9   :  { %18318 = vmatprep.mubr.f32.mxu1 %v26434_v7 }
 0xbfc   :  { %18319 = vmatmul.mubr.f32.gmra.mrb[52].mxu1 %v26556_v19 }
 0xbfd   :  { %18321 = vmatprep.mubr.f32.mxu1 %v26440_v16 }
 0xc00   :  { %18322 = vmatmul.mubr.f32.gmra.mrb[54].mxu1 %v26560_v1 }
 0xc01   :  { %18324 = vmatprep.mubr.f32.mxu1 %v26446_v9 }
 0xc04   :  { %18325 = vmatmul.mubr.f32.gmra.mrb[56].mxu1 %v26564_v51 }
 0xc05   :  { %18327 = vmatprep.mubr.f32.mxu1 %v26452_v54 }
 0xc08   :  { %18328 = vmatmul.mubr.f32.gmra.mrb[58].mxu1 %v26568_v22 }
 0xc09   :  { %18330 = vmatprep.mubr.f32.mxu1 %v26458_v52 }
 0xc0c   :  { %18331 = vmatmul.mubr.f32.gmra.mrb[60].mxu1 %v26572_v17 }
 0xc0d   :  { %18333 = vmatprep.mubr.f32.mxu1 %v26464_v41 }
 0xc10   :  { %18334 = vmatmul.mubr.f32.gmra.mrb[62].mxu1 %v26576_v26 }
 0xc11   :  { %18368 = vmatprep.mubr.f32.mxu1 %v26488_v34  ;;  %v28695_v34 = vld [vmem:[#allocation204_spill] sm:$0xff] }
 0xc12   :  { %v19980_v14 = vpack.c.bf16 %v28695_v34, %v28694_v30  ;;  %v26628_v30 = vld [vmem:[#allocation3 + $0x260] sm:$0xff]  ;;  %v26632_v34 = vld [vmem:[#allocation3 + $0x268] sm:$0xff] }
 0xc14   :  { %18369 = vmatmul.mubr.f32.vlgmr.msra.gmra.mrb[32].mxu1 %v26416_v58 }
 0xc15   :  { %19971 = vmatpush3.bf16.msra.mxu1 %v19968_v47  ;;  %18371 = vmatprep.mubr.f32.mxu1 %v26494_v35  ;;  %v28696_v35 = vld [vmem:[#allocation126_spill] sm:$0xff] }
 0xc16   :  { %19973 = vmatprep.subr.bf16.mxu1 %v19972_v12  ;;  %v19984_v63 = vpack.c.bf16 %v28697_v6, %v28696_v35  ;;  %v26638_v35 = vld [vmem:[#allocation3 + $0x288] sm:$0xff]  ;;  %v26640_v6 = vld [vmem:[#allocation3 + $0x2a0] sm:$0xff] }
 0xc18   :  { %18372 = vmatmul.mubr.f32.gmra.mrb[34].mxu1 %v26424_v20 }
 0xc19   :  { %18374 = vmatprep.mubr.f32.mxu1 %v26498_v38  ;;  %19975 = vmatpush3.bf16.msra.mxu1 %v19972_v12  ;;  %v28698_v38 = vld [vmem:[#allocation205_spill] sm:$0xff]  ;;  %v20000_v12 = vpack.c.bf16 %v28705_v33, %v28704_v56  ;;  %v28710_v33 = vld [vmem:[#allocation211_spill] sm:$0xff] }
 0xc1a   :  { %19977 = vmatprep.subr.bf16.mxu1 %v19976_v57  ;;  %v19988_v0 = vpack.c.bf16 %v28699_v46, %v28698_v38  ;;  %v26646_v38 = vld [vmem:[#allocation3 + $0x2c0] sm:$0xff]  ;;  %v26650_v46 = vld [vmem:[#allocation3 + $0x2c8] sm:$0xff] }
 0xc1c   :  { %18375 = vmatmul.mubr.f32.gmra.mrb[36].mxu1 %v26430_v37 }
 0xc1d   :  { %18377 = vmatprep.mubr.f32.mxu1 %v26502_v24  ;;  %19979 = vmatpush3.bf16.msra.mxu1 %v19976_v57  ;;  %v28700_v24 = vld [vmem:[#allocation128_spill] sm:$0xff] }
 0xc1e   :  { %19981 = vmatprep.subr.bf16.mxu1 %v19980_v14  ;;  %v19992_v39 = vpack.c.bf16 %v28701_v2, %v28700_v24  ;;  %v26626_v57 = vld [vmem:[#allocation3 + $0x248] sm:$0xff]  ;;  %v28706_v2 = vld [vmem:[#allocation209_spill] sm:$0xff] }
 0xc1f   :  { %v26656_v24 = vld [vmem:[#allocation3 + $0x2e8] sm:$0xff] }
 0xc20   :  { %18378 = vmatmul.mubr.f32.gmra.mrb[38].mxu1 %v26436_v48 }
 0xc21   :  { %18380 = vmatprep.mubr.f32.mxu1 %v26506_v40  ;;  %19983 = vmatpush3.bf16.msra.mxu1 %v19980_v14  ;;  %v28702_v40 = vld [vmem:[#allocation207_spill] sm:$0xff] }
 0xc22   :  { %19985 = vmatprep.subr.bf16.mxu1 %v19984_v63  ;;  %v19996_v47 = vpack.c.bf16 %v28703_v25, %v28702_v40  ;;  %v26634_v14 = vld [vmem:[#allocation3 + $0x280] sm:$0xff]  ;;  %v28708_v25 = vld [vmem:[#allocation132_spill] sm:$0xff] }
 0xc24   :  { %18381 = vmatmul.mubr.f32.gmra.mrb[40].mxu1 %v26442_v27 }
 0xc25   :  { %18383 = vmatprep.mubr.f32.mxu1 %v26510_v49  ;;  %19987 = vmatpush3.bf16.msra.mxu1 %v19984_v63  ;;  %v26608_v49 = vld [vmem:[#allocation3 + $0x200] sm:$0xff]  ;;  %v26644_v63 = vld [vmem:[#allocation3 + $0x2a8] sm:$0xff] }
 0xc26   :  { %19989 = vmatprep.subr.bf16.mxu1 %v19988_v0 }
 0xc28   :  { %18384 = vmatmul.mubr.f32.gmra.mrb[42].mxu1 %v26448_v23 }
 0xc29   :  { %18386 = vmatprep.mubr.f32.mxu1 %v26514_v5  ;;  %19991 = vmatpush3.bf16.msra.mxu1 %v19988_v0  ;;  %v26614_v5 = vld [vmem:[#allocation3 + $0x208] sm:$0xff]  ;;  %v26652_v0 = vld [vmem:[#allocation3 + $0x2e0] sm:$0xff] }
 0xc2a   :  { %19993 = vmatprep.subr.bf16.mxu1 %v19992_v39 }
 0xc2c   :  { %18387 = vmatmul.mubr.f32.gmra.mrb[44].mxu1 %v26454_v53 }
 0xc2d   :  { %18389 = vmatprep.mubr.f32.mxu1 %v26518_v18  ;;  %19995 = vmatpush3.bf16.msra.mxu1 %v19992_v39  ;;  %v26620_v18 = vld [vmem:[#allocation3 + $0x228] sm:$0xff]  ;;  %v28707_v39 = vld [vmem:[#allocation210_spill] sm:$0xff] }
 0xc2e   :  { %19997 = vmatprep.subr.bf16.mxu1 %v19996_v47  ;;  %v20004_v40 = vpack.c.bf16 %v28707_v39, %v28706_v2  ;;  %v28715_v39 = vld [vmem:[#allocation215_spill] sm:$0xff] }
 0xc30   :  { %18390 = vmatmul.mubr.f32.gmra.mrb[46].mxu1 %v26460_v55 }
 0xc31   :  { %18392 = vmatprep.mubr.f32.mxu1 %v26608_v49  ;;  %19999 = vmatpush3.bf16.msra.mxu1 %v19996_v47  ;;  %v28709_v47 = vld [vmem:[#allocation133_spill] sm:$0xff] }
 0xc32   :  { %20001 = vmatprep.subr.bf16.mxu1 %v20000_v12  ;;  %v20008_v56 = vpack.c.bf16 %v28709_v47, %v28708_v25  ;;  %v28717_v25 = vld [vmem:[#allocation135_spill] sm:$0xff] }
 0xc34   :  { %18393 = vmatmul.mubr.f32.gmra.mrb[48].mxu1 %v26614_v5 }
 0xc35   :  { %18395 = vmatprep.mubr.f32.mxu1 %v26616_v10 }
 0xc38   :  { %18396 = vmatmul.mubr.f32.gmra.mrb[50].mxu1 %v26620_v18 }
 0xc39   :  { %18398 = vmatprep.mubr.f32.mxu1 %v26622_v13 }
 0xc3c   :  { %18399 = vmatmul.mubr.f32.gmra.mrb[52].mxu1 %v26626_v57 }
 0xc3d   :  { %18401 = vmatprep.mubr.f32.mxu1 %v26628_v30 }
 0xc40   :  { %18402 = vmatmul.mubr.f32.gmra.mrb[54].mxu1 %v26632_v34 }
 0xc41   :  { %18404 = vmatprep.mubr.f32.mxu1 %v26634_v14 }
 0xc44   :  { %18405 = vmatmul.mubr.f32.gmra.mrb[56].mxu1 %v26638_v35 }
 0xc45   :  { %18407 = vmatprep.mubr.f32.mxu1 %v26640_v6 }
 0xc48   :  { %18408 = vmatmul.mubr.f32.gmra.mrb[58].mxu1 %v26644_v63 }
 0xc49   :  { %18410 = vmatprep.mubr.f32.mxu1 %v26646_v38 }
 0xc4c   :  { %18411 = vmatmul.mubr.f32.gmra.mrb[60].mxu1 %v26650_v46 }
 0xc4d   :  { %18413 = vmatprep.mubr.f32.mxu1 %v26652_v0 }
 0xc50   :  { %18414 = vmatmul.mubr.f32.gmra.mrb[62].mxu1 %v26656_v24 }
 0xc51   :  { %18448 = vmatprep.mubr.f32.mxu1 %v26416_v58  ;;  %v28711_v58 = vld [vmem:[#allocation212_spill] sm:$0xff] }
 0xc52   :  { %v20012_v11 = vpack.c.bf16 %v28711_v58, %v28710_v33  ;;  %v28721_v33 = vld [vmem:[#allocation105_spill] sm:$0xff] }
 0xc54   :  { %18449 = vmatmul.mubr.f32.vlgmr.msra.gmra.mrb[32].mxu1 %v26422_v15 }
 0xc55   :  { %20003 = vmatpush3.bf16.msra.mxu1 %v20000_v12  ;;  %18451 = vmatprep.mubr.f32.mxu1 %v26424_v20  ;;  %v28712_v20 = vld [vmem:[#allocation213_spill] sm:$0xff]  ;;  %v28713_v12 = vld [vmem:[#allocation214_spill] sm:$0xff] }
 0xc56   :  { %20005 = vmatprep.subr.bf16.mxu1 %v20004_v40  ;;  %v20016_v2 = vpack.c.bf16 %v28713_v12, %v28712_v20  ;;  %v26692_v20 = vld [vmem:[#allocation3 + $0x210] sm:$0xff] }
 0xc57   :  { %v26704_v12 = vld [vmem:[#allocation3 + $0x270] sm:$0xff] }
 0xc58   :  { %18452 = vmatmul.mubr.f32.gmra.mrb[34].mxu1 %v26428_v36 }
 0xc59   :  { %18454 = vmatprep.mubr.f32.mxu1 %v26430_v37  ;;  %20007 = vmatpush3.bf16.msra.mxu1 %v20004_v40  ;;  %v28714_v37 = vld [vmem:[#allocation134_spill] sm:$0xff] }
 0xc5a   :  { %20009 = vmatprep.subr.bf16.mxu1 %v20008_v56  ;;  %v20020_v40 = vpack.c.bf16 %v28715_v39, %v28714_v37  ;;  %v26712_v37 = vld [vmem:[#allocation3 + $0x2b0] sm:$0xff] }
 0xc5b   :  { %v26716_v39 = vld [vmem:[#allocation3 + $0x2d0] sm:$0xff] }
 0xc5c   :  { %18455 = vmatmul.mubr.f32.gmra.mrb[36].mxu1 %v26434_v7 }
 0xc5d   :  { %18457 = vmatprep.mubr.f32.mxu1 %v26436_v48  ;;  %20011 = vmatpush3.bf16.msra.mxu1 %v20008_v56  ;;  %v28716_v48 = vld [vmem:[#allocation216_spill] sm:$0xff] }
 0xc5e   :  { %20013 = vmatprep.subr.bf16.mxu1 %v20012_v11  ;;  %v20024_v47 = vpack.c.bf16 %v28717_v25, %v28716_v48  ;;  %v28722_v48 = vld [vmem:[#allocation106_spill] sm:$0xff]  ;;  %v28723_v25 = vld [vmem:[#allocation107_spill] sm:$0xff] }
 0xc60   :  { %18458 = vmatmul.mubr.f32.gmra.mrb[38].mxu1 %v26440_v16 }
 0xc61   :  { %18460 = vmatprep.mubr.f32.mxu1 %v26442_v27  ;;  %20015 = vmatpush3.bf16.msra.mxu1 %v20012_v11  ;;  %v28718_v11 = vld [vmem:[#allocation136_spill] sm:$0xff]  ;;  %v28719_v27 = vld [vmem:[#allocation217_spill] sm:$0xff] }
 0xc62   :  { %20017 = vmatprep.subr.bf16.mxu1 %v20016_v2  ;;  %v20028_v56 = vpack.c.bf16 %v28719_v27, %v28718_v11  ;;  %v28724_v11 = vld [vmem:[#allocation108_spill] sm:$0xff]  ;;  %v28725_v27 = vld [vmem:[#allocation109_spill] sm:$0xff] }
 0xc64   :  { %18461 = vmatmul.mubr.f32.gmra.mrb[40].mxu1 %v26446_v9 }
 0xc65   :  { %18463 = vmatprep.mubr.f32.mxu1 %v26448_v23  ;;  %20019 = vmatpush3.bf16.msra.mxu1 %v20016_v2  ;;  %v28720_v23 = vld [vmem:[#allocation218_spill] sm:$0xff]  ;;  %v26708_v2 = vld [vmem:[#allocation3 + $0x290] sm:$0xff] }
 0xc66   :  { %20021 = vmatprep.subr.bf16.mxu1 %v20020_v40  ;;  %v20032_v58 = vpack.c.bf16 %v28721_v33, %v28720_v23  ;;  %v28726_v23 = vld [vmem:[#allocation110_spill] sm:$0xff] }
 0xc68   :  { %18464 = vmatmul.mubr.f32.gmra.mrb[42].mxu1 %v26452_v54 }
 0xc69   :  { %18466 = vmatprep.mubr.f32.mxu1 %v26454_v53  ;;  %20023 = vmatpush3.bf16.msra.mxu1 %v20020_v40  ;;  %v26696_v53 = vld [vmem:[#allocation3 + $0x230] sm:$0xff] }
 0xc6a   :  { %20025 = vmatprep.subr.bf16.mxu1 %v20024_v47  ;;  %v26720_v40 = vld [vmem:[#allocation3 + $0x2f0] sm:$0xff] }
 0xc6c   :  { %18467 = vmatmul.mubr.f32.gmra.mrb[44].mxu1 %v26458_v52 }
 0xc6d   :  { %18469 = vmatprep.mubr.f32.mxu1 %v26460_v55  ;;  %20027 = vmatpush3.bf16.msra.mxu1 %v20024_v47  ;;  %v26700_v55 = vld [vmem:[#allocation3 + $0x250] sm:$0xff]  ;;  %v20036_v47 = vpack.c.bf16 %v28723_v25, %v28722_v48 }
 0xc6e   :  { %20029 = vmatprep.subr.bf16.mxu1 %v20028_v56 }
 0xc70   :  { %18470 = vmatmul.mubr.f32.gmra.mrb[46].mxu1 %v26464_v41 }
 0xc71   :  { %18472 = vmatprep.mubr.f32.mxu1 %v26614_v5  ;;  %20031 = vmatpush3.bf16.msra.mxu1 %v20028_v56  ;;  %v20040_v56 = vpack.c.bf16 %v28725_v27, %v28724_v11  ;;  %v26776_v27 = vld [vmem:[#allocation3 + $0x2b8] sm:$0xff] }
 0xc72   :  { %20033 = vmatprep.subr.bf16.mxu1 %v20032_v58 }
 0xc74   :  { %18473 = vmatmul.mubr.f32.gmra.mrb[48].mxu1 %v26692_v20 }
 0xc75   :  { %18475 = vmatprep.mubr.f32.mxu1 %v26620_v18 }
 0xc78   :  { %18476 = vmatmul.mubr.f32.gmra.mrb[50].mxu1 %v26696_v53 }
 0xc79   :  { %18478 = vmatprep.mubr.f32.mxu1 %v26626_v57 }
 0xc7c   :  { %18479 = vmatmul.mubr.f32.gmra.mrb[52].mxu1 %v26700_v55 }
 0xc7d   :  { %18481 = vmatprep.mubr.f32.mxu1 %v26632_v34 }
 0xc80   :  { %18482 = vmatmul.mubr.f32.gmra.mrb[54].mxu1 %v26704_v12 }
 0xc81   :  { %18484 = vmatprep.mubr.f32.mxu1 %v26638_v35 }
 0xc84   :  { %18485 = vmatmul.mubr.f32.gmra.mrb[56].mxu1 %v26708_v2 }
 0xc85   :  { %18487 = vmatprep.mubr.f32.mxu1 %v26644_v63 }
 0xc88   :  { %18488 = vmatmul.mubr.f32.gmra.mrb[58].mxu1 %v26712_v37 }
 0xc89   :  { %18490 = vmatprep.mubr.f32.mxu1 %v26650_v46 }
 0xc8c   :  { %18491 = vmatmul.mubr.f32.gmra.mrb[60].mxu1 %v26716_v39 }
 0xc8d   :  { %18493 = vmatprep.mubr.f32.mxu1 %v26656_v24 }
 0xc90   :  { %18494 = vmatmul.mubr.f32.gmra.mrb[62].mxu1 %v26720_v40 }
 0xc91   :  { %18528 = vmatprep.mubr.f32.mxu1 %v26422_v15  ;;  %v28727_v15 = vld [vmem:[#allocation111_spill] sm:$0xff] }
 0xc92   :  { %v20044_v33 = vpack.c.bf16 %v28727_v15, %v28726_v23  ;;  %v26784_v23 = vld [vmem:[#allocation3 + $0x2f8] sm:$0xff]  ;;  %v28738_v15 = vld [vmem:[#allocation224_spill] sm:$0xff] }
 0xc94   :  { %18529 = vmatmul.mubr.f32.vlgmr.msra.gmra.mrb[32].mxu1 %v26548_v42  ;;  %v28729_v42 = vld [vmem:[#allocation113_spill] sm:$0xff] }
 0xc95   :  { %20035 = vmatpush3.bf16.msra.mxu1 %v20032_v58  ;;  %18531 = vmatprep.mubr.f32.mxu1 %v26428_v36  ;;  %v28728_v36 = vld [vmem:[#allocation112_spill] sm:$0xff] }
 0xc96   :  { %20037 = vmatprep.subr.bf16.mxu1 %v20036_v47  ;;  %v20048_v58 = vpack.c.bf16 %v28729_v42, %v28728_v36  ;;  %v28740_v42 = vld [vmem:[#allocation226_spill] sm:$0xff] }
 0xc98   :  { %18532 = vmatmul.mubr.f32.gmra.mrb[34].mxu1 %v26552_v50  ;;  %v28731_v50 = vld [vmem:[#allocation115_spill] sm:$0xff] }
 0xc99   :  { %18534 = vmatprep.mubr.f32.mxu1 %v26434_v7  ;;  %20039 = vmatpush3.bf16.msra.mxu1 %v20036_v47  ;;  %v28730_v7 = vld [vmem:[#allocation114_spill] sm:$0xff] }
 0xc9a   :  { %20041 = vmatprep.subr.bf16.mxu1 %v20040_v56  ;;  %v20052_v48 = vpack.c.bf16 %v28731_v50, %v28730_v7  ;;  %v28742_v50 = vld [vmem:[#allocation228_spill] sm:$0xff] }
 0xc9c   :  { %18535 = vmatmul.mubr.f32.gmra.mrb[36].mxu1 %v26556_v19  ;;  %v28733_v19 = vld [vmem:[#allocation219_spill] sm:$0xff] }
 0xc9d   :  { %18537 = vmatprep.mubr.f32.mxu1 %v26440_v16  ;;  %20043 = vmatpush3.bf16.msra.mxu1 %v20040_v56  ;;  %v28732_v16 = vld [vmem:[#allocation116_spill] sm:$0xff]  ;;  %v26780_v56 = vld [vmem:[#allocation3 + $0x2d8] sm:$0xff] }
 0xc9e   :  { %20045 = vmatprep.subr.bf16.mxu1 %v20044_v33  ;;  %v20056_v25 = vpack.c.bf16 %v28733_v19, %v28732_v16  ;;  %v28745_v16 = vld [vmem:[#allocation231_spill] sm:$0xff] }
 0xca0   :  { %18538 = vmatmul.mubr.f32.gmra.mrb[38].mxu1 %v26560_v1  ;;  %v28735_v1 = vld [vmem:[#allocation221_spill] sm:$0xff] }
 0xca1   :  { %18540 = vmatprep.mubr.f32.mxu1 %v26446_v9  ;;  %20047 = vmatpush3.bf16.msra.mxu1 %v20044_v33  ;;  %v28734_v9 = vld [vmem:[#allocation220_spill] sm:$0xff]  ;;  %v28739_v33 = vld [vmem:[#allocation225_spill] sm:$0xff] }
 0xca2   :  { %20049 = vmatprep.subr.bf16.mxu1 %v20048_v58  ;;  %v20060_v47 = vpack.c.bf16 %v28735_v1, %v28734_v9  ;;  %v20068_v36 = vpack.c.bf16 %v28739_v33, %v28738_v15  ;;  %v28749_v1 = vld [vmem:[#allocation235_spill] sm:$0xff] }
 0xca3   :  { %v28753_v15 = vld [vmem:[#allocation239_spill] sm:$0xff] }
 0xca4   :  { %18541 = vmatmul.mubr.f32.gmra.mrb[40].mxu1 %v26564_v51  ;;  %v28737_v51 = vld [vmem:[#allocation223_spill] sm:$0xff] }
 0xca5   :  { %18543 = vmatprep.mubr.f32.mxu1 %v26452_v54  ;;  %20051 = vmatpush3.bf16.msra.mxu1 %v20048_v58  ;;  %v28736_v54 = vld [vmem:[#allocation222_spill] sm:$0xff]  ;;  %v28741_v58 = vld [vmem:[#allocation227_spill] sm:$0xff] }
 0xca6   :  { %20053 = vmatprep.subr.bf16.mxu1 %v20052_v48  ;;  %v20064_v11 = vpack.c.bf16 %v28737_v51, %v28736_v54  ;;  %v20072_v7 = vpack.c.bf16 %v28741_v58, %v28740_v42  ;;  %v28751_v54 = vld [vmem:[#allocation237_spill] sm:$0xff]  ;;  %v26822_v42 = vld [vmem:[#allocation3 + $0x328] sm:$0xff] }
 0xca7   :  { %v26825_v58 = vld [vmem:[#allocation3 + $0x348] sm:$0xff] }
 0xca8   :  { %18544 = vmatmul.mubr.f32.gmra.mrb[42].mxu1 %v26568_v22  ;;  %v26756_v22 = vld [vmem:[#allocation3 + $0x218] sm:$0xff] }
 0xca9   :  { %18546 = vmatprep.mubr.f32.mxu1 %v26458_v52  ;;  %20055 = vmatpush3.bf16.msra.mxu1 %v20052_v48  ;;  %v26760_v52 = vld [vmem:[#allocation3 + $0x238] sm:$0xff] }
 0xcaa   :  { %20057 = vmatprep.subr.bf16.mxu1 %v20056_v25 }
 0xcac   :  { %18547 = vmatmul.mubr.f32.gmra.mrb[44].mxu1 %v26572_v17  ;;  %v26768_v17 = vld [vmem:[#allocation3 + $0x278] sm:$0xff] }
 0xcad   :  { %18549 = vmatprep.mubr.f32.mxu1 %v26464_v41  ;;  %20059 = vmatpush3.bf16.msra.mxu1 %v20056_v25  ;;  %v26764_v41 = vld [vmem:[#allocation3 + $0x258] sm:$0xff] }
 0xcae   :  { %20061 = vmatprep.subr.bf16.mxu1 %v20060_v47  ;;  %v28747_v25 = vld [vmem:[#allocation233_spill] sm:$0xff] }
 0xcb0   :  { %18550 = vmatmul.mubr.f32.gmra.mrb[46].mxu1 %v26576_v26  ;;  %v26772_v26 = vld [vmem:[#allocation3 + $0x298] sm:$0xff] }
 0xcb1   :  { %18552 = vmatprep.mubr.f32.mxu1 %v26692_v20  ;;  %20063 = vmatpush3.bf16.msra.mxu1 %v20060_v47 }
 0xcb2   :  { %20065 = vmatprep.subr.bf16.mxu1 %v20064_v11 }
 0xcb4   :  { %18553 = vmatmul.mubr.f32.gmra.mrb[48].mxu1 %v26756_v22 }
 0xcb5   :  { %18555 = vmatprep.mubr.f32.mxu1 %v26696_v53 }
 0xcb8   :  { %18556 = vmatmul.mubr.f32.gmra.mrb[50].mxu1 %v26760_v52 }
 0xcb9   :  { %18558 = vmatprep.mubr.f32.mxu1 %v26700_v55 }
 0xcbc   :  { %18559 = vmatmul.mubr.f32.gmra.mrb[52].mxu1 %v26764_v41 }
 0xcbd   :  { %18561 = vmatprep.mubr.f32.mxu1 %v26704_v12 }
 0xcc0   :  { %18562 = vmatmul.mubr.f32.gmra.mrb[54].mxu1 %v26768_v17 }
 0xcc1   :  { %18564 = vmatprep.mubr.f32.mxu1 %v26708_v2 }
 0xcc4   :  { %18565 = vmatmul.mubr.f32.gmra.mrb[56].mxu1 %v26772_v26 }
 0xcc5   :  { %18567 = vmatprep.mubr.f32.mxu1 %v26712_v37 }
 0xcc8   :  { %18568 = vmatmul.mubr.f32.gmra.mrb[58].mxu1 %v26776_v27 }
 0xcc9   :  { %18570 = vmatprep.mubr.f32.mxu1 %v26716_v39 }
 0xccc   :  { %18571 = vmatmul.mubr.f32.gmra.mrb[60].mxu1 %v26780_v56 }
 0xccd   :  { %18573 = vmatprep.mubr.f32.mxu1 %v26720_v40 }
 0xcd0   :  { %18574 = vmatmul.mubr.f32.gmra.mrb[62].mxu1 %v26784_v23 }
 0xcd1   :  { %18608 = vmatprep.mubr.f32.mxu1 %v26608_v49  ;;  %v28743_v49 = vld [vmem:[#allocation229_spill] sm:$0xff] }
 0xcd2   :  { %v20076_v48 = vpack.c.bf16 %v28743_v49, %v28742_v50  ;;  %v26828_v50 = vld [vmem:[#allocation3 + $0x368] sm:$0xff]  ;;  %v11831_v49 = vld [vmem:[#allocation3 + $0x380] sm:$0xff] }
 0xcd4   :  { %18609 = vmatmul.mubr.f32.vlgmr.msra.gmra.mrb[32].mxu1 %v26614_v5 }
 0xcd5   :  { %20067 = vmatpush3.bf16.msra.mxu1 %v20064_v11  ;;  %18611 = vmatprep.mubr.f32.mxu1 %v26616_v10  ;;  %v28744_v10 = vld [vmem:[#allocation230_spill] sm:$0xff] }
 0xcd6   :  { %20069 = vmatprep.subr.bf16.mxu1 %v20068_v36  ;;  %v20080_v19 = vpack.c.bf16 %v28745_v16, %v28744_v10  ;;  %v28752_v11 = vld [vmem:[#allocation238_spill] sm:$0xff]  ;;  %v11834_v16 = vld [vmem:[#allocation3 + $0x3a8] sm:$0xff] }
 0xcd7   :  { %v20096_v33 = vpack.c.bf16 %v28753_v15, %v28752_v11  ;;  %v11833_v10 = vld [vmem:[#allocation3 + $0x3a0] sm:$0xff] }
 0xcd8   :  { %18612 = vmatmul.mubr.f32.gmra.mrb[34].mxu1 %v26620_v18  ;;  %v28761_v15 = vld [vmem:[#allocation247_spill] sm:$0xff] }
 0xcd9   :  { %18614 = vmatprep.mubr.f32.mxu1 %v26622_v13  ;;  %20071 = vmatpush3.bf16.msra.mxu1 %v20068_v36  ;;  %v28746_v13 = vld [vmem:[#allocation232_spill] sm:$0xff] }
 0xcda   :  { %20073 = vmatprep.subr.bf16.mxu1 %v20072_v7  ;;  %v20084_v9 = vpack.c.bf16 %v28747_v25, %v28746_v13  ;;  %v26819_v36 = vld [vmem:[#allocation3 + $0x308] sm:$0xff]  ;;  %v11837_v25 = vld [vmem:[#allocation3 + $0x3e0] sm:$0xff] }
 0xcdb   :  { %v11836_v13 = vld [vmem:[#allocation3 + $0x3c8] sm:$0xff] }
 0xcdc   :  { %18615 = vmatmul.mubr.f32.gmra.mrb[36].mxu1 %v26626_v57 }
 0xcdd   :  { %18617 = vmatprep.mubr.f32.mxu1 %v26628_v30  ;;  %20075 = vmatpush3.bf16.msra.mxu1 %v20072_v7  ;;  %v28748_v30 = vld [vmem:[#allocation234_spill] sm:$0xff] }
 0xcde   :  { %20077 = vmatprep.subr.bf16.mxu1 %v20076_v48  ;;  %v20088_v47 = vpack.c.bf16 %v28749_v1, %v28748_v30  ;;  %v11829_v7 = vld [vmem:[#allocation3 + $0x360] sm:$0xff]  ;;  %v28754_v30 = vld [vmem:[#allocation240_spill] sm:$0xff]  ;;  %v28755_v1 = vld [vmem:[#allocation241_spill] sm:$0xff] }
 0xce0   :  { %18618 = vmatmul.mubr.f32.gmra.mrb[38].mxu1 %v26632_v34 }
 0xce1   :  { %18620 = vmatprep.mubr.f32.mxu1 %v26634_v14  ;;  %20079 = vmatpush3.bf16.msra.mxu1 %v20076_v48  ;;  %v28750_v14 = vld [vmem:[#allocation236_spill] sm:$0xff] }
 0xce2   :  { %20081 = vmatprep.subr.bf16.mxu1 %v20080_v19  ;;  %v20092_v51 = vpack.c.bf16 %v28751_v54, %v28750_v14  ;;  %v26831_v48 = vld [vmem:[#allocation3 + $0x388] sm:$0xff]  ;;  %v28756_v14 = vld [vmem:[#allocation242_spill] sm:$0xff] }
 0xce3   :  { %v28757_v54 = vld [vmem:[#allocation243_spill] sm:$0xff] }
 0xce4   :  { %18621 = vmatmul.mubr.f32.gmra.mrb[40].mxu1 %v26638_v35 }
 0xce5   :  { %18623 = vmatprep.mubr.f32.mxu1 %v26640_v6  ;;  %20083 = vmatpush3.bf16.msra.mxu1 %v20080_v19  ;;  %v11823_v6 = vld [vmem:[#allocation3 + $0x300] sm:$0xff] }
 0xce6   :  { %20085 = vmatprep.subr.bf16.mxu1 %v20084_v9  ;;  %v11835_v19 = vld [vmem:[#allocation3 + $0x3c0] sm:$0xff] }
 0xce8   :  { %18624 = vmatmul.mubr.f32.gmra.mrb[42].mxu1 %v26644_v63 }
 0xce9   :  { %18626 = vmatprep.mubr.f32.mxu1 %v26646_v38  ;;  %20087 = vmatpush3.bf16.msra.mxu1 %v20084_v9  ;;  %v11825_v38 = vld [vmem:[#allocation3 + $0x320] sm:$0xff]  ;;  %v11838_v9 = vld [vmem:[#allocation3 + $0x3e8] sm:$0xff] }
 0xcea   :  { %20089 = vmatprep.subr.bf16.mxu1 %v20088_v47 }
 0xcec   :  { %18627 = vmatmul.mubr.f32.gmra.mrb[44].mxu1 %v26650_v46 }
 0xced   :  { %18629 = vmatprep.mubr.f32.mxu1 %v26652_v0  ;;  %20091 = vmatpush3.bf16.msra.mxu1 %v20088_v47  ;;  %v11827_v0 = vld [vmem:[#allocation3 + $0x340] sm:$0xff]  ;;  %v20100_v47 = vpack.c.bf16 %v28755_v1, %v28754_v30  ;;  %v12137_v30 = vld [vmem:[#allocation3 + $0x390] sm:$0xff] }
 0xcee   :  { %20093 = vmatprep.subr.bf16.mxu1 %v20092_v51  ;;  %v12141_v1 = vld [vmem:[#allocation3 + $0x3d0] sm:$0xff] }
 0xcf0   :  { %18630 = vmatmul.mubr.f32.gmra.mrb[46].mxu1 %v26656_v24 }
 0xcf1   :  { %18632 = vmatprep.mubr.f32.mxu1 %v11823_v6  ;;  %20095 = vmatpush3.bf16.msra.mxu1 %v20092_v51  ;;  %v20104_v51 = vpack.c.bf16 %v28757_v54, %v28756_v14  ;;  %v28758_v6 = vld [vmem:[#allocation244_spill] sm:$0xff] }
 0xcf2   :  { %20097 = vmatprep.subr.bf16.mxu1 %v20096_v33 }
 0xcf4   :  { %18633 = vmatmul.mubr.f32.gmra.mrb[48].mxu1 %v26819_v36 }
 0xcf5   :  { %18635 = vmatprep.mubr.f32.mxu1 %v11825_v38  ;;  %v28763_v38 = vld [vmem:[#allocation117_spill] sm:$0xff] }
 0xcf8   :  { %18636 = vmatmul.mubr.f32.gmra.mrb[50].mxu1 %v26822_v42 }
 0xcf9   :  { %18638 = vmatprep.mubr.f32.mxu1 %v11827_v0 }
 0xcfc   :  { %18639 = vmatmul.mubr.f32.gmra.mrb[52].mxu1 %v26825_v58 }
 0xcfd   :  { %18641 = vmatprep.mubr.f32.mxu1 %v11829_v7  ;;  %v28765_v7 = vld [vmem:[#allocation119_spill] sm:$0xff] }
 0xd00   :  { %18642 = vmatmul.mubr.f32.gmra.mrb[54].mxu1 %v26828_v50 }
 0xd01   :  { %18644 = vmatprep.mubr.f32.mxu1 %v11831_v49 }
 0xd04   :  { %18645 = vmatmul.mubr.f32.gmra.mrb[56].mxu1 %v26831_v48 }
 0xd05   :  { %18647 = vmatprep.mubr.f32.mxu1 %v11833_v10  ;;  %v28767_v10 = vld [vmem:[#allocation137_spill] sm:$0xff] }
 0xd08   :  { %18648 = vmatmul.mubr.f32.gmra.mrb[58].mxu1 %v11834_v16 }
 0xd09   :  { %18650 = vmatprep.mubr.f32.mxu1 %v11835_v19 }
 0xd0c   :  { %18651 = vmatmul.mubr.f32.gmra.mrb[60].mxu1 %v11836_v13 }
 0xd0d   :  { %18653 = vmatprep.mubr.f32.mxu1 %v11837_v25  ;;  %v12133_v25 = vld [vmem:[#allocation3 + $0x350] sm:$0xff] }
 0xd10   :  { %18654 = vmatmul.mubr.f32.gmra.mrb[62].mxu1 %v11838_v9 }
 0xd11   :  { %18688 = vmatprep.mubr.f32.mxu1 %v26614_v5  ;;  %v28759_v5 = vld [vmem:[#allocation245_spill] sm:$0xff] }
 0xd12   :  { %v20108_v11 = vpack.c.bf16 %v28759_v5, %v28758_v6 }
 0xd14   :  { %18689 = vmatmul.mubr.f32.vlgmr.msra.gmra.mrb[32].mxu1 %v26692_v20 }
 0xd15   :  { %20099 = vmatpush3.bf16.msra.mxu1 %v20096_v33  ;;  %18691 = vmatprep.mubr.f32.mxu1 %v26620_v18  ;;  %v28760_v18 = vld [vmem:[#allocation246_spill] sm:$0xff] }
 0xd16   :  { %20101 = vmatprep.subr.bf16.mxu1 %v20100_v47  ;;  %v20112_v33 = vpack.c.bf16 %v28761_v15, %v28760_v18 }
 0xd18   :  { %18692 = vmatmul.mubr.f32.gmra.mrb[34].mxu1 %v26696_v53 }
 0xd19   :  { %18694 = vmatprep.mubr.f32.mxu1 %v26626_v57  ;;  %20103 = vmatpush3.bf16.msra.mxu1 %v20100_v47  ;;  %v28762_v57 = vld [vmem:[#allocation248_spill] sm:$0xff] }
 0xd1a   :  { %20105 = vmatprep.subr.bf16.mxu1 %v20104_v51  ;;  %v20116_v0 = vpack.c.bf16 %v28763_v38, %v28762_v57 }
 0xd1c   :  { %18695 = vmatmul.mubr.f32.gmra.mrb[36].mxu1 %v26700_v55 }
 0xd1d   :  { %18697 = vmatprep.mubr.f32.mxu1 %v26632_v34  ;;  %20107 = vmatpush3.bf16.msra.mxu1 %v20104_v51  ;;  %v28764_v34 = vld [vmem:[#allocation118_spill] sm:$0xff] }
 0xd1e   :  { %20109 = vmatprep.subr.bf16.mxu1 %v20108_v11  ;;  %v20120_v49 = vpack.c.bf16 %v28765_v7, %v28764_v34 }
 0xd20   :  { %18698 = vmatmul.mubr.f32.gmra.mrb[38].mxu1 %v26704_v12 }
 0xd21   :  { %18700 = vmatprep.mubr.f32.mxu1 %v26638_v35  ;;  %20111 = vmatpush3.bf16.msra.mxu1 %v20108_v11  ;;  %v28766_v35 = vld [vmem:[#allocation120_spill] sm:$0xff] }
 0xd22   :  { %20113 = vmatprep.subr.bf16.mxu1 %v20112_v33  ;;  %v20124_v19 = vpack.c.bf16 %v28767_v10, %v28766_v35 }
 0xd24   :  { %18701 = vmatmul.mubr.f32.gmra.mrb[40].mxu1 %v26708_v2 }
 0xd25   :  { %18703 = vmatprep.mubr.f32.mxu1 %v26644_v63  ;;  %20115 = vmatpush3.bf16.msra.mxu1 %v20112_v33  ;;  %v12129_v63 = vld [vmem:[#allocation3 + $0x310] sm:$0xff] }
 0xd26   :  { %20117 = vmatprep.subr.bf16.mxu1 %v20116_v0 }
 0xd28   :  { %18704 = vmatmul.mubr.f32.gmra.mrb[42].mxu1 %v26712_v37 }
 0xd29   :  { %18706 = vmatprep.mubr.f32.mxu1 %v26650_v46  ;;  %20119 = vmatpush3.bf16.msra.mxu1 %v20116_v0  ;;  %v12131_v46 = vld [vmem:[#allocation3 + $0x330] sm:$0xff] }
 0xd2a   :  { %20121 = vmatprep.subr.bf16.mxu1 %v20120_v49 }
 0xd2c   :  { %18707 = vmatmul.mubr.f32.gmra.mrb[44].mxu1 %v26716_v39 }
 0xd2d   :  { %18709 = vmatprep.mubr.f32.mxu1 %v26656_v24  ;;  %20123 = vmatpush3.bf16.msra.mxu1 %v20120_v49  ;;  %v12135_v24 = vld [vmem:[#allocation3 + $0x370] sm:$0xff] }
 0xd2e   :  { %20125 = vmatprep.subr.bf16.mxu1 %v20124_v19 }
 0xd30   :  { %18710 = vmatmul.mubr.f32.gmra.mrb[46].mxu1 %v26720_v40 }
 0xd31   :  { %18712 = vmatprep.mubr.f32.mxu1 %v26819_v36  ;;  %20127 = vmatpush3.bf16.msra.mxu1 %v20124_v19  ;;  %v12139_v36 = vld [vmem:[#allocation3 + $0x3b0] sm:$0xff] }
 0xd34   :  { %18713 = vmatmul.mubr.f32.gmra.mrb[48].mxu1 %v12129_v63 }
 0xd35   :  { %18715 = vmatprep.mubr.f32.mxu1 %v26822_v42  ;;  %v12143_v42 = vld [vmem:[#allocation3 + $0x3f0] sm:$0xff] }
 0xd38   :  { %18716 = vmatmul.mubr.f32.gmra.mrb[50].mxu1 %v12131_v46 }
 0xd39   :  { %18718 = vmatprep.mubr.f32.mxu1 %v26825_v58 }
 0xd3c   :  { %18719 = vmatmul.mubr.f32.gmra.mrb[52].mxu1 %v12133_v25 }
 0xd3d   :  { %18721 = vmatprep.mubr.f32.mxu1 %v26828_v50 }
 0xd40   :  { %18722 = vmatmul.mubr.f32.gmra.mrb[54].mxu1 %v12135_v24 }
 0xd41   :  { %18724 = vmatprep.mubr.f32.mxu1 %v26831_v48 }
 0xd44   :  { %18725 = vmatmul.mubr.f32.gmra.mrb[56].mxu1 %v12137_v30 }
 0xd45   :  { %18727 = vmatprep.mubr.f32.mxu1 %v11834_v16 }
 0xd48   :  { %18728 = vmatmul.mubr.f32.gmra.mrb[58].mxu1 %v12139_v36 }
 0xd49   :  { %18730 = vmatprep.mubr.f32.mxu1 %v11836_v13 }
 0xd4c   :  { %18731 = vmatmul.mubr.f32.gmra.mrb[60].mxu1 %v12141_v1 }
 0xd4d   :  { %18733 = vmatprep.mubr.f32.mxu1 %v11838_v9 }
 0xd50   :  { %18734 = vmatmul.mubr.f32.gmra.mrb[62].mxu1 %v12143_v42 }
 0xd51   :  { %18768 = vmatprep.mubr.f32.mxu1 %v26692_v20  ;;  %v12434_v20 = vld [vmem:[#allocation3 + $0x318] sm:$0xff] }
 0xd54   :  { %18769 = vmatmul.mubr.f32.vlgmr.msra.gmra.mrb[32].mxu1 %v26756_v22  ;;  %v26888_v22 = vld [vmem:[%s27447_s2 + $0x3] ss:$0 sm:$0xff] }
 0xd55   :  { %18771 = vmatprep.mubr.f32.mxu1 %v26696_v53  ;;  %v12436_v53 = vld [vmem:[#allocation3 + $0x338] sm:$0xff] }
 0xd58   :  { %18772 = vmatmul.mubr.f32.gmra.mrb[34].mxu1 %v26760_v52 }
 0xd59   :  { %18774 = vmatprep.mubr.f32.mxu1 %v26700_v55  ;;  %v12438_v55 = vld [vmem:[#allocation3 + $0x358] sm:$0xff] }
 0xd5c   :  { %18775 = vmatmul.mubr.f32.gmra.mrb[36].mxu1 %v26764_v41 }
 0xd5d   :  { %18777 = vmatprep.mubr.f32.mxu1 %v26704_v12  ;;  %v12440_v12 = vld [vmem:[#allocation3 + $0x378] sm:$0xff] }
 0xd60   :  { %18778 = vmatmul.mubr.f32.gmra.mrb[38].mxu1 %v26768_v17 }
 0xd61   :  { %18780 = vmatprep.mubr.f32.mxu1 %v26708_v2  ;;  %v12442_v2 = vld [vmem:[#allocation3 + $0x398] sm:$0xff] }
 0xd64   :  { %18781 = vmatmul.mubr.f32.gmra.mrb[40].mxu1 %v26772_v26 }
 0xd65   :  { %18783 = vmatprep.mubr.f32.mxu1 %v26712_v37  ;;  %v12444_v37 = vld [vmem:[#allocation3 + $0x3b8] sm:$0xff] }
 0xd68   :  { %18784 = vmatmul.mubr.f32.gmra.mrb[42].mxu1 %v26776_v27 }
 0xd69   :  { %18786 = vmatprep.mubr.f32.mxu1 %v26716_v39  ;;  %v12446_v39 = vld [vmem:[#allocation3 + $0x3d8] sm:$0xff] }
 0xd6c   :  { %18787 = vmatmul.mubr.f32.gmra.mrb[44].mxu1 %v26780_v56 }
 0xd6d   :  { %18789 = vmatprep.mubr.f32.mxu1 %v26720_v40  ;;  %v12448_v40 = vld [vmem:[#allocation3 + $0x3f8] sm:$0xff] }
 0xd70   :  { %18790 = vmatmul.mubr.f32.gmra.mrb[46].mxu1 %v26784_v23 }
 0xd71   :  { %18792 = vmatprep.mubr.f32.mxu1 %v12129_v63 }
 0xd74   :  { %18793 = vmatmul.mubr.f32.gmra.mrb[48].mxu1 %v12434_v20 }
 0xd75   :  { %18795 = vmatprep.mubr.f32.mxu1 %v12131_v46 }
 0xd78   :  { %18796 = vmatmul.mubr.f32.gmra.mrb[50].mxu1 %v12436_v53 }
 0xd79   :  { %18798 = vmatprep.mubr.f32.mxu1 %v12133_v25 }
 0xd7c   :  { %18799 = vmatmul.mubr.f32.gmra.mrb[52].mxu1 %v12438_v55 }
 0xd7d   :  { %18801 = vmatprep.mubr.f32.mxu1 %v12135_v24 }
 0xd80   :  { %18802 = vmatmul.mubr.f32.gmra.mrb[54].mxu1 %v12440_v12 }
 0xd81   :  { %18804 = vmatprep.mubr.f32.mxu1 %v12137_v30 }
 0xd84   :  { %18805 = vmatmul.mubr.f32.gmra.mrb[56].mxu1 %v12442_v2 }
 0xd85   :  { %18807 = vmatprep.mubr.f32.mxu1 %v12139_v36 }
 0xd88   :  { %18808 = vmatmul.mubr.f32.gmra.mrb[58].mxu1 %v12444_v37 }
 0xd89   :  { %18810 = vmatprep.mubr.f32.mxu1 %v12141_v1 }
 0xd8c   :  { %18811 = vmatmul.mubr.f32.gmra.mrb[60].mxu1 %v12446_v39 }
 0xd8d   :  { %18813 = vmatprep.mubr.f32.mxu1 %v12143_v42 }
 0xd90   :  { %18814 = vmatmul.mubr.f32.gmra.mrb[62].mxu1 %v12448_v40 }
 0xe27   :  { %v18770_v52 = vpop.f32.mrb[32].mxu1 }
 0xe28   :  { %v26891_v41 = vadd.f32 %v18770_v52, %v26888_v22  ;;  %v12531_v17 = vpop.f32.mrb[33].mxu1 }
 0xe29   :  { %v26894_v26 = vadd.f32 %v26888_v22, %v12531_v17 }
 0xe2b   :  { %v18773_v23 = vpop.f32.mrb[34].mxu1 }
 0xe2c   :  { %v26899_v58 = vadd.f32 %v18773_v23, %v26888_v22  ;;  %v12541_v50 = vpop.f32.mrb[35].mxu1 }
 0xe2d   :  { %v26902_v48 = vadd.f32 %v26888_v22, %v12541_v50 }
 0xe2f   :  { %v18776_v9 = vpop.f32.mrb[36].mxu1 }
 0xe30   :  { %v26907_v47 = vadd.f32 %v18776_v9, %v26888_v22  ;;  %v12551_v14 = vpop.f32.mrb[37].mxu1 }
 0xe31   :  { %v26910_v54 = vadd.f32 %v26888_v22, %v12551_v14 }
 0xe33   :  { %v18779_v5 = vpop.f32.mrb[38].mxu1 }
 0xe34   :  { %v26915_v11 = vadd.f32 %v18779_v5, %v26888_v22  ;;  %v12561_v18 = vpop.f32.mrb[39].mxu1 }
 0xe35   :  { %v26918_v15 = vadd.f32 %v26888_v22, %v12561_v18 }
 0xe37   :  { %v18782_v38 = vpop.f32.mrb[40].mxu1 }
 0xe38   :  { %v26923_v0 = vadd.f32 %v18782_v38, %v26888_v22  ;;  %v12571_v34 = vpop.f32.mrb[41].mxu1 }
 0xe39   :  { %v26926_v7 = vadd.f32 %v26888_v22, %v12571_v34 }
 0xe3b   :  { %v18785_v10 = vpop.f32.mrb[42].mxu1 }
 0xe3c   :  { %v26931_v19 = vadd.f32 %v18785_v10, %v26888_v22  ;;  %v12581_v63 = vpop.f32.mrb[43].mxu1 }
 0xe3d   :  { %v26934_v46 = vadd.f32 %v26888_v22, %v12581_v63 }
 0xe3f   :  { %v18788_v30 = vpop.f32.mrb[44].mxu1 }
 0xe40   :  { %v26939_v36 = vadd.f32 %v18788_v30, %v26888_v22  ;;  %v12591_v1 = vpop.f32.mrb[45].mxu1 }
 0xe41   :  { %v26942_v42 = vadd.f32 %v26888_v22, %v12591_v1 }
 0xe43   :  { %v18791_v55 = vpop.f32.mrb[46].mxu1 }
 0xe44   :  { %v26947_v12 = vadd.f32 %v18791_v55, %v26888_v22  ;;  %v12601_v2 = vpop.f32.mrb[47].mxu1 }
 0xe45   :  { %v26950_v37 = vadd.f32 %v26888_v22, %v12601_v2 }
 0xe47   :  { %v18794_v52 = vpop.f32.mrb[48].mxu1 }
 0xe48   :  { %v26955_v17 = vadd.f32 %v18794_v52, %v26888_v22  ;;  %v12611_v23 = vpop.f32.mrb[49].mxu1 }
 0xe49   :  { %v26958_v50 = vadd.f32 %v26888_v22, %v12611_v23 }
 0xe4b   :  { %v18797_v5 = vpop.f32.mrb[50].mxu1 }
 0xe4c   :  { %v26963_v18 = vadd.f32 %v18797_v5, %v26888_v22  ;;  %v12621_v38 = vpop.f32.mrb[51].mxu1 }
 0xe4d   :  { %v26966_v34 = vadd.f32 %v26888_v22, %v12621_v38 }
 0xe4f   :  { %v18800_v30 = vpop.f32.mrb[52].mxu1 }
 0xe50   :  { %v26971_v1 = vadd.f32 %v18800_v30, %v26888_v22  ;;  %v12631_v55 = vpop.f32.mrb[53].mxu1 }
 0xe51   :  { %v26974_v2 = vadd.f32 %v26888_v22, %v12631_v55 }
 0xe53   :  { %v18803_v5 = vpop.f32.mrb[54].mxu1 }
 0xe54   :  { %v26979_v38 = vadd.f32 %v18803_v5, %v26888_v22  ;;  %v12641_v9 = vpop.f32.mrb[55].mxu1 }
 0xe55   :  { %v26982_v10 = vadd.f32 %v26888_v22, %v12641_v9 }
 0xe57   :  { %v18806_v14 = vpop.f32.mrb[56].mxu1 }
 0xe58   :  { %v26987_v55 = vadd.f32 %v18806_v14, %v26888_v22  ;;  %v12651_v39 = vpop.f32.mrb[57].mxu1 }
 0xe59   :  { %v26990_v52 = vadd.f32 %v26888_v22, %v12651_v39 }
 0xe5b   :  { %v18809_v40 = vpop.f32.mrb[58].mxu1 }
 0xe5c   :  { %v26995_v9 = vadd.f32 %v18809_v40, %v26888_v22  ;;  %v12661_v20 = vpop.f32.mrb[59].mxu1 }
 0xe5d   :  { %v26998_v63 = vadd.f32 %v26888_v22, %v12661_v20 }
 0xe5f   :  { %v18812_v53 = vpop.f32.mrb[60].mxu1 }
 0xe60   :  { %v27003_v39 = vadd.f32 %v18812_v53, %v26888_v22  ;;  %v12671_v25 = vpop.f32.mrb[61].mxu1 }
 0xe61   :  { %v27006_v23 = vadd.f32 %v26888_v22, %v12671_v25 }
 0xe63   :  { %v18815_v24 = vpop.f32.mrb[62].mxu1 }
 0xe64   :  { %v27011_v20 = vadd.f32 %v18815_v24, %v26888_v22  ;;  %v12681_v49 = vpop.f32.mrb[63].mxu1 }
 0xe65   :  { %v27014_v30 = vadd.f32 %v26888_v22, %v12681_v49 }
 0xe66   :  { %21259 = dma.done.wait [#allocation5], 2048 }
 0xe67   :  { %21260 = vsyncadd [#allocation5], 4294965248  ;;  %v27021_v25 = vld [vmem:[%s27446_s1 + $0x1880] sm:$0xff]  ;;  %v27026_v24 = vld [vmem:[%s27446_s1 + $0x1888] sm:$0xff] }
 0xe68   :  { %v27031_v22 = vld [vmem:[%s27446_s1 + $0x1890] sm:$0xff]  ;;  %v27036_v49 = vld [vmem:[%s27446_s1 + $0x1898] sm:$0xff]  ;;  %v27041_v14 = vld [vmem:[%s27446_s1 + $0x18a0] sm:$0xff] }
 0xe69   :  { %v27046_v53 = vld [vmem:[%s27446_s1 + $0x18a8] sm:$0xff]  ;;  %v27051_v5 = vld [vmem:[%s27446_s1 + $0x18b0] sm:$0xff]  ;;  %v27056_v40 = vld [vmem:[%s27446_s1 + $0x18b8] sm:$0xff] }
 0xe6a   :  { %v27061_v35 = vld [vmem:[%s27446_s1 + $0x18c0] sm:$0xff]  ;;  %v27066_v33 = vld [vmem:[%s27446_s1 + $0x18c8] sm:$0xff]  ;;  %v27071_v57 = vld [vmem:[%s27446_s1 + $0x18d0] sm:$0xff] }
 0xe6b   :  { %v27076_v51 = vld [vmem:[%s27446_s1 + $0x18d8] sm:$0xff]  ;;  %v27081_v6 = vld [vmem:[%s27446_s1 + $0x18e0] sm:$0xff]  ;;  %v27086_v16 = vld [vmem:[%s27446_s1 + $0x18e8] sm:$0xff] }
 0xe6c   :  { %28768 = vst [vmem:[#allocation54_spill] sm:$0xff] %v27076_v51  ;;  %28769 = vst [vmem:[#allocation55_spill] sm:$0xff] %v27081_v6  ;;  %v27091_v13 = vld [vmem:[%s27446_s1 + $0x18f0] sm:$0xff]  ;;  %v27096_v27 = vld [vmem:[%s27446_s1 + $0x18f8] sm:$0xff] }
 0xe6d   :  { %28770 = vst [vmem:[#allocation56_spill] sm:$0xff] %v27091_v13  ;;  %28771 = vst [vmem:[#allocation57_spill] sm:$0xff] %v27096_v27 }
 0xe6e   :  { %12870 = vsyncadd [#allocation5 + $0x1], 2048  ;;  %v20128_v56 = vpack.c.bf16 %v26265_v21, %v26260_v61  ;;  %v20132_v6 = vpack.c.bf16 %v26275_v3, %v26270_v59  ;;  %v28772_v51 = vmax.f32 %v26894_v26, 0.0  ;;  %v20136_v13 = vpack.c.bf16 %v26285_v28, %v26280_v31  ;;  %v28773_v3 = vld [vmem:[#allocation53_spill] sm:$0xff] }
 0xe6f   :  { %v20140_v27 = vpack.c.bf16 %v26295_v60, %v26290_v8  ;;  %v20144_v61 = vpack.c.bf16 %v26305_v4, %v26300_v32  ;;  %v20148_v21 = vpack.c.bf16 %v26315_v45, %v26310_v29  ;;  %v20152_v59 = vpack.c.bf16 %v26325_v44, %v26320_v43 }
 0xe70   :  { %18848 = vmatprep.mubr.f32.mxu0 %v28772_v51  ;;  %20129 = vmatprep.subr.bf16.mxu0 %v20128_v56  ;;  %v20156_v31 = vpack.c.bf16 %v28773_v3, %v26330_v62  ;;  %v28774_v28 = vmax.f32 %v26891_v41, 0.0  ;;  %v28775_v8 = vmax.f32 %v26902_v48, 0.0  ;;  %v28776_v60 = vmax.f32 %v26899_v58, 0.0 }
 0xe71   :  { %20131 = vmatpush3.bf16.msra.mxu0 %v20128_v56  ;;  %v28777_v32 = vmax.f32 %v26910_v54, 0.0  ;;  %v28778_v4 = vmax.f32 %v26907_v47, 0.0  ;;  %v28779_v29 = vmax.f32 %v26918_v15, 0.0  ;;  %v28780_v45 = vmax.f32 %v26915_v11, 0.0 }
 0xe72   :  { %20133 = vmatprep.subr.bf16.mxu0 %v20132_v6  ;;  %v28781_v43 = vmax.f32 %v26926_v7, 0.0  ;;  %v28782_v44 = vmax.f32 %v26923_v0, 0.0  ;;  %v28783_v62 = vmax.f32 %v26934_v46, 0.0  ;;  %v28784_v41 = vmax.f32 %v26931_v19, 0.0 }
 0xe73   :  { %v28785_v26 = vmax.f32 %v26942_v42, 0.0  ;;  %v28787_v56 = vmax.f32 %v26950_v37, 0.0  ;;  %v28788_v58 = vmax.f32 %v26947_v12, 0.0  ;;  %v28789_v48 = vmax.f32 %v26958_v50, 0.0 }
 0xe74   :  { %v28791_v47 = vmax.f32 %v26966_v34, 0.0  ;;  %v28792_v54 = vmax.f32 %v26963_v18, 0.0  ;;  %v28793_v51 = vmax.f32 %v26974_v2, 0.0  ;;  %v28795_v11 = vmax.f32 %v26982_v10, 0.0 }
 0xe75   :  { %20135 = vmatpush3.bf16.msra.mxu0 %v20132_v6  ;;  %v28794_v6 = vmax.f32 %v26971_v1, 0.0  ;;  %v28796_v15 = vmax.f32 %v26979_v38, 0.0  ;;  %v28797_v0 = vmax.f32 %v26990_v52, 0.0  ;;  %v28798_v7 = vmax.f32 %v26987_v55, 0.0 }
 0xe76   :  { %20137 = vmatprep.subr.bf16.mxu0 %v20136_v13  ;;  %v28799_v19 = vmax.f32 %v26998_v63, 0.0  ;;  %v28800_v46 = vmax.f32 %v26995_v9, 0.0  ;;  %v28802_v42 = vmax.f32 %v27003_v39, 0.0  ;;  %v28803_v12 = vmax.f32 %v27014_v30, 0.0 }
 0xe77   :  { %v28804_v37 = vmax.f32 %v27011_v20, 0.0 }
 0xe79   :  { %20139 = vmatpush3.bf16.msra.mxu0 %v20136_v13  ;;  %v28790_v13 = vmax.f32 %v26955_v17, 0.0  ;;  %v27181_v17 = vld [vmem:[%s27447_s2 + $0x4] ss:$0 sm:$0xff] }
 0xe7a   :  { %20141 = vmatprep.subr.bf16.mxu0 %v20140_v27 }
 0xe7d   :  { %20143 = vmatpush3.bf16.msra.mxu0 %v20140_v27  ;;  %v28786_v27 = vmax.f32 %v26939_v36, 0.0  ;;  %v28801_v36 = vmax.f32 %v27006_v23, 0.0 }
 0xe7e   :  { %20145 = vmatprep.subr.bf16.mxu0 %v20144_v61 }
 0xe81   :  { %20147 = vmatpush3.bf16.msra.mxu0 %v20144_v61 }
 0xe82   :  { %20149 = vmatprep.subr.bf16.mxu0 %v20148_v21 }
 0xe85   :  { %20151 = vmatpush3.bf16.msra.mxu0 %v20148_v21 }
 0xe86   :  { %20153 = vmatprep.subr.bf16.mxu0 %v20152_v59 }
 0xe89   :  { %20155 = vmatpush3.bf16.msra.mxu0 %v20152_v59 }
 0xe8a   :  { %20157 = vmatprep.subr.bf16.mxu0 %v20156_v31 }
 0xe8d   :  { %20159 = vmatpush3.bf16.msra.mxu0 %v20156_v31 }
 0xe90   :  { %18849 = vmatmul.mubr.f32.vlgmr.msra.gmra.mrb[64].mxu0 %v28774_v28 }
 0xe91   :  { %18851 = vmatprep.mubr.f32.mxu0 %v28775_v8 }
 0xe94   :  { %18852 = vmatmul.mubr.f32.gmra.mrb[66].mxu0 %v28776_v60 }
 0xe95   :  { %18854 = vmatprep.mubr.f32.mxu0 %v28777_v32 }
 0xe98   :  { %18855 = vmatmul.mubr.f32.gmra.mrb[68].mxu0 %v28778_v4 }
 0xe99   :  { %18857 = vmatprep.mubr.f32.mxu0 %v28779_v29 }
 0xe9c   :  { %18858 = vmatmul.mubr.f32.gmra.mrb[70].mxu0 %v28780_v45 }
 0xe9d   :  { %18860 = vmatprep.mubr.f32.mxu0 %v28781_v43 }
 0xea0   :  { %18861 = vmatmul.mubr.f32.gmra.mrb[72].mxu0 %v28782_v44 }
 0xea1   :  { %18863 = vmatprep.mubr.f32.mxu0 %v28783_v62 }
 0xea4   :  { %18864 = vmatmul.mubr.f32.gmra.mrb[74].mxu0 %v28784_v41 }
 0xea5   :  { %18866 = vmatprep.mubr.f32.mxu0 %v28785_v26 }
 0xea8   :  { %18867 = vmatmul.mubr.f32.gmra.mrb[76].mxu0 %v28786_v27 }
 0xea9   :  { %18869 = vmatprep.mubr.f32.mxu0 %v28787_v56 }
 0xeac   :  { %18870 = vmatmul.mubr.f32.gmra.mrb[78].mxu0 %v28788_v58 }
 0xead   :  { %18872 = vmatprep.mubr.f32.mxu0 %v28789_v48  ;;  %v20164_v48 = vpack.c.bf16 %v27036_v49, %v27031_v22 }
 0xeb0   :  { %18873 = vmatmul.mubr.f32.gmra.mrb[80].mxu0 %v28790_v13 }
 0xeb1   :  { %18875 = vmatprep.mubr.f32.mxu0 %v28791_v47 }
 0xeb4   :  { %18876 = vmatmul.mubr.f32.gmra.mrb[82].mxu0 %v28792_v54 }
 0xeb5   :  { %18878 = vmatprep.mubr.f32.mxu0 %v28793_v51 }
 0xeb8   :  { %18879 = vmatmul.mubr.f32.gmra.mrb[84].mxu0 %v28794_v6 }
 0xeb9   :  { %18881 = vmatprep.mubr.f32.mxu0 %v28795_v11 }
 0xebc   :  { %18882 = vmatmul.mubr.f32.gmra.mrb[86].mxu0 %v28796_v15 }
 0xebd   :  { %18884 = vmatprep.mubr.f32.mxu0 %v28797_v0 }
 0xec0   :  { %18885 = vmatmul.mubr.f32.gmra.mrb[88].mxu0 %v28798_v7 }
 0xec1   :  { %18887 = vmatprep.mubr.f32.mxu0 %v28799_v19 }
 0xec4   :  { %18888 = vmatmul.mubr.f32.gmra.mrb[90].mxu0 %v28800_v46 }
 0xec5   :  { %18890 = vmatprep.mubr.f32.mxu0 %v28801_v36 }
 0xec8   :  { %18891 = vmatmul.mubr.f32.gmra.mrb[92].mxu0 %v28802_v42 }
 0xec9   :  { %18893 = vmatprep.mubr.f32.mxu0 %v28803_v12 }
 0xecc   :  { %18894 = vmatmul.mubr.f32.gmra.mrb[94].mxu0 %v28804_v37 }
 0xf63   :  { %v18850_v50 = vpop.f32.mrb[64].mxu0 }
 0xf64   :  { %v27184_v18 = vadd.f32 %v18850_v50, %v27181_v17  ;;  %v12961_v34 = vpop.f32.mrb[65].mxu0 }
 0xf65   :  { %v27187_v10 = vadd.f32 %v27181_v17, %v12961_v34 }
 0xf66   :  { %v13121_v63 = vmax.f32 %v27184_v18, 0.0 }
 0xf67   :  { %v13120_v1 = vmax.f32 %v27187_v10, 0.0  ;;  %v18853_v2 = vpop.f32.mrb[66].mxu0 }
 0xf68   :  { %v27192_v52 = vadd.f32 %v18853_v2, %v27181_v17  ;;  %v12971_v23 = vpop.f32.mrb[67].mxu0 }
 0xf69   :  { %v27195_v38 = vadd.f32 %v27181_v17, %v12971_v23  ;;  %18928 = vmatprep.mubr.f32.mxu1 %v13120_v1 }
 0xf6a   :  { %v13123_v30 = vmax.f32 %v27192_v52, 0.0 }
 0xf6b   :  { %v13122_v55 = vmax.f32 %v27195_v38, 0.0  ;;  %v18856_v9 = vpop.f32.mrb[68].mxu0 }
 0xf6c   :  { %v27200_v39 = vadd.f32 %v18856_v9, %v27181_v17  ;;  %v12981_v20 = vpop.f32.mrb[69].mxu0 }
 0xf6d   :  { %v27203_v61 = vadd.f32 %v27181_v17, %v12981_v20 }
 0xf6e   :  { %v13125_v21 = vmax.f32 %v27200_v39, 0.0 }
 0xf6f   :  { %v13124_v59 = vmax.f32 %v27203_v61, 0.0  ;;  %v18859_v3 = vpop.f32.mrb[70].mxu0 }
 0xf70   :  { %v27208_v31 = vadd.f32 %v18859_v3, %v27181_v17  ;;  %v12991_v28 = vpop.f32.mrb[71].mxu0 }
 0xf71   :  { %v27211_v8 = vadd.f32 %v27181_v17, %v12991_v28 }
 0xf72   :  { %v13127_v60 = vmax.f32 %v27208_v31, 0.0 }
 0xf73   :  { %v13126_v32 = vmax.f32 %v27211_v8, 0.0  ;;  %v18862_v4 = vpop.f32.mrb[72].mxu0 }
 0xf74   :  { %v27216_v29 = vadd.f32 %v18862_v4, %v27181_v17  ;;  %v13001_v45 = vpop.f32.mrb[73].mxu0 }
 0xf75   :  { %v27219_v43 = vadd.f32 %v27181_v17, %v13001_v45 }
 0xf76   :  { %v13129_v44 = vmax.f32 %v27216_v29, 0.0 }
 0xf77   :  { %v13128_v62 = vmax.f32 %v27219_v43, 0.0  ;;  %v18865_v41 = vpop.f32.mrb[74].mxu0 }
 0xf78   :  { %v27224_v26 = vadd.f32 %v18865_v41, %v27181_v17  ;;  %v13011_v27 = vpop.f32.mrb[75].mxu0 }
 0xf79   :  { %v27227_v56 = vadd.f32 %v27181_v17, %v13011_v27 }
 0xf7b   :  { %v18868_v13 = vpop.f32.mrb[76].mxu0 }
 0xf7c   :  { %v27232_v47 = vadd.f32 %v18868_v13, %v27181_v17  ;;  %v13021_v54 = vpop.f32.mrb[77].mxu0 }
 0xf7d   :  { %v27235_v51 = vadd.f32 %v27181_v17, %v13021_v54 }
 0xf7f   :  { %v18871_v15 = vpop.f32.mrb[78].mxu0 }
 0xf80   :  { %v27240_v0 = vadd.f32 %v18871_v15, %v27181_v17  ;;  %v13031_v7 = vpop.f32.mrb[79].mxu0 }
 0xf81   :  { %v27243_v19 = vadd.f32 %v27181_v17, %v13031_v7 }
 0xf83   :  { %v18874_v42 = vpop.f32.mrb[80].mxu0 }
 0xf84   :  { %v27248_v12 = vadd.f32 %v18874_v42, %v27181_v17  ;;  %v13041_v37 = vpop.f32.mrb[81].mxu0 }
 0xf85   :  { %v27251_v50 = vadd.f32 %v27181_v17, %v13041_v37 }
 0xf87   :  { %v18877_v23 = vpop.f32.mrb[82].mxu0 }
 0xf88   :  { %v27256_v9 = vadd.f32 %v18877_v23, %v27181_v17  ;;  %v13051_v20 = vpop.f32.mrb[83].mxu0 }
 0xf89   :  { %v27259_v3 = vadd.f32 %v27181_v17, %v13051_v20 }
 0xf8b   :  { %v18880_v45 = vpop.f32.mrb[84].mxu0 }
 0xf8c   :  { %v27264_v41 = vadd.f32 %v18880_v45, %v27181_v17  ;;  %v13061_v27 = vpop.f32.mrb[85].mxu0 }
 0xf8d   :  { %v27267_v13 = vadd.f32 %v27181_v17, %v13061_v27 }
 0xf8f   :  { %v18883_v7 = vpop.f32.mrb[86].mxu0 }
 0xf90   :  { %v27272_v42 = vadd.f32 %v18883_v7, %v27181_v17  ;;  %v13071_v37 = vpop.f32.mrb[87].mxu0 }
 0xf91   :  { %v27275_v23 = vadd.f32 %v27181_v17, %v13071_v37 }
 0xf93   :  { %v18886_v28 = vpop.f32.mrb[88].mxu0 }
 0xf94   :  { %v27280_v27 = vadd.f32 %v18886_v28, %v27181_v17  ;;  %v13081_v4 = vpop.f32.mrb[89].mxu0 }
 0xf95   :  { %v27283_v54 = vadd.f32 %v27181_v17, %v13081_v4 }
 0xf97   :  { %v18889_v34 = vpop.f32.mrb[90].mxu0 }
 0xf98   :  { %v27288_v37 = vadd.f32 %v18889_v34, %v27181_v17  ;;  %v13091_v2 = vpop.f32.mrb[91].mxu0 }
 0xf99   :  { %v27291_v20 = vadd.f32 %v27181_v17, %v13091_v2 }
 0xf9b   :  { %v18892_v46 = vpop.f32.mrb[92].mxu0 }
 0xf9c   :  { %v27296_v4 = vadd.f32 %v18892_v46, %v27181_v17  ;;  %v13101_v36 = vpop.f32.mrb[93].mxu0  ;;  %v20160_v46 = vpack.c.bf16 %v27026_v24, %v27021_v25 }
 0xf9d   :  { %v27299_v15 = vadd.f32 %v27181_v17, %v13101_v36 }
 0xf9e   :  { %v13149_v7 = vmax.f32 %v27296_v4, 0.0 }
 0xf9f   :  { %v13148_v34 = vmax.f32 %v27299_v15, 0.0  ;;  %v18895_v6 = vpop.f32.mrb[94].mxu0 }
 0xfa0   :  { %v13117_v2 = vadd.f32 %v18895_v6, %v27181_v17  ;;  %v13111_v11 = vpop.f32.mrb[95].mxu0 }
 0xfa1   :  { %v13112_v45 = vadd.f32 %v27181_v17, %v13111_v11 }
 0xfa2   :  { %v13151_v58 = vmax.f32 %v13117_v2, 0.0 }
 0xfa3   :  { %v13150_v28 = vmax.f32 %v13112_v45, 0.0 }
 0xfa4   :  { %21261 = dma.done.wait [#allocation5 + $0x1], 2048 }
 0xfa5   :  { %21262 = vsyncadd [#allocation5 + $0x1], 4294965248  ;;  %20161 = vmatprep.subr.bf16.mxu1 %v20160_v46  ;;  %v20168_v6 = vpack.c.bf16 %v27046_v53, %v27041_v14  ;;  %v20172_v17 = vpack.c.bf16 %v27056_v40, %v27051_v5  ;;  %v20176_v25 = vpack.c.bf16 %v27066_v33, %v27061_v35  ;;  %v28805_v24 = vld [vmem:[#allocation54_spill] sm:$0xff]  ;;  %v28806_v49 = vld [vmem:[#allocation55_spill] sm:$0xff]  ;;  %v28810_v33 = vmax.f32 %v27224_v26, 0.0 }
 0xfa6   :  { %20163 = vmatpush3.bf16.msra.mxu1 %v20160_v46  ;;  %v20180_v22 = vpack.c.bf16 %v28805_v24, %v27071_v57  ;;  %v20184_v14 = vpack.c.bf16 %v27086_v16, %v28806_v49  ;;  %v28807_v53 = vld [vmem:[#allocation56_spill] sm:$0xff]  ;;  %v28808_v10 = vld [vmem:[#allocation57_spill] sm:$0xff]  ;;  %v28809_v16 = vmax.f32 %v27227_v56, 0.0  ;;  %v28811_v57 = vmax.f32 %v27235_v51, 0.0  ;;  %v27386_v43 = vld [vmem:[%s27447_s2 + $0x5] ss:$0 sm:$0xff] }
 0xfa7   :  { %20165 = vmatprep.subr.bf16.mxu1 %v20164_v48  ;;  %v20188_v5 = vpack.c.bf16 %v28808_v10, %v28807_v53  ;;  %v28812_v35 = vmax.f32 %v27232_v47, 0.0  ;;  %v28813_v40 = vmax.f32 %v27243_v19, 0.0  ;;  %v28814_v18 = vmax.f32 %v27240_v0, 0.0 }
 0xfa8   :  { %v28816_v1 = vmax.f32 %v27248_v12, 0.0  ;;  %v28817_v52 = vmax.f32 %v27259_v3, 0.0  ;;  %v28818_v38 = vmax.f32 %v27256_v9, 0.0  ;;  %v28821_v39 = vmax.f32 %v27275_v23, 0.0 }
 0xfa9   :  { %v28822_v61 = vmax.f32 %v27272_v42, 0.0  ;;  %v28825_v31 = vmax.f32 %v27291_v20, 0.0  ;;  %v28826_v8 = vmax.f32 %v27288_v37, 0.0  ;;  %v21264_v29 = vmov 0  }
 0xfaa   :  { %20167 = vmatpush3.bf16.msra.mxu1 %v20164_v48  ;;  %21250 = vset.pattern.permute.xlu0 %v21264_v29 }
 0xfab   :  { %20169 = vmatprep.subr.bf16.mxu1 %v20168_v6 }
 0xfae   :  { %20171 = vmatpush3.bf16.msra.mxu1 %v20168_v6 }
 0xfaf   :  { %20173 = vmatprep.subr.bf16.mxu1 %v20172_v17 }
 0xfb2   :  { %20175 = vmatpush3.bf16.msra.mxu1 %v20172_v17 }
 0xfb3   :  { %20177 = vmatprep.subr.bf16.mxu1 %v20176_v25 }
 0xfb6   :  { %20179 = vmatpush3.bf16.msra.mxu1 %v20176_v25 }
 0xfb7   :  { %20181 = vmatprep.subr.bf16.mxu1 %v20180_v22 }
 0xfba   :  { %20183 = vmatpush3.bf16.msra.mxu1 %v20180_v22 }
 0xfbb   :  { %20185 = vmatprep.subr.bf16.mxu1 %v20184_v14 }
 0xfbe   :  { %20187 = vmatpush3.bf16.msra.mxu1 %v20184_v14 }
 0xfbf   :  { %20189 = vmatprep.subr.bf16.mxu1 %v20188_v5 }
 0xfc2   :  { %20191 = vmatpush3.bf16.msra.mxu1 %v20188_v5 }
 0xfc5   :  { %18929 = vmatmul.mubr.f32.vlgmr.msra.gmra.mrb[64].mxu1 %v13121_v63  ;;  %v28815_v63 = vmax.f32 %v27251_v50, 0.0 }
 0xfc6   :  { %18931 = vmatprep.mubr.f32.mxu1 %v13122_v55  ;;  %v28820_v55 = vmax.f32 %v27264_v41, 0.0 }
 0xfc9   :  { %18932 = vmatmul.mubr.f32.gmra.mrb[66].mxu1 %v13123_v30  ;;  %v28819_v30 = vmax.f32 %v27267_v13, 0.0 }
 0xfca   :  { %18934 = vmatprep.mubr.f32.mxu1 %v13124_v59  ;;  %v28824_v59 = vmax.f32 %v27280_v27, 0.0 }
 0xfcd   :  { %18935 = vmatmul.mubr.f32.gmra.mrb[68].mxu1 %v13125_v21  ;;  %v28823_v21 = vmax.f32 %v27283_v54, 0.0 }
 0xfce   :  { %18937 = vmatprep.mubr.f32.mxu1 %v13126_v32  ;;  %v14074_v32 = vld [vmem:[#allocation6] ss:$0 sm:$0xff] }
 0xfcf   :  { %13443 = vperm.xlu0 %21250, %v14074_v32  }
 0xfd1   :  { %18938 = vmatmul.mubr.f32.gmra.mrb[70].mxu1 %v13127_v60  ;;  %v27380_v60 = vld [vmem:[%s27448_s3] sm:$0x3] }
 0xfd2   :  { %18940 = vmatprep.mubr.f32.mxu1 %v13128_v62  ;;  %15934 = vmatprep.mubr.f32.mxu0 %v27380_v60 }
 0xfd5   :  { %18941 = vmatmul.mubr.f32.gmra.mrb[72].mxu1 %v13129_v44 }
 0xfd6   :  { %18943 = vmatprep.mubr.f32.mxu1 %v28809_v16 }
 0xfd9   :  { %18944 = vmatmul.mubr.f32.gmra.mrb[74].mxu1 %v28810_v33 }
 0xfda   :  { %18946 = vmatprep.mubr.f32.mxu1 %v28811_v57 }
 0xfdd   :  { %18947 = vmatmul.mubr.f32.gmra.mrb[76].mxu1 %v28812_v35 }
 0xfde   :  { %18949 = vmatprep.mubr.f32.mxu1 %v28813_v40 }
 0xfe1   :  { %18950 = vmatmul.mubr.f32.gmra.mrb[78].mxu1 %v28814_v18 }
 0xfe2   :  { %18952 = vmatprep.mubr.f32.mxu1 %v28815_v63 }
 0xfe5   :  { %18953 = vmatmul.mubr.f32.gmra.mrb[80].mxu1 %v28816_v1 }
 0xfe6   :  { %18955 = vmatprep.mubr.f32.mxu1 %v28817_v52 }
 0xfe9   :  { %18956 = vmatmul.mubr.f32.gmra.mrb[82].mxu1 %v28818_v38 }
 0xfea   :  { %18958 = vmatprep.mubr.f32.mxu1 %v28819_v30 }
 0xfed   :  { %18959 = vmatmul.mubr.f32.gmra.mrb[84].mxu1 %v28820_v55 }
 0xfee   :  { %18961 = vmatprep.mubr.f32.mxu1 %v28821_v39 }
 0xff1   :  { %18962 = vmatmul.mubr.f32.gmra.mrb[86].mxu1 %v28822_v61 }
 0xff2   :  { %18964 = vmatprep.mubr.f32.mxu1 %v28823_v21 }
 0xff5   :  { %18965 = vmatmul.mubr.f32.gmra.mrb[88].mxu1 %v28824_v59 }
 0xff6   :  { %18967 = vmatprep.mubr.f32.mxu1 %v28825_v31 }
 0xff9   :  { %18968 = vmatmul.mubr.f32.gmra.mrb[90].mxu1 %v28826_v8 }
 0xffa   :  { %18970 = vmatprep.mubr.f32.mxu1 %v13148_v34 }
 0xffd   :  { %18971 = vmatmul.mubr.f32.gmra.mrb[92].mxu1 %v13149_v7 }
 0xffe   :  { %18973 = vmatprep.mubr.f32.mxu1 %v13150_v28 }
0x1001   :  { %18974 = vmatmul.mubr.f32.gmra.mrb[94].mxu1 %v13151_v58 }
0x1098   :  { %v18930_v44 = vpop.f32.mrb[64].mxu1 }
0x1099   :  { %v13250_v62 = vadd.f32 %v18930_v44, %v27386_v43  ;;  %v13244_v26 = vpop.f32.mrb[65].mxu1 }
0x109a   :  { %v13245_v56 = vadd.f32 %v27386_v43, %v13244_v26 }
0x109b   :  { %v13404_v58 = vmax.f32 %v13250_v62, 0.0 }
0x109c   :  { %v13403_v48 = vmax.f32 %v13245_v56, 0.0  ;;  %v18933_v47 = vpop.f32.mrb[66].mxu1 }
0x109d   :  { %v13260_v51 = vadd.f32 %v18933_v47, %v27386_v43  ;;  %v13254_v11 = vpop.f32.mrb[67].mxu1 }
0x109e   :  { %v13255_v0 = vadd.f32 %v27386_v43, %v13254_v11  ;;  %v20194_v19 = vpack.c.bf16 %v13404_v58, %v13403_v48 }
0x109f   :  { %v13406_v36 = vmax.f32 %v13260_v51, 0.0 }
0x10a0   :  { %v13405_v12 = vmax.f32 %v13255_v0, 0.0  ;;  %v18936_v50 = vpop.f32.mrb[68].mxu1 }
0x10a1   :  { %v13270_v9 = vadd.f32 %v18936_v50, %v27386_v43  ;;  %v13264_v3 = vpop.f32.mrb[69].mxu1 }
0x10a2   :  { %v27393_v41 = vpack.c.bf16 %v13406_v36, %v13405_v12  ;;  %v13265_v13 = vadd.f32 %v27386_v43, %v13264_v3 }
0x10a3   :  { %v13408_v54 = vmax.f32 %v13270_v9, 0.0 }
0x10a4   :  { %v13407_v15 = vmax.f32 %v13265_v13, 0.0  ;;  %v18939_v42 = vpop.f32.mrb[70].mxu1 }
0x10a5   :  { %v13280_v23 = vadd.f32 %v18939_v42, %v27386_v43  ;;  %v13274_v20 = vpop.f32.mrb[71].mxu1 }
0x10a6   :  { %v27397_v45 = vpack.c.bf16 %v13408_v54, %v13407_v15  ;;  %v13275_v27 = vadd.f32 %v27386_v43, %v13274_v20 }
0x10a7   :  { %v13410_v7 = vmax.f32 %v13280_v23, 0.0 }
0x10a8   :  { %v13409_v37 = vmax.f32 %v13275_v27, 0.0  ;;  %v18942_v28 = vpop.f32.mrb[72].mxu1 }
0x10a9   :  { %v13290_v4 = vadd.f32 %v18942_v28, %v27386_v43  ;;  %v13284_v34 = vpop.f32.mrb[73].mxu1 }
0x10aa   :  { %v27401_v2 = vpack.c.bf16 %v13410_v7, %v13409_v37  ;;  %v13285_v46 = vadd.f32 %v27386_v43, %v13284_v34 }
0x10ab   :  { %v13412_v6 = vmax.f32 %v13290_v4, 0.0 }
0x10ac   :  { %v13411_v17 = vmax.f32 %v13285_v46, 0.0  ;;  %v18945_v25 = vpop.f32.mrb[74].mxu1 }
0x10ad   :  { %v13300_v24 = vadd.f32 %v18945_v25, %v27386_v43  ;;  %v13294_v22 = vpop.f32.mrb[75].mxu1 }
0x10ae   :  { %v27405_v49 = vpack.c.bf16 %v13412_v6, %v13411_v17  ;;  %v13295_v14 = vadd.f32 %v27386_v43, %v13294_v22 }
0x10af   :  { %v13414_v53 = vmax.f32 %v13300_v24, 0.0 }
0x10b0   :  { %v13413_v10 = vmax.f32 %v13295_v14, 0.0  ;;  %v18948_v5 = vpop.f32.mrb[76].mxu1 }
0x10b1   :  { %v13310_v16 = vadd.f32 %v18948_v5, %v27386_v43  ;;  %v13304_v33 = vpop.f32.mrb[77].mxu1 }
0x10b2   :  { %v27409_v57 = vpack.c.bf16 %v13414_v53, %v13413_v10  ;;  %v13305_v35 = vadd.f32 %v27386_v43, %v13304_v33 }
0x10b3   :  { %v13416_v40 = vmax.f32 %v13310_v16, 0.0 }
0x10b4   :  { %v13415_v18 = vmax.f32 %v13305_v35, 0.0  ;;  %v18951_v63 = vpop.f32.mrb[78].mxu1 }
0x10b5   :  { %v13320_v1 = vadd.f32 %v18951_v63, %v27386_v43  ;;  %v13314_v52 = vpop.f32.mrb[79].mxu1 }
0x10b6   :  { %v27413_v38 = vpack.c.bf16 %v13416_v40, %v13415_v18  ;;  %v13315_v30 = vadd.f32 %v27386_v43, %v13314_v52 }
0x10b7   :  { %v13418_v55 = vmax.f32 %v13320_v1, 0.0 }
0x10b8   :  { %v13417_v39 = vmax.f32 %v13315_v30, 0.0  ;;  %v18954_v61 = vpop.f32.mrb[80].mxu1 }
0x10b9   :  { %v13330_v21 = vadd.f32 %v18954_v61, %v27386_v43  ;;  %v13324_v59 = vpop.f32.mrb[81].mxu1 }
0x10ba   :  { %v27417_v31 = vpack.c.bf16 %v13418_v55, %v13417_v39  ;;  %v13325_v8 = vadd.f32 %v27386_v43, %v13324_v59 }
0x10bb   :  { %v13420_v32 = vmax.f32 %v13330_v21, 0.0 }
0x10bc   :  { %v13419_v29 = vmax.f32 %v13325_v8, 0.0  ;;  %v18957_v44 = vpop.f32.mrb[82].mxu1 }
0x10bd   :  { %v13340_v62 = vadd.f32 %v18957_v44, %v27386_v43  ;;  %v13334_v26 = vpop.f32.mrb[83].mxu1 }
0x10be   :  { %v13335_v56 = vadd.f32 %v27386_v43, %v13334_v26  ;;  %v20192_v58 = vpack.c.bf16 %v13420_v32, %v13419_v29 }
0x10bf   :  { %v13422_v48 = vmax.f32 %v13340_v62, 0.0 }
0x10c0   :  { %v13421_v47 = vmax.f32 %v13335_v56, 0.0  ;;  %20193 = vmatprep.subr.bf16.mxu0 %v20192_v58  ;;  %v18960_v51 = vpop.f32.mrb[84].mxu1 }
0x10c1   :  { %20195 = vmatpush3.bf16.xpose.msra.mxu0 %v20194_v19  ;;  %v13350_v11 = vadd.f32 %v18960_v51, %v27386_v43  ;;  %v13344_v0 = vpop.f32.mrb[85].mxu1 }
0x10c2   :  { %v20196_v36 = vpack.c.bf16 %v13422_v48, %v13421_v47  ;;  %v13345_v12 = vadd.f32 %v27386_v43, %v13344_v0 }
0x10c3   :  { %v13424_v50 = vmax.f32 %v13350_v11, 0.0 }
0x10c4   :  { %20197 = vmatprep.subr.bf16.mxu0 %v20196_v36  ;;  %v13423_v9 = vmax.f32 %v13345_v12, 0.0  ;;  %v18963_v3 = vpop.f32.mrb[86].mxu1 }
0x10c5   :  { %v13360_v13 = vadd.f32 %v18963_v3, %v27386_v43  ;;  %v13354_v54 = vpop.f32.mrb[87].mxu1 }
0x10c6   :  { %v20200_v15 = vpack.c.bf16 %v13424_v50, %v13423_v9  ;;  %v13355_v42 = vadd.f32 %v27386_v43, %v13354_v54 }
0x10c7   :  { %v13426_v23 = vmax.f32 %v13360_v13, 0.0 }
0x10c8   :  { %v13425_v20 = vmax.f32 %v13355_v42, 0.0  ;;  %v18966_v27 = vpop.f32.mrb[88].mxu1 }
0x10c9   :  { %20199 = vmatpush3.bf16.xpose.msra.mxu0 %v27393_v41  ;;  %v13370_v19 = vadd.f32 %v18966_v27, %v27386_v43  ;;  %v13364_v7 = vpop.f32.mrb[89].mxu1 }
0x10ca   :  { %20201 = vmatprep.subr.bf16.mxu0 %v20200_v15  ;;  %v20204_v37 = vpack.c.bf16 %v13426_v23, %v13425_v20  ;;  %v13365_v28 = vadd.f32 %v27386_v43, %v13364_v7 }
0x10cb   :  { %v13428_v4 = vmax.f32 %v13370_v19, 0.0 }
0x10cc   :  { %v13427_v34 = vmax.f32 %v13365_v28, 0.0  ;;  %v18969_v46 = vpop.f32.mrb[90].mxu1 }
0x10cd   :  { %v13380_v6 = vadd.f32 %v18969_v46, %v27386_v43  ;;  %v13374_v17 = vpop.f32.mrb[91].mxu1 }
0x10ce   :  { %v20208_v25 = vpack.c.bf16 %v13428_v4, %v13427_v34  ;;  %v13375_v24 = vadd.f32 %v27386_v43, %v13374_v17 }
0x10cf   :  { %v13430_v22 = vmax.f32 %v13380_v6, 0.0 }
0x10d0   :  { %v13429_v14 = vmax.f32 %v13375_v24, 0.0  ;;  %v18972_v53 = vpop.f32.mrb[92].mxu1 }
0x10d1   :  { %20203 = vmatpush3.bf16.xpose.msra.mxu0 %v27397_v45  ;;  %v13390_v41 = vadd.f32 %v18972_v53, %v27386_v43  ;;  %v13384_v10 = vpop.f32.mrb[93].mxu1 }
0x10d2   :  { %20205 = vmatprep.subr.bf16.mxu0 %v20204_v37  ;;  %v20212_v5 = vpack.c.bf16 %v13430_v22, %v13429_v14  ;;  %v13385_v16 = vadd.f32 %v27386_v43, %v13384_v10 }
0x10d3   :  { %v13432_v33 = vmax.f32 %v13390_v41, 0.0 }
0x10d4   :  { %v13431_v35 = vmax.f32 %v13385_v16, 0.0  ;;  %v18975_v40 = vpop.f32.mrb[94].mxu1 }
0x10d5   :  { %v13400_v18 = vadd.f32 %v18975_v40, %v27386_v43  ;;  %v13394_v63 = vpop.f32.mrb[95].mxu1 }
0x10d6   :  { %v20216_v1 = vpack.c.bf16 %v13432_v33, %v13431_v35  ;;  %v13395_v52 = vadd.f32 %v27386_v43, %v13394_v63  ;;  %v13444_v43 = vpop.permute.xlu0 %13443 }
0x10d7   :  { %v13434_v30 = vmax.f32 %v13400_v18, 0.0 }
0x10d8   :  { %v13433_v55 = vmax.f32 %v13395_v52, 0.0 }
0x10d9   :  { %20207 = vmatpush3.bf16.xpose.msra.mxu0 %v27401_v2 }
0x10da   :  { %20209 = vmatprep.subr.bf16.mxu0 %v20208_v25  ;;  %v20220_v45 = vpack.c.bf16 %v13434_v30, %v13433_v55 }
0x10e1   :  { %20211 = vmatpush3.bf16.xpose.msra.mxu0 %v27405_v49 }
0x10e2   :  { %20213 = vmatprep.subr.bf16.mxu0 %v20212_v5 }
0x10e9   :  { %20215 = vmatpush3.bf16.xpose.msra.mxu0 %v27409_v57 }
0x10ea   :  { %20217 = vmatprep.subr.bf16.mxu0 %v20216_v1 }
0x10f1   :  { %20219 = vmatpush3.bf16.xpose.msra.mxu0 %v27413_v38 }
0x10f2   :  { %20221 = vmatprep.subr.bf16.mxu0 %v20220_v45 }
0x10f9   :  { %20223 = vmatpush3.bf16.xpose.msra.mxu0 %v27417_v31 }
0x1100   :  { %15935 = vmatmul.mubr.f32.vlgmr.msra.gmra.mrb[96].mxu0 %v27380_v60 }
0x11d3   :  { %v13512_v39 = vpop.f32.mrb[96].mxu0 }
0x11d4   :  { %v13513_v61 = vadd.f32 %v13512_v39, %v13444_v43  ;;  %v13514_v21 = vpop.f32.mrb[97].mxu0 }
0x11d5   :  { %v13515_v2 = vadd.f32 %v13514_v21, %v13444_v43 }
0x11d7   :  { %v13519_v59 = vcombine.low %v13513_v61, %v13515_v2 }
0x11d9   :  { %14075 = vst.sshfl [vmem:[%s27450_s5] sm:$0x33 pattern:$0x76325410] %v13519_v59 }
0x11da   :  { %13533 = vsyncmov [#allocation5] }
0x11dd   :  { %s13534_s29 = vpop.sfrf %13533 }
0x11de   :  { %p14076_p0 = scmp.ne.s32.totalorder %s13534_s29, 0 }
0x11e0   :  { %13538 = shalt.err (%p14076_p0)  }
0x11e1   :  { %13540 = vsyncmov [#allocation5 + $0x1] }
0x11e4   :  { %s13541_s30 = vpop.sfrf %13540 }
0x11e5   :  { %p14077_p1 = scmp.ne.s32.totalorder %s13541_s30, 0 }
0x11e7   :  { %13545 = shalt.err (%p14077_p1)  }

</bundles_post_ra>
